<compile_context>
chip_gen: v5e
topology: v5e:2x2
jax: 0.10.0
libtpu: 0.0.40
codegen_flags: <defaults>
</compile_context>

<pallas_src>
import functools
import math

import jax
import jax.numpy as jnp
from jax.experimental import pallas as pl


# --------------------------- in-kernel helpers -------------------------------

def _layer_norm(x, gamma, beta):
    # LayerNorm over last dim, eps = 1e-5 (PyTorch default).
    mean = jnp.mean(x, axis=-1, keepdims=True)
    var = jnp.mean(jnp.square(x - mean), axis=-1, keepdims=True)
    return (x - mean) * jax.lax.rsqrt(var + 1e-5) * gamma + beta


def _mha(q2d, kv2d, neg_mask, *, heads, n, lq, lk, e):
    """Multi-head attention exactly as the reference forward():
    inputs are split into heads directly (the reference's V/K/Q Linear layers
    are never applied), softmax(masked_fill(QK^T, -1e20) / sqrt(head_dim)) @ V,
    heads re-merged.  `neg_mask` is the precomputed (mask == 0) boolean.
    Returns (n*lq, e); fc_out is applied by the caller."""
    dh = e // heads
    scale = jnp.float32(1.0 / math.sqrt(dh))
    q3 = q2d.reshape(n, lq, e)
    kv3 = kv2d.reshape(n, lk, e)
    head_outs = []
    for h in range(heads):                      # static unroll: tiny head count
        qh = q3[:, :, h * dh:(h + 1) * dh]      # (N, Lq, Dh)
        kh = kv3[:, :, h * dh:(h + 1) * dh]     # (N, Lk, Dh) (keys == values)
        en = jnp.einsum('bqd,bkd->bqk', qh, kh,
                        preferred_element_type=jnp.float32)   # (N, Lq, Lk)
        en = jnp.where(neg_mask[None, :, :], jnp.float32(-1e20), en) * scale
        m = jnp.max(en, axis=-1, keepdims=True)
        p = jnp.exp(en - m)
        inv = pl.reciprocal(jnp.sum(p, axis=-1, keepdims=True), approx=False)
        attn = p * inv
        head_outs.append(jnp.einsum('bqk,bkd->bqd', attn, kh,
                                    preferred_element_type=jnp.float32))
    return jnp.concatenate(head_outs, axis=-1).reshape(n * lq, e)


# --------------------------- fully fused kernel --------------------------------

def _transformer_kernel(*refs, n, ls, lt, heads, num_layers):
    """Whole Transformer forward in one kernel.  Refs arrive in the exact order
    built by `transformer_forward`; the last ref is the output."""
    it = iter(refs)
    nxt = lambda: next(it)

    src_ref, tgt_ref = nxt(), nxt()
    smask_ref, tmask_ref = nxt(), nxt()
    ws, bs = nxt()[...], nxt()[...]
    wt, bt = nxt()[...], nxt()[...]
    pos_s, pos_t = nxt()[...], nxt()[...]

    e = ws.shape[-1]

    # --- word embeddings + positional-embedding add (dropout = identity) -----
    src_x = jnp.dot(src_ref[...], ws, preferred_element_type=jnp.float32) + bs
    src_x = (src_x.reshape(n, ls, e) + pos_s[None, :, :]).reshape(n * ls, e)
    tgt_x = jnp.dot(tgt_ref[...], wt, preferred_element_type=jnp.float32) + bt
    tgt_x = (tgt_x.reshape(n, lt, e) + pos_t[None, :, :]).reshape(n * lt, e)

    # Mask predicates computed once, reused by all attention layers.
    s_neg = smask_ref[...] == 0.0
    t_neg = tmask_ref[...] == 0.0

    # --- encoder stack (statically unrolled) ----------------------------------
    for _ in range(num_layers):
        wo, bo = nxt()[...], nxt()[...]
        g1, be1 = nxt()[...], nxt()[...]
        w1, b1 = nxt()[...], nxt()[...]
        w2, b2 = nxt()[...], nxt()[...]
        g2, be2 = nxt()[...], nxt()[...]
        att = _mha(src_x, src_x, s_neg, heads=heads, n=n, lq=ls, lk=ls, e=e)
        att = jnp.dot(att, wo, preferred_element_type=jnp.float32) + bo
        h = _layer_norm(att + src_x, g1, be1)
        ff = jnp.maximum(
            jnp.dot(h, w1, preferred_element_type=jnp.float32) + b1, 0.0)
        ff = jnp.dot(ff, w2, preferred_element_type=jnp.float32) + b2
        src_x = _layer_norm(ff + h, g2, be2)

    # --- decoder stack (statically unrolled) ----------------------------------
    for _ in range(num_layers):
        wo1, bo1 = nxt()[...], nxt()[...]
        g1, be1 = nxt()[...], nxt()[...]
        wo2, bo2 = nxt()[...], nxt()[...]
        g2, be2 = nxt()[...], nxt()[...]
        w1, b1 = nxt()[...], nxt()[...]
        w2, b2 = nxt()[...], nxt()[...]
        g3, be3 = nxt()[...], nxt()[...]
        att = _mha(tgt_x, tgt_x, t_neg, heads=heads, n=n, lq=lt, lk=lt, e=e)
        att = jnp.dot(att, wo1, preferred_element_type=jnp.float32) + bo1
        q = _layer_norm(att + tgt_x, g1, be1)
        # Reference module passes the SAME (tgt) mask to cross-attention.
        catt = _mha(q, src_x, t_neg, heads=heads, n=n, lq=lt, lk=ls, e=e)
        catt = jnp.dot(catt, wo2, preferred_element_type=jnp.float32) + bo2
        q = _layer_norm(catt + q, g2, be2)
        ff = jnp.maximum(
            jnp.dot(q, w1, preferred_element_type=jnp.float32) + b1, 0.0)
        ff = jnp.dot(ff, w2, preferred_element_type=jnp.float32) + b2
        tgt_x = _layer_norm(ff + q, g3, be3)

    # --- final projection ------------------------------------------------------
    wf, bf = nxt()[...], nxt()[...]
    o_ref = nxt()
    o_ref[...] = jnp.dot(tgt_x, wf, preferred_element_type=jnp.float32) + bf


# ------------------------------- model forward --------------------------------

def transformer_forward(params, src, tgt, src_mask, tgt_mask, heads):
    n, ls, d = src.shape
    lt = tgt.shape[1]
    e = params["pos_emb"].shape[1]
    num_layers = len(params["encoder_blocks"])

    args = [
        src.reshape(n * ls, d), tgt.reshape(n * lt, d),
        src_mask, tgt_mask,
        params["src_emb"]["w"], params["src_emb"]["b"],
        params["tgt_emb"]["w"], params["tgt_emb"]["b"],
        params["pos_emb"][:ls], params["pos_emb"][:lt],
    ]
    for p in params["encoder_blocks"]:
        args += [p["attn_out"]["w"], p["attn_out"]["b"],
                 p["norm1"]["gamma"], p["norm1"]["beta"],
                 p["ff"]["w1"], p["ff"]["b1"], p["ff"]["w2"], p["ff"]["b2"],
                 p["norm2"]["gamma"], p["norm2"]["beta"]]
    for p in params["decoder_blocks"]:
        args += [p["attn_out"]["w"], p["attn_out"]["b"],
                 p["norm1"]["gamma"], p["norm1"]["beta"],
                 p["enc_attn_out"]["w"], p["enc_attn_out"]["b"],
                 p["norm2"]["gamma"], p["norm2"]["beta"],
                 p["ff"]["w1"], p["ff"]["b1"], p["ff"]["w2"], p["ff"]["b2"],
                 p["norm3"]["gamma"], p["norm3"]["beta"]]
    args += [params["fc_out"]["w"], params["fc_out"]["b"]]

    out = pl.pallas_call(
        functools.partial(_transformer_kernel, n=n, ls=ls, lt=lt,
                          heads=heads, num_layers=num_layers),
        out_shape=jax.ShapeDtypeStruct((n * lt, d), jnp.float32),
    )(*args)
    return out.reshape(n, lt, d)


# ------------------------------ parameter init --------------------------------

def _init_linear(key, in_f, out_f):
    kw, kb = jax.random.split(key)
    # Weights stored pre-transposed as (in, out) so kernels compute x @ W with
    # no in-kernel transpose.  (A PyTorch (out, in) weight would be loaded .T.)
    return {"w": jax.random.normal(kw, (in_f, out_f), jnp.float32) * 0.05,
            "b": jax.random.normal(kb, (1, out_f), jnp.float32) * 0.05}


def _init_ln(e):
    return {"gamma": jnp.ones((1, e), jnp.float32),
            "beta": jnp.zeros((1, e), jnp.float32)}


def _init_ff(key, e, expansion):
    k1, k2 = jax.random.split(key)
    l1 = _init_linear(k1, e, expansion * e)
    l2 = _init_linear(k2, expansion * e, e)
    return {"w1": l1["w"], "b1": l1["b"], "w2": l2["w"], "b2": l2["b"]}


def init_transformer(key, input_dim, embed_size, num_layers, heads,
                     forward_expansion, max_length):
    keys = jax.random.split(key, 4 + 2 * num_layers)
    params = {
        "src_emb": _init_linear(keys[0], input_dim, embed_size),
        "tgt_emb": _init_linear(keys[1], input_dim, embed_size),
        "pos_emb": jax.random.normal(keys[2], (max_length, embed_size),
                                     jnp.float32) * 0.05,
        "fc_out": _init_linear(keys[3], embed_size, input_dim),
        "encoder_blocks": [],
        "decoder_blocks": [],
    }
    # NOTE: the reference MultiHeadAttention defines values/keys/queries Linear
    # layers but never applies them in forward(); only fc_out affects the
    # output, so only fc_out params ("attn_out"/"enc_attn_out") are created.
    for i in range(num_layers):
        ke = jax.random.split(keys[4 + i], 2)
        params["encoder_blocks"].append({
            "attn_out": _init_linear(ke[0], embed_size, embed_size),
            "norm1": _init_ln(embed_size),
            "norm2": _init_ln(embed_size),
            "ff": _init_ff(ke[1], embed_size, forward_expansion),
        })
    for i in range(num_layers):
        kd = jax.random.split(keys[4 + num_layers + i], 3)
        params["decoder_blocks"].append({
            "attn_out": _init_linear(kd[0], embed_size, embed_size),
            "enc_attn_out": _init_linear(kd[1], embed_size, embed_size),
            "norm1": _init_ln(embed_size),
            "norm2": _init_ln(embed_size),
            "norm3": _init_ln(embed_size),
            "ff": _init_ff(kd[2], embed_size, forward_expansion),
        })
    return params


# ------------------------------------ main -------------------------------------

if __name__ == "__main__":
    N = 2          # batch
    L = 8          # seq len (src len == tgt len, as the reference usage requires)
    INPUT_DIM = 16
    EMBED = 32
    HEADS = 4
    LAYERS = 2
    FEXP = 2
    MAX_LEN = 64

    root = jax.random.PRNGKey(0)
    kp, ks, kt = jax.random.split(root, 3)

    params = init_transformer(kp, INPUT_DIM, EMBED, LAYERS, HEADS, FEXP, MAX_LEN)

    src = jax.random.normal(ks, (N, L, INPUT_DIM), jnp.float32)
    tgt = jax.random.normal(kt, (N, L, INPUT_DIM), jnp.float32)
    src_mask = jnp.ones((L, L), jnp.float32)                      # no masking
    tgt_mask = jnp.tril(jnp.ones((L, L), jnp.float32))            # causal

    fwd = jax.jit(functools.partial(transformer_forward, heads=HEADS))
    out = fwd(params, src, tgt, src_mask, tgt_mask)
    jax.block_until_ready(out)
    assert out.shape == (N, L, INPUT_DIM)
    print("KERNEL_OK")
</pallas_src>

<mosaic_0001>
module attributes {stable_mosaic.version = 11 : i64} {
  func.func @_transformer_kernel(%arg0: memref<16x16xf32, #tpu.memory_space<vmem>>, %arg1: memref<16x16xf32, #tpu.memory_space<vmem>>, %arg2: memref<8x8xf32, #tpu.memory_space<vmem>>, %arg3: memref<8x8xf32, #tpu.memory_space<vmem>>, %arg4: memref<16x32xf32, #tpu.memory_space<vmem>>, %arg5: memref<1x32xf32, #tpu.memory_space<vmem>>, %arg6: memref<16x32xf32, #tpu.memory_space<vmem>>, %arg7: memref<1x32xf32, #tpu.memory_space<vmem>>, %arg8: memref<8x32xf32, #tpu.memory_space<vmem>>, %arg9: memref<8x32xf32, #tpu.memory_space<vmem>>, %arg10: memref<32x32xf32, #tpu.memory_space<vmem>>, %arg11: memref<1x32xf32, #tpu.memory_space<vmem>>, %arg12: memref<1x32xf32, #tpu.memory_space<vmem>>, %arg13: memref<1x32xf32, #tpu.memory_space<vmem>>, %arg14: memref<32x64xf32, #tpu.memory_space<vmem>>, %arg15: memref<1x64xf32, #tpu.memory_space<vmem>>, %arg16: memref<64x32xf32, #tpu.memory_space<vmem>>, %arg17: memref<1x32xf32, #tpu.memory_space<vmem>>, %arg18: memref<1x32xf32, #tpu.memory_space<vmem>>, %arg19: memref<1x32xf32, #tpu.memory_space<vmem>>, %arg20: memref<32x32xf32, #tpu.memory_space<vmem>>, %arg21: memref<1x32xf32, #tpu.memory_space<vmem>>, %arg22: memref<1x32xf32, #tpu.memory_space<vmem>>, %arg23: memref<1x32xf32, #tpu.memory_space<vmem>>, %arg24: memref<32x64xf32, #tpu.memory_space<vmem>>, %arg25: memref<1x64xf32, #tpu.memory_space<vmem>>, %arg26: memref<64x32xf32, #tpu.memory_space<vmem>>, %arg27: memref<1x32xf32, #tpu.memory_space<vmem>>, %arg28: memref<1x32xf32, #tpu.memory_space<vmem>>, %arg29: memref<1x32xf32, #tpu.memory_space<vmem>>, %arg30: memref<32x32xf32, #tpu.memory_space<vmem>>, %arg31: memref<1x32xf32, #tpu.memory_space<vmem>>, %arg32: memref<1x32xf32, #tpu.memory_space<vmem>>, %arg33: memref<1x32xf32, #tpu.memory_space<vmem>>, %arg34: memref<32x32xf32, #tpu.memory_space<vmem>>, %arg35: memref<1x32xf32, #tpu.memory_space<vmem>>, %arg36: memref<1x32xf32, #tpu.memory_space<vmem>>, %arg37: memref<1x32xf32, #tpu.memory_space<vmem>>, %arg38: memref<32x64xf32, #tpu.memory_space<vmem>>, %arg39: memref<1x64xf32, #tpu.memory_space<vmem>>, %arg40: memref<64x32xf32, #tpu.memory_space<vmem>>, %arg41: memref<1x32xf32, #tpu.memory_space<vmem>>, %arg42: memref<1x32xf32, #tpu.memory_space<vmem>>, %arg43: memref<1x32xf32, #tpu.memory_space<vmem>>, %arg44: memref<32x32xf32, #tpu.memory_space<vmem>>, %arg45: memref<1x32xf32, #tpu.memory_space<vmem>>, %arg46: memref<1x32xf32, #tpu.memory_space<vmem>>, %arg47: memref<1x32xf32, #tpu.memory_space<vmem>>, %arg48: memref<32x32xf32, #tpu.memory_space<vmem>>, %arg49: memref<1x32xf32, #tpu.memory_space<vmem>>, %arg50: memref<1x32xf32, #tpu.memory_space<vmem>>, %arg51: memref<1x32xf32, #tpu.memory_space<vmem>>, %arg52: memref<32x64xf32, #tpu.memory_space<vmem>>, %arg53: memref<1x64xf32, #tpu.memory_space<vmem>>, %arg54: memref<64x32xf32, #tpu.memory_space<vmem>>, %arg55: memref<1x32xf32, #tpu.memory_space<vmem>>, %arg56: memref<1x32xf32, #tpu.memory_space<vmem>>, %arg57: memref<1x32xf32, #tpu.memory_space<vmem>>, %arg58: memref<32x16xf32, #tpu.memory_space<vmem>>, %arg59: memref<1x16xf32, #tpu.memory_space<vmem>>, %arg60: memref<16x16xf32, #tpu.memory_space<vmem>>) attributes {dimension_semantics = [], scalar_prefetch = 0 : i64, scratch_operands = 0 : i64, tpu.core_type = #tpu.core_type<tc>} {
    %c0 = arith.constant 0 : index
    %c0_0 = arith.constant 0 : index
    %0 = vector.load %arg4[%c0, %c0_0] : memref<16x32xf32, #tpu.memory_space<vmem>>, vector<16x32xf32>
    %c0_1 = arith.constant 0 : index
    %c0_2 = arith.constant 0 : index
    %1 = vector.load %arg5[%c0_1, %c0_2] : memref<1x32xf32, #tpu.memory_space<vmem>>, vector<1x32xf32>
    %c0_3 = arith.constant 0 : index
    %c0_4 = arith.constant 0 : index
    %2 = vector.load %arg6[%c0_3, %c0_4] : memref<16x32xf32, #tpu.memory_space<vmem>>, vector<16x32xf32>
    %c0_5 = arith.constant 0 : index
    %c0_6 = arith.constant 0 : index
    %3 = vector.load %arg7[%c0_5, %c0_6] : memref<1x32xf32, #tpu.memory_space<vmem>>, vector<1x32xf32>
    %c0_7 = arith.constant 0 : index
    %c0_8 = arith.constant 0 : index
    %4 = vector.load %arg8[%c0_7, %c0_8] : memref<8x32xf32, #tpu.memory_space<vmem>>, vector<8x32xf32>
    %c0_9 = arith.constant 0 : index
    %c0_10 = arith.constant 0 : index
    %5 = vector.load %arg9[%c0_9, %c0_10] : memref<8x32xf32, #tpu.memory_space<vmem>>, vector<8x32xf32>
    %c0_11 = arith.constant 0 : index
    %c0_12 = arith.constant 0 : index
    %6 = vector.load %arg0[%c0_11, %c0_12] : memref<16x16xf32, #tpu.memory_space<vmem>>, vector<16x16xf32>
    %cst = arith.constant dense<0.000000e+00> : vector<16x32xf32>
    %7 = tpu.matmul %6, %0, %cst {dimension_numbers = #tpu.dot_dimension_numbers<[1], [0], [0], [1], [0, 0, 1, 1], [], []>} : vector<16x16xf32>, vector<16x32xf32>, vector<16x32xf32> -> vector<16x32xf32>
    %8 = vector.broadcast %1 : vector<1x32xf32> to vector<16x32xf32>
    %9 = arith.addf %7, %8 : vector<16x32xf32>
    %10 = vector.shape_cast %9 : vector<16x32xf32> to vector<2x8x32xf32>
    %11 = vector.shape_cast %4 : vector<8x32xf32> to vector<1x8x32xf32>
    %12 = vector.broadcast %11 : vector<1x8x32xf32> to vector<2x8x32xf32>
    %13 = arith.addf %10, %12 : vector<2x8x32xf32>
    %14 = vector.shape_cast %13 : vector<2x8x32xf32> to vector<16x32xf32>
    %c0_13 = arith.constant 0 : index
    %c0_14 = arith.constant 0 : index
    %15 = vector.load %arg1[%c0_13, %c0_14] : memref<16x16xf32, #tpu.memory_space<vmem>>, vector<16x16xf32>
    %cst_15 = arith.constant dense<0.000000e+00> : vector<16x32xf32>
    %16 = tpu.matmul %15, %2, %cst_15 {dimension_numbers = #tpu.dot_dimension_numbers<[1], [0], [0], [1], [0, 0, 1, 1], [], []>} : vector<16x16xf32>, vector<16x32xf32>, vector<16x32xf32> -> vector<16x32xf32>
    %17 = vector.broadcast %3 : vector<1x32xf32> to vector<16x32xf32>
    %18 = arith.addf %16, %17 : vector<16x32xf32>
    %19 = vector.shape_cast %18 : vector<16x32xf32> to vector<2x8x32xf32>
    %20 = vector.shape_cast %5 : vector<8x32xf32> to vector<1x8x32xf32>
    %21 = vector.broadcast %20 : vector<1x8x32xf32> to vector<2x8x32xf32>
    %22 = arith.addf %19, %21 : vector<2x8x32xf32>
    %23 = vector.shape_cast %22 : vector<2x8x32xf32> to vector<16x32xf32>
    %c0_16 = arith.constant 0 : index
    %c0_17 = arith.constant 0 : index
    %24 = vector.load %arg2[%c0_16, %c0_17] : memref<8x8xf32, #tpu.memory_space<vmem>>, vector<8x8xf32>
    %cst_18 = arith.constant 0.000000e+00 : f32
    %25 = vector.broadcast %cst_18 : f32 to vector<8x8xf32>
    %26 = arith.cmpf oeq, %24, %25 : vector<8x8xf32>
    %c0_19 = arith.constant 0 : index
    %c0_20 = arith.constant 0 : index
    %27 = vector.load %arg3[%c0_19, %c0_20] : memref<8x8xf32, #tpu.memory_space<vmem>>, vector<8x8xf32>
    %cst_21 = arith.constant 0.000000e+00 : f32
    %28 = vector.broadcast %cst_21 : f32 to vector<8x8xf32>
    %29 = arith.cmpf oeq, %27, %28 : vector<8x8xf32>
    %c0_22 = arith.constant 0 : index
    %c0_23 = arith.constant 0 : index
    %30 = vector.load %arg10[%c0_22, %c0_23] : memref<32x32xf32, #tpu.memory_space<vmem>>, vector<32x32xf32>
    %c0_24 = arith.constant 0 : index
    %c0_25 = arith.constant 0 : index
    %31 = vector.load %arg11[%c0_24, %c0_25] : memref<1x32xf32, #tpu.memory_space<vmem>>, vector<1x32xf32>
    %c0_26 = arith.constant 0 : index
    %c0_27 = arith.constant 0 : index
    %32 = vector.load %arg12[%c0_26, %c0_27] : memref<1x32xf32, #tpu.memory_space<vmem>>, vector<1x32xf32>
    %c0_28 = arith.constant 0 : index
    %c0_29 = arith.constant 0 : index
    %33 = vector.load %arg13[%c0_28, %c0_29] : memref<1x32xf32, #tpu.memory_space<vmem>>, vector<1x32xf32>
    %c0_30 = arith.constant 0 : index
    %c0_31 = arith.constant 0 : index
    %34 = vector.load %arg14[%c0_30, %c0_31] : memref<32x64xf32, #tpu.memory_space<vmem>>, vector<32x64xf32>
    %c0_32 = arith.constant 0 : index
    %c0_33 = arith.constant 0 : index
    %35 = vector.load %arg15[%c0_32, %c0_33] : memref<1x64xf32, #tpu.memory_space<vmem>>, vector<1x64xf32>
    %c0_34 = arith.constant 0 : index
    %c0_35 = arith.constant 0 : index
    %36 = vector.load %arg16[%c0_34, %c0_35] : memref<64x32xf32, #tpu.memory_space<vmem>>, vector<64x32xf32>
    %c0_36 = arith.constant 0 : index
    %c0_37 = arith.constant 0 : index
    %37 = vector.load %arg17[%c0_36, %c0_37] : memref<1x32xf32, #tpu.memory_space<vmem>>, vector<1x32xf32>
    %c0_38 = arith.constant 0 : index
    %c0_39 = arith.constant 0 : index
    %38 = vector.load %arg18[%c0_38, %c0_39] : memref<1x32xf32, #tpu.memory_space<vmem>>, vector<1x32xf32>
    %c0_40 = arith.constant 0 : index
    %c0_41 = arith.constant 0 : index
    %39 = vector.load %arg19[%c0_40, %c0_41] : memref<1x32xf32, #tpu.memory_space<vmem>>, vector<1x32xf32>
    %40 = vector.shape_cast %14 : vector<16x32xf32> to vector<2x8x32xf32>
    %41 = vector.shape_cast %14 : vector<16x32xf32> to vector<2x8x32xf32>
    %42 = vector.extract_strided_slice %40 {offsets = [0, 0, 0], sizes = [2, 8, 8], strides = [1, 1, 1]} : vector<2x8x32xf32> to vector<2x8x8xf32>
    %43 = vector.extract_strided_slice %41 {offsets = [0, 0, 0], sizes = [2, 8, 8], strides = [1, 1, 1]} : vector<2x8x32xf32> to vector<2x8x8xf32>
    "tpu.trace_start"() <{level = 10 : i32, message = "bqd,bkd->bqk"}> : () -> ()
    %cst_42 = arith.constant dense<0.000000e+00> : vector<2x8x8xf32>
    %44 = tpu.matmul %42, %43, %cst_42 {dimension_numbers = #tpu.dot_dimension_numbers<[2], [2], [1], [1], [0, 0, 0, 1, 1, 1], [0], [0]>} : vector<2x8x8xf32>, vector<2x8x8xf32>, vector<2x8x8xf32> -> vector<2x8x8xf32>
    "tpu.trace_stop"() : () -> ()
    %45 = vector.shape_cast %26 : vector<8x8xi1> to vector<1x8x8xi1>
    %cst_43 = arith.constant -1.000000e+20 : f32
    %46 = vector.shape_cast %45 : vector<1x8x8xi1> to vector<1x8x8xi1>
    %47 = vector.broadcast %46 : vector<1x8x8xi1> to vector<2x8x8xi1>
    %48 = vector.broadcast %cst_43 : f32 to vector<2x8x8xf32>
    %49 = arith.select %47, %48, %44 : vector<2x8x8xi1>, vector<2x8x8xf32>
    %cst_44 = arith.constant 0.353553385 : f32
    %50 = vector.broadcast %cst_44 : f32 to vector<2x8x8xf32>
    %51 = arith.mulf %49, %50 : vector<2x8x8xf32>
    %cst_45 = arith.constant dense<0xFF800000> : vector<2x8xf32>
    %52 = vector.multi_reduction <maximumf>, %51, %cst_45 [2] : vector<2x8x8xf32> to vector<2x8xf32>
    %53 = vector.shape_cast %52 : vector<2x8xf32> to vector<2x8x1xf32>
    %54 = vector.broadcast %53 : vector<2x8x1xf32> to vector<2x8x8xf32>
    %55 = arith.subf %51, %54 : vector<2x8x8xf32>
    %56 = math.exp %55 : vector<2x8x8xf32>
    %cst_46 = arith.constant dense<0.000000e+00> : vector<2x8xf32>
    %57 = vector.multi_reduction <add>, %56, %cst_46 [2] : vector<2x8x8xf32> to vector<2x8xf32>
    %58 = vector.shape_cast %57 : vector<2x8xf32> to vector<2x8x1xf32>
    %59 = tpu.reciprocal %58 : vector<2x8x1xf32> -> vector<2x8x1xf32>
    %60 = vector.broadcast %59 : vector<2x8x1xf32> to vector<2x8x8xf32>
    %61 = arith.mulf %56, %60 : vector<2x8x8xf32>
    "tpu.trace_start"() <{level = 10 : i32, message = "bqk,bkd->bqd"}> : () -> ()
    %cst_47 = arith.constant dense<0.000000e+00> : vector<2x8x8xf32>
    %62 = tpu.matmul %61, %43, %cst_47 {dimension_numbers = #tpu.dot_dimension_numbers<[2], [1], [1], [2], [0, 0, 0, 1, 1, 2], [0], [0]>} : vector<2x8x8xf32>, vector<2x8x8xf32>, vector<2x8x8xf32> -> vector<2x8x8xf32>
    "tpu.trace_stop"() : () -> ()
    %63 = vector.extract_strided_slice %40 {offsets = [0, 0, 8], sizes = [2, 8, 8], strides = [1, 1, 1]} : vector<2x8x32xf32> to vector<2x8x8xf32>
    %64 = vector.extract_strided_slice %41 {offsets = [0, 0, 8], sizes = [2, 8, 8], strides = [1, 1, 1]} : vector<2x8x32xf32> to vector<2x8x8xf32>
    "tpu.trace_start"() <{level = 10 : i32, message = "bqd,bkd->bqk"}> : () -> ()
    %cst_48 = arith.constant dense<0.000000e+00> : vector<2x8x8xf32>
    %65 = tpu.matmul %63, %64, %cst_48 {dimension_numbers = #tpu.dot_dimension_numbers<[2], [2], [1], [1], [0, 0, 0, 1, 1, 1], [0], [0]>} : vector<2x8x8xf32>, vector<2x8x8xf32>, vector<2x8x8xf32> -> vector<2x8x8xf32>
    "tpu.trace_stop"() : () -> ()
    %66 = vector.shape_cast %26 : vector<8x8xi1> to vector<1x8x8xi1>
    %cst_49 = arith.constant -1.000000e+20 : f32
    %67 = vector.shape_cast %66 : vector<1x8x8xi1> to vector<1x8x8xi1>
    %68 = vector.broadcast %67 : vector<1x8x8xi1> to vector<2x8x8xi1>
    %69 = vector.broadcast %cst_49 : f32 to vector<2x8x8xf32>
    %70 = arith.select %68, %69, %65 : vector<2x8x8xi1>, vector<2x8x8xf32>
    %cst_50 = arith.constant 0.353553385 : f32
    %71 = vector.broadcast %cst_50 : f32 to vector<2x8x8xf32>
    %72 = arith.mulf %70, %71 : vector<2x8x8xf32>
    %cst_51 = arith.constant dense<0xFF800000> : vector<2x8xf32>
    %73 = vector.multi_reduction <maximumf>, %72, %cst_51 [2] : vector<2x8x8xf32> to vector<2x8xf32>
    %74 = vector.shape_cast %73 : vector<2x8xf32> to vector<2x8x1xf32>
    %75 = vector.broadcast %74 : vector<2x8x1xf32> to vector<2x8x8xf32>
    %76 = arith.subf %72, %75 : vector<2x8x8xf32>
    %77 = math.exp %76 : vector<2x8x8xf32>
    %cst_52 = arith.constant dense<0.000000e+00> : vector<2x8xf32>
    %78 = vector.multi_reduction <add>, %77, %cst_52 [2] : vector<2x8x8xf32> to vector<2x8xf32>
    %79 = vector.shape_cast %78 : vector<2x8xf32> to vector<2x8x1xf32>
    %80 = tpu.reciprocal %79 : vector<2x8x1xf32> -> vector<2x8x1xf32>
    %81 = vector.broadcast %80 : vector<2x8x1xf32> to vector<2x8x8xf32>
    %82 = arith.mulf %77, %81 : vector<2x8x8xf32>
    "tpu.trace_start"() <{level = 10 : i32, message = "bqk,bkd->bqd"}> : () -> ()
    %cst_53 = arith.constant dense<0.000000e+00> : vector<2x8x8xf32>
    %83 = tpu.matmul %82, %64, %cst_53 {dimension_numbers = #tpu.dot_dimension_numbers<[2], [1], [1], [2], [0, 0, 0, 1, 1, 2], [0], [0]>} : vector<2x8x8xf32>, vector<2x8x8xf32>, vector<2x8x8xf32> -> vector<2x8x8xf32>
    "tpu.trace_stop"() : () -> ()
    %84 = vector.extract_strided_slice %40 {offsets = [0, 0, 16], sizes = [2, 8, 8], strides = [1, 1, 1]} : vector<2x8x32xf32> to vector<2x8x8xf32>
    %85 = vector.extract_strided_slice %41 {offsets = [0, 0, 16], sizes = [2, 8, 8], strides = [1, 1, 1]} : vector<2x8x32xf32> to vector<2x8x8xf32>
    "tpu.trace_start"() <{level = 10 : i32, message = "bqd,bkd->bqk"}> : () -> ()
    %cst_54 = arith.constant dense<0.000000e+00> : vector<2x8x8xf32>
    %86 = tpu.matmul %84, %85, %cst_54 {dimension_numbers = #tpu.dot_dimension_numbers<[2], [2], [1], [1], [0, 0, 0, 1, 1, 1], [0], [0]>} : vector<2x8x8xf32>, vector<2x8x8xf32>, vector<2x8x8xf32> -> vector<2x8x8xf32>
    "tpu.trace_stop"() : () -> ()
    %87 = vector.shape_cast %26 : vector<8x8xi1> to vector<1x8x8xi1>
    %cst_55 = arith.constant -1.000000e+20 : f32
    %88 = vector.shape_cast %87 : vector<1x8x8xi1> to vector<1x8x8xi1>
    %89 = vector.broadcast %88 : vector<1x8x8xi1> to vector<2x8x8xi1>
    %90 = vector.broadcast %cst_55 : f32 to vector<2x8x8xf32>
    %91 = arith.select %89, %90, %86 : vector<2x8x8xi1>, vector<2x8x8xf32>
    %cst_56 = arith.constant 0.353553385 : f32
    %92 = vector.broadcast %cst_56 : f32 to vector<2x8x8xf32>
    %93 = arith.mulf %91, %92 : vector<2x8x8xf32>
    %cst_57 = arith.constant dense<0xFF800000> : vector<2x8xf32>
    %94 = vector.multi_reduction <maximumf>, %93, %cst_57 [2] : vector<2x8x8xf32> to vector<2x8xf32>
    %95 = vector.shape_cast %94 : vector<2x8xf32> to vector<2x8x1xf32>
    %96 = vector.broadcast %95 : vector<2x8x1xf32> to vector<2x8x8xf32>
    %97 = arith.subf %93, %96 : vector<2x8x8xf32>
    %98 = math.exp %97 : vector<2x8x8xf32>
    %cst_58 = arith.constant dense<0.000000e+00> : vector<2x8xf32>
    %99 = vector.multi_reduction <add>, %98, %cst_58 [2] : vector<2x8x8xf32> to vector<2x8xf32>
    %100 = vector.shape_cast %99 : vector<2x8xf32> to vector<2x8x1xf32>
    %101 = tpu.reciprocal %100 : vector<2x8x1xf32> -> vector<2x8x1xf32>
    %102 = vector.broadcast %101 : vector<2x8x1xf32> to vector<2x8x8xf32>
    %103 = arith.mulf %98, %102 : vector<2x8x8xf32>
    "tpu.trace_start"() <{level = 10 : i32, message = "bqk,bkd->bqd"}> : () -> ()
    %cst_59 = arith.constant dense<0.000000e+00> : vector<2x8x8xf32>
    %104 = tpu.matmul %103, %85, %cst_59 {dimension_numbers = #tpu.dot_dimension_numbers<[2], [1], [1], [2], [0, 0, 0, 1, 1, 2], [0], [0]>} : vector<2x8x8xf32>, vector<2x8x8xf32>, vector<2x8x8xf32> -> vector<2x8x8xf32>
    "tpu.trace_stop"() : () -> ()
    %105 = vector.extract_strided_slice %40 {offsets = [0, 0, 24], sizes = [2, 8, 8], strides = [1, 1, 1]} : vector<2x8x32xf32> to vector<2x8x8xf32>
    %106 = vector.extract_strided_slice %41 {offsets = [0, 0, 24], sizes = [2, 8, 8], strides = [1, 1, 1]} : vector<2x8x32xf32> to vector<2x8x8xf32>
    "tpu.trace_start"() <{level = 10 : i32, message = "bqd,bkd->bqk"}> : () -> ()
    %cst_60 = arith.constant dense<0.000000e+00> : vector<2x8x8xf32>
    %107 = tpu.matmul %105, %106, %cst_60 {dimension_numbers = #tpu.dot_dimension_numbers<[2], [2], [1], [1], [0, 0, 0, 1, 1, 1], [0], [0]>} : vector<2x8x8xf32>, vector<2x8x8xf32>, vector<2x8x8xf32> -> vector<2x8x8xf32>
    "tpu.trace_stop"() : () -> ()
    %108 = vector.shape_cast %26 : vector<8x8xi1> to vector<1x8x8xi1>
    %cst_61 = arith.constant -1.000000e+20 : f32
    %109 = vector.shape_cast %108 : vector<1x8x8xi1> to vector<1x8x8xi1>
    %110 = vector.broadcast %109 : vector<1x8x8xi1> to vector<2x8x8xi1>
    %111 = vector.broadcast %cst_61 : f32 to vector<2x8x8xf32>
    %112 = arith.select %110, %111, %107 : vector<2x8x8xi1>, vector<2x8x8xf32>
    %cst_62 = arith.constant 0.353553385 : f32
    %113 = vector.broadcast %cst_62 : f32 to vector<2x8x8xf32>
    %114 = arith.mulf %112, %113 : vector<2x8x8xf32>
    %cst_63 = arith.constant dense<0xFF800000> : vector<2x8xf32>
    %115 = vector.multi_reduction <maximumf>, %114, %cst_63 [2] : vector<2x8x8xf32> to vector<2x8xf32>
    %116 = vector.shape_cast %115 : vector<2x8xf32> to vector<2x8x1xf32>
    %117 = vector.broadcast %116 : vector<2x8x1xf32> to vector<2x8x8xf32>
    %118 = arith.subf %114, %117 : vector<2x8x8xf32>
    %119 = math.exp %118 : vector<2x8x8xf32>
    %cst_64 = arith.constant dense<0.000000e+00> : vector<2x8xf32>
    %120 = vector.multi_reduction <add>, %119, %cst_64 [2] : vector<2x8x8xf32> to vector<2x8xf32>
    %121 = vector.shape_cast %120 : vector<2x8xf32> to vector<2x8x1xf32>
    %122 = tpu.reciprocal %121 : vector<2x8x1xf32> -> vector<2x8x1xf32>
    %123 = vector.broadcast %122 : vector<2x8x1xf32> to vector<2x8x8xf32>
    %124 = arith.mulf %119, %123 : vector<2x8x8xf32>
    "tpu.trace_start"() <{level = 10 : i32, message = "bqk,bkd->bqd"}> : () -> ()
    %cst_65 = arith.constant dense<0.000000e+00> : vector<2x8x8xf32>
    %125 = tpu.matmul %124, %106, %cst_65 {dimension_numbers = #tpu.dot_dimension_numbers<[2], [1], [1], [2], [0, 0, 0, 1, 1, 2], [0], [0]>} : vector<2x8x8xf32>, vector<2x8x8xf32>, vector<2x8x8xf32> -> vector<2x8x8xf32>
    "tpu.trace_stop"() : () -> ()
    %126 = tpu.concatenate %62, %83, %104, %125 in 2 : vector<2x8x8xf32>, vector<2x8x8xf32>, vector<2x8x8xf32>, vector<2x8x8xf32> -> vector<2x8x32xf32>
    %127 = vector.shape_cast %126 : vector<2x8x32xf32> to vector<16x32xf32>
    %cst_66 = arith.constant dense<0.000000e+00> : vector<16x32xf32>
    %128 = tpu.matmul %127, %30, %cst_66 {dimension_numbers = #tpu.dot_dimension_numbers<[1], [0], [0], [1], [0, 0, 1, 1], [], []>} : vector<16x32xf32>, vector<32x32xf32>, vector<16x32xf32> -> vector<16x32xf32>
    %129 = vector.broadcast %31 : vector<1x32xf32> to vector<16x32xf32>
    %130 = arith.addf %128, %129 : vector<16x32xf32>
    %131 = arith.addf %130, %14 : vector<16x32xf32>
    %cst_67 = arith.constant dense<0.000000e+00> : vector<16xf32>
    %132 = vector.multi_reduction <add>, %131, %cst_67 [1] : vector<16x32xf32> to vector<16xf32>
    %133 = vector.shape_cast %132 : vector<16xf32> to vector<16x1xf32>
    %cst_68 = arith.constant 3.200000e+01 : f32
    %134 = vector.broadcast %cst_68 : f32 to vector<16x1xf32>
    %135 = arith.divf %133, %134 : vector<16x1xf32>
    %136 = vector.broadcast %135 : vector<16x1xf32> to vector<16x32xf32>
    %137 = arith.subf %131, %136 : vector<16x32xf32>
    %138 = arith.mulf %137, %137 : vector<16x32xf32>
    %cst_69 = arith.constant dense<0.000000e+00> : vector<16xf32>
    %139 = vector.multi_reduction <add>, %138, %cst_69 [1] : vector<16x32xf32> to vector<16xf32>
    %140 = vector.shape_cast %139 : vector<16xf32> to vector<16x1xf32>
    %cst_70 = arith.constant 3.200000e+01 : f32
    %141 = vector.broadcast %cst_70 : f32 to vector<16x1xf32>
    %142 = arith.divf %140, %141 : vector<16x1xf32>
    %143 = vector.broadcast %135 : vector<16x1xf32> to vector<16x32xf32>
    %144 = arith.subf %131, %143 : vector<16x32xf32>
    %cst_71 = arith.constant 9.99999974E-6 : f32
    %145 = vector.broadcast %cst_71 : f32 to vector<16x1xf32>
    %146 = arith.addf %142, %145 : vector<16x1xf32>
    %147 = math.rsqrt %146 : vector<16x1xf32>
    %148 = vector.broadcast %147 : vector<16x1xf32> to vector<16x32xf32>
    %149 = arith.mulf %144, %148 : vector<16x32xf32>
    %150 = vector.broadcast %32 : vector<1x32xf32> to vector<16x32xf32>
    %151 = arith.mulf %149, %150 : vector<16x32xf32>
    %152 = vector.broadcast %33 : vector<1x32xf32> to vector<16x32xf32>
    %153 = arith.addf %151, %152 : vector<16x32xf32>
    %cst_72 = arith.constant dense<0.000000e+00> : vector<16x64xf32>
    %154 = tpu.matmul %153, %34, %cst_72 {dimension_numbers = #tpu.dot_dimension_numbers<[1], [0], [0], [1], [0, 0, 1, 1], [], []>} : vector<16x32xf32>, vector<32x64xf32>, vector<16x64xf32> -> vector<16x64xf32>
    %155 = vector.broadcast %35 : vector<1x64xf32> to vector<16x64xf32>
    %156 = arith.addf %154, %155 : vector<16x64xf32>
    %cst_73 = arith.constant 0.000000e+00 : f32
    %157 = vector.broadcast %cst_73 : f32 to vector<16x64xf32>
    %158 = arith.maximumf %156, %157 : vector<16x64xf32>
    %cst_74 = arith.constant dense<0.000000e+00> : vector<16x32xf32>
    %159 = tpu.matmul %158, %36, %cst_74 {dimension_numbers = #tpu.dot_dimension_numbers<[1], [0], [0], [1], [0, 0, 1, 1], [], []>} : vector<16x64xf32>, vector<64x32xf32>, vector<16x32xf32> -> vector<16x32xf32>
    %160 = vector.broadcast %37 : vector<1x32xf32> to vector<16x32xf32>
    %161 = arith.addf %159, %160 : vector<16x32xf32>
    %162 = arith.addf %161, %153 : vector<16x32xf32>
    %cst_75 = arith.constant dense<0.000000e+00> : vector<16xf32>
    %163 = vector.multi_reduction <add>, %162, %cst_75 [1] : vector<16x32xf32> to vector<16xf32>
    %164 = vector.shape_cast %163 : vector<16xf32> to vector<16x1xf32>
    %cst_76 = arith.constant 3.200000e+01 : f32
    %165 = vector.broadcast %cst_76 : f32 to vector<16x1xf32>
    %166 = arith.divf %164, %165 : vector<16x1xf32>
    %167 = vector.broadcast %166 : vector<16x1xf32> to vector<16x32xf32>
    %168 = arith.subf %162, %167 : vector<16x32xf32>
    %169 = arith.mulf %168, %168 : vector<16x32xf32>
    %cst_77 = arith.constant dense<0.000000e+00> : vector<16xf32>
    %170 = vector.multi_reduction <add>, %169, %cst_77 [1] : vector<16x32xf32> to vector<16xf32>
    %171 = vector.shape_cast %170 : vector<16xf32> to vector<16x1xf32>
    %cst_78 = arith.constant 3.200000e+01 : f32
    %172 = vector.broadcast %cst_78 : f32 to vector<16x1xf32>
    %173 = arith.divf %171, %172 : vector<16x1xf32>
    %174 = vector.broadcast %166 : vector<16x1xf32> to vector<16x32xf32>
    %175 = arith.subf %162, %174 : vector<16x32xf32>
    %cst_79 = arith.constant 9.99999974E-6 : f32
    %176 = vector.broadcast %cst_79 : f32 to vector<16x1xf32>
    %177 = arith.addf %173, %176 : vector<16x1xf32>
    %178 = math.rsqrt %177 : vector<16x1xf32>
    %179 = vector.broadcast %178 : vector<16x1xf32> to vector<16x32xf32>
    %180 = arith.mulf %175, %179 : vector<16x32xf32>
    %181 = vector.broadcast %38 : vector<1x32xf32> to vector<16x32xf32>
    %182 = arith.mulf %180, %181 : vector<16x32xf32>
    %183 = vector.broadcast %39 : vector<1x32xf32> to vector<16x32xf32>
    %184 = arith.addf %182, %183 : vector<16x32xf32>
    %c0_80 = arith.constant 0 : index
    %c0_81 = arith.constant 0 : index
    %185 = vector.load %arg20[%c0_80, %c0_81] : memref<32x32xf32, #tpu.memory_space<vmem>>, vector<32x32xf32>
    %c0_82 = arith.constant 0 : index
    %c0_83 = arith.constant 0 : index
    %186 = vector.load %arg21[%c0_82, %c0_83] : memref<1x32xf32, #tpu.memory_space<vmem>>, vector<1x32xf32>
    %c0_84 = arith.constant 0 : index
    %c0_85 = arith.constant 0 : index
    %187 = vector.load %arg22[%c0_84, %c0_85] : memref<1x32xf32, #tpu.memory_space<vmem>>, vector<1x32xf32>
    %c0_86 = arith.constant 0 : index
    %c0_87 = arith.constant 0 : index
    %188 = vector.load %arg23[%c0_86, %c0_87] : memref<1x32xf32, #tpu.memory_space<vmem>>, vector<1x32xf32>
    %c0_88 = arith.constant 0 : index
    %c0_89 = arith.constant 0 : index
    %189 = vector.load %arg24[%c0_88, %c0_89] : memref<32x64xf32, #tpu.memory_space<vmem>>, vector<32x64xf32>
    %c0_90 = arith.constant 0 : index
    %c0_91 = arith.constant 0 : index
    %190 = vector.load %arg25[%c0_90, %c0_91] : memref<1x64xf32, #tpu.memory_space<vmem>>, vector<1x64xf32>
    %c0_92 = arith.constant 0 : index
    %c0_93 = arith.constant 0 : index
    %191 = vector.load %arg26[%c0_92, %c0_93] : memref<64x32xf32, #tpu.memory_space<vmem>>, vector<64x32xf32>
    %c0_94 = arith.constant 0 : index
    %c0_95 = arith.constant 0 : index
    %192 = vector.load %arg27[%c0_94, %c0_95] : memref<1x32xf32, #tpu.memory_space<vmem>>, vector<1x32xf32>
    %c0_96 = arith.constant 0 : index
    %c0_97 = arith.constant 0 : index
    %193 = vector.load %arg28[%c0_96, %c0_97] : memref<1x32xf32, #tpu.memory_space<vmem>>, vector<1x32xf32>
    %c0_98 = arith.constant 0 : index
    %c0_99 = arith.constant 0 : index
    %194 = vector.load %arg29[%c0_98, %c0_99] : memref<1x32xf32, #tpu.memory_space<vmem>>, vector<1x32xf32>
    %195 = vector.shape_cast %184 : vector<16x32xf32> to vector<2x8x32xf32>
    %196 = vector.shape_cast %184 : vector<16x32xf32> to vector<2x8x32xf32>
    %197 = vector.extract_strided_slice %195 {offsets = [0, 0, 0], sizes = [2, 8, 8], strides = [1, 1, 1]} : vector<2x8x32xf32> to vector<2x8x8xf32>
    %198 = vector.extract_strided_slice %196 {offsets = [0, 0, 0], sizes = [2, 8, 8], strides = [1, 1, 1]} : vector<2x8x32xf32> to vector<2x8x8xf32>
    "tpu.trace_start"() <{level = 10 : i32, message = "bqd,bkd->bqk"}> : () -> ()
    %cst_100 = arith.constant dense<0.000000e+00> : vector<2x8x8xf32>
    %199 = tpu.matmul %197, %198, %cst_100 {dimension_numbers = #tpu.dot_dimension_numbers<[2], [2], [1], [1], [0, 0, 0, 1, 1, 1], [0], [0]>} : vector<2x8x8xf32>, vector<2x8x8xf32>, vector<2x8x8xf32> -> vector<2x8x8xf32>
    "tpu.trace_stop"() : () -> ()
    %200 = vector.shape_cast %26 : vector<8x8xi1> to vector<1x8x8xi1>
    %cst_101 = arith.constant -1.000000e+20 : f32
    %201 = vector.shape_cast %200 : vector<1x8x8xi1> to vector<1x8x8xi1>
    %202 = vector.broadcast %201 : vector<1x8x8xi1> to vector<2x8x8xi1>
    %203 = vector.broadcast %cst_101 : f32 to vector<2x8x8xf32>
    %204 = arith.select %202, %203, %199 : vector<2x8x8xi1>, vector<2x8x8xf32>
    %cst_102 = arith.constant 0.353553385 : f32
    %205 = vector.broadcast %cst_102 : f32 to vector<2x8x8xf32>
    %206 = arith.mulf %204, %205 : vector<2x8x8xf32>
    %cst_103 = arith.constant dense<0xFF800000> : vector<2x8xf32>
    %207 = vector.multi_reduction <maximumf>, %206, %cst_103 [2] : vector<2x8x8xf32> to vector<2x8xf32>
    %208 = vector.shape_cast %207 : vector<2x8xf32> to vector<2x8x1xf32>
    %209 = vector.broadcast %208 : vector<2x8x1xf32> to vector<2x8x8xf32>
    %210 = arith.subf %206, %209 : vector<2x8x8xf32>
    %211 = math.exp %210 : vector<2x8x8xf32>
    %cst_104 = arith.constant dense<0.000000e+00> : vector<2x8xf32>
    %212 = vector.multi_reduction <add>, %211, %cst_104 [2] : vector<2x8x8xf32> to vector<2x8xf32>
    %213 = vector.shape_cast %212 : vector<2x8xf32> to vector<2x8x1xf32>
    %214 = tpu.reciprocal %213 : vector<2x8x1xf32> -> vector<2x8x1xf32>
    %215 = vector.broadcast %214 : vector<2x8x1xf32> to vector<2x8x8xf32>
    %216 = arith.mulf %211, %215 : vector<2x8x8xf32>
    "tpu.trace_start"() <{level = 10 : i32, message = "bqk,bkd->bqd"}> : () -> ()
    %cst_105 = arith.constant dense<0.000000e+00> : vector<2x8x8xf32>
    %217 = tpu.matmul %216, %198, %cst_105 {dimension_numbers = #tpu.dot_dimension_numbers<[2], [1], [1], [2], [0, 0, 0, 1, 1, 2], [0], [0]>} : vector<2x8x8xf32>, vector<2x8x8xf32>, vector<2x8x8xf32> -> vector<2x8x8xf32>
    "tpu.trace_stop"() : () -> ()
    %218 = vector.extract_strided_slice %195 {offsets = [0, 0, 8], sizes = [2, 8, 8], strides = [1, 1, 1]} : vector<2x8x32xf32> to vector<2x8x8xf32>
    %219 = vector.extract_strided_slice %196 {offsets = [0, 0, 8], sizes = [2, 8, 8], strides = [1, 1, 1]} : vector<2x8x32xf32> to vector<2x8x8xf32>
    "tpu.trace_start"() <{level = 10 : i32, message = "bqd,bkd->bqk"}> : () -> ()
    %cst_106 = arith.constant dense<0.000000e+00> : vector<2x8x8xf32>
    %220 = tpu.matmul %218, %219, %cst_106 {dimension_numbers = #tpu.dot_dimension_numbers<[2], [2], [1], [1], [0, 0, 0, 1, 1, 1], [0], [0]>} : vector<2x8x8xf32>, vector<2x8x8xf32>, vector<2x8x8xf32> -> vector<2x8x8xf32>
    "tpu.trace_stop"() : () -> ()
    %221 = vector.shape_cast %26 : vector<8x8xi1> to vector<1x8x8xi1>
    %cst_107 = arith.constant -1.000000e+20 : f32
    %222 = vector.shape_cast %221 : vector<1x8x8xi1> to vector<1x8x8xi1>
    %223 = vector.broadcast %222 : vector<1x8x8xi1> to vector<2x8x8xi1>
    %224 = vector.broadcast %cst_107 : f32 to vector<2x8x8xf32>
    %225 = arith.select %223, %224, %220 : vector<2x8x8xi1>, vector<2x8x8xf32>
    %cst_108 = arith.constant 0.353553385 : f32
    %226 = vector.broadcast %cst_108 : f32 to vector<2x8x8xf32>
    %227 = arith.mulf %225, %226 : vector<2x8x8xf32>
    %cst_109 = arith.constant dense<0xFF800000> : vector<2x8xf32>
    %228 = vector.multi_reduction <maximumf>, %227, %cst_109 [2] : vector<2x8x8xf32> to vector<2x8xf32>
    %229 = vector.shape_cast %228 : vector<2x8xf32> to vector<2x8x1xf32>
    %230 = vector.broadcast %229 : vector<2x8x1xf32> to vector<2x8x8xf32>
    %231 = arith.subf %227, %230 : vector<2x8x8xf32>
    %232 = math.exp %231 : vector<2x8x8xf32>
    %cst_110 = arith.constant dense<0.000000e+00> : vector<2x8xf32>
    %233 = vector.multi_reduction <add>, %232, %cst_110 [2] : vector<2x8x8xf32> to vector<2x8xf32>
    %234 = vector.shape_cast %233 : vector<2x8xf32> to vector<2x8x1xf32>
    %235 = tpu.reciprocal %234 : vector<2x8x1xf32> -> vector<2x8x1xf32>
    %236 = vector.broadcast %235 : vector<2x8x1xf32> to vector<2x8x8xf32>
    %237 = arith.mulf %232, %236 : vector<2x8x8xf32>
    "tpu.trace_start"() <{level = 10 : i32, message = "bqk,bkd->bqd"}> : () -> ()
    %cst_111 = arith.constant dense<0.000000e+00> : vector<2x8x8xf32>
    %238 = tpu.matmul %237, %219, %cst_111 {dimension_numbers = #tpu.dot_dimension_numbers<[2], [1], [1], [2], [0, 0, 0, 1, 1, 2], [0], [0]>} : vector<2x8x8xf32>, vector<2x8x8xf32>, vector<2x8x8xf32> -> vector<2x8x8xf32>
    "tpu.trace_stop"() : () -> ()
    %239 = vector.extract_strided_slice %195 {offsets = [0, 0, 16], sizes = [2, 8, 8], strides = [1, 1, 1]} : vector<2x8x32xf32> to vector<2x8x8xf32>
    %240 = vector.extract_strided_slice %196 {offsets = [0, 0, 16], sizes = [2, 8, 8], strides = [1, 1, 1]} : vector<2x8x32xf32> to vector<2x8x8xf32>
    "tpu.trace_start"() <{level = 10 : i32, message = "bqd,bkd->bqk"}> : () -> ()
    %cst_112 = arith.constant dense<0.000000e+00> : vector<2x8x8xf32>
    %241 = tpu.matmul %239, %240, %cst_112 {dimension_numbers = #tpu.dot_dimension_numbers<[2], [2], [1], [1], [0, 0, 0, 1, 1, 1], [0], [0]>} : vector<2x8x8xf32>, vector<2x8x8xf32>, vector<2x8x8xf32> -> vector<2x8x8xf32>
    "tpu.trace_stop"() : () -> ()
    %242 = vector.shape_cast %26 : vector<8x8xi1> to vector<1x8x8xi1>
    %cst_113 = arith.constant -1.000000e+20 : f32
    %243 = vector.shape_cast %242 : vector<1x8x8xi1> to vector<1x8x8xi1>
    %244 = vector.broadcast %243 : vector<1x8x8xi1> to vector<2x8x8xi1>
    %245 = vector.broadcast %cst_113 : f32 to vector<2x8x8xf32>
    %246 = arith.select %244, %245, %241 : vector<2x8x8xi1>, vector<2x8x8xf32>
    %cst_114 = arith.constant 0.353553385 : f32
    %247 = vector.broadcast %cst_114 : f32 to vector<2x8x8xf32>
    %248 = arith.mulf %246, %247 : vector<2x8x8xf32>
    %cst_115 = arith.constant dense<0xFF800000> : vector<2x8xf32>
    %249 = vector.multi_reduction <maximumf>, %248, %cst_115 [2] : vector<2x8x8xf32> to vector<2x8xf32>
    %250 = vector.shape_cast %249 : vector<2x8xf32> to vector<2x8x1xf32>
    %251 = vector.broadcast %250 : vector<2x8x1xf32> to vector<2x8x8xf32>
    %252 = arith.subf %248, %251 : vector<2x8x8xf32>
    %253 = math.exp %252 : vector<2x8x8xf32>
    %cst_116 = arith.constant dense<0.000000e+00> : vector<2x8xf32>
    %254 = vector.multi_reduction <add>, %253, %cst_116 [2] : vector<2x8x8xf32> to vector<2x8xf32>
    %255 = vector.shape_cast %254 : vector<2x8xf32> to vector<2x8x1xf32>
    %256 = tpu.reciprocal %255 : vector<2x8x1xf32> -> vector<2x8x1xf32>
    %257 = vector.broadcast %256 : vector<2x8x1xf32> to vector<2x8x8xf32>
    %258 = arith.mulf %253, %257 : vector<2x8x8xf32>
    "tpu.trace_start"() <{level = 10 : i32, message = "bqk,bkd->bqd"}> : () -> ()
    %cst_117 = arith.constant dense<0.000000e+00> : vector<2x8x8xf32>
    %259 = tpu.matmul %258, %240, %cst_117 {dimension_numbers = #tpu.dot_dimension_numbers<[2], [1], [1], [2], [0, 0, 0, 1, 1, 2], [0], [0]>} : vector<2x8x8xf32>, vector<2x8x8xf32>, vector<2x8x8xf32> -> vector<2x8x8xf32>
    "tpu.trace_stop"() : () -> ()
    %260 = vector.extract_strided_slice %195 {offsets = [0, 0, 24], sizes = [2, 8, 8], strides = [1, 1, 1]} : vector<2x8x32xf32> to vector<2x8x8xf32>
    %261 = vector.extract_strided_slice %196 {offsets = [0, 0, 24], sizes = [2, 8, 8], strides = [1, 1, 1]} : vector<2x8x32xf32> to vector<2x8x8xf32>
    "tpu.trace_start"() <{level = 10 : i32, message = "bqd,bkd->bqk"}> : () -> ()
    %cst_118 = arith.constant dense<0.000000e+00> : vector<2x8x8xf32>
    %262 = tpu.matmul %260, %261, %cst_118 {dimension_numbers = #tpu.dot_dimension_numbers<[2], [2], [1], [1], [0, 0, 0, 1, 1, 1], [0], [0]>} : vector<2x8x8xf32>, vector<2x8x8xf32>, vector<2x8x8xf32> -> vector<2x8x8xf32>
    "tpu.trace_stop"() : () -> ()
    %263 = vector.shape_cast %26 : vector<8x8xi1> to vector<1x8x8xi1>
    %cst_119 = arith.constant -1.000000e+20 : f32
    %264 = vector.shape_cast %263 : vector<1x8x8xi1> to vector<1x8x8xi1>
    %265 = vector.broadcast %264 : vector<1x8x8xi1> to vector<2x8x8xi1>
    %266 = vector.broadcast %cst_119 : f32 to vector<2x8x8xf32>
    %267 = arith.select %265, %266, %262 : vector<2x8x8xi1>, vector<2x8x8xf32>
    %cst_120 = arith.constant 0.353553385 : f32
    %268 = vector.broadcast %cst_120 : f32 to vector<2x8x8xf32>
    %269 = arith.mulf %267, %268 : vector<2x8x8xf32>
    %cst_121 = arith.constant dense<0xFF800000> : vector<2x8xf32>
    %270 = vector.multi_reduction <maximumf>, %269, %cst_121 [2] : vector<2x8x8xf32> to vector<2x8xf32>
    %271 = vector.shape_cast %270 : vector<2x8xf32> to vector<2x8x1xf32>
    %272 = vector.broadcast %271 : vector<2x8x1xf32> to vector<2x8x8xf32>
    %273 = arith.subf %269, %272 : vector<2x8x8xf32>
    %274 = math.exp %273 : vector<2x8x8xf32>
    %cst_122 = arith.constant dense<0.000000e+00> : vector<2x8xf32>
    %275 = vector.multi_reduction <add>, %274, %cst_122 [2] : vector<2x8x8xf32> to vector<2x8xf32>
    %276 = vector.shape_cast %275 : vector<2x8xf32> to vector<2x8x1xf32>
    %277 = tpu.reciprocal %276 : vector<2x8x1xf32> -> vector<2x8x1xf32>
    %278 = vector.broadcast %277 : vector<2x8x1xf32> to vector<2x8x8xf32>
    %279 = arith.mulf %274, %278 : vector<2x8x8xf32>
    "tpu.trace_start"() <{level = 10 : i32, message = "bqk,bkd->bqd"}> : () -> ()
    %cst_123 = arith.constant dense<0.000000e+00> : vector<2x8x8xf32>
    %280 = tpu.matmul %279, %261, %cst_123 {dimension_numbers = #tpu.dot_dimension_numbers<[2], [1], [1], [2], [0, 0, 0, 1, 1, 2], [0], [0]>} : vector<2x8x8xf32>, vector<2x8x8xf32>, vector<2x8x8xf32> -> vector<2x8x8xf32>
    "tpu.trace_stop"() : () -> ()
    %281 = tpu.concatenate %217, %238, %259, %280 in 2 : vector<2x8x8xf32>, vector<2x8x8xf32>, vector<2x8x8xf32>, vector<2x8x8xf32> -> vector<2x8x32xf32>
    %282 = vector.shape_cast %281 : vector<2x8x32xf32> to vector<16x32xf32>
    %cst_124 = arith.constant dense<0.000000e+00> : vector<16x32xf32>
    %283 = tpu.matmul %282, %185, %cst_124 {dimension_numbers = #tpu.dot_dimension_numbers<[1], [0], [0], [1], [0, 0, 1, 1], [], []>} : vector<16x32xf32>, vector<32x32xf32>, vector<16x32xf32> -> vector<16x32xf32>
    %284 = vector.broadcast %186 : vector<1x32xf32> to vector<16x32xf32>
    %285 = arith.addf %283, %284 : vector<16x32xf32>
    %286 = arith.addf %285, %184 : vector<16x32xf32>
    %cst_125 = arith.constant dense<0.000000e+00> : vector<16xf32>
    %287 = vector.multi_reduction <add>, %286, %cst_125 [1] : vector<16x32xf32> to vector<16xf32>
    %288 = vector.shape_cast %287 : vector<16xf32> to vector<16x1xf32>
    %cst_126 = arith.constant 3.200000e+01 : f32
    %289 = vector.broadcast %cst_126 : f32 to vector<16x1xf32>
    %290 = arith.divf %288, %289 : vector<16x1xf32>
    %291 = vector.broadcast %290 : vector<16x1xf32> to vector<16x32xf32>
    %292 = arith.subf %286, %291 : vector<16x32xf32>
    %293 = arith.mulf %292, %292 : vector<16x32xf32>
    %cst_127 = arith.constant dense<0.000000e+00> : vector<16xf32>
    %294 = vector.multi_reduction <add>, %293, %cst_127 [1] : vector<16x32xf32> to vector<16xf32>
    %295 = vector.shape_cast %294 : vector<16xf32> to vector<16x1xf32>
    %cst_128 = arith.constant 3.200000e+01 : f32
    %296 = vector.broadcast %cst_128 : f32 to vector<16x1xf32>
    %297 = arith.divf %295, %296 : vector<16x1xf32>
    %298 = vector.broadcast %290 : vector<16x1xf32> to vector<16x32xf32>
    %299 = arith.subf %286, %298 : vector<16x32xf32>
    %cst_129 = arith.constant 9.99999974E-6 : f32
    %300 = vector.broadcast %cst_129 : f32 to vector<16x1xf32>
    %301 = arith.addf %297, %300 : vector<16x1xf32>
    %302 = math.rsqrt %301 : vector<16x1xf32>
    %303 = vector.broadcast %302 : vector<16x1xf32> to vector<16x32xf32>
    %304 = arith.mulf %299, %303 : vector<16x32xf32>
    %305 = vector.broadcast %187 : vector<1x32xf32> to vector<16x32xf32>
    %306 = arith.mulf %304, %305 : vector<16x32xf32>
    %307 = vector.broadcast %188 : vector<1x32xf32> to vector<16x32xf32>
    %308 = arith.addf %306, %307 : vector<16x32xf32>
    %cst_130 = arith.constant dense<0.000000e+00> : vector<16x64xf32>
    %309 = tpu.matmul %308, %189, %cst_130 {dimension_numbers = #tpu.dot_dimension_numbers<[1], [0], [0], [1], [0, 0, 1, 1], [], []>} : vector<16x32xf32>, vector<32x64xf32>, vector<16x64xf32> -> vector<16x64xf32>
    %310 = vector.broadcast %190 : vector<1x64xf32> to vector<16x64xf32>
    %311 = arith.addf %309, %310 : vector<16x64xf32>
    %cst_131 = arith.constant 0.000000e+00 : f32
    %312 = vector.broadcast %cst_131 : f32 to vector<16x64xf32>
    %313 = arith.maximumf %311, %312 : vector<16x64xf32>
    %cst_132 = arith.constant dense<0.000000e+00> : vector<16x32xf32>
    %314 = tpu.matmul %313, %191, %cst_132 {dimension_numbers = #tpu.dot_dimension_numbers<[1], [0], [0], [1], [0, 0, 1, 1], [], []>} : vector<16x64xf32>, vector<64x32xf32>, vector<16x32xf32> -> vector<16x32xf32>
    %315 = vector.broadcast %192 : vector<1x32xf32> to vector<16x32xf32>
    %316 = arith.addf %314, %315 : vector<16x32xf32>
    %317 = arith.addf %316, %308 : vector<16x32xf32>
    %cst_133 = arith.constant dense<0.000000e+00> : vector<16xf32>
    %318 = vector.multi_reduction <add>, %317, %cst_133 [1] : vector<16x32xf32> to vector<16xf32>
    %319 = vector.shape_cast %318 : vector<16xf32> to vector<16x1xf32>
    %cst_134 = arith.constant 3.200000e+01 : f32
    %320 = vector.broadcast %cst_134 : f32 to vector<16x1xf32>
    %321 = arith.divf %319, %320 : vector<16x1xf32>
    %322 = vector.broadcast %321 : vector<16x1xf32> to vector<16x32xf32>
    %323 = arith.subf %317, %322 : vector<16x32xf32>
    %324 = arith.mulf %323, %323 : vector<16x32xf32>
    %cst_135 = arith.constant dense<0.000000e+00> : vector<16xf32>
    %325 = vector.multi_reduction <add>, %324, %cst_135 [1] : vector<16x32xf32> to vector<16xf32>
    %326 = vector.shape_cast %325 : vector<16xf32> to vector<16x1xf32>
    %cst_136 = arith.constant 3.200000e+01 : f32
    %327 = vector.broadcast %cst_136 : f32 to vector<16x1xf32>
    %328 = arith.divf %326, %327 : vector<16x1xf32>
    %329 = vector.broadcast %321 : vector<16x1xf32> to vector<16x32xf32>
    %330 = arith.subf %317, %329 : vector<16x32xf32>
    %cst_137 = arith.constant 9.99999974E-6 : f32
    %331 = vector.broadcast %cst_137 : f32 to vector<16x1xf32>
    %332 = arith.addf %328, %331 : vector<16x1xf32>
    %333 = math.rsqrt %332 : vector<16x1xf32>
    %334 = vector.broadcast %333 : vector<16x1xf32> to vector<16x32xf32>
    %335 = arith.mulf %330, %334 : vector<16x32xf32>
    %336 = vector.broadcast %193 : vector<1x32xf32> to vector<16x32xf32>
    %337 = arith.mulf %335, %336 : vector<16x32xf32>
    %338 = vector.broadcast %194 : vector<1x32xf32> to vector<16x32xf32>
    %339 = arith.addf %337, %338 : vector<16x32xf32>
    %c0_138 = arith.constant 0 : index
    %c0_139 = arith.constant 0 : index
    %340 = vector.load %arg30[%c0_138, %c0_139] : memref<32x32xf32, #tpu.memory_space<vmem>>, vector<32x32xf32>
    %c0_140 = arith.constant 0 : index
    %c0_141 = arith.constant 0 : index
    %341 = vector.load %arg31[%c0_140, %c0_141] : memref<1x32xf32, #tpu.memory_space<vmem>>, vector<1x32xf32>
    %c0_142 = arith.constant 0 : index
    %c0_143 = arith.constant 0 : index
    %342 = vector.load %arg32[%c0_142, %c0_143] : memref<1x32xf32, #tpu.memory_space<vmem>>, vector<1x32xf32>
    %c0_144 = arith.constant 0 : index
    %c0_145 = arith.constant 0 : index
    %343 = vector.load %arg33[%c0_144, %c0_145] : memref<1x32xf32, #tpu.memory_space<vmem>>, vector<1x32xf32>
    %c0_146 = arith.constant 0 : index
    %c0_147 = arith.constant 0 : index
    %344 = vector.load %arg34[%c0_146, %c0_147] : memref<32x32xf32, #tpu.memory_space<vmem>>, vector<32x32xf32>
    %c0_148 = arith.constant 0 : index
    %c0_149 = arith.constant 0 : index
    %345 = vector.load %arg35[%c0_148, %c0_149] : memref<1x32xf32, #tpu.memory_space<vmem>>, vector<1x32xf32>
    %c0_150 = arith.constant 0 : index
    %c0_151 = arith.constant 0 : index
    %346 = vector.load %arg36[%c0_150, %c0_151] : memref<1x32xf32, #tpu.memory_space<vmem>>, vector<1x32xf32>
    %c0_152 = arith.constant 0 : index
    %c0_153 = arith.constant 0 : index
    %347 = vector.load %arg37[%c0_152, %c0_153] : memref<1x32xf32, #tpu.memory_space<vmem>>, vector<1x32xf32>
    %c0_154 = arith.constant 0 : index
    %c0_155 = arith.constant 0 : index
    %348 = vector.load %arg38[%c0_154, %c0_155] : memref<32x64xf32, #tpu.memory_space<vmem>>, vector<32x64xf32>
    %c0_156 = arith.constant 0 : index
    %c0_157 = arith.constant 0 : index
    %349 = vector.load %arg39[%c0_156, %c0_157] : memref<1x64xf32, #tpu.memory_space<vmem>>, vector<1x64xf32>
    %c0_158 = arith.constant 0 : index
    %c0_159 = arith.constant 0 : index
    %350 = vector.load %arg40[%c0_158, %c0_159] : memref<64x32xf32, #tpu.memory_space<vmem>>, vector<64x32xf32>
    %c0_160 = arith.constant 0 : index
    %c0_161 = arith.constant 0 : index
    %351 = vector.load %arg41[%c0_160, %c0_161] : memref<1x32xf32, #tpu.memory_space<vmem>>, vector<1x32xf32>
    %c0_162 = arith.constant 0 : index
    %c0_163 = arith.constant 0 : index
    %352 = vector.load %arg42[%c0_162, %c0_163] : memref<1x32xf32, #tpu.memory_space<vmem>>, vector<1x32xf32>
    %c0_164 = arith.constant 0 : index
    %c0_165 = arith.constant 0 : index
    %353 = vector.load %arg43[%c0_164, %c0_165] : memref<1x32xf32, #tpu.memory_space<vmem>>, vector<1x32xf32>
    %354 = vector.shape_cast %23 : vector<16x32xf32> to vector<2x8x32xf32>
    %355 = vector.shape_cast %23 : vector<16x32xf32> to vector<2x8x32xf32>
    %356 = vector.extract_strided_slice %354 {offsets = [0, 0, 0], sizes = [2, 8, 8], strides = [1, 1, 1]} : vector<2x8x32xf32> to vector<2x8x8xf32>
    %357 = vector.extract_strided_slice %355 {offsets = [0, 0, 0], sizes = [2, 8, 8], strides = [1, 1, 1]} : vector<2x8x32xf32> to vector<2x8x8xf32>
    "tpu.trace_start"() <{level = 10 : i32, message = "bqd,bkd->bqk"}> : () -> ()
    %cst_166 = arith.constant dense<0.000000e+00> : vector<2x8x8xf32>
    %358 = tpu.matmul %356, %357, %cst_166 {dimension_numbers = #tpu.dot_dimension_numbers<[2], [2], [1], [1], [0, 0, 0, 1, 1, 1], [0], [0]>} : vector<2x8x8xf32>, vector<2x8x8xf32>, vector<2x8x8xf32> -> vector<2x8x8xf32>
    "tpu.trace_stop"() : () -> ()
    %359 = vector.shape_cast %29 : vector<8x8xi1> to vector<1x8x8xi1>
    %cst_167 = arith.constant -1.000000e+20 : f32
    %360 = vector.shape_cast %359 : vector<1x8x8xi1> to vector<1x8x8xi1>
    %361 = vector.broadcast %360 : vector<1x8x8xi1> to vector<2x8x8xi1>
    %362 = vector.broadcast %cst_167 : f32 to vector<2x8x8xf32>
    %363 = arith.select %361, %362, %358 : vector<2x8x8xi1>, vector<2x8x8xf32>
    %cst_168 = arith.constant 0.353553385 : f32
    %364 = vector.broadcast %cst_168 : f32 to vector<2x8x8xf32>
    %365 = arith.mulf %363, %364 : vector<2x8x8xf32>
    %cst_169 = arith.constant dense<0xFF800000> : vector<2x8xf32>
    %366 = vector.multi_reduction <maximumf>, %365, %cst_169 [2] : vector<2x8x8xf32> to vector<2x8xf32>
    %367 = vector.shape_cast %366 : vector<2x8xf32> to vector<2x8x1xf32>
    %368 = vector.broadcast %367 : vector<2x8x1xf32> to vector<2x8x8xf32>
    %369 = arith.subf %365, %368 : vector<2x8x8xf32>
    %370 = math.exp %369 : vector<2x8x8xf32>
    %cst_170 = arith.constant dense<0.000000e+00> : vector<2x8xf32>
    %371 = vector.multi_reduction <add>, %370, %cst_170 [2] : vector<2x8x8xf32> to vector<2x8xf32>
    %372 = vector.shape_cast %371 : vector<2x8xf32> to vector<2x8x1xf32>
    %373 = tpu.reciprocal %372 : vector<2x8x1xf32> -> vector<2x8x1xf32>
    %374 = vector.broadcast %373 : vector<2x8x1xf32> to vector<2x8x8xf32>
    %375 = arith.mulf %370, %374 : vector<2x8x8xf32>
    "tpu.trace_start"() <{level = 10 : i32, message = "bqk,bkd->bqd"}> : () -> ()
    %cst_171 = arith.constant dense<0.000000e+00> : vector<2x8x8xf32>
    %376 = tpu.matmul %375, %357, %cst_171 {dimension_numbers = #tpu.dot_dimension_numbers<[2], [1], [1], [2], [0, 0, 0, 1, 1, 2], [0], [0]>} : vector<2x8x8xf32>, vector<2x8x8xf32>, vector<2x8x8xf32> -> vector<2x8x8xf32>
    "tpu.trace_stop"() : () -> ()
    %377 = vector.extract_strided_slice %354 {offsets = [0, 0, 8], sizes = [2, 8, 8], strides = [1, 1, 1]} : vector<2x8x32xf32> to vector<2x8x8xf32>
    %378 = vector.extract_strided_slice %355 {offsets = [0, 0, 8], sizes = [2, 8, 8], strides = [1, 1, 1]} : vector<2x8x32xf32> to vector<2x8x8xf32>
    "tpu.trace_start"() <{level = 10 : i32, message = "bqd,bkd->bqk"}> : () -> ()
    %cst_172 = arith.constant dense<0.000000e+00> : vector<2x8x8xf32>
    %379 = tpu.matmul %377, %378, %cst_172 {dimension_numbers = #tpu.dot_dimension_numbers<[2], [2], [1], [1], [0, 0, 0, 1, 1, 1], [0], [0]>} : vector<2x8x8xf32>, vector<2x8x8xf32>, vector<2x8x8xf32> -> vector<2x8x8xf32>
    "tpu.trace_stop"() : () -> ()
    %380 = vector.shape_cast %29 : vector<8x8xi1> to vector<1x8x8xi1>
    %cst_173 = arith.constant -1.000000e+20 : f32
    %381 = vector.shape_cast %380 : vector<1x8x8xi1> to vector<1x8x8xi1>
    %382 = vector.broadcast %381 : vector<1x8x8xi1> to vector<2x8x8xi1>
    %383 = vector.broadcast %cst_173 : f32 to vector<2x8x8xf32>
    %384 = arith.select %382, %383, %379 : vector<2x8x8xi1>, vector<2x8x8xf32>
    %cst_174 = arith.constant 0.353553385 : f32
    %385 = vector.broadcast %cst_174 : f32 to vector<2x8x8xf32>
    %386 = arith.mulf %384, %385 : vector<2x8x8xf32>
    %cst_175 = arith.constant dense<0xFF800000> : vector<2x8xf32>
    %387 = vector.multi_reduction <maximumf>, %386, %cst_175 [2] : vector<2x8x8xf32> to vector<2x8xf32>
    %388 = vector.shape_cast %387 : vector<2x8xf32> to vector<2x8x1xf32>
    %389 = vector.broadcast %388 : vector<2x8x1xf32> to vector<2x8x8xf32>
    %390 = arith.subf %386, %389 : vector<2x8x8xf32>
    %391 = math.exp %390 : vector<2x8x8xf32>
    %cst_176 = arith.constant dense<0.000000e+00> : vector<2x8xf32>
    %392 = vector.multi_reduction <add>, %391, %cst_176 [2] : vector<2x8x8xf32> to vector<2x8xf32>
    %393 = vector.shape_cast %392 : vector<2x8xf32> to vector<2x8x1xf32>
    %394 = tpu.reciprocal %393 : vector<2x8x1xf32> -> vector<2x8x1xf32>
    %395 = vector.broadcast %394 : vector<2x8x1xf32> to vector<2x8x8xf32>
    %396 = arith.mulf %391, %395 : vector<2x8x8xf32>
    "tpu.trace_start"() <{level = 10 : i32, message = "bqk,bkd->bqd"}> : () -> ()
    %cst_177 = arith.constant dense<0.000000e+00> : vector<2x8x8xf32>
    %397 = tpu.matmul %396, %378, %cst_177 {dimension_numbers = #tpu.dot_dimension_numbers<[2], [1], [1], [2], [0, 0, 0, 1, 1, 2], [0], [0]>} : vector<2x8x8xf32>, vector<2x8x8xf32>, vector<2x8x8xf32> -> vector<2x8x8xf32>
    "tpu.trace_stop"() : () -> ()
    %398 = vector.extract_strided_slice %354 {offsets = [0, 0, 16], sizes = [2, 8, 8], strides = [1, 1, 1]} : vector<2x8x32xf32> to vector<2x8x8xf32>
    %399 = vector.extract_strided_slice %355 {offsets = [0, 0, 16], sizes = [2, 8, 8], strides = [1, 1, 1]} : vector<2x8x32xf32> to vector<2x8x8xf32>
    "tpu.trace_start"() <{level = 10 : i32, message = "bqd,bkd->bqk"}> : () -> ()
    %cst_178 = arith.constant dense<0.000000e+00> : vector<2x8x8xf32>
    %400 = tpu.matmul %398, %399, %cst_178 {dimension_numbers = #tpu.dot_dimension_numbers<[2], [2], [1], [1], [0, 0, 0, 1, 1, 1], [0], [0]>} : vector<2x8x8xf32>, vector<2x8x8xf32>, vector<2x8x8xf32> -> vector<2x8x8xf32>
    "tpu.trace_stop"() : () -> ()
    %401 = vector.shape_cast %29 : vector<8x8xi1> to vector<1x8x8xi1>
    %cst_179 = arith.constant -1.000000e+20 : f32
    %402 = vector.shape_cast %401 : vector<1x8x8xi1> to vector<1x8x8xi1>
    %403 = vector.broadcast %402 : vector<1x8x8xi1> to vector<2x8x8xi1>
    %404 = vector.broadcast %cst_179 : f32 to vector<2x8x8xf32>
    %405 = arith.select %403, %404, %400 : vector<2x8x8xi1>, vector<2x8x8xf32>
    %cst_180 = arith.constant 0.353553385 : f32
    %406 = vector.broadcast %cst_180 : f32 to vector<2x8x8xf32>
    %407 = arith.mulf %405, %406 : vector<2x8x8xf32>
    %cst_181 = arith.constant dense<0xFF800000> : vector<2x8xf32>
    %408 = vector.multi_reduction <maximumf>, %407, %cst_181 [2] : vector<2x8x8xf32> to vector<2x8xf32>
    %409 = vector.shape_cast %408 : vector<2x8xf32> to vector<2x8x1xf32>
    %410 = vector.broadcast %409 : vector<2x8x1xf32> to vector<2x8x8xf32>
    %411 = arith.subf %407, %410 : vector<2x8x8xf32>
    %412 = math.exp %411 : vector<2x8x8xf32>
    %cst_182 = arith.constant dense<0.000000e+00> : vector<2x8xf32>
    %413 = vector.multi_reduction <add>, %412, %cst_182 [2] : vector<2x8x8xf32> to vector<2x8xf32>
    %414 = vector.shape_cast %413 : vector<2x8xf32> to vector<2x8x1xf32>
    %415 = tpu.reciprocal %414 : vector<2x8x1xf32> -> vector<2x8x1xf32>
    %416 = vector.broadcast %415 : vector<2x8x1xf32> to vector<2x8x8xf32>
    %417 = arith.mulf %412, %416 : vector<2x8x8xf32>
    "tpu.trace_start"() <{level = 10 : i32, message = "bqk,bkd->bqd"}> : () -> ()
    %cst_183 = arith.constant dense<0.000000e+00> : vector<2x8x8xf32>
    %418 = tpu.matmul %417, %399, %cst_183 {dimension_numbers = #tpu.dot_dimension_numbers<[2], [1], [1], [2], [0, 0, 0, 1, 1, 2], [0], [0]>} : vector<2x8x8xf32>, vector<2x8x8xf32>, vector<2x8x8xf32> -> vector<2x8x8xf32>
    "tpu.trace_stop"() : () -> ()
    %419 = vector.extract_strided_slice %354 {offsets = [0, 0, 24], sizes = [2, 8, 8], strides = [1, 1, 1]} : vector<2x8x32xf32> to vector<2x8x8xf32>
    %420 = vector.extract_strided_slice %355 {offsets = [0, 0, 24], sizes = [2, 8, 8], strides = [1, 1, 1]} : vector<2x8x32xf32> to vector<2x8x8xf32>
    "tpu.trace_start"() <{level = 10 : i32, message = "bqd,bkd->bqk"}> : () -> ()
    %cst_184 = arith.constant dense<0.000000e+00> : vector<2x8x8xf32>
    %421 = tpu.matmul %419, %420, %cst_184 {dimension_numbers = #tpu.dot_dimension_numbers<[2], [2], [1], [1], [0, 0, 0, 1, 1, 1], [0], [0]>} : vector<2x8x8xf32>, vector<2x8x8xf32>, vector<2x8x8xf32> -> vector<2x8x8xf32>
    "tpu.trace_stop"() : () -> ()
    %422 = vector.shape_cast %29 : vector<8x8xi1> to vector<1x8x8xi1>
    %cst_185 = arith.constant -1.000000e+20 : f32
    %423 = vector.shape_cast %422 : vector<1x8x8xi1> to vector<1x8x8xi1>
    %424 = vector.broadcast %423 : vector<1x8x8xi1> to vector<2x8x8xi1>
    %425 = vector.broadcast %cst_185 : f32 to vector<2x8x8xf32>
    %426 = arith.select %424, %425, %421 : vector<2x8x8xi1>, vector<2x8x8xf32>
    %cst_186 = arith.constant 0.353553385 : f32
    %427 = vector.broadcast %cst_186 : f32 to vector<2x8x8xf32>
    %428 = arith.mulf %426, %427 : vector<2x8x8xf32>
    %cst_187 = arith.constant dense<0xFF800000> : vector<2x8xf32>
    %429 = vector.multi_reduction <maximumf>, %428, %cst_187 [2] : vector<2x8x8xf32> to vector<2x8xf32>
    %430 = vector.shape_cast %429 : vector<2x8xf32> to vector<2x8x1xf32>
    %431 = vector.broadcast %430 : vector<2x8x1xf32> to vector<2x8x8xf32>
    %432 = arith.subf %428, %431 : vector<2x8x8xf32>
    %433 = math.exp %432 : vector<2x8x8xf32>
    %cst_188 = arith.constant dense<0.000000e+00> : vector<2x8xf32>
    %434 = vector.multi_reduction <add>, %433, %cst_188 [2] : vector<2x8x8xf32> to vector<2x8xf32>
    %435 = vector.shape_cast %434 : vector<2x8xf32> to vector<2x8x1xf32>
    %436 = tpu.reciprocal %435 : vector<2x8x1xf32> -> vector<2x8x1xf32>
    %437 = vector.broadcast %436 : vector<2x8x1xf32> to vector<2x8x8xf32>
    %438 = arith.mulf %433, %437 : vector<2x8x8xf32>
    "tpu.trace_start"() <{level = 10 : i32, message = "bqk,bkd->bqd"}> : () -> ()
    %cst_189 = arith.constant dense<0.000000e+00> : vector<2x8x8xf32>
    %439 = tpu.matmul %438, %420, %cst_189 {dimension_numbers = #tpu.dot_dimension_numbers<[2], [1], [1], [2], [0, 0, 0, 1, 1, 2], [0], [0]>} : vector<2x8x8xf32>, vector<2x8x8xf32>, vector<2x8x8xf32> -> vector<2x8x8xf32>
    "tpu.trace_stop"() : () -> ()
    %440 = tpu.concatenate %376, %397, %418, %439 in 2 : vector<2x8x8xf32>, vector<2x8x8xf32>, vector<2x8x8xf32>, vector<2x8x8xf32> -> vector<2x8x32xf32>
    %441 = vector.shape_cast %440 : vector<2x8x32xf32> to vector<16x32xf32>
    %cst_190 = arith.constant dense<0.000000e+00> : vector<16x32xf32>
    %442 = tpu.matmul %441, %340, %cst_190 {dimension_numbers = #tpu.dot_dimension_numbers<[1], [0], [0], [1], [0, 0, 1, 1], [], []>} : vector<16x32xf32>, vector<32x32xf32>, vector<16x32xf32> -> vector<16x32xf32>
    %443 = vector.broadcast %341 : vector<1x32xf32> to vector<16x32xf32>
    %444 = arith.addf %442, %443 : vector<16x32xf32>
    %445 = arith.addf %444, %23 : vector<16x32xf32>
    %cst_191 = arith.constant dense<0.000000e+00> : vector<16xf32>
    %446 = vector.multi_reduction <add>, %445, %cst_191 [1] : vector<16x32xf32> to vector<16xf32>
    %447 = vector.shape_cast %446 : vector<16xf32> to vector<16x1xf32>
    %cst_192 = arith.constant 3.200000e+01 : f32
    %448 = vector.broadcast %cst_192 : f32 to vector<16x1xf32>
    %449 = arith.divf %447, %448 : vector<16x1xf32>
    %450 = vector.broadcast %449 : vector<16x1xf32> to vector<16x32xf32>
    %451 = arith.subf %445, %450 : vector<16x32xf32>
    %452 = arith.mulf %451, %451 : vector<16x32xf32>
    %cst_193 = arith.constant dense<0.000000e+00> : vector<16xf32>
    %453 = vector.multi_reduction <add>, %452, %cst_193 [1] : vector<16x32xf32> to vector<16xf32>
    %454 = vector.shape_cast %453 : vector<16xf32> to vector<16x1xf32>
    %cst_194 = arith.constant 3.200000e+01 : f32
    %455 = vector.broadcast %cst_194 : f32 to vector<16x1xf32>
    %456 = arith.divf %454, %455 : vector<16x1xf32>
    %457 = vector.broadcast %449 : vector<16x1xf32> to vector<16x32xf32>
    %458 = arith.subf %445, %457 : vector<16x32xf32>
    %cst_195 = arith.constant 9.99999974E-6 : f32
    %459 = vector.broadcast %cst_195 : f32 to vector<16x1xf32>
    %460 = arith.addf %456, %459 : vector<16x1xf32>
    %461 = math.rsqrt %460 : vector<16x1xf32>
    %462 = vector.broadcast %461 : vector<16x1xf32> to vector<16x32xf32>
    %463 = arith.mulf %458, %462 : vector<16x32xf32>
    %464 = vector.broadcast %342 : vector<1x32xf32> to vector<16x32xf32>
    %465 = arith.mulf %463, %464 : vector<16x32xf32>
    %466 = vector.broadcast %343 : vector<1x32xf32> to vector<16x32xf32>
    %467 = arith.addf %465, %466 : vector<16x32xf32>
    %468 = vector.shape_cast %467 : vector<16x32xf32> to vector<2x8x32xf32>
    %469 = vector.shape_cast %339 : vector<16x32xf32> to vector<2x8x32xf32>
    %470 = vector.extract_strided_slice %468 {offsets = [0, 0, 0], sizes = [2, 8, 8], strides = [1, 1, 1]} : vector<2x8x32xf32> to vector<2x8x8xf32>
    %471 = vector.extract_strided_slice %469 {offsets = [0, 0, 0], sizes = [2, 8, 8], strides = [1, 1, 1]} : vector<2x8x32xf32> to vector<2x8x8xf32>
    "tpu.trace_start"() <{level = 10 : i32, message = "bqd,bkd->bqk"}> : () -> ()
    %cst_196 = arith.constant dense<0.000000e+00> : vector<2x8x8xf32>
    %472 = tpu.matmul %470, %471, %cst_196 {dimension_numbers = #tpu.dot_dimension_numbers<[2], [2], [1], [1], [0, 0, 0, 1, 1, 1], [0], [0]>} : vector<2x8x8xf32>, vector<2x8x8xf32>, vector<2x8x8xf32> -> vector<2x8x8xf32>
    "tpu.trace_stop"() : () -> ()
    %473 = vector.shape_cast %29 : vector<8x8xi1> to vector<1x8x8xi1>
    %cst_197 = arith.constant -1.000000e+20 : f32
    %474 = vector.shape_cast %473 : vector<1x8x8xi1> to vector<1x8x8xi1>
    %475 = vector.broadcast %474 : vector<1x8x8xi1> to vector<2x8x8xi1>
    %476 = vector.broadcast %cst_197 : f32 to vector<2x8x8xf32>
    %477 = arith.select %475, %476, %472 : vector<2x8x8xi1>, vector<2x8x8xf32>
    %cst_198 = arith.constant 0.353553385 : f32
    %478 = vector.broadcast %cst_198 : f32 to vector<2x8x8xf32>
    %479 = arith.mulf %477, %478 : vector<2x8x8xf32>
    %cst_199 = arith.constant dense<0xFF800000> : vector<2x8xf32>
    %480 = vector.multi_reduction <maximumf>, %479, %cst_199 [2] : vector<2x8x8xf32> to vector<2x8xf32>
    %481 = vector.shape_cast %480 : vector<2x8xf32> to vector<2x8x1xf32>
    %482 = vector.broadcast %481 : vector<2x8x1xf32> to vector<2x8x8xf32>
    %483 = arith.subf %479, %482 : vector<2x8x8xf32>
    %484 = math.exp %483 : vector<2x8x8xf32>
    %cst_200 = arith.constant dense<0.000000e+00> : vector<2x8xf32>
    %485 = vector.multi_reduction <add>, %484, %cst_200 [2] : vector<2x8x8xf32> to vector<2x8xf32>
    %486 = vector.shape_cast %485 : vector<2x8xf32> to vector<2x8x1xf32>
    %487 = tpu.reciprocal %486 : vector<2x8x1xf32> -> vector<2x8x1xf32>
    %488 = vector.broadcast %487 : vector<2x8x1xf32> to vector<2x8x8xf32>
    %489 = arith.mulf %484, %488 : vector<2x8x8xf32>
    "tpu.trace_start"() <{level = 10 : i32, message = "bqk,bkd->bqd"}> : () -> ()
    %cst_201 = arith.constant dense<0.000000e+00> : vector<2x8x8xf32>
    %490 = tpu.matmul %489, %471, %cst_201 {dimension_numbers = #tpu.dot_dimension_numbers<[2], [1], [1], [2], [0, 0, 0, 1, 1, 2], [0], [0]>} : vector<2x8x8xf32>, vector<2x8x8xf32>, vector<2x8x8xf32> -> vector<2x8x8xf32>
    "tpu.trace_stop"() : () -> ()
    %491 = vector.extract_strided_slice %468 {offsets = [0, 0, 8], sizes = [2, 8, 8], strides = [1, 1, 1]} : vector<2x8x32xf32> to vector<2x8x8xf32>
    %492 = vector.extract_strided_slice %469 {offsets = [0, 0, 8], sizes = [2, 8, 8], strides = [1, 1, 1]} : vector<2x8x32xf32> to vector<2x8x8xf32>
    "tpu.trace_start"() <{level = 10 : i32, message = "bqd,bkd->bqk"}> : () -> ()
    %cst_202 = arith.constant dense<0.000000e+00> : vector<2x8x8xf32>
    %493 = tpu.matmul %491, %492, %cst_202 {dimension_numbers = #tpu.dot_dimension_numbers<[2], [2], [1], [1], [0, 0, 0, 1, 1, 1], [0], [0]>} : vector<2x8x8xf32>, vector<2x8x8xf32>, vector<2x8x8xf32> -> vector<2x8x8xf32>
    "tpu.trace_stop"() : () -> ()
    %494 = vector.shape_cast %29 : vector<8x8xi1> to vector<1x8x8xi1>
    %cst_203 = arith.constant -1.000000e+20 : f32
    %495 = vector.shape_cast %494 : vector<1x8x8xi1> to vector<1x8x8xi1>
    %496 = vector.broadcast %495 : vector<1x8x8xi1> to vector<2x8x8xi1>
    %497 = vector.broadcast %cst_203 : f32 to vector<2x8x8xf32>
    %498 = arith.select %496, %497, %493 : vector<2x8x8xi1>, vector<2x8x8xf32>
    %cst_204 = arith.constant 0.353553385 : f32
    %499 = vector.broadcast %cst_204 : f32 to vector<2x8x8xf32>
    %500 = arith.mulf %498, %499 : vector<2x8x8xf32>
    %cst_205 = arith.constant dense<0xFF800000> : vector<2x8xf32>
    %501 = vector.multi_reduction <maximumf>, %500, %cst_205 [2] : vector<2x8x8xf32> to vector<2x8xf32>
    %502 = vector.shape_cast %501 : vector<2x8xf32> to vector<2x8x1xf32>
    %503 = vector.broadcast %502 : vector<2x8x1xf32> to vector<2x8x8xf32>
    %504 = arith.subf %500, %503 : vector<2x8x8xf32>
    %505 = math.exp %504 : vector<2x8x8xf32>
    %cst_206 = arith.constant dense<0.000000e+00> : vector<2x8xf32>
    %506 = vector.multi_reduction <add>, %505, %cst_206 [2] : vector<2x8x8xf32> to vector<2x8xf32>
    %507 = vector.shape_cast %506 : vector<2x8xf32> to vector<2x8x1xf32>
    %508 = tpu.reciprocal %507 : vector<2x8x1xf32> -> vector<2x8x1xf32>
    %509 = vector.broadcast %508 : vector<2x8x1xf32> to vector<2x8x8xf32>
    %510 = arith.mulf %505, %509 : vector<2x8x8xf32>
    "tpu.trace_start"() <{level = 10 : i32, message = "bqk,bkd->bqd"}> : () -> ()
    %cst_207 = arith.constant dense<0.000000e+00> : vector<2x8x8xf32>
    %511 = tpu.matmul %510, %492, %cst_207 {dimension_numbers = #tpu.dot_dimension_numbers<[2], [1], [1], [2], [0, 0, 0, 1, 1, 2], [0], [0]>} : vector<2x8x8xf32>, vector<2x8x8xf32>, vector<2x8x8xf32> -> vector<2x8x8xf32>
    "tpu.trace_stop"() : () -> ()
    %512 = vector.extract_strided_slice %468 {offsets = [0, 0, 16], sizes = [2, 8, 8], strides = [1, 1, 1]} : vector<2x8x32xf32> to vector<2x8x8xf32>
    %513 = vector.extract_strided_slice %469 {offsets = [0, 0, 16], sizes = [2, 8, 8], strides = [1, 1, 1]} : vector<2x8x32xf32> to vector<2x8x8xf32>
    "tpu.trace_start"() <{level = 10 : i32, message = "bqd,bkd->bqk"}> : () -> ()
    %cst_208 = arith.constant dense<0.000000e+00> : vector<2x8x8xf32>
    %514 = tpu.matmul %512, %513, %cst_208 {dimension_numbers = #tpu.dot_dimension_numbers<[2], [2], [1], [1], [0, 0, 0, 1, 1, 1], [0], [0]>} : vector<2x8x8xf32>, vector<2x8x8xf32>, vector<2x8x8xf32> -> vector<2x8x8xf32>
    "tpu.trace_stop"() : () -> ()
    %515 = vector.shape_cast %29 : vector<8x8xi1> to vector<1x8x8xi1>
    %cst_209 = arith.constant -1.000000e+20 : f32
    %516 = vector.shape_cast %515 : vector<1x8x8xi1> to vector<1x8x8xi1>
    %517 = vector.broadcast %516 : vector<1x8x8xi1> to vector<2x8x8xi1>
    %518 = vector.broadcast %cst_209 : f32 to vector<2x8x8xf32>
    %519 = arith.select %517, %518, %514 : vector<2x8x8xi1>, vector<2x8x8xf32>
    %cst_210 = arith.constant 0.353553385 : f32
    %520 = vector.broadcast %cst_210 : f32 to vector<2x8x8xf32>
    %521 = arith.mulf %519, %520 : vector<2x8x8xf32>
    %cst_211 = arith.constant dense<0xFF800000> : vector<2x8xf32>
    %522 = vector.multi_reduction <maximumf>, %521, %cst_211 [2] : vector<2x8x8xf32> to vector<2x8xf32>
    %523 = vector.shape_cast %522 : vector<2x8xf32> to vector<2x8x1xf32>
    %524 = vector.broadcast %523 : vector<2x8x1xf32> to vector<2x8x8xf32>
    %525 = arith.subf %521, %524 : vector<2x8x8xf32>
    %526 = math.exp %525 : vector<2x8x8xf32>
    %cst_212 = arith.constant dense<0.000000e+00> : vector<2x8xf32>
    %527 = vector.multi_reduction <add>, %526, %cst_212 [2] : vector<2x8x8xf32> to vector<2x8xf32>
    %528 = vector.shape_cast %527 : vector<2x8xf32> to vector<2x8x1xf32>
    %529 = tpu.reciprocal %528 : vector<2x8x1xf32> -> vector<2x8x1xf32>
    %530 = vector.broadcast %529 : vector<2x8x1xf32> to vector<2x8x8xf32>
    %531 = arith.mulf %526, %530 : vector<2x8x8xf32>
    "tpu.trace_start"() <{level = 10 : i32, message = "bqk,bkd->bqd"}> : () -> ()
    %cst_213 = arith.constant dense<0.000000e+00> : vector<2x8x8xf32>
    %532 = tpu.matmul %531, %513, %cst_213 {dimension_numbers = #tpu.dot_dimension_numbers<[2], [1], [1], [2], [0, 0, 0, 1, 1, 2], [0], [0]>} : vector<2x8x8xf32>, vector<2x8x8xf32>, vector<2x8x8xf32> -> vector<2x8x8xf32>
    "tpu.trace_stop"() : () -> ()
    %533 = vector.extract_strided_slice %468 {offsets = [0, 0, 24], sizes = [2, 8, 8], strides = [1, 1, 1]} : vector<2x8x32xf32> to vector<2x8x8xf32>
    %534 = vector.extract_strided_slice %469 {offsets = [0, 0, 24], sizes = [2, 8, 8], strides = [1, 1, 1]} : vector<2x8x32xf32> to vector<2x8x8xf32>
    "tpu.trace_start"() <{level = 10 : i32, message = "bqd,bkd->bqk"}> : () -> ()
    %cst_214 = arith.constant dense<0.000000e+00> : vector<2x8x8xf32>
    %535 = tpu.matmul %533, %534, %cst_214 {dimension_numbers = #tpu.dot_dimension_numbers<[2], [2], [1], [1], [0, 0, 0, 1, 1, 1], [0], [0]>} : vector<2x8x8xf32>, vector<2x8x8xf32>, vector<2x8x8xf32> -> vector<2x8x8xf32>
    "tpu.trace_stop"() : () -> ()
    %536 = vector.shape_cast %29 : vector<8x8xi1> to vector<1x8x8xi1>
    %cst_215 = arith.constant -1.000000e+20 : f32
    %537 = vector.shape_cast %536 : vector<1x8x8xi1> to vector<1x8x8xi1>
    %538 = vector.broadcast %537 : vector<1x8x8xi1> to vector<2x8x8xi1>
    %539 = vector.broadcast %cst_215 : f32 to vector<2x8x8xf32>
    %540 = arith.select %538, %539, %535 : vector<2x8x8xi1>, vector<2x8x8xf32>
    %cst_216 = arith.constant 0.353553385 : f32
    %541 = vector.broadcast %cst_216 : f32 to vector<2x8x8xf32>
    %542 = arith.mulf %540, %541 : vector<2x8x8xf32>
    %cst_217 = arith.constant dense<0xFF800000> : vector<2x8xf32>
    %543 = vector.multi_reduction <maximumf>, %542, %cst_217 [2] : vector<2x8x8xf32> to vector<2x8xf32>
    %544 = vector.shape_cast %543 : vector<2x8xf32> to vector<2x8x1xf32>
    %545 = vector.broadcast %544 : vector<2x8x1xf32> to vector<2x8x8xf32>
    %546 = arith.subf %542, %545 : vector<2x8x8xf32>
    %547 = math.exp %546 : vector<2x8x8xf32>
    %cst_218 = arith.constant dense<0.000000e+00> : vector<2x8xf32>
    %548 = vector.multi_reduction <add>, %547, %cst_218 [2] : vector<2x8x8xf32> to vector<2x8xf32>
    %549 = vector.shape_cast %548 : vector<2x8xf32> to vector<2x8x1xf32>
    %550 = tpu.reciprocal %549 : vector<2x8x1xf32> -> vector<2x8x1xf32>
    %551 = vector.broadcast %550 : vector<2x8x1xf32> to vector<2x8x8xf32>
    %552 = arith.mulf %547, %551 : vector<2x8x8xf32>
    "tpu.trace_start"() <{level = 10 : i32, message = "bqk,bkd->bqd"}> : () -> ()
    %cst_219 = arith.constant dense<0.000000e+00> : vector<2x8x8xf32>
    %553 = tpu.matmul %552, %534, %cst_219 {dimension_numbers = #tpu.dot_dimension_numbers<[2], [1], [1], [2], [0, 0, 0, 1, 1, 2], [0], [0]>} : vector<2x8x8xf32>, vector<2x8x8xf32>, vector<2x8x8xf32> -> vector<2x8x8xf32>
    "tpu.trace_stop"() : () -> ()
    %554 = tpu.concatenate %490, %511, %532, %553 in 2 : vector<2x8x8xf32>, vector<2x8x8xf32>, vector<2x8x8xf32>, vector<2x8x8xf32> -> vector<2x8x32xf32>
    %555 = vector.shape_cast %554 : vector<2x8x32xf32> to vector<16x32xf32>
    %cst_220 = arith.constant dense<0.000000e+00> : vector<16x32xf32>
    %556 = tpu.matmul %555, %344, %cst_220 {dimension_numbers = #tpu.dot_dimension_numbers<[1], [0], [0], [1], [0, 0, 1, 1], [], []>} : vector<16x32xf32>, vector<32x32xf32>, vector<16x32xf32> -> vector<16x32xf32>
    %557 = vector.broadcast %345 : vector<1x32xf32> to vector<16x32xf32>
    %558 = arith.addf %556, %557 : vector<16x32xf32>
    %559 = arith.addf %558, %467 : vector<16x32xf32>
    %cst_221 = arith.constant dense<0.000000e+00> : vector<16xf32>
    %560 = vector.multi_reduction <add>, %559, %cst_221 [1] : vector<16x32xf32> to vector<16xf32>
    %561 = vector.shape_cast %560 : vector<16xf32> to vector<16x1xf32>
    %cst_222 = arith.constant 3.200000e+01 : f32
    %562 = vector.broadcast %cst_222 : f32 to vector<16x1xf32>
    %563 = arith.divf %561, %562 : vector<16x1xf32>
    %564 = vector.broadcast %563 : vector<16x1xf32> to vector<16x32xf32>
    %565 = arith.subf %559, %564 : vector<16x32xf32>
    %566 = arith.mulf %565, %565 : vector<16x32xf32>
    %cst_223 = arith.constant dense<0.000000e+00> : vector<16xf32>
    %567 = vector.multi_reduction <add>, %566, %cst_223 [1] : vector<16x32xf32> to vector<16xf32>
    %568 = vector.shape_cast %567 : vector<16xf32> to vector<16x1xf32>
    %cst_224 = arith.constant 3.200000e+01 : f32
    %569 = vector.broadcast %cst_224 : f32 to vector<16x1xf32>
    %570 = arith.divf %568, %569 : vector<16x1xf32>
    %571 = vector.broadcast %563 : vector<16x1xf32> to vector<16x32xf32>
    %572 = arith.subf %559, %571 : vector<16x32xf32>
    %cst_225 = arith.constant 9.99999974E-6 : f32
    %573 = vector.broadcast %cst_225 : f32 to vector<16x1xf32>
    %574 = arith.addf %570, %573 : vector<16x1xf32>
    %575 = math.rsqrt %574 : vector<16x1xf32>
    %576 = vector.broadcast %575 : vector<16x1xf32> to vector<16x32xf32>
    %577 = arith.mulf %572, %576 : vector<16x32xf32>
    %578 = vector.broadcast %346 : vector<1x32xf32> to vector<16x32xf32>
    %579 = arith.mulf %577, %578 : vector<16x32xf32>
    %580 = vector.broadcast %347 : vector<1x32xf32> to vector<16x32xf32>
    %581 = arith.addf %579, %580 : vector<16x32xf32>
    %cst_226 = arith.constant dense<0.000000e+00> : vector<16x64xf32>
    %582 = tpu.matmul %581, %348, %cst_226 {dimension_numbers = #tpu.dot_dimension_numbers<[1], [0], [0], [1], [0, 0, 1, 1], [], []>} : vector<16x32xf32>, vector<32x64xf32>, vector<16x64xf32> -> vector<16x64xf32>
    %583 = vector.broadcast %349 : vector<1x64xf32> to vector<16x64xf32>
    %584 = arith.addf %582, %583 : vector<16x64xf32>
    %cst_227 = arith.constant 0.000000e+00 : f32
    %585 = vector.broadcast %cst_227 : f32 to vector<16x64xf32>
    %586 = arith.maximumf %584, %585 : vector<16x64xf32>
    %cst_228 = arith.constant dense<0.000000e+00> : vector<16x32xf32>
    %587 = tpu.matmul %586, %350, %cst_228 {dimension_numbers = #tpu.dot_dimension_numbers<[1], [0], [0], [1], [0, 0, 1, 1], [], []>} : vector<16x64xf32>, vector<64x32xf32>, vector<16x32xf32> -> vector<16x32xf32>
    %588 = vector.broadcast %351 : vector<1x32xf32> to vector<16x32xf32>
    %589 = arith.addf %587, %588 : vector<16x32xf32>
    %590 = arith.addf %589, %581 : vector<16x32xf32>
    %cst_229 = arith.constant dense<0.000000e+00> : vector<16xf32>
    %591 = vector.multi_reduction <add>, %590, %cst_229 [1] : vector<16x32xf32> to vector<16xf32>
    %592 = vector.shape_cast %591 : vector<16xf32> to vector<16x1xf32>
    %cst_230 = arith.constant 3.200000e+01 : f32
    %593 = vector.broadcast %cst_230 : f32 to vector<16x1xf32>
    %594 = arith.divf %592, %593 : vector<16x1xf32>
    %595 = vector.broadcast %594 : vector<16x1xf32> to vector<16x32xf32>
    %596 = arith.subf %590, %595 : vector<16x32xf32>
    %597 = arith.mulf %596, %596 : vector<16x32xf32>
    %cst_231 = arith.constant dense<0.000000e+00> : vector<16xf32>
    %598 = vector.multi_reduction <add>, %597, %cst_231 [1] : vector<16x32xf32> to vector<16xf32>
    %599 = vector.shape_cast %598 : vector<16xf32> to vector<16x1xf32>
    %cst_232 = arith.constant 3.200000e+01 : f32
    %600 = vector.broadcast %cst_232 : f32 to vector<16x1xf32>
    %601 = arith.divf %599, %600 : vector<16x1xf32>
    %602 = vector.broadcast %594 : vector<16x1xf32> to vector<16x32xf32>
    %603 = arith.subf %590, %602 : vector<16x32xf32>
    %cst_233 = arith.constant 9.99999974E-6 : f32
    %604 = vector.broadcast %cst_233 : f32 to vector<16x1xf32>
    %605 = arith.addf %601, %604 : vector<16x1xf32>
    %606 = math.rsqrt %605 : vector<16x1xf32>
    %607 = vector.broadcast %606 : vector<16x1xf32> to vector<16x32xf32>
    %608 = arith.mulf %603, %607 : vector<16x32xf32>
    %609 = vector.broadcast %352 : vector<1x32xf32> to vector<16x32xf32>
    %610 = arith.mulf %608, %609 : vector<16x32xf32>
    %611 = vector.broadcast %353 : vector<1x32xf32> to vector<16x32xf32>
    %612 = arith.addf %610, %611 : vector<16x32xf32>
    %c0_234 = arith.constant 0 : index
    %c0_235 = arith.constant 0 : index
    %613 = vector.load %arg44[%c0_234, %c0_235] : memref<32x32xf32, #tpu.memory_space<vmem>>, vector<32x32xf32>
    %c0_236 = arith.constant 0 : index
    %c0_237 = arith.constant 0 : index
    %614 = vector.load %arg45[%c0_236, %c0_237] : memref<1x32xf32, #tpu.memory_space<vmem>>, vector<1x32xf32>
    %c0_238 = arith.constant 0 : index
    %c0_239 = arith.constant 0 : index
    %615 = vector.load %arg46[%c0_238, %c0_239] : memref<1x32xf32, #tpu.memory_space<vmem>>, vector<1x32xf32>
    %c0_240 = arith.constant 0 : index
    %c0_241 = arith.constant 0 : index
    %616 = vector.load %arg47[%c0_240, %c0_241] : memref<1x32xf32, #tpu.memory_space<vmem>>, vector<1x32xf32>
    %c0_242 = arith.constant 0 : index
    %c0_243 = arith.constant 0 : index
    %617 = vector.load %arg48[%c0_242, %c0_243] : memref<32x32xf32, #tpu.memory_space<vmem>>, vector<32x32xf32>
    %c0_244 = arith.constant 0 : index
    %c0_245 = arith.constant 0 : index
    %618 = vector.load %arg49[%c0_244, %c0_245] : memref<1x32xf32, #tpu.memory_space<vmem>>, vector<1x32xf32>
    %c0_246 = arith.constant 0 : index
    %c0_247 = arith.constant 0 : index
    %619 = vector.load %arg50[%c0_246, %c0_247] : memref<1x32xf32, #tpu.memory_space<vmem>>, vector<1x32xf32>
    %c0_248 = arith.constant 0 : index
    %c0_249 = arith.constant 0 : index
    %620 = vector.load %arg51[%c0_248, %c0_249] : memref<1x32xf32, #tpu.memory_space<vmem>>, vector<1x32xf32>
    %c0_250 = arith.constant 0 : index
    %c0_251 = arith.constant 0 : index
    %621 = vector.load %arg52[%c0_250, %c0_251] : memref<32x64xf32, #tpu.memory_space<vmem>>, vector<32x64xf32>
    %c0_252 = arith.constant 0 : index
    %c0_253 = arith.constant 0 : index
    %622 = vector.load %arg53[%c0_252, %c0_253] : memref<1x64xf32, #tpu.memory_space<vmem>>, vector<1x64xf32>
    %c0_254 = arith.constant 0 : index
    %c0_255 = arith.constant 0 : index
    %623 = vector.load %arg54[%c0_254, %c0_255] : memref<64x32xf32, #tpu.memory_space<vmem>>, vector<64x32xf32>
    %c0_256 = arith.constant 0 : index
    %c0_257 = arith.constant 0 : index
    %624 = vector.load %arg55[%c0_256, %c0_257] : memref<1x32xf32, #tpu.memory_space<vmem>>, vector<1x32xf32>
    %c0_258 = arith.constant 0 : index
    %c0_259 = arith.constant 0 : index
    %625 = vector.load %arg56[%c0_258, %c0_259] : memref<1x32xf32, #tpu.memory_space<vmem>>, vector<1x32xf32>
    %c0_260 = arith.constant 0 : index
    %c0_261 = arith.constant 0 : index
    %626 = vector.load %arg57[%c0_260, %c0_261] : memref<1x32xf32, #tpu.memory_space<vmem>>, vector<1x32xf32>
    %627 = vector.shape_cast %612 : vector<16x32xf32> to vector<2x8x32xf32>
    %628 = vector.shape_cast %612 : vector<16x32xf32> to vector<2x8x32xf32>
    %629 = vector.extract_strided_slice %627 {offsets = [0, 0, 0], sizes = [2, 8, 8], strides = [1, 1, 1]} : vector<2x8x32xf32> to vector<2x8x8xf32>
    %630 = vector.extract_strided_slice %628 {offsets = [0, 0, 0], sizes = [2, 8, 8], strides = [1, 1, 1]} : vector<2x8x32xf32> to vector<2x8x8xf32>
    "tpu.trace_start"() <{level = 10 : i32, message = "bqd,bkd->bqk"}> : () -> ()
    %cst_262 = arith.constant dense<0.000000e+00> : vector<2x8x8xf32>
    %631 = tpu.matmul %629, %630, %cst_262 {dimension_numbers = #tpu.dot_dimension_numbers<[2], [2], [1], [1], [0, 0, 0, 1, 1, 1], [0], [0]>} : vector<2x8x8xf32>, vector<2x8x8xf32>, vector<2x8x8xf32> -> vector<2x8x8xf32>
    "tpu.trace_stop"() : () -> ()
    %632 = vector.shape_cast %29 : vector<8x8xi1> to vector<1x8x8xi1>
    %cst_263 = arith.constant -1.000000e+20 : f32
    %633 = vector.shape_cast %632 : vector<1x8x8xi1> to vector<1x8x8xi1>
    %634 = vector.broadcast %633 : vector<1x8x8xi1> to vector<2x8x8xi1>
    %635 = vector.broadcast %cst_263 : f32 to vector<2x8x8xf32>
    %636 = arith.select %634, %635, %631 : vector<2x8x8xi1>, vector<2x8x8xf32>
    %cst_264 = arith.constant 0.353553385 : f32
    %637 = vector.broadcast %cst_264 : f32 to vector<2x8x8xf32>
    %638 = arith.mulf %636, %637 : vector<2x8x8xf32>
    %cst_265 = arith.constant dense<0xFF800000> : vector<2x8xf32>
    %639 = vector.multi_reduction <maximumf>, %638, %cst_265 [2] : vector<2x8x8xf32> to vector<2x8xf32>
    %640 = vector.shape_cast %639 : vector<2x8xf32> to vector<2x8x1xf32>
    %641 = vector.broadcast %640 : vector<2x8x1xf32> to vector<2x8x8xf32>
    %642 = arith.subf %638, %641 : vector<2x8x8xf32>
    %643 = math.exp %642 : vector<2x8x8xf32>
    %cst_266 = arith.constant dense<0.000000e+00> : vector<2x8xf32>
    %644 = vector.multi_reduction <add>, %643, %cst_266 [2] : vector<2x8x8xf32> to vector<2x8xf32>
    %645 = vector.shape_cast %644 : vector<2x8xf32> to vector<2x8x1xf32>
    %646 = tpu.reciprocal %645 : vector<2x8x1xf32> -> vector<2x8x1xf32>
    %647 = vector.broadcast %646 : vector<2x8x1xf32> to vector<2x8x8xf32>
    %648 = arith.mulf %643, %647 : vector<2x8x8xf32>
    "tpu.trace_start"() <{level = 10 : i32, message = "bqk,bkd->bqd"}> : () -> ()
    %cst_267 = arith.constant dense<0.000000e+00> : vector<2x8x8xf32>
    %649 = tpu.matmul %648, %630, %cst_267 {dimension_numbers = #tpu.dot_dimension_numbers<[2], [1], [1], [2], [0, 0, 0, 1, 1, 2], [0], [0]>} : vector<2x8x8xf32>, vector<2x8x8xf32>, vector<2x8x8xf32> -> vector<2x8x8xf32>
    "tpu.trace_stop"() : () -> ()
    %650 = vector.extract_strided_slice %627 {offsets = [0, 0, 8], sizes = [2, 8, 8], strides = [1, 1, 1]} : vector<2x8x32xf32> to vector<2x8x8xf32>
    %651 = vector.extract_strided_slice %628 {offsets = [0, 0, 8], sizes = [2, 8, 8], strides = [1, 1, 1]} : vector<2x8x32xf32> to vector<2x8x8xf32>
    "tpu.trace_start"() <{level = 10 : i32, message = "bqd,bkd->bqk"}> : () -> ()
    %cst_268 = arith.constant dense<0.000000e+00> : vector<2x8x8xf32>
    %652 = tpu.matmul %650, %651, %cst_268 {dimension_numbers = #tpu.dot_dimension_numbers<[2], [2], [1], [1], [0, 0, 0, 1, 1, 1], [0], [0]>} : vector<2x8x8xf32>, vector<2x8x8xf32>, vector<2x8x8xf32> -> vector<2x8x8xf32>
    "tpu.trace_stop"() : () -> ()
    %653 = vector.shape_cast %29 : vector<8x8xi1> to vector<1x8x8xi1>
    %cst_269 = arith.constant -1.000000e+20 : f32
    %654 = vector.shape_cast %653 : vector<1x8x8xi1> to vector<1x8x8xi1>
    %655 = vector.broadcast %654 : vector<1x8x8xi1> to vector<2x8x8xi1>
    %656 = vector.broadcast %cst_269 : f32 to vector<2x8x8xf32>
    %657 = arith.select %655, %656, %652 : vector<2x8x8xi1>, vector<2x8x8xf32>
    %cst_270 = arith.constant 0.353553385 : f32
    %658 = vector.broadcast %cst_270 : f32 to vector<2x8x8xf32>
    %659 = arith.mulf %657, %658 : vector<2x8x8xf32>
    %cst_271 = arith.constant dense<0xFF800000> : vector<2x8xf32>
    %660 = vector.multi_reduction <maximumf>, %659, %cst_271 [2] : vector<2x8x8xf32> to vector<2x8xf32>
    %661 = vector.shape_cast %660 : vector<2x8xf32> to vector<2x8x1xf32>
    %662 = vector.broadcast %661 : vector<2x8x1xf32> to vector<2x8x8xf32>
    %663 = arith.subf %659, %662 : vector<2x8x8xf32>
    %664 = math.exp %663 : vector<2x8x8xf32>
    %cst_272 = arith.constant dense<0.000000e+00> : vector<2x8xf32>
    %665 = vector.multi_reduction <add>, %664, %cst_272 [2] : vector<2x8x8xf32> to vector<2x8xf32>
    %666 = vector.shape_cast %665 : vector<2x8xf32> to vector<2x8x1xf32>
    %667 = tpu.reciprocal %666 : vector<2x8x1xf32> -> vector<2x8x1xf32>
    %668 = vector.broadcast %667 : vector<2x8x1xf32> to vector<2x8x8xf32>
    %669 = arith.mulf %664, %668 : vector<2x8x8xf32>
    "tpu.trace_start"() <{level = 10 : i32, message = "bqk,bkd->bqd"}> : () -> ()
    %cst_273 = arith.constant dense<0.000000e+00> : vector<2x8x8xf32>
    %670 = tpu.matmul %669, %651, %cst_273 {dimension_numbers = #tpu.dot_dimension_numbers<[2], [1], [1], [2], [0, 0, 0, 1, 1, 2], [0], [0]>} : vector<2x8x8xf32>, vector<2x8x8xf32>, vector<2x8x8xf32> -> vector<2x8x8xf32>
    "tpu.trace_stop"() : () -> ()
    %671 = vector.extract_strided_slice %627 {offsets = [0, 0, 16], sizes = [2, 8, 8], strides = [1, 1, 1]} : vector<2x8x32xf32> to vector<2x8x8xf32>
    %672 = vector.extract_strided_slice %628 {offsets = [0, 0, 16], sizes = [2, 8, 8], strides = [1, 1, 1]} : vector<2x8x32xf32> to vector<2x8x8xf32>
    "tpu.trace_start"() <{level = 10 : i32, message = "bqd,bkd->bqk"}> : () -> ()
    %cst_274 = arith.constant dense<0.000000e+00> : vector<2x8x8xf32>
    %673 = tpu.matmul %671, %672, %cst_274 {dimension_numbers = #tpu.dot_dimension_numbers<[2], [2], [1], [1], [0, 0, 0, 1, 1, 1], [0], [0]>} : vector<2x8x8xf32>, vector<2x8x8xf32>, vector<2x8x8xf32> -> vector<2x8x8xf32>
    "tpu.trace_stop"() : () -> ()
    %674 = vector.shape_cast %29 : vector<8x8xi1> to vector<1x8x8xi1>
    %cst_275 = arith.constant -1.000000e+20 : f32
    %675 = vector.shape_cast %674 : vector<1x8x8xi1> to vector<1x8x8xi1>
    %676 = vector.broadcast %675 : vector<1x8x8xi1> to vector<2x8x8xi1>
    %677 = vector.broadcast %cst_275 : f32 to vector<2x8x8xf32>
    %678 = arith.select %676, %677, %673 : vector<2x8x8xi1>, vector<2x8x8xf32>
    %cst_276 = arith.constant 0.353553385 : f32
    %679 = vector.broadcast %cst_276 : f32 to vector<2x8x8xf32>
    %680 = arith.mulf %678, %679 : vector<2x8x8xf32>
    %cst_277 = arith.constant dense<0xFF800000> : vector<2x8xf32>
    %681 = vector.multi_reduction <maximumf>, %680, %cst_277 [2] : vector<2x8x8xf32> to vector<2x8xf32>
    %682 = vector.shape_cast %681 : vector<2x8xf32> to vector<2x8x1xf32>
    %683 = vector.broadcast %682 : vector<2x8x1xf32> to vector<2x8x8xf32>
    %684 = arith.subf %680, %683 : vector<2x8x8xf32>
    %685 = math.exp %684 : vector<2x8x8xf32>
    %cst_278 = arith.constant dense<0.000000e+00> : vector<2x8xf32>
    %686 = vector.multi_reduction <add>, %685, %cst_278 [2] : vector<2x8x8xf32> to vector<2x8xf32>
    %687 = vector.shape_cast %686 : vector<2x8xf32> to vector<2x8x1xf32>
    %688 = tpu.reciprocal %687 : vector<2x8x1xf32> -> vector<2x8x1xf32>
    %689 = vector.broadcast %688 : vector<2x8x1xf32> to vector<2x8x8xf32>
    %690 = arith.mulf %685, %689 : vector<2x8x8xf32>
    "tpu.trace_start"() <{level = 10 : i32, message = "bqk,bkd->bqd"}> : () -> ()
    %cst_279 = arith.constant dense<0.000000e+00> : vector<2x8x8xf32>
    %691 = tpu.matmul %690, %672, %cst_279 {dimension_numbers = #tpu.dot_dimension_numbers<[2], [1], [1], [2], [0, 0, 0, 1, 1, 2], [0], [0]>} : vector<2x8x8xf32>, vector<2x8x8xf32>, vector<2x8x8xf32> -> vector<2x8x8xf32>
    "tpu.trace_stop"() : () -> ()
    %692 = vector.extract_strided_slice %627 {offsets = [0, 0, 24], sizes = [2, 8, 8], strides = [1, 1, 1]} : vector<2x8x32xf32> to vector<2x8x8xf32>
    %693 = vector.extract_strided_slice %628 {offsets = [0, 0, 24], sizes = [2, 8, 8], strides = [1, 1, 1]} : vector<2x8x32xf32> to vector<2x8x8xf32>
    "tpu.trace_start"() <{level = 10 : i32, message = "bqd,bkd->bqk"}> : () -> ()
    %cst_280 = arith.constant dense<0.000000e+00> : vector<2x8x8xf32>
    %694 = tpu.matmul %692, %693, %cst_280 {dimension_numbers = #tpu.dot_dimension_numbers<[2], [2], [1], [1], [0, 0, 0, 1, 1, 1], [0], [0]>} : vector<2x8x8xf32>, vector<2x8x8xf32>, vector<2x8x8xf32> -> vector<2x8x8xf32>
    "tpu.trace_stop"() : () -> ()
    %695 = vector.shape_cast %29 : vector<8x8xi1> to vector<1x8x8xi1>
    %cst_281 = arith.constant -1.000000e+20 : f32
    %696 = vector.shape_cast %695 : vector<1x8x8xi1> to vector<1x8x8xi1>
    %697 = vector.broadcast %696 : vector<1x8x8xi1> to vector<2x8x8xi1>
    %698 = vector.broadcast %cst_281 : f32 to vector<2x8x8xf32>
    %699 = arith.select %697, %698, %694 : vector<2x8x8xi1>, vector<2x8x8xf32>
    %cst_282 = arith.constant 0.353553385 : f32
    %700 = vector.broadcast %cst_282 : f32 to vector<2x8x8xf32>
    %701 = arith.mulf %699, %700 : vector<2x8x8xf32>
    %cst_283 = arith.constant dense<0xFF800000> : vector<2x8xf32>
    %702 = vector.multi_reduction <maximumf>, %701, %cst_283 [2] : vector<2x8x8xf32> to vector<2x8xf32>
    %703 = vector.shape_cast %702 : vector<2x8xf32> to vector<2x8x1xf32>
    %704 = vector.broadcast %703 : vector<2x8x1xf32> to vector<2x8x8xf32>
    %705 = arith.subf %701, %704 : vector<2x8x8xf32>
    %706 = math.exp %705 : vector<2x8x8xf32>
    %cst_284 = arith.constant dense<0.000000e+00> : vector<2x8xf32>
    %707 = vector.multi_reduction <add>, %706, %cst_284 [2] : vector<2x8x8xf32> to vector<2x8xf32>
    %708 = vector.shape_cast %707 : vector<2x8xf32> to vector<2x8x1xf32>
    %709 = tpu.reciprocal %708 : vector<2x8x1xf32> -> vector<2x8x1xf32>
    %710 = vector.broadcast %709 : vector<2x8x1xf32> to vector<2x8x8xf32>
    %711 = arith.mulf %706, %710 : vector<2x8x8xf32>
    "tpu.trace_start"() <{level = 10 : i32, message = "bqk,bkd->bqd"}> : () -> ()
    %cst_285 = arith.constant dense<0.000000e+00> : vector<2x8x8xf32>
    %712 = tpu.matmul %711, %693, %cst_285 {dimension_numbers = #tpu.dot_dimension_numbers<[2], [1], [1], [2], [0, 0, 0, 1, 1, 2], [0], [0]>} : vector<2x8x8xf32>, vector<2x8x8xf32>, vector<2x8x8xf32> -> vector<2x8x8xf32>
    "tpu.trace_stop"() : () -> ()
    %713 = tpu.concatenate %649, %670, %691, %712 in 2 : vector<2x8x8xf32>, vector<2x8x8xf32>, vector<2x8x8xf32>, vector<2x8x8xf32> -> vector<2x8x32xf32>
    %714 = vector.shape_cast %713 : vector<2x8x32xf32> to vector<16x32xf32>
    %cst_286 = arith.constant dense<0.000000e+00> : vector<16x32xf32>
    %715 = tpu.matmul %714, %613, %cst_286 {dimension_numbers = #tpu.dot_dimension_numbers<[1], [0], [0], [1], [0, 0, 1, 1], [], []>} : vector<16x32xf32>, vector<32x32xf32>, vector<16x32xf32> -> vector<16x32xf32>
    %716 = vector.broadcast %614 : vector<1x32xf32> to vector<16x32xf32>
    %717 = arith.addf %715, %716 : vector<16x32xf32>
    %718 = arith.addf %717, %612 : vector<16x32xf32>
    %cst_287 = arith.constant dense<0.000000e+00> : vector<16xf32>
    %719 = vector.multi_reduction <add>, %718, %cst_287 [1] : vector<16x32xf32> to vector<16xf32>
    %720 = vector.shape_cast %719 : vector<16xf32> to vector<16x1xf32>
    %cst_288 = arith.constant 3.200000e+01 : f32
    %721 = vector.broadcast %cst_288 : f32 to vector<16x1xf32>
    %722 = arith.divf %720, %721 : vector<16x1xf32>
    %723 = vector.broadcast %722 : vector<16x1xf32> to vector<16x32xf32>
    %724 = arith.subf %718, %723 : vector<16x32xf32>
    %725 = arith.mulf %724, %724 : vector<16x32xf32>
    %cst_289 = arith.constant dense<0.000000e+00> : vector<16xf32>
    %726 = vector.multi_reduction <add>, %725, %cst_289 [1] : vector<16x32xf32> to vector<16xf32>
    %727 = vector.shape_cast %726 : vector<16xf32> to vector<16x1xf32>
    %cst_290 = arith.constant 3.200000e+01 : f32
    %728 = vector.broadcast %cst_290 : f32 to vector<16x1xf32>
    %729 = arith.divf %727, %728 : vector<16x1xf32>
    %730 = vector.broadcast %722 : vector<16x1xf32> to vector<16x32xf32>
    %731 = arith.subf %718, %730 : vector<16x32xf32>
    %cst_291 = arith.constant 9.99999974E-6 : f32
    %732 = vector.broadcast %cst_291 : f32 to vector<16x1xf32>
    %733 = arith.addf %729, %732 : vector<16x1xf32>
    %734 = math.rsqrt %733 : vector<16x1xf32>
    %735 = vector.broadcast %734 : vector<16x1xf32> to vector<16x32xf32>
    %736 = arith.mulf %731, %735 : vector<16x32xf32>
    %737 = vector.broadcast %615 : vector<1x32xf32> to vector<16x32xf32>
    %738 = arith.mulf %736, %737 : vector<16x32xf32>
    %739 = vector.broadcast %616 : vector<1x32xf32> to vector<16x32xf32>
    %740 = arith.addf %738, %739 : vector<16x32xf32>
    %741 = vector.shape_cast %740 : vector<16x32xf32> to vector<2x8x32xf32>
    %742 = vector.shape_cast %339 : vector<16x32xf32> to vector<2x8x32xf32>
    %743 = vector.extract_strided_slice %741 {offsets = [0, 0, 0], sizes = [2, 8, 8], strides = [1, 1, 1]} : vector<2x8x32xf32> to vector<2x8x8xf32>
    %744 = vector.extract_strided_slice %742 {offsets = [0, 0, 0], sizes = [2, 8, 8], strides = [1, 1, 1]} : vector<2x8x32xf32> to vector<2x8x8xf32>
    "tpu.trace_start"() <{level = 10 : i32, message = "bqd,bkd->bqk"}> : () -> ()
    %cst_292 = arith.constant dense<0.000000e+00> : vector<2x8x8xf32>
    %745 = tpu.matmul %743, %744, %cst_292 {dimension_numbers = #tpu.dot_dimension_numbers<[2], [2], [1], [1], [0, 0, 0, 1, 1, 1], [0], [0]>} : vector<2x8x8xf32>, vector<2x8x8xf32>, vector<2x8x8xf32> -> vector<2x8x8xf32>
    "tpu.trace_stop"() : () -> ()
    %746 = vector.shape_cast %29 : vector<8x8xi1> to vector<1x8x8xi1>
    %cst_293 = arith.constant -1.000000e+20 : f32
    %747 = vector.shape_cast %746 : vector<1x8x8xi1> to vector<1x8x8xi1>
    %748 = vector.broadcast %747 : vector<1x8x8xi1> to vector<2x8x8xi1>
    %749 = vector.broadcast %cst_293 : f32 to vector<2x8x8xf32>
    %750 = arith.select %748, %749, %745 : vector<2x8x8xi1>, vector<2x8x8xf32>
    %cst_294 = arith.constant 0.353553385 : f32
    %751 = vector.broadcast %cst_294 : f32 to vector<2x8x8xf32>
    %752 = arith.mulf %750, %751 : vector<2x8x8xf32>
    %cst_295 = arith.constant dense<0xFF800000> : vector<2x8xf32>
    %753 = vector.multi_reduction <maximumf>, %752, %cst_295 [2] : vector<2x8x8xf32> to vector<2x8xf32>
    %754 = vector.shape_cast %753 : vector<2x8xf32> to vector<2x8x1xf32>
    %755 = vector.broadcast %754 : vector<2x8x1xf32> to vector<2x8x8xf32>
    %756 = arith.subf %752, %755 : vector<2x8x8xf32>
    %757 = math.exp %756 : vector<2x8x8xf32>
    %cst_296 = arith.constant dense<0.000000e+00> : vector<2x8xf32>
    %758 = vector.multi_reduction <add>, %757, %cst_296 [2] : vector<2x8x8xf32> to vector<2x8xf32>
    %759 = vector.shape_cast %758 : vector<2x8xf32> to vector<2x8x1xf32>
    %760 = tpu.reciprocal %759 : vector<2x8x1xf32> -> vector<2x8x1xf32>
    %761 = vector.broadcast %760 : vector<2x8x1xf32> to vector<2x8x8xf32>
    %762 = arith.mulf %757, %761 : vector<2x8x8xf32>
    "tpu.trace_start"() <{level = 10 : i32, message = "bqk,bkd->bqd"}> : () -> ()
    %cst_297 = arith.constant dense<0.000000e+00> : vector<2x8x8xf32>
    %763 = tpu.matmul %762, %744, %cst_297 {dimension_numbers = #tpu.dot_dimension_numbers<[2], [1], [1], [2], [0, 0, 0, 1, 1, 2], [0], [0]>} : vector<2x8x8xf32>, vector<2x8x8xf32>, vector<2x8x8xf32> -> vector<2x8x8xf32>
    "tpu.trace_stop"() : () -> ()
    %764 = vector.extract_strided_slice %741 {offsets = [0, 0, 8], sizes = [2, 8, 8], strides = [1, 1, 1]} : vector<2x8x32xf32> to vector<2x8x8xf32>
    %765 = vector.extract_strided_slice %742 {offsets = [0, 0, 8], sizes = [2, 8, 8], strides = [1, 1, 1]} : vector<2x8x32xf32> to vector<2x8x8xf32>
    "tpu.trace_start"() <{level = 10 : i32, message = "bqd,bkd->bqk"}> : () -> ()
    %cst_298 = arith.constant dense<0.000000e+00> : vector<2x8x8xf32>
    %766 = tpu.matmul %764, %765, %cst_298 {dimension_numbers = #tpu.dot_dimension_numbers<[2], [2], [1], [1], [0, 0, 0, 1, 1, 1], [0], [0]>} : vector<2x8x8xf32>, vector<2x8x8xf32>, vector<2x8x8xf32> -> vector<2x8x8xf32>
    "tpu.trace_stop"() : () -> ()
    %767 = vector.shape_cast %29 : vector<8x8xi1> to vector<1x8x8xi1>
    %cst_299 = arith.constant -1.000000e+20 : f32
    %768 = vector.shape_cast %767 : vector<1x8x8xi1> to vector<1x8x8xi1>
    %769 = vector.broadcast %768 : vector<1x8x8xi1> to vector<2x8x8xi1>
    %770 = vector.broadcast %cst_299 : f32 to vector<2x8x8xf32>
    %771 = arith.select %769, %770, %766 : vector<2x8x8xi1>, vector<2x8x8xf32>
    %cst_300 = arith.constant 0.353553385 : f32
    %772 = vector.broadcast %cst_300 : f32 to vector<2x8x8xf32>
    %773 = arith.mulf %771, %772 : vector<2x8x8xf32>
    %cst_301 = arith.constant dense<0xFF800000> : vector<2x8xf32>
    %774 = vector.multi_reduction <maximumf>, %773, %cst_301 [2] : vector<2x8x8xf32> to vector<2x8xf32>
    %775 = vector.shape_cast %774 : vector<2x8xf32> to vector<2x8x1xf32>
    %776 = vector.broadcast %775 : vector<2x8x1xf32> to vector<2x8x8xf32>
    %777 = arith.subf %773, %776 : vector<2x8x8xf32>
    %778 = math.exp %777 : vector<2x8x8xf32>
    %cst_302 = arith.constant dense<0.000000e+00> : vector<2x8xf32>
    %779 = vector.multi_reduction <add>, %778, %cst_302 [2] : vector<2x8x8xf32> to vector<2x8xf32>
    %780 = vector.shape_cast %779 : vector<2x8xf32> to vector<2x8x1xf32>
    %781 = tpu.reciprocal %780 : vector<2x8x1xf32> -> vector<2x8x1xf32>
    %782 = vector.broadcast %781 : vector<2x8x1xf32> to vector<2x8x8xf32>
    %783 = arith.mulf %778, %782 : vector<2x8x8xf32>
    "tpu.trace_start"() <{level = 10 : i32, message = "bqk,bkd->bqd"}> : () -> ()
    %cst_303 = arith.constant dense<0.000000e+00> : vector<2x8x8xf32>
    %784 = tpu.matmul %783, %765, %cst_303 {dimension_numbers = #tpu.dot_dimension_numbers<[2], [1], [1], [2], [0, 0, 0, 1, 1, 2], [0], [0]>} : vector<2x8x8xf32>, vector<2x8x8xf32>, vector<2x8x8xf32> -> vector<2x8x8xf32>
    "tpu.trace_stop"() : () -> ()
    %785 = vector.extract_strided_slice %741 {offsets = [0, 0, 16], sizes = [2, 8, 8], strides = [1, 1, 1]} : vector<2x8x32xf32> to vector<2x8x8xf32>
    %786 = vector.extract_strided_slice %742 {offsets = [0, 0, 16], sizes = [2, 8, 8], strides = [1, 1, 1]} : vector<2x8x32xf32> to vector<2x8x8xf32>
    "tpu.trace_start"() <{level = 10 : i32, message = "bqd,bkd->bqk"}> : () -> ()
    %cst_304 = arith.constant dense<0.000000e+00> : vector<2x8x8xf32>
    %787 = tpu.matmul %785, %786, %cst_304 {dimension_numbers = #tpu.dot_dimension_numbers<[2], [2], [1], [1], [0, 0, 0, 1, 1, 1], [0], [0]>} : vector<2x8x8xf32>, vector<2x8x8xf32>, vector<2x8x8xf32> -> vector<2x8x8xf32>
    "tpu.trace_stop"() : () -> ()
    %788 = vector.shape_cast %29 : vector<8x8xi1> to vector<1x8x8xi1>
    %cst_305 = arith.constant -1.000000e+20 : f32
    %789 = vector.shape_cast %788 : vector<1x8x8xi1> to vector<1x8x8xi1>
    %790 = vector.broadcast %789 : vector<1x8x8xi1> to vector<2x8x8xi1>
    %791 = vector.broadcast %cst_305 : f32 to vector<2x8x8xf32>
    %792 = arith.select %790, %791, %787 : vector<2x8x8xi1>, vector<2x8x8xf32>
    %cst_306 = arith.constant 0.353553385 : f32
    %793 = vector.broadcast %cst_306 : f32 to vector<2x8x8xf32>
    %794 = arith.mulf %792, %793 : vector<2x8x8xf32>
    %cst_307 = arith.constant dense<0xFF800000> : vector<2x8xf32>
    %795 = vector.multi_reduction <maximumf>, %794, %cst_307 [2] : vector<2x8x8xf32> to vector<2x8xf32>
    %796 = vector.shape_cast %795 : vector<2x8xf32> to vector<2x8x1xf32>
    %797 = vector.broadcast %796 : vector<2x8x1xf32> to vector<2x8x8xf32>
    %798 = arith.subf %794, %797 : vector<2x8x8xf32>
    %799 = math.exp %798 : vector<2x8x8xf32>
    %cst_308 = arith.constant dense<0.000000e+00> : vector<2x8xf32>
    %800 = vector.multi_reduction <add>, %799, %cst_308 [2] : vector<2x8x8xf32> to vector<2x8xf32>
    %801 = vector.shape_cast %800 : vector<2x8xf32> to vector<2x8x1xf32>
    %802 = tpu.reciprocal %801 : vector<2x8x1xf32> -> vector<2x8x1xf32>
    %803 = vector.broadcast %802 : vector<2x8x1xf32> to vector<2x8x8xf32>
    %804 = arith.mulf %799, %803 : vector<2x8x8xf32>
    "tpu.trace_start"() <{level = 10 : i32, message = "bqk,bkd->bqd"}> : () -> ()
    %cst_309 = arith.constant dense<0.000000e+00> : vector<2x8x8xf32>
    %805 = tpu.matmul %804, %786, %cst_309 {dimension_numbers = #tpu.dot_dimension_numbers<[2], [1], [1], [2], [0, 0, 0, 1, 1, 2], [0], [0]>} : vector<2x8x8xf32>, vector<2x8x8xf32>, vector<2x8x8xf32> -> vector<2x8x8xf32>
    "tpu.trace_stop"() : () -> ()
    %806 = vector.extract_strided_slice %741 {offsets = [0, 0, 24], sizes = [2, 8, 8], strides = [1, 1, 1]} : vector<2x8x32xf32> to vector<2x8x8xf32>
    %807 = vector.extract_strided_slice %742 {offsets = [0, 0, 24], sizes = [2, 8, 8], strides = [1, 1, 1]} : vector<2x8x32xf32> to vector<2x8x8xf32>
    "tpu.trace_start"() <{level = 10 : i32, message = "bqd,bkd->bqk"}> : () -> ()
    %cst_310 = arith.constant dense<0.000000e+00> : vector<2x8x8xf32>
    %808 = tpu.matmul %806, %807, %cst_310 {dimension_numbers = #tpu.dot_dimension_numbers<[2], [2], [1], [1], [0, 0, 0, 1, 1, 1], [0], [0]>} : vector<2x8x8xf32>, vector<2x8x8xf32>, vector<2x8x8xf32> -> vector<2x8x8xf32>
    "tpu.trace_stop"() : () -> ()
    %809 = vector.shape_cast %29 : vector<8x8xi1> to vector<1x8x8xi1>
    %cst_311 = arith.constant -1.000000e+20 : f32
    %810 = vector.shape_cast %809 : vector<1x8x8xi1> to vector<1x8x8xi1>
    %811 = vector.broadcast %810 : vector<1x8x8xi1> to vector<2x8x8xi1>
    %812 = vector.broadcast %cst_311 : f32 to vector<2x8x8xf32>
    %813 = arith.select %811, %812, %808 : vector<2x8x8xi1>, vector<2x8x8xf32>
    %cst_312 = arith.constant 0.353553385 : f32
    %814 = vector.broadcast %cst_312 : f32 to vector<2x8x8xf32>
    %815 = arith.mulf %813, %814 : vector<2x8x8xf32>
    %cst_313 = arith.constant dense<0xFF800000> : vector<2x8xf32>
    %816 = vector.multi_reduction <maximumf>, %815, %cst_313 [2] : vector<2x8x8xf32> to vector<2x8xf32>
    %817 = vector.shape_cast %816 : vector<2x8xf32> to vector<2x8x1xf32>
    %818 = vector.broadcast %817 : vector<2x8x1xf32> to vector<2x8x8xf32>
    %819 = arith.subf %815, %818 : vector<2x8x8xf32>
    %820 = math.exp %819 : vector<2x8x8xf32>
    %cst_314 = arith.constant dense<0.000000e+00> : vector<2x8xf32>
    %821 = vector.multi_reduction <add>, %820, %cst_314 [2] : vector<2x8x8xf32> to vector<2x8xf32>
    %822 = vector.shape_cast %821 : vector<2x8xf32> to vector<2x8x1xf32>
    %823 = tpu.reciprocal %822 : vector<2x8x1xf32> -> vector<2x8x1xf32>
    %824 = vector.broadcast %823 : vector<2x8x1xf32> to vector<2x8x8xf32>
    %825 = arith.mulf %820, %824 : vector<2x8x8xf32>
    "tpu.trace_start"() <{level = 10 : i32, message = "bqk,bkd->bqd"}> : () -> ()
    %cst_315 = arith.constant dense<0.000000e+00> : vector<2x8x8xf32>
    %826 = tpu.matmul %825, %807, %cst_315 {dimension_numbers = #tpu.dot_dimension_numbers<[2], [1], [1], [2], [0, 0, 0, 1, 1, 2], [0], [0]>} : vector<2x8x8xf32>, vector<2x8x8xf32>, vector<2x8x8xf32> -> vector<2x8x8xf32>
    "tpu.trace_stop"() : () -> ()
    %827 = tpu.concatenate %763, %784, %805, %826 in 2 : vector<2x8x8xf32>, vector<2x8x8xf32>, vector<2x8x8xf32>, vector<2x8x8xf32> -> vector<2x8x32xf32>
    %828 = vector.shape_cast %827 : vector<2x8x32xf32> to vector<16x32xf32>
    %cst_316 = arith.constant dense<0.000000e+00> : vector<16x32xf32>
    %829 = tpu.matmul %828, %617, %cst_316 {dimension_numbers = #tpu.dot_dimension_numbers<[1], [0], [0], [1], [0, 0, 1, 1], [], []>} : vector<16x32xf32>, vector<32x32xf32>, vector<16x32xf32> -> vector<16x32xf32>
    %830 = vector.broadcast %618 : vector<1x32xf32> to vector<16x32xf32>
    %831 = arith.addf %829, %830 : vector<16x32xf32>
    %832 = arith.addf %831, %740 : vector<16x32xf32>
    %cst_317 = arith.constant dense<0.000000e+00> : vector<16xf32>
    %833 = vector.multi_reduction <add>, %832, %cst_317 [1] : vector<16x32xf32> to vector<16xf32>
    %834 = vector.shape_cast %833 : vector<16xf32> to vector<16x1xf32>
    %cst_318 = arith.constant 3.200000e+01 : f32
    %835 = vector.broadcast %cst_318 : f32 to vector<16x1xf32>
    %836 = arith.divf %834, %835 : vector<16x1xf32>
    %837 = vector.broadcast %836 : vector<16x1xf32> to vector<16x32xf32>
    %838 = arith.subf %832, %837 : vector<16x32xf32>
    %839 = arith.mulf %838, %838 : vector<16x32xf32>
    %cst_319 = arith.constant dense<0.000000e+00> : vector<16xf32>
    %840 = vector.multi_reduction <add>, %839, %cst_319 [1] : vector<16x32xf32> to vector<16xf32>
    %841 = vector.shape_cast %840 : vector<16xf32> to vector<16x1xf32>
    %cst_320 = arith.constant 3.200000e+01 : f32
    %842 = vector.broadcast %cst_320 : f32 to vector<16x1xf32>
    %843 = arith.divf %841, %842 : vector<16x1xf32>
    %844 = vector.broadcast %836 : vector<16x1xf32> to vector<16x32xf32>
    %845 = arith.subf %832, %844 : vector<16x32xf32>
    %cst_321 = arith.constant 9.99999974E-6 : f32
    %846 = vector.broadcast %cst_321 : f32 to vector<16x1xf32>
    %847 = arith.addf %843, %846 : vector<16x1xf32>
    %848 = math.rsqrt %847 : vector<16x1xf32>
    %849 = vector.broadcast %848 : vector<16x1xf32> to vector<16x32xf32>
    %850 = arith.mulf %845, %849 : vector<16x32xf32>
    %851 = vector.broadcast %619 : vector<1x32xf32> to vector<16x32xf32>
    %852 = arith.mulf %850, %851 : vector<16x32xf32>
    %853 = vector.broadcast %620 : vector<1x32xf32> to vector<16x32xf32>
    %854 = arith.addf %852, %853 : vector<16x32xf32>
    %cst_322 = arith.constant dense<0.000000e+00> : vector<16x64xf32>
    %855 = tpu.matmul %854, %621, %cst_322 {dimension_numbers = #tpu.dot_dimension_numbers<[1], [0], [0], [1], [0, 0, 1, 1], [], []>} : vector<16x32xf32>, vector<32x64xf32>, vector<16x64xf32> -> vector<16x64xf32>
    %856 = vector.broadcast %622 : vector<1x64xf32> to vector<16x64xf32>
    %857 = arith.addf %855, %856 : vector<16x64xf32>
    %cst_323 = arith.constant 0.000000e+00 : f32
    %858 = vector.broadcast %cst_323 : f32 to vector<16x64xf32>
    %859 = arith.maximumf %857, %858 : vector<16x64xf32>
    %cst_324 = arith.constant dense<0.000000e+00> : vector<16x32xf32>
    %860 = tpu.matmul %859, %623, %cst_324 {dimension_numbers = #tpu.dot_dimension_numbers<[1], [0], [0], [1], [0, 0, 1, 1], [], []>} : vector<16x64xf32>, vector<64x32xf32>, vector<16x32xf32> -> vector<16x32xf32>
    %861 = vector.broadcast %624 : vector<1x32xf32> to vector<16x32xf32>
    %862 = arith.addf %860, %861 : vector<16x32xf32>
    %863 = arith.addf %862, %854 : vector<16x32xf32>
    %cst_325 = arith.constant dense<0.000000e+00> : vector<16xf32>
    %864 = vector.multi_reduction <add>, %863, %cst_325 [1] : vector<16x32xf32> to vector<16xf32>
    %865 = vector.shape_cast %864 : vector<16xf32> to vector<16x1xf32>
    %cst_326 = arith.constant 3.200000e+01 : f32
    %866 = vector.broadcast %cst_326 : f32 to vector<16x1xf32>
    %867 = arith.divf %865, %866 : vector<16x1xf32>
    %868 = vector.broadcast %867 : vector<16x1xf32> to vector<16x32xf32>
    %869 = arith.subf %863, %868 : vector<16x32xf32>
    %870 = arith.mulf %869, %869 : vector<16x32xf32>
    %cst_327 = arith.constant dense<0.000000e+00> : vector<16xf32>
    %871 = vector.multi_reduction <add>, %870, %cst_327 [1] : vector<16x32xf32> to vector<16xf32>
    %872 = vector.shape_cast %871 : vector<16xf32> to vector<16x1xf32>
    %cst_328 = arith.constant 3.200000e+01 : f32
    %873 = vector.broadcast %cst_328 : f32 to vector<16x1xf32>
    %874 = arith.divf %872, %873 : vector<16x1xf32>
    %875 = vector.broadcast %867 : vector<16x1xf32> to vector<16x32xf32>
    %876 = arith.subf %863, %875 : vector<16x32xf32>
    %cst_329 = arith.constant 9.99999974E-6 : f32
    %877 = vector.broadcast %cst_329 : f32 to vector<16x1xf32>
    %878 = arith.addf %874, %877 : vector<16x1xf32>
    %879 = math.rsqrt %878 : vector<16x1xf32>
    %880 = vector.broadcast %879 : vector<16x1xf32> to vector<16x32xf32>
    %881 = arith.mulf %876, %880 : vector<16x32xf32>
    %882 = vector.broadcast %625 : vector<1x32xf32> to vector<16x32xf32>
    %883 = arith.mulf %881, %882 : vector<16x32xf32>
    %884 = vector.broadcast %626 : vector<1x32xf32> to vector<16x32xf32>
    %885 = arith.addf %883, %884 : vector<16x32xf32>
    %c0_330 = arith.constant 0 : index
    %c0_331 = arith.constant 0 : index
    %886 = vector.load %arg58[%c0_330, %c0_331] : memref<32x16xf32, #tpu.memory_space<vmem>>, vector<32x16xf32>
    %c0_332 = arith.constant 0 : index
    %c0_333 = arith.constant 0 : index
    %887 = vector.load %arg59[%c0_332, %c0_333] : memref<1x16xf32, #tpu.memory_space<vmem>>, vector<1x16xf32>
    %cst_334 = arith.constant dense<0.000000e+00> : vector<16x16xf32>
    %888 = tpu.matmul %885, %886, %cst_334 {dimension_numbers = #tpu.dot_dimension_numbers<[1], [0], [0], [1], [0, 0, 1, 1], [], []>} : vector<16x32xf32>, vector<32x16xf32>, vector<16x16xf32> -> vector<16x16xf32>
    %889 = vector.broadcast %887 : vector<1x16xf32> to vector<16x16xf32>
    %890 = arith.addf %888, %889 : vector<16x16xf32>
    %c0_335 = arith.constant 0 : index
    %c0_336 = arith.constant 0 : index
    %891 = vector.load %arg60[%c0_335, %c0_336] : memref<16x16xf32, #tpu.memory_space<vmem>>, vector<16x16xf32>
    tpu.vector_store %arg60[%c0_335, %c0_336], %890 {strides = array<i32>} : memref<16x16xf32, #tpu.memory_space<vmem>>, vector<16x16xf32>,
    return
  }
}

</mosaic_0001>

<bundles_post_ra>
// kernel: transformer_forward.1
= control target key start
LH: loop header
LB: loop body
LE: loop exit
PB: predicated region body
PF: predicated region fallthrough
CT: control target
= control target key end

     0   :  { %s7430_s6 = smov 1   ;;  %s7431_s10 = smov 2   ;;  %s9125_s0 = inlined_call_operand.smem [shape: u32[61], index: -1, kind: input, shape index: {}] }
   0x1   :  { %s7546_s5 = sld [smem:[%s9125_s0]]   ;;  %s7432_s14 = smov 3  }
   0x2   :  { %s7551_s9 = sld [smem:[%s9125_s0 + %s7430_s6]]   ;;  %s7433_s18 = smov 4  }
   0x3   :  { %s7556_s13 = sld [smem:[%s9125_s0 + %s7431_s10]]   ;;  %s7434_s22 = smov 5  }
   0x4   :  { %s7561_s17 = sld [smem:[%s9125_s0 + %s7432_s14]]   ;;  %s7435_s26 = smov 6  }
   0x5   :  { %s7566_s21 = sld [smem:[%s9125_s0 + %s7433_s18]]   ;;  %s7436_s30 = smov 7  }
   0x6   :  { %s7571_s25 = sld [smem:[%s9125_s0 + %s7434_s22]]   ;;  %s7437_s4 = smov 8  }
   0x7   :  { %9164 = sst [smem:[#allocation84_spill]] %s7546_s5  ;;  %s7438_s10 = smov 9  }
   0x8   :  { %9165 = sst [smem:[#allocation85_spill]] %s7551_s9  ;;  %s7439_s15 = smov 10  }
   0x9   :  { %9166 = sst [smem:[#allocation86_spill]] %s7556_s13  ;;  %s7440_s20 = smov 11  }
   0xa   :  { %9167 = sst [smem:[#allocation87_spill]] %s7561_s17  ;;  %s7442_s1 = smov 13  }
   0xb   :  { %s7576_s29 = sld [smem:[%s9125_s0 + %s7435_s26]]   ;;  %s7441_s26 = smov 12  }
   0xc   :  { %9168 = sst [smem:[#allocation88_spill]] %s7571_s25  ;;  %s7443_s7 = smov 14  }
   0xd   :  { %s7581_s3 = sld [smem:[%s9125_s0 + %s7436_s30]]   ;;  %s7445_s22 = smov 16  }
   0xe   :  { %s7586_s8 = sld [smem:[%s9125_s0 + %s7437_s4]]   ;;  %s7446_s28 = smov 17  }
   0xf   :  { %s7591_s14 = sld [smem:[%s9125_s0 + %s7438_s10]]  }
  0x10   :  { %s7596_s19 = sld [smem:[%s9125_s0 + %s7439_s15]]   ;;  %s7444_s15 = smov 15  }
  0x11   :  { %9169 = sst [smem:[#allocation89_spill]] %s7576_s29 }
  0x12   :  { %s7601_s24 = sld [smem:[%s9125_s0 + %s7440_s20]]  }
  0x13   :  { %s7606_s30 = sld [smem:[%s9125_s0 + %s7441_s26]]  }
  0x14   :  { %9170 = sst [smem:[#allocation90_spill]] %s7586_s8 }
  0x15   :  { %9171 = sst [smem:[#allocation91_spill]] %s7591_s14 }
  0x16   :  { %9172 = sst [smem:[#allocation92_spill]] %s7596_s19 }
  0x17   :  { %s7611_s6 = sld [smem:[%s9125_s0 + %s7442_s1]]  }
  0x18   :  { %9173 = sst [smem:[#allocation93_spill]] %s7601_s24 }
  0x19   :  { %s7616_s12 = sld [smem:[%s9125_s0 + %s7443_s7]]   ;;  %s7447_s7 = smov 18  }
  0x1a   :  { %s7621_s20 = sld [smem:[%s9125_s0 + %s7444_s15]]   ;;  %s7448_s15 = smov 19  }
  0x1b   :  { %s7626_s27 = sld [smem:[%s9125_s0 + %s7445_s22]]   ;;  %s7449_s22 = smov 20  }
  0x1c   :  { %s7631_s4 = sld [smem:[%s9125_s0 + %s7446_s28]]   ;;  %s7450_s28 = smov 21  }
  0x1d   :  { %9174 = sst [smem:[#allocation94_spill]] %s7611_s6 }
  0x1e   :  { %s7636_s17 = sld [smem:[%s9125_s0 + %s7447_s7]]   ;;  %s7451_s7 = smov 22  }
  0x1f   :  { %9175 = sst [smem:[#allocation95_spill]] %s7616_s12 }
  0x20   :  { %s7641_s12 = sld [smem:[%s9125_s0 + %s7448_s15]]   ;;  %s7452_s15 = smov 23  }
  0x21   :  { %9176 = sst [smem:[#allocation96_spill]] %s7626_s27 }
  0x22   :  { %9177 = sst [smem:[#allocation97_spill]] %s7631_s4 }
  0x23   :  { %s7646_s27 = sld [smem:[%s9125_s0 + %s7449_s22]]   ;;  %s7453_s22 = smov 24  }
  0x24   :  { %s7651_s19 = sld [smem:[%s9125_s0 + %s7450_s28]]   ;;  %s7454_s28 = smov 25  }
  0x25   :  { %s7656_s14 = sld [smem:[%s9125_s0 + %s7451_s7]]   ;;  %s7455_s7 = smov 26  }
  0x26   :  { %9178 = sst [smem:[#allocation98_spill]] %s7641_s12 }
  0x27   :  { %s7661_s13 = sld [smem:[%s9125_s0 + %s7452_s15]]   ;;  %s7456_s15 = smov 27  }
  0x28   :  { %s7671_s8 = sld [smem:[%s9125_s0 + %s7454_s28]]   ;;  %s7458_s28 = smov 29  }
  0x29   :  { %9179 = sst [smem:[#allocation99_spill]] %s7646_s27 }
  0x2a   :  { %s7666_s27 = sld [smem:[%s9125_s0 + %s7453_s22]]   ;;  %s7457_s22 = smov 28  }
  0x2b   :  { %9180 = sst [smem:[#allocation100_spill]] %s7656_s14 }
  0x2c   :  { %s7676_s25 = sld [smem:[%s9125_s0 + %s7455_s7]]   ;;  %s7459_s7 = smov 30  }
  0x2d   :  { %s7681_s5 = sld [smem:[%s9125_s0 + %s7456_s15]]   ;;  %s7460_s15 = smov 31  }
  0x2e   :  { %9182 = sst [smem:[#allocation102_spill]] %s7671_s8 }
  0x2f   :  { %s7691_s8 = sld [smem:[%s9125_s0 + %s7458_s28]]   ;;  %s7462_s28 = smov 33  }
  0x30   :  { %9181 = sst [smem:[#allocation101_spill]] %s7666_s27 }
  0x31   :  { %s7686_s27 = sld [smem:[%s9125_s0 + %s7457_s22]]   ;;  %s7461_s22 = smov 32  }
  0x32   :  { %9183 = sst [smem:[#allocation103_spill]] %s7676_s25 }
  0x33   :  { %s7696_s25 = sld [smem:[%s9125_s0 + %s7459_s7]]   ;;  %s7463_s7 = smov 34  }
  0x34   :  { %s7701_s14 = sld [smem:[%s9125_s0 + %s7460_s15]]   ;;  %s7464_s15 = smov 35  }
  0x35   :  { %s7711_s12 = sld [smem:[%s9125_s0 + %s7462_s28]]   ;;  %s7466_s28 = smov 37  }
  0x37   :  { %9184 = sst [smem:[#allocation104_spill]] %s7686_s27 }
  0x38   :  { %s7706_s27 = sld [smem:[%s9125_s0 + %s7461_s22]]   ;;  %s7465_s22 = smov 36  }
  0x39   :  { %9185 = sst [smem:[#allocation105_spill]] %s7696_s25 }
  0x3a   :  { %9186 = sst [smem:[#allocation106_spill]] %s7701_s14 }
  0x3b   :  { %9187 = sst [smem:[#allocation107_spill]] %s7711_s12 }
  0x3c   :  { %s7716_s25 = sld [smem:[%s9125_s0 + %s7463_s7]]   ;;  %s7467_s7 = smov 38  }
  0x3d   :  { %s7721_s14 = sld [smem:[%s9125_s0 + %s7464_s15]]   ;;  %s7468_s15 = smov 39  }
  0x3e   :  { %s7726_s4 = sld [smem:[%s9125_s0 + %s7465_s22]]   ;;  %s7469_s22 = smov 40  }
  0x3f   :  { %s7731_s12 = sld [smem:[%s9125_s0 + %s7466_s28]]   ;;  %s7470_s28 = smov 41  }
  0x40   :  { %s7741_s6 = sld [smem:[%s9125_s0 + %s7468_s15]]   ;;  %s7472_s15 = smov 43  }
  0x41   :  { %s7751_s24 = sld [smem:[%s9125_s0 + %s7470_s28]]   ;;  %s7474_s28 = smov 45  }
  0x42   :  { %9188 = sst [smem:[#allocation108_spill]] %s7716_s25 }
  0x43   :  { %s7736_s25 = sld [smem:[%s9125_s0 + %s7467_s7]]   ;;  %s7471_s7 = smov 42  }
  0x44   :  { %9189 = sst [smem:[#allocation109_spill]] %s7726_s4 }
  0x45   :  { %s7746_s4 = sld [smem:[%s9125_s0 + %s7469_s22]]   ;;  %s7473_s22 = smov 44  }
  0x46   :  { %9191 = sst [smem:[#allocation111_spill]] %s7741_s6 }
  0x47   :  { %s7761_s6 = sld [smem:[%s9125_s0 + %s7472_s15]]   ;;  %s7476_s15 = smov 47  }
  0x48   :  { %s7771_s29 = sld [smem:[%s9125_s0 + %s7474_s28]]   ;;  %s7478_s28 = smov 49  }
  0x49   :  { %9190 = sst [smem:[#allocation110_spill]] %s7736_s25 }
  0x4a   :  { %s7756_s25 = sld [smem:[%s9125_s0 + %s7471_s7]]   ;;  %s7475_s7 = smov 46  }
  0x4b   :  { %9192 = sst [smem:[#allocation112_spill]] %s7746_s4 }
  0x4c   :  { %s7766_s4 = sld [smem:[%s9125_s0 + %s7473_s22]]   ;;  %s7477_s22 = smov 48  }
  0x4d   :  { %s7781_s9 = sld [smem:[%s9125_s0 + %s7476_s15]]   ;;  %s7480_s15 = smov 51  }
  0x4e   :  { %9195 = sst [smem:[#allocation115_spill]] %s7771_s29 }
  0x4f   :  { %s7791_s29 = sld [smem:[%s9125_s0 + %s7478_s28]]   ;;  %s7482_s28 = smov 53  }
  0x50   :  { %9193 = sst [smem:[#allocation113_spill]] %s7756_s25 }
  0x51   :  { %s7776_s25 = sld [smem:[%s9125_s0 + %s7475_s7]]   ;;  %s7479_s7 = smov 50  }
  0x52   :  { %9194 = sst [smem:[#allocation114_spill]] %s7766_s4 }
  0x53   :  { %9197 = sst [smem:[#allocation117_spill]] %s7781_s9 }
  0x54   :  { %s7786_s4 = sld [smem:[%s9125_s0 + %s7477_s22]]   ;;  %s7481_s22 = smov 52  }
  0x55   :  { %9199 = sst [smem:[#allocation119_spill]] %s7791_s29 }
  0x56   :  { %s7801_s9 = sld [smem:[%s9125_s0 + %s7480_s15]]   ;;  %s7484_s15 = smov 55  }
  0x57   :  { %9196 = sst [smem:[#allocation116_spill]] %s7776_s25 }
  0x58   :  { %s7796_s25 = sld [smem:[%s9125_s0 + %s7479_s7]]   ;;  %s7483_s7 = smov 54  }
  0x59   :  { %s7811_s29 = sld [smem:[%s9125_s0 + %s7482_s28]]   ;;  %s7486_s28 = smov 57  }
  0x5a   :  { %9198 = sst [smem:[#allocation118_spill]] %s7786_s4 }
  0x5b   :  { %s7806_s4 = sld [smem:[%s9125_s0 + %s7481_s22]]   ;;  %s7485_s22 = smov 56  }
  0x5c   :  { %9201 = sst [smem:[#allocation121_spill]] %s7801_s9 }
  0x5d   :  { %s7821_s9 = sld [smem:[%s9125_s0 + %s7484_s15]]   ;;  %s7488_s15 = smov 59  }
  0x5e   :  { %9200 = sst [smem:[#allocation120_spill]] %s7796_s25 }
  0x5f   :  { %9203 = sst [smem:[#allocation123_spill]] %s7811_s29 }
  0x60   :  { %s7816_s25 = sld [smem:[%s9125_s0 + %s7483_s7]]   ;;  %s7487_s7 = smov 58  }
  0x61   :  { %9202 = sst [smem:[#allocation122_spill]] %s7806_s4 }
  0x62   :  { %s7826_s4 = sld [smem:[%s9125_s0 + %s7485_s22]]   ;;  %s7489_s22 = smov 60  }
  0x63   :  { %9205 = sst [smem:[#allocation125_spill]] %s7821_s9 }
  0x64   :  { %s7831_s29 = sld [smem:[%s9125_s0 + %s7486_s28]]  }
  0x65   :  { %s7841_s9 = sld [smem:[%s9125_s0 + %s7488_s15]]  }
  0x66   :  { %9204 = sst [smem:[#allocation124_spill]] %s7816_s25 }
  0x67   :  { %s7836_s25 = sld [smem:[%s9125_s0 + %s7487_s7]]  }
  0x68   :  { %9206 = sst [smem:[#allocation126_spill]] %s7826_s4 }
  0x69   :  { %s7846_s4 = sld [smem:[%s9125_s0 + %s7489_s22]]  }
  0x6a   :  { %126 = vsyncpa [#allocation3], 0 }
  0x6b   :  { %127 = vsyncpa [#allocation6], 0 }
  0x6c   :  { %128 = vsyncpa [#allocation9], 0 }
  0x6d   :  { %129 = vsyncpa [#allocation12], 0 }
  0x6e   :  { %130 = vsyncpa [#allocation15], 0 }
  0x6f   :  { %131 = vsyncpa [#allocation18], 0 }
  0x70   :  { %132 = vsyncpa [#allocation21], 0 }
  0x71   :  { %133 = vsyncpa [#allocation24], 0 }
  0x72   :  { %134 = vsyncpa [#allocation27], 0 }
  0x73   :  { %135 = vsyncpa [#allocation30], 0 }
  0x74   :  { %136 = vsyncpa [#allocation33], 0 }
  0x75   :  { %137 = vsyncpa [#allocation36], 0 }
  0x76   :  { %138 = vsyncpa [#allocation39], 0 }
  0x77   :  { %139 = vsyncpa [#allocation42], 0 }
  0x78   :  { %140 = vsyncpa [#allocation45], 0 }
  0x79   :  { %141 = vsyncpa [#allocation48], 0 }
  0x7a   :  { %142 = vsyncpa [#allocation51], 0 }
  0x7b   :  { %143 = vsyncpa [#allocation54], 0 }
  0x7c   :  { %144 = vsyncpa [#allocation57], 0 }
  0x7d   :  { %145 = vsyncpa [#allocation60], 0 }
  0x7e   :  { %146 = vsyncpa [#allocation4], 0  ;;  %s170_s0 = sshll.u32 %s7566_s21, 4  ;;  %s7490_s28 = smov [#allocation5]   ;;  %s171_s0 = int_to_ptr.hbm [resolvable:$true] %s170_s0 }
  0x7f   :  { %s172_s1 = sshll.u32 %s7490_s28, 4  ;;  %s199_s2 = sshll.u32 %s7581_s3, 4  ;;  %s173_s1 = int_to_ptr.vmem [resolvable:$true] %s172_s1  ;;  %s200_s2 = int_to_ptr.hbm [resolvable:$true] %s199_s2 }
  0x80   :  { %s6428_s7 = sshra.s32 %s171_s0, 4  ;;  %s6432_s11 = scalar_lea.hbm %s7566_s21, 16  ;;  %s6429_s7 = int_to_ptr.hbm [resolvable:$true] %s6428_s7 }
  0x81   :  { %s6430_s10 = scalar_lea.hbm %s6429_s7, 16  ;;  %p6433_p1 = scmp.lt.s32.totalorder %s6429_s7, %s7566_s21 }
  0x82   :  { %p6431_p0 = scmp.ne.s32.totalorder %s6429_s7, %s6430_s10  ;;  %p6434_p2 = scmp.lt.s32.totalorder %s6432_s11, %s6430_s10 }
  0x84   :  { %p6435_p3 = por %p6434_p2, %p6433_p1 }
  0x86   :  { %p6436_p4 = pnand %p6435_p3, %p6431_p0 }
  0x88   :  { %6439 = shalt.err (!%p6436_p4)
}
  0x89   :  { %s7491_s15 = smov 128   ;;  %s7492_s16 = smov 8  }
  0x8a   :  { %178 = dma.hbm_to_vmem [thread:$0]  %s171_s0, 256, %s173_s1, [#allocation6], %s7491_s15, %s7491_s15, %s7492_s16  }
  0x8b   :  { %s7493_s18 = smov [#allocation8]   ;;  %s227_s23 = sshll.u32 %s7606_s30, 4  ;;  %s228_s23 = int_to_ptr.hbm [resolvable:$true] %s227_s23 }
  0x8c   :  { %s201_s22 = sshll.u32 %s7493_s18, 4  ;;  %s6452_s21 = sshra.s32 %s200_s2, 4  ;;  %s202_s22 = int_to_ptr.vmem [resolvable:$true] %s201_s22  ;;  %s6453_s21 = int_to_ptr.hbm [resolvable:$true] %s6452_s21 }
  0x8d   :  { %s6454_s26 = scalar_lea.hbm %s6453_s21, 1  ;;  %s6456_s28 = scalar_lea.hbm %s7581_s3, 1 }
  0x8e   :  { %p6455_p5 = scmp.ne.s32.totalorder %s6453_s21, %s6454_s26  ;;  %p6457_p6 = scmp.lt.s32.totalorder %s6453_s21, %s7581_s3 }
  0x8f   :  { %p6458_p7 = scmp.lt.s32.totalorder %s6456_s28, %s6454_s26 }
  0x91   :  { %p6459_p8 = por %p6458_p7, %p6457_p6 }
  0x93   :  { %p6460_p9 = pnand %p6459_p8, %p6455_p5 }
  0x95   :  { %6463 = shalt.err (!%p6460_p9)
}
  0x96   :  { %204 = dma.hbm_to_vmem [thread:$0]  %s200_s2, 16, %s202_s22, [#allocation9]  }
  0x97   :  { %s251_s0 = sshll.u32 %s7621_s20, 4  ;;  %s7494_s1 = smov [#allocation11]   ;;  %s252_s0 = int_to_ptr.hbm [resolvable:$true] %s251_s0 }
  0x98   :  { %s229_s7 = sshll.u32 %s7494_s1, 4  ;;  %s6476_s10 = sshra.s32 %s228_s23, 4  ;;  %s230_s7 = int_to_ptr.vmem [resolvable:$true] %s229_s7  ;;  %s6477_s10 = int_to_ptr.hbm [resolvable:$true] %s6476_s10 }
  0x99   :  { %s6478_s11 = scalar_lea.hbm %s6477_s10, 1  ;;  %s6480_s18 = scalar_lea.hbm %s7606_s30, 1 }
  0x9a   :  { %p6479_p10 = scmp.ne.s32.totalorder %s6477_s10, %s6478_s11  ;;  %p6481_p11 = scmp.lt.s32.totalorder %s6477_s10, %s7606_s30 }
  0x9b   :  { %p6482_p12 = scmp.lt.s32.totalorder %s6480_s18, %s6478_s11 }
  0x9d   :  { %p6483_p13 = por %p6482_p12, %p6481_p11 }
  0x9f   :  { %p6484_p0 = pnand %p6483_p13, %p6479_p10 }
  0xa1   :  { %6487 = shalt.err (!%p6484_p0)
}
  0xa2   :  { %232 = dma.hbm_to_vmem [thread:$0]  %s228_s23, 16, %s230_s7, [#allocation12]  }
  0xa3   :  { %s7495_s3 = smov [#allocation14]   ;;  %s275_s22 = sshll.u32 %s7636_s17, 4  ;;  %s276_s22 = int_to_ptr.hbm [resolvable:$true] %s275_s22 }
  0xa4   :  { %s253_s2 = sshll.u32 %s7495_s3, 4  ;;  %s6500_s21 = sshra.s32 %s252_s0, 4  ;;  %s254_s2 = int_to_ptr.vmem [resolvable:$true] %s253_s2  ;;  %s6501_s21 = int_to_ptr.hbm [resolvable:$true] %s6500_s21 }
  0xa5   :  { %s6502_s26 = scalar_lea.hbm %s6501_s21, 1  ;;  %s6504_s28 = scalar_lea.hbm %s7621_s20, 1 }
  0xa6   :  { %p6503_p1 = scmp.ne.s32.totalorder %s6501_s21, %s6502_s26  ;;  %p6505_p2 = scmp.lt.s32.totalorder %s6501_s21, %s7621_s20 }
  0xa7   :  { %p6506_p3 = scmp.lt.s32.totalorder %s6504_s28, %s6502_s26 }
  0xa9   :  { %p6507_p4 = por %p6506_p3, %p6505_p2 }
  0xab   :  { %p6508_p5 = pnand %p6507_p4, %p6503_p1 }
  0xad   :  { %6511 = shalt.err (!%p6508_p5)
}
  0xae   :  { %256 = dma.hbm_to_vmem [thread:$0]  %s252_s0, 16, %s254_s2, [#allocation15]  }
  0xaf   :  { %s299_s30 = sshll.u32 %s7651_s19, 4  ;;  %s7496_s23 = smov [#allocation17]   ;;  %s300_s30 = int_to_ptr.hbm [resolvable:$true] %s299_s30 }
  0xb0   :  { %s277_s1 = sshll.u32 %s7496_s23, 4  ;;  %s6524_s7 = sshra.s32 %s276_s22, 4  ;;  %s278_s1 = int_to_ptr.vmem [resolvable:$true] %s277_s1  ;;  %s6525_s7 = int_to_ptr.hbm [resolvable:$true] %s6524_s7 }
  0xb1   :  { %s6526_s10 = scalar_lea.hbm %s6525_s7, 1  ;;  %s6528_s11 = scalar_lea.hbm %s7636_s17, 1 }
  0xb2   :  { %p6527_p6 = scmp.ne.s32.totalorder %s6525_s7, %s6526_s10  ;;  %p6529_p7 = scmp.lt.s32.totalorder %s6525_s7, %s7636_s17 }
  0xb3   :  { %p6530_p8 = scmp.lt.s32.totalorder %s6528_s11, %s6526_s10 }
  0xb5   :  { %p6531_p9 = por %p6530_p8, %p6529_p7 }
  0xb7   :  { %p6532_p10 = pnand %p6531_p9, %p6527_p6 }
  0xb9   :  { %6535 = shalt.err (!%p6532_p10)
}
  0xba   :  { %280 = dma.hbm_to_vmem [thread:$0]  %s276_s22, 16, %s278_s1, [#allocation18]  }
  0xbb   :  { %s7497_s20 = smov [#allocation20]   ;;  %s321_s18 = sshll.u32 %s7661_s13, 4  ;;  %s322_s18 = int_to_ptr.hbm [resolvable:$true] %s321_s18 }
  0xbc   :  { %s301_s0 = sshll.u32 %s7497_s20, 4  ;;  %s6548_s3 = sshra.s32 %s300_s30, 4  ;;  %s302_s0 = int_to_ptr.vmem [resolvable:$true] %s301_s0  ;;  %s6549_s3 = int_to_ptr.hbm [resolvable:$true] %s6548_s3 }
  0xbd   :  { %s6550_s2 = scalar_lea.hbm %s6549_s3, 1  ;;  %s6552_s21 = scalar_lea.hbm %s7651_s19, 1 }
  0xbe   :  { %p6551_p11 = scmp.ne.s32.totalorder %s6549_s3, %s6550_s2  ;;  %p6553_p12 = scmp.lt.s32.totalorder %s6549_s3, %s7651_s19 }
  0xbf   :  { %p6554_p13 = scmp.lt.s32.totalorder %s6552_s21, %s6550_s2 }
  0xc1   :  { %p6555_p0 = por %p6554_p13, %p6553_p12 }
  0xc3   :  { %p6556_p1 = pnand %p6555_p0, %p6551_p11 }
  0xc5   :  { %6559 = shalt.err (!%p6556_p1)
}
  0xc6   :  { %304 = dma.hbm_to_vmem [thread:$0]  %s300_s30, 16, %s302_s0, [#allocation21]  }
  0xc7   :  { %s347_s17 = sshll.u32 %s7681_s5, 4  ;;  %s7498_s22 = smov [#allocation23]   ;;  %s348_s17 = int_to_ptr.hbm [resolvable:$true] %s347_s17 }
  0xc8   :  { %s323_s26 = sshll.u32 %s7498_s22, 4  ;;  %s6572_s28 = sshra.s32 %s322_s18, 4  ;;  %s324_s26 = int_to_ptr.vmem [resolvable:$true] %s323_s26  ;;  %s6573_s28 = int_to_ptr.hbm [resolvable:$true] %s6572_s28 }
  0xc9   :  { %s6574_s23 = scalar_lea.hbm %s6573_s28, 1  ;;  %s6576_s1 = scalar_lea.hbm %s7661_s13, 1 }
  0xca   :  { %p6575_p2 = scmp.ne.s32.totalorder %s6573_s28, %s6574_s23  ;;  %p6577_p3 = scmp.lt.s32.totalorder %s6573_s28, %s7661_s13 }
  0xcb   :  { %p6578_p4 = scmp.lt.s32.totalorder %s6576_s1, %s6574_s23 }
  0xcd   :  { %p6579_p5 = por %p6578_p4, %p6577_p3 }
  0xcf   :  { %p6580_p6 = pnand %p6579_p5, %p6575_p2 }
  0xd1   :  { %6583 = shalt.err (!%p6580_p6)
}
  0xd2   :  { %326 = dma.hbm_to_vmem [thread:$0]  %s322_s18, 16, %s324_s26, [#allocation24]  }
  0xd3   :  { %s7499_s19 = smov [#allocation26]   ;;  %s369_s7 = sshll.u32 %s7691_s8, 4  ;;  %s370_s7 = int_to_ptr.hbm [resolvable:$true] %s369_s7 }
  0xd4   :  { %s349_s30 = sshll.u32 %s7499_s19, 4  ;;  %s6596_s10 = sshra.s32 %s348_s17, 4  ;;  %s350_s30 = int_to_ptr.vmem [resolvable:$true] %s349_s30  ;;  %s6597_s10 = int_to_ptr.hbm [resolvable:$true] %s6596_s10 }
  0xd5   :  { %s6598_s11 = scalar_lea.hbm %s6597_s10, 1  ;;  %s6600_s20 = scalar_lea.hbm %s7681_s5, 1 }
  0xd6   :  { %p6599_p7 = scmp.ne.s32.totalorder %s6597_s10, %s6598_s11  ;;  %p6601_p8 = scmp.lt.s32.totalorder %s6597_s10, %s7681_s5 }
  0xd7   :  { %p6602_p9 = scmp.lt.s32.totalorder %s6600_s20, %s6598_s11 }
  0xd9   :  { %p6603_p10 = por %p6602_p9, %p6601_p8 }
  0xdb   :  { %p6604_p11 = pnand %p6603_p10, %p6599_p7 }
  0xdd   :  { %6607 = shalt.err (!%p6604_p11)
}
  0xde   :  { %352 = dma.hbm_to_vmem [thread:$0]  %s348_s17, 16, %s350_s30, [#allocation27]  }
  0xdf   :  { %s393_s13 = sshll.u32 %s7706_s27, 4  ;;  %s7500_s0 = smov [#allocation29]   ;;  %s394_s13 = int_to_ptr.hbm [resolvable:$true] %s393_s13 }
  0xe0   :  { %s371_s18 = sshll.u32 %s7500_s0, 4  ;;  %s6620_s3 = sshra.s32 %s370_s7, 4  ;;  %s372_s18 = int_to_ptr.vmem [resolvable:$true] %s371_s18  ;;  %s6621_s3 = int_to_ptr.hbm [resolvable:$true] %s6620_s3 }
  0xe1   :  { %s6622_s2 = scalar_lea.hbm %s6621_s3, 1  ;;  %s6624_s21 = scalar_lea.hbm %s7691_s8, 1 }
  0xe2   :  { %p6623_p12 = scmp.ne.s32.totalorder %s6621_s3, %s6622_s2  ;;  %p6625_p13 = scmp.lt.s32.totalorder %s6621_s3, %s7691_s8 }
  0xe3   :  { %p6626_p0 = scmp.lt.s32.totalorder %s6624_s21, %s6622_s2 }
  0xe5   :  { %p6627_p1 = por %p6626_p0, %p6625_p13 }
  0xe7   :  { %p6628_p2 = pnand %p6627_p1, %p6623_p12 }
  0xe9   :  { %6631 = shalt.err (!%p6628_p2)
}
  0xea   :  { %374 = dma.hbm_to_vmem [thread:$0]  %s370_s7, 16, %s372_s18, [#allocation30]  }
  0xeb   :  { %s7501_s5 = smov [#allocation32]   ;;  %s417_s22 = sshll.u32 %s7721_s14, 4  ;;  %s418_s22 = int_to_ptr.hbm [resolvable:$true] %s417_s22 }
  0xec   :  { %s395_s17 = sshll.u32 %s7501_s5, 4  ;;  %s6644_s26 = sshra.s32 %s394_s13, 4  ;;  %s396_s17 = int_to_ptr.vmem [resolvable:$true] %s395_s17  ;;  %s6645_s26 = int_to_ptr.hbm [resolvable:$true] %s6644_s26 }
  0xed   :  { %s6646_s28 = scalar_lea.hbm %s6645_s26, 1  ;;  %s6648_s23 = scalar_lea.hbm %s7706_s27, 1 }
  0xee   :  { %p6647_p3 = scmp.ne.s32.totalorder %s6645_s26, %s6646_s28  ;;  %p6649_p4 = scmp.lt.s32.totalorder %s6645_s26, %s7706_s27 }
  0xef   :  { %p6650_p5 = scmp.lt.s32.totalorder %s6648_s23, %s6646_s28 }
  0xf1   :  { %p6651_p6 = por %p6650_p5, %p6649_p4 }
  0xf3   :  { %p6652_p7 = pnand %p6651_p6, %p6647_p3 }
  0xf5   :  { %6655 = shalt.err (!%p6652_p7)
}
  0xf6   :  { %398 = dma.hbm_to_vmem [thread:$0]  %s394_s13, 16, %s396_s17, [#allocation33]  }
  0xf7   :  { %s439_s8 = sshll.u32 %s7731_s12, 4  ;;  %s7502_s1 = smov [#allocation35]   ;;  %s440_s8 = int_to_ptr.hbm [resolvable:$true] %s439_s8 }
  0xf8   :  { %s419_s19 = sshll.u32 %s7502_s1, 4  ;;  %s6668_s30 = sshra.s32 %s418_s22, 4  ;;  %s420_s19 = int_to_ptr.vmem [resolvable:$true] %s419_s19  ;;  %s6669_s30 = int_to_ptr.hbm [resolvable:$true] %s6668_s30 }
  0xf9   :  { %s6670_s7 = scalar_lea.hbm %s6669_s30, 1  ;;  %s6672_s10 = scalar_lea.hbm %s7721_s14, 1 }
  0xfa   :  { %p6671_p8 = scmp.ne.s32.totalorder %s6669_s30, %s6670_s7  ;;  %p6673_p9 = scmp.lt.s32.totalorder %s6669_s30, %s7721_s14 }
  0xfb   :  { %p6674_p10 = scmp.lt.s32.totalorder %s6672_s10, %s6670_s7 }
  0xfd   :  { %p6675_p11 = por %p6674_p10, %p6673_p9 }
  0xff   :  { %p6676_p12 = pnand %p6675_p11, %p6671_p8 }
 0x101   :  { %6679 = shalt.err (!%p6676_p12)
}
 0x102   :  { %422 = dma.hbm_to_vmem [thread:$0]  %s418_s22, 16, %s420_s19, [#allocation36]  }
 0x103   :  { %s7503_s27 = smov [#allocation38]   ;;  %s465_s20 = sshll.u32 %s7751_s24, 4  ;;  %s466_s20 = int_to_ptr.hbm [resolvable:$true] %s465_s20 }
 0x104   :  { %s441_s11 = sshll.u32 %s7503_s27, 4  ;;  %s6692_s13 = sshra.s32 %s440_s8, 4  ;;  %s442_s11 = int_to_ptr.vmem [resolvable:$true] %s441_s11  ;;  %s6693_s13 = int_to_ptr.hbm [resolvable:$true] %s6692_s13 }
 0x105   :  { %s6694_s0 = scalar_lea.hbm %s6693_s13, 1  ;;  %s6696_s18 = scalar_lea.hbm %s7731_s12, 1 }
 0x106   :  { %p6695_p13 = scmp.ne.s32.totalorder %s6693_s13, %s6694_s0  ;;  %p6697_p0 = scmp.lt.s32.totalorder %s6693_s13, %s7731_s12 }
 0x107   :  { %p6698_p1 = scmp.lt.s32.totalorder %s6696_s18, %s6694_s0 }
 0x109   :  { %p6699_p2 = por %p6698_p1, %p6697_p0 }
 0x10b   :  { %p6700_p3 = pnand %p6699_p2, %p6695_p13 }
 0x10d   :  { %6703 = shalt.err (!%p6700_p3)
}
 0x10e   :  { %444 = dma.hbm_to_vmem [thread:$0]  %s440_s8, 16, %s442_s11, [#allocation39]  }
 0x10f   :  { %s487_s14 = sshll.u32 %s7761_s6, 4  ;;  %s7504_s3 = smov [#allocation41]   ;;  %s488_s14 = int_to_ptr.hbm [resolvable:$true] %s487_s14 }
 0x110   :  { %s467_s2 = sshll.u32 %s7504_s3, 4  ;;  %s6716_s21 = sshra.s32 %s466_s20, 4  ;;  %s468_s2 = int_to_ptr.vmem [resolvable:$true] %s467_s2  ;;  %s6717_s21 = int_to_ptr.hbm [resolvable:$true] %s6716_s21 }
 0x111   :  { %s6718_s5 = scalar_lea.hbm %s6717_s21, 1  ;;  %s6720_s17 = scalar_lea.hbm %s7751_s24, 1 }
 0x112   :  { %p6719_p4 = scmp.ne.s32.totalorder %s6717_s21, %s6718_s5  ;;  %p6721_p5 = scmp.lt.s32.totalorder %s6717_s21, %s7751_s24 }
 0x113   :  { %p6722_p6 = scmp.lt.s32.totalorder %s6720_s17, %s6718_s5 }
 0x115   :  { %p6723_p7 = por %p6722_p6, %p6721_p5 }
 0x117   :  { %p6724_p8 = pnand %p6723_p7, %p6719_p4 }
 0x119   :  { %6727 = shalt.err (!%p6724_p8)
}
 0x11a   :  { %470 = dma.hbm_to_vmem [thread:$0]  %s466_s20, 16, %s468_s2, [#allocation42]  }
 0x11b   :  { %s9207_s12 = sld [smem:[#allocation116_spill]]  ;;  %s7505_s22 = smov [#allocation44]  }
 0x11c   :  { %s489_s26 = sshll.u32 %s7505_s22, 4  ;;  %s6740_s23 = sshra.s32 %s488_s14, 4  ;;  %s490_s26 = int_to_ptr.vmem [resolvable:$true] %s489_s26  ;;  %s6741_s23 = int_to_ptr.hbm [resolvable:$true] %s6740_s23 }
 0x11d   :  { %s6742_s8 = scalar_lea.hbm %s6741_s23, 1  ;;  %s6744_s1 = scalar_lea.hbm %s7761_s6, 1 }
 0x11e   :  { %p6743_p9 = scmp.ne.s32.totalorder %s6741_s23, %s6742_s8  ;;  %p6745_p10 = scmp.lt.s32.totalorder %s6741_s23, %s7761_s6 }
 0x11f   :  { %p6746_p11 = scmp.lt.s32.totalorder %s6744_s1, %s6742_s8 }
 0x121   :  { %s511_s28 = sshll.u32 %s9207_s12, 4  ;;  %p6747_p12 = por %p6746_p11, %p6745_p10  ;;  %s512_s28 = int_to_ptr.hbm [resolvable:$true] %s511_s28 }
 0x123   :  { %p6748_p13 = pnand %p6747_p12, %p6743_p9 }
 0x125   :  { %6751 = shalt.err (!%p6748_p13)
}
 0x126   :  { %492 = dma.hbm_to_vmem [thread:$0]  %s488_s14, 16, %s490_s26, [#allocation45]  }
 0x127   :  { %s9208_s24 = sld [smem:[#allocation119_spill]]  ;;  %s7506_s30 = smov [#allocation47]  }
 0x128   :  { %s513_s7 = sshll.u32 %s7506_s30, 4  ;;  %s6764_s10 = sshra.s32 %s512_s28, 4  ;;  %s514_s7 = int_to_ptr.vmem [resolvable:$true] %s513_s7  ;;  %s6765_s10 = int_to_ptr.hbm [resolvable:$true] %s6764_s10 }
 0x129   :  { %s6766_s27 = scalar_lea.hbm %s6765_s10, 1  ;;  %s6768_s11 = scalar_lea.hbm %s9207_s12, 1 }
 0x12a   :  { %p6767_p0 = scmp.ne.s32.totalorder %s6765_s10, %s6766_s27  ;;  %p6769_p1 = scmp.lt.s32.totalorder %s6765_s10, %s9207_s12 }
 0x12b   :  { %p6770_p2 = scmp.lt.s32.totalorder %s6768_s11, %s6766_s27 }
 0x12d   :  { %s535_s19 = sshll.u32 %s9208_s24, 4  ;;  %p6771_p3 = por %p6770_p2, %p6769_p1  ;;  %s536_s19 = int_to_ptr.hbm [resolvable:$true] %s535_s19 }
 0x12f   :  { %p6772_p4 = pnand %p6771_p3, %p6767_p0 }
 0x131   :  { %6775 = shalt.err (!%p6772_p4)
}
 0x132   :  { %516 = dma.hbm_to_vmem [thread:$0]  %s512_s28, 16, %s514_s7, [#allocation48]  }
 0x133   :  { %s9209_s6 = sld [smem:[#allocation121_spill]]  ;;  %s7507_s20 = smov [#allocation50]  }
 0x134   :  { %s537_s13 = sshll.u32 %s7507_s20, 4  ;;  %s6788_s18 = sshra.s32 %s536_s19, 4  ;;  %s538_s13 = int_to_ptr.vmem [resolvable:$true] %s537_s13  ;;  %s6789_s18 = int_to_ptr.hbm [resolvable:$true] %s6788_s18 }
 0x135   :  { %s6790_s14 = scalar_lea.hbm %s6789_s18, 1  ;;  %s6792_s3 = scalar_lea.hbm %s9208_s24, 1 }
 0x136   :  { %p6791_p5 = scmp.ne.s32.totalorder %s6789_s18, %s6790_s14  ;;  %p6793_p6 = scmp.lt.s32.totalorder %s6789_s18, %s9208_s24 }
 0x137   :  { %p6794_p7 = scmp.lt.s32.totalorder %s6792_s3, %s6790_s14 }
 0x139   :  { %s557_s0 = sshll.u32 %s9209_s6, 4  ;;  %p6795_p8 = por %p6794_p7, %p6793_p6  ;;  %s558_s0 = int_to_ptr.hbm [resolvable:$true] %s557_s0 }
 0x13b   :  { %p6796_p9 = pnand %p6795_p8, %p6791_p5 }
 0x13d   :  { %6799 = shalt.err (!%p6796_p9)
}
 0x13e   :  { %540 = dma.hbm_to_vmem [thread:$0]  %s536_s19, 16, %s538_s13, [#allocation51]  }
 0x13f   :  { %s9210_s2 = sld [smem:[#allocation125_spill]]  ;;  %s7508_s5 = smov [#allocation53]  }
 0x140   :  { %s559_s17 = sshll.u32 %s7508_s5, 4  ;;  %s6812_s12 = sshra.s32 %s558_s0, 4  ;;  %s560_s17 = int_to_ptr.vmem [resolvable:$true] %s559_s17  ;;  %s6813_s12 = int_to_ptr.hbm [resolvable:$true] %s6812_s12 }
 0x141   :  { %s6814_s22 = scalar_lea.hbm %s6813_s12, 1  ;;  %s6816_s26 = scalar_lea.hbm %s9209_s6, 1 }
 0x142   :  { %p6815_p10 = scmp.ne.s32.totalorder %s6813_s12, %s6814_s22  ;;  %p6817_p11 = scmp.lt.s32.totalorder %s6813_s12, %s9209_s6 }
 0x143   :  { %p6818_p12 = scmp.lt.s32.totalorder %s6816_s26, %s6814_s22 }
 0x145   :  { %s583_s21 = sshll.u32 %s9210_s2, 4  ;;  %p6819_p13 = por %p6818_p12, %p6817_p11  ;;  %s584_s21 = int_to_ptr.hbm [resolvable:$true] %s583_s21 }
 0x147   :  { %p6820_p0 = pnand %p6819_p13, %p6815_p10 }
 0x149   :  { %6823 = shalt.err (!%p6820_p0)
}
 0x14a   :  { %562 = dma.hbm_to_vmem [thread:$0]  %s558_s0, 16, %s560_s17, [#allocation54]  }
 0x14b   :  { %s7509_s28 = smov [#allocation56]   ;;  %s605_s8 = sshll.u32 %s7831_s29, 4  ;;  %s606_s8 = int_to_ptr.hbm [resolvable:$true] %s605_s8 }
 0x14c   :  { %s585_s23 = sshll.u32 %s7509_s28, 4  ;;  %s6836_s1 = sshra.s32 %s584_s21, 4  ;;  %s586_s23 = int_to_ptr.vmem [resolvable:$true] %s585_s23  ;;  %s6837_s1 = int_to_ptr.hbm [resolvable:$true] %s6836_s1 }
 0x14d   :  { %s6838_s24 = scalar_lea.hbm %s6837_s1, 1  ;;  %s6840_s19 = scalar_lea.hbm %s9210_s2, 1 }
 0x14e   :  { %p6839_p1 = scmp.ne.s32.totalorder %s6837_s1, %s6838_s24  ;;  %p6841_p2 = scmp.lt.s32.totalorder %s6837_s1, %s9210_s2 }
 0x14f   :  { %p6842_p3 = scmp.lt.s32.totalorder %s6840_s19, %s6838_s24 }
 0x151   :  { %p6843_p4 = por %p6842_p3, %p6841_p2 }
 0x153   :  { %p6844_p5 = pnand %p6843_p4, %p6839_p1 }
 0x155   :  { %6847 = shalt.err (!%p6844_p5)
}
 0x156   :  { %588 = dma.hbm_to_vmem [thread:$0]  %s584_s21, 16, %s586_s23, [#allocation57]  }
 0x157   :  { %s9211_s30 = sld [smem:[#allocation85_spill]]  ;;  %s7510_s10 = smov [#allocation59]  }
 0x158   :  { %s607_s27 = sshll.u32 %s7510_s10, 4  ;;  %s6860_s11 = sshra.s32 %s606_s8, 4  ;;  %s608_s27 = int_to_ptr.vmem [resolvable:$true] %s607_s27  ;;  %s6861_s11 = int_to_ptr.hbm [resolvable:$true] %s6860_s11 }
 0x159   :  { %s6862_s6 = scalar_lea.hbm %s6861_s11, 1  ;;  %s6864_s20 = scalar_lea.hbm %s7831_s29, 1 }
 0x15a   :  { %p6863_p6 = scmp.ne.s32.totalorder %s6861_s11, %s6862_s6  ;;  %p6865_p7 = scmp.lt.s32.totalorder %s6861_s11, %s7831_s29 }
 0x15b   :  { %p6866_p8 = scmp.lt.s32.totalorder %s6864_s20, %s6862_s6 }
 0x15d   :  { %s153_s7 = sshll.u32 %s9211_s30, 4  ;;  %p6867_p9 = por %p6866_p8, %p6865_p7  ;;  %s7907_s7 = int_to_ptr.hbm [resolvable:$true] %s153_s7 }
 0x15f   :  { %p6868_p10 = pnand %p6867_p9, %p6863_p6 }
 0x161   :  { %6871 = shalt.err (!%p6868_p10)
}
 0x162   :  { %610 = dma.hbm_to_vmem [thread:$0]  %s606_s8, 16, %s608_s27, [#allocation60]  }
 0x163   :  { %s9212_s13 = sld [smem:[#allocation89_spill]]  ;;  %s7511_s0 = smov [#allocation2]  }
 0x164   :  { %s155_s18 = sshll.u32 %s7511_s0, 4  ;;  %s6884_s3 = sshra.s32 %s7907_s7, 4  ;;  %s156_s18 = int_to_ptr.vmem [resolvable:$true] %s155_s18  ;;  %s6885_s3 = int_to_ptr.hbm [resolvable:$true] %s6884_s3 }
 0x165   :  { %s6886_s2 = scalar_lea.hbm %s6885_s3, 16  ;;  %s6888_s29 = scalar_lea.hbm %s9211_s30, 16 }
 0x166   :  { %p6887_p11 = scmp.ne.s32.totalorder %s6885_s3, %s6886_s2  ;;  %p6889_p12 = scmp.lt.s32.totalorder %s6885_s3, %s9211_s30 }
 0x167   :  { %p6890_p13 = scmp.lt.s32.totalorder %s6888_s29, %s6886_s2 }
 0x169   :  { %s185_s14 = sshll.u32 %s9212_s13, 4  ;;  %p6891_p0 = por %p6890_p13, %p6889_p12  ;;  %s7912_s14 = int_to_ptr.hbm [resolvable:$true] %s185_s14 }
 0x16b   :  { %p6892_p1 = pnand %p6891_p0, %p6887_p11 }
 0x16d   :  { %6895 = shalt.err (!%p6892_p1)
}
 0x16e   :  { %s9213_s21 = sld [smem:[#allocation93_spill]]  ;;  %s7512_s17 = smov [#allocation7]  }
 0x16f   :  { %161 = dma.hbm_to_vmem [thread:$0]  %s7907_s7, 256, %s156_s18, [#allocation3], %s7491_s15, %s7491_s15, %s7492_s16  }
 0x170   :  { %s187_s12 = sshll.u32 %s7512_s17, 4  ;;  %s6908_s22 = sshra.s32 %s7912_s14, 4  ;;  %s188_s12 = int_to_ptr.vmem [resolvable:$true] %s187_s12  ;;  %s6909_s22 = int_to_ptr.hbm [resolvable:$true] %s6908_s22 }
 0x171   :  { %s6910_s26 = scalar_lea.hbm %s6909_s22, 16  ;;  %s6912_s28 = scalar_lea.hbm %s9212_s13, 16 }
 0x172   :  { %p6911_p2 = scmp.ne.s32.totalorder %s6909_s22, %s6910_s26  ;;  %p6913_p3 = scmp.lt.s32.totalorder %s6909_s22, %s9212_s13 }
 0x173   :  { %p6914_p4 = scmp.lt.s32.totalorder %s6912_s28, %s6910_s26 }
 0x174   :  { %s216_s5 = sshll.u32 %s9213_s21, 4  ;;  %s217_s5 = int_to_ptr.hbm [resolvable:$true] %s216_s5 }
 0x175   :  { %p6915_p5 = por %p6914_p4, %p6913_p3 }
 0x177   :  { %p6916_p6 = pnand %p6915_p5, %p6911_p2 }
 0x179   :  { %6919 = shalt.err (!%p6916_p6)
}
 0x17a   :  { %s9214_s23 = sld [smem:[#allocation94_spill]]  ;;  %s7513_s8 = smov [#allocation10]  }
 0x17b   :  { %193 = dma.hbm_to_vmem [thread:$0]  %s7912_s14, 256, %s188_s12, [#allocation6], %s7491_s15, %s7491_s15, %s7492_s16  }
 0x17c   :  { %s218_s1 = sshll.u32 %s7513_s8, 4  ;;  %s6932_s19 = sshra.s32 %s217_s5, 4  ;;  %s219_s1 = int_to_ptr.vmem [resolvable:$true] %s218_s1  ;;  %s6933_s19 = int_to_ptr.hbm [resolvable:$true] %s6932_s19 }
 0x17d   :  { %s6934_s30 = scalar_lea.hbm %s6933_s19, 1  ;;  %s6936_s7 = scalar_lea.hbm %s9213_s21, 1 }
 0x17e   :  { %p6935_p7 = scmp.ne.s32.totalorder %s6933_s19, %s6934_s30  ;;  %p6937_p8 = scmp.lt.s32.totalorder %s6933_s19, %s9213_s21 }
 0x17f   :  { %p6938_p9 = scmp.lt.s32.totalorder %s6936_s7, %s6934_s30 }
 0x180   :  { %s238_s24 = sshll.u32 %s9214_s23, 4  ;;  %s239_s24 = int_to_ptr.hbm [resolvable:$true] %s238_s24 }
 0x181   :  { %p6939_p10 = por %p6938_p9, %p6937_p8 }
 0x183   :  { %p6940_p11 = pnand %p6939_p10, %p6935_p7 }
 0x185   :  { %6943 = shalt.err (!%p6940_p11)
}
 0x186   :  { %221 = dma.hbm_to_vmem [thread:$0]  %s217_s5, 16, %s219_s1, [#allocation9]  }
 0x187   :  { %s9215_s10 = sld [smem:[#allocation97_spill]]  ;;  %s7514_s11 = smov [#allocation13]  }
 0x188   :  { %s240_s6 = sshll.u32 %s7514_s11, 4  ;;  %s6956_s20 = sshra.s32 %s239_s24, 4  ;;  %s241_s6 = int_to_ptr.vmem [resolvable:$true] %s240_s6  ;;  %s6957_s20 = int_to_ptr.hbm [resolvable:$true] %s6956_s20 }
 0x189   :  { %s6958_s13 = scalar_lea.hbm %s6957_s20, 1  ;;  %s6960_s0 = scalar_lea.hbm %s9214_s23, 1 }
 0x18a   :  { %p6959_p12 = scmp.ne.s32.totalorder %s6957_s20, %s6958_s13  ;;  %p6961_p13 = scmp.lt.s32.totalorder %s6957_s20, %s9214_s23 }
 0x18b   :  { %p6962_p0 = scmp.lt.s32.totalorder %s6960_s0, %s6958_s13 }
 0x18d   :  { %s264_s27 = sshll.u32 %s9215_s10, 4  ;;  %p6963_p1 = por %p6962_p0, %p6961_p13  ;;  %s265_s27 = int_to_ptr.hbm [resolvable:$true] %s264_s27 }
 0x18f   :  { %p6964_p2 = pnand %p6963_p1, %p6959_p12 }
 0x191   :  { %6967 = shalt.err (!%p6964_p2)
}
 0x192   :  { %243 = dma.hbm_to_vmem [thread:$0]  %s239_s24, 16, %s241_s6, [#allocation12]  }
 0x193   :  { %s9216_s18 = sld [smem:[#allocation98_spill]]  ;;  %s7515_s14 = smov [#allocation16]  }
 0x194   :  { %s266_s3 = sshll.u32 %s7515_s14, 4  ;;  %s6980_s29 = sshra.s32 %s265_s27, 4  ;;  %s267_s3 = int_to_ptr.vmem [resolvable:$true] %s266_s3  ;;  %s6981_s29 = int_to_ptr.hbm [resolvable:$true] %s6980_s29 }
 0x195   :  { %s6982_s21 = scalar_lea.hbm %s6981_s29, 1  ;;  %s6984_s5 = scalar_lea.hbm %s9215_s10, 1 }
 0x196   :  { %p6983_p3 = scmp.ne.s32.totalorder %s6981_s29, %s6982_s21  ;;  %p6985_p4 = scmp.lt.s32.totalorder %s6981_s29, %s9215_s10 }
 0x197   :  { %p6986_p5 = scmp.lt.s32.totalorder %s6984_s5, %s6982_s21 }
 0x199   :  { %s286_s2 = sshll.u32 %s9216_s18, 4  ;;  %p6987_p6 = por %p6986_p5, %p6985_p4  ;;  %s287_s2 = int_to_ptr.hbm [resolvable:$true] %s286_s2 }
 0x19b   :  { %p6988_p7 = pnand %p6987_p6, %p6983_p3 }
 0x19d   :  { %6991 = shalt.err (!%p6988_p7)
}
 0x19e   :  { %269 = dma.hbm_to_vmem [thread:$0]  %s265_s27, 16, %s267_s3, [#allocation15]  }
 0x19f   :  { %s9217_s17 = sld [smem:[#allocation100_spill]]  ;;  %s7516_s22 = smov [#allocation19]  }
 0x1a0   :  { %s288_s26 = sshll.u32 %s7516_s22, 4  ;;  %s7004_s28 = sshra.s32 %s287_s2, 4  ;;  %s289_s26 = int_to_ptr.vmem [resolvable:$true] %s288_s26  ;;  %s7005_s28 = int_to_ptr.hbm [resolvable:$true] %s7004_s28 }
 0x1a1   :  { %s7006_s23 = scalar_lea.hbm %s7005_s28, 1  ;;  %s7008_s8 = scalar_lea.hbm %s9216_s18, 1 }
 0x1a2   :  { %p7007_p8 = scmp.ne.s32.totalorder %s7005_s28, %s7006_s23  ;;  %p7009_p9 = scmp.lt.s32.totalorder %s7005_s28, %s9216_s18 }
 0x1a3   :  { %p7010_p10 = scmp.lt.s32.totalorder %s7008_s8, %s7006_s23 }
 0x1a5   :  { %s310_s12 = sshll.u32 %s9217_s17, 4  ;;  %p7011_p11 = por %p7010_p10, %p7009_p9  ;;  %s311_s12 = int_to_ptr.hbm [resolvable:$true] %s310_s12 }
 0x1a7   :  { %p7012_p12 = pnand %p7011_p11, %p7007_p8 }
 0x1a9   :  { %7015 = shalt.err (!%p7012_p12)
}
 0x1aa   :  { %291 = dma.hbm_to_vmem [thread:$0]  %s287_s2, 16, %s289_s26, [#allocation18]  }
 0x1ab   :  { %s9218_s1 = sld [smem:[#allocation102_spill]]  ;;  %s7517_s24 = smov [#allocation22]  }
 0x1ac   :  { %s312_s19 = sshll.u32 %s7517_s24, 4  ;;  %s7028_s7 = sshra.s32 %s311_s12, 4  ;;  %s313_s19 = int_to_ptr.vmem [resolvable:$true] %s312_s19  ;;  %s7029_s7 = int_to_ptr.hbm [resolvable:$true] %s7028_s7 }
 0x1ad   :  { %s7030_s10 = scalar_lea.hbm %s7029_s7, 1  ;;  %s7032_s27 = scalar_lea.hbm %s9217_s17, 1 }
 0x1ae   :  { %p7031_p13 = scmp.ne.s32.totalorder %s7029_s7, %s7030_s10  ;;  %p7033_p0 = scmp.lt.s32.totalorder %s7029_s7, %s9217_s17 }
 0x1af   :  { %p7034_p1 = scmp.lt.s32.totalorder %s7032_s27, %s7030_s10 }
 0x1b1   :  { %s334_s30 = sshll.u32 %s9218_s1, 4  ;;  %p7035_p2 = por %p7034_p1, %p7033_p0  ;;  %s335_s30 = int_to_ptr.hbm [resolvable:$true] %s334_s30 }
 0x1b3   :  { %p7036_p3 = pnand %p7035_p2, %p7031_p13 }
 0x1b5   :  { %7039 = shalt.err (!%p7036_p3)
}
 0x1b6   :  { %315 = dma.hbm_to_vmem [thread:$0]  %s311_s12, 16, %s313_s19, [#allocation21]  }
 0x1b7   :  { %s9219_s11 = sld [smem:[#allocation104_spill]]  ;;  %s7518_s20 = smov [#allocation25]  }
 0x1b8   :  { %s336_s13 = sshll.u32 %s7518_s20, 4  ;;  %s7052_s0 = sshra.s32 %s335_s30, 4  ;;  %s337_s13 = int_to_ptr.vmem [resolvable:$true] %s336_s13  ;;  %s7053_s0 = int_to_ptr.hbm [resolvable:$true] %s7052_s0 }
 0x1b9   :  { %s7054_s18 = scalar_lea.hbm %s7053_s0, 1  ;;  %s7056_s14 = scalar_lea.hbm %s9218_s1, 1 }
 0x1ba   :  { %p7055_p4 = scmp.ne.s32.totalorder %s7053_s0, %s7054_s18  ;;  %p7057_p5 = scmp.lt.s32.totalorder %s7053_s0, %s9218_s1 }
 0x1bb   :  { %p7058_p6 = scmp.lt.s32.totalorder %s7056_s14, %s7054_s18 }
 0x1bd   :  { %s358_s6 = sshll.u32 %s9219_s11, 4  ;;  %p7059_p7 = por %p7058_p6, %p7057_p5  ;;  %s359_s6 = int_to_ptr.hbm [resolvable:$true] %s358_s6 }
 0x1bf   :  { %p7060_p8 = pnand %p7059_p7, %p7055_p4 }
 0x1c1   :  { %7063 = shalt.err (!%p7060_p8)
}
 0x1c2   :  { %339 = dma.hbm_to_vmem [thread:$0]  %s335_s30, 16, %s337_s13, [#allocation24]  }
 0x1c3   :  { %s9220_s3 = sld [smem:[#allocation106_spill]]  ;;  %s7519_s2 = smov [#allocation28]  }
 0x1c4   :  { %s360_s29 = sshll.u32 %s7519_s2, 4  ;;  %s7076_s5 = sshra.s32 %s359_s6, 4  ;;  %s361_s29 = int_to_ptr.vmem [resolvable:$true] %s360_s29  ;;  %s7077_s5 = int_to_ptr.hbm [resolvable:$true] %s7076_s5 }
 0x1c5   :  { %s7078_s17 = scalar_lea.hbm %s7077_s5, 1  ;;  %s7080_s12 = scalar_lea.hbm %s9219_s11, 1 }
 0x1c6   :  { %p7079_p9 = scmp.ne.s32.totalorder %s7077_s5, %s7078_s17  ;;  %p7081_p10 = scmp.lt.s32.totalorder %s7077_s5, %s9219_s11 }
 0x1c7   :  { %p7082_p11 = scmp.lt.s32.totalorder %s7080_s12, %s7078_s17 }
 0x1c9   :  { %s382_s21 = sshll.u32 %s9220_s3, 4  ;;  %p7083_p12 = por %p7082_p11, %p7081_p10  ;;  %s383_s21 = int_to_ptr.hbm [resolvable:$true] %s382_s21 }
 0x1cb   :  { %p7084_p13 = pnand %p7083_p12, %p7079_p9 }
 0x1cd   :  { %7087 = shalt.err (!%p7084_p13)
}
 0x1ce   :  { %363 = dma.hbm_to_vmem [thread:$0]  %s359_s6, 16, %s361_s29, [#allocation27]  }
 0x1cf   :  { %s9221_s22 = sld [smem:[#allocation107_spill]]  ;;  %s7520_s28 = smov [#allocation31]  }
 0x1d0   :  { %s384_s23 = sshll.u32 %s7520_s28, 4  ;;  %s7100_s8 = sshra.s32 %s383_s21, 4  ;;  %s385_s23 = int_to_ptr.vmem [resolvable:$true] %s384_s23  ;;  %s7101_s8 = int_to_ptr.hbm [resolvable:$true] %s7100_s8 }
 0x1d1   :  { %s7102_s1 = scalar_lea.hbm %s7101_s8, 1  ;;  %s7104_s24 = scalar_lea.hbm %s9220_s3, 1 }
 0x1d2   :  { %p7103_p0 = scmp.ne.s32.totalorder %s7101_s8, %s7102_s1  ;;  %p7105_p1 = scmp.lt.s32.totalorder %s7101_s8, %s9220_s3 }
 0x1d3   :  { %p7106_p2 = scmp.lt.s32.totalorder %s7104_s24, %s7102_s1 }
 0x1d5   :  { %s404_s26 = sshll.u32 %s9221_s22, 4  ;;  %p7107_p3 = por %p7106_p2, %p7105_p1  ;;  %s405_s26 = int_to_ptr.hbm [resolvable:$true] %s404_s26 }
 0x1d7   :  { %p7108_p4 = pnand %p7107_p3, %p7103_p0 }
 0x1d9   :  { %7111 = shalt.err (!%p7108_p4)
}
 0x1da   :  { %387 = dma.hbm_to_vmem [thread:$0]  %s383_s21, 16, %s385_s23, [#allocation30]  }
 0x1db   :  { %s9222_s19 = sld [smem:[#allocation109_spill]]  ;;  %s7521_s30 = smov [#allocation34]  }
 0x1dc   :  { %s406_s7 = sshll.u32 %s7521_s30, 4  ;;  %s7124_s27 = sshra.s32 %s405_s26, 4  ;;  %s407_s7 = int_to_ptr.vmem [resolvable:$true] %s406_s7  ;;  %s7125_s27 = int_to_ptr.hbm [resolvable:$true] %s7124_s27 }
 0x1dd   :  { %s7126_s11 = scalar_lea.hbm %s7125_s27, 1  ;;  %s7128_s6 = scalar_lea.hbm %s9221_s22, 1 }
 0x1de   :  { %p7127_p5 = scmp.ne.s32.totalorder %s7125_s27, %s7126_s11  ;;  %p7129_p6 = scmp.lt.s32.totalorder %s7125_s27, %s9221_s22 }
 0x1df   :  { %p7130_p7 = scmp.lt.s32.totalorder %s7128_s6, %s7126_s11 }
 0x1e1   :  { %s428_s10 = sshll.u32 %s9222_s19, 4  ;;  %p7131_p8 = por %p7130_p7, %p7129_p6  ;;  %s429_s10 = int_to_ptr.hbm [resolvable:$true] %s428_s10 }
 0x1e3   :  { %p7132_p9 = pnand %p7131_p8, %p7127_p5 }
 0x1e5   :  { %7135 = shalt.err (!%p7132_p9)
}
 0x1e6   :  { %409 = dma.hbm_to_vmem [thread:$0]  %s405_s26, 16, %s407_s7, [#allocation33]  }
 0x1e7   :  { %s9223_s20 = sld [smem:[#allocation111_spill]]  ;;  %s7522_s0 = smov [#allocation37]  }
 0x1e8   :  { %s430_s18 = sshll.u32 %s7522_s0, 4  ;;  %s7148_s14 = sshra.s32 %s429_s10, 4  ;;  %s431_s18 = int_to_ptr.vmem [resolvable:$true] %s430_s18  ;;  %s7149_s14 = int_to_ptr.hbm [resolvable:$true] %s7148_s14 }
 0x1e9   :  { %s7150_s3 = scalar_lea.hbm %s7149_s14, 1  ;;  %s7152_s2 = scalar_lea.hbm %s9222_s19, 1 }
 0x1ea   :  { %p7151_p10 = scmp.ne.s32.totalorder %s7149_s14, %s7150_s3  ;;  %p7153_p11 = scmp.lt.s32.totalorder %s7149_s14, %s9222_s19 }
 0x1eb   :  { %p7154_p12 = scmp.lt.s32.totalorder %s7152_s2, %s7150_s3 }
 0x1ed   :  { %s452_s13 = sshll.u32 %s9223_s20, 4  ;;  %p7155_p13 = por %p7154_p12, %p7153_p11  ;;  %s453_s13 = int_to_ptr.hbm [resolvable:$true] %s452_s13 }
 0x1ef   :  { %p7156_p0 = pnand %p7155_p13, %p7151_p10 }
 0x1f1   :  { %7159 = shalt.err (!%p7156_p0)
}
 0x1f2   :  { %433 = dma.hbm_to_vmem [thread:$0]  %s429_s10, 16, %s431_s18, [#allocation36]  }
 0x1f3   :  { %s9224_s29 = sld [smem:[#allocation113_spill]]  ;;  %s7523_s21 = smov [#allocation40]  }
 0x1f4   :  { %s454_s5 = sshll.u32 %s7523_s21, 4  ;;  %s7172_s12 = sshra.s32 %s453_s13, 4  ;;  %s455_s5 = int_to_ptr.vmem [resolvable:$true] %s454_s5  ;;  %s7173_s12 = int_to_ptr.hbm [resolvable:$true] %s7172_s12 }
 0x1f5   :  { %s7174_s22 = scalar_lea.hbm %s7173_s12, 1  ;;  %s7176_s26 = scalar_lea.hbm %s9223_s20, 1 }
 0x1f6   :  { %p7175_p1 = scmp.ne.s32.totalorder %s7173_s12, %s7174_s22  ;;  %p7177_p2 = scmp.lt.s32.totalorder %s7173_s12, %s9223_s20 }
 0x1f7   :  { %p7178_p3 = scmp.lt.s32.totalorder %s7176_s26, %s7174_s22 }
 0x1f9   :  { %s476_s17 = sshll.u32 %s9224_s29, 4  ;;  %p7179_p4 = por %p7178_p3, %p7177_p2  ;;  %s477_s17 = int_to_ptr.hbm [resolvable:$true] %s476_s17 }
 0x1fb   :  { %p7180_p5 = pnand %p7179_p4, %p7175_p1 }
 0x1fd   :  { %7183 = shalt.err (!%p7180_p5)
}
 0x1fe   :  { %457 = dma.hbm_to_vmem [thread:$0]  %s453_s13, 16, %s455_s5, [#allocation39]  }
 0x1ff   :  { %s9225_s28 = sld [smem:[#allocation115_spill]]  ;;  %s7524_s8 = smov [#allocation43]  }
 0x200   :  { %s478_s1 = sshll.u32 %s7524_s8, 4  ;;  %s7196_s24 = sshra.s32 %s477_s17, 4  ;;  %s479_s1 = int_to_ptr.vmem [resolvable:$true] %s478_s1  ;;  %s7197_s24 = int_to_ptr.hbm [resolvable:$true] %s7196_s24 }
 0x201   :  { %s7198_s19 = scalar_lea.hbm %s7197_s24, 1  ;;  %s7200_s30 = scalar_lea.hbm %s9224_s29, 1 }
 0x202   :  { %p7199_p6 = scmp.ne.s32.totalorder %s7197_s24, %s7198_s19  ;;  %p7201_p7 = scmp.lt.s32.totalorder %s7197_s24, %s9224_s29 }
 0x203   :  { %p7202_p8 = scmp.lt.s32.totalorder %s7200_s30, %s7198_s19 }
 0x205   :  { %s500_s23 = sshll.u32 %s9225_s28, 4  ;;  %p7203_p9 = por %p7202_p8, %p7201_p7  ;;  %s501_s23 = int_to_ptr.hbm [resolvable:$true] %s500_s23 }
 0x207   :  { %p7204_p10 = pnand %p7203_p9, %p7199_p6 }
 0x209   :  { %7207 = shalt.err (!%p7204_p10)
}
 0x20a   :  { %481 = dma.hbm_to_vmem [thread:$0]  %s477_s17, 16, %s479_s1, [#allocation42]  }
 0x20b   :  { %s9226_s7 = sld [smem:[#allocation117_spill]]  ;;  %s7525_s10 = smov [#allocation46]  }
 0x20c   :  { %s502_s27 = sshll.u32 %s7525_s10, 4  ;;  %s7220_s6 = sshra.s32 %s501_s23, 4  ;;  %s503_s27 = int_to_ptr.vmem [resolvable:$true] %s502_s27  ;;  %s7221_s6 = int_to_ptr.hbm [resolvable:$true] %s7220_s6 }
 0x20d   :  { %s7222_s20 = scalar_lea.hbm %s7221_s6, 1  ;;  %s7224_s13 = scalar_lea.hbm %s9225_s28, 1 }
 0x20e   :  { %p7223_p11 = scmp.ne.s32.totalorder %s7221_s6, %s7222_s20  ;;  %p7225_p12 = scmp.lt.s32.totalorder %s7221_s6, %s9225_s28 }
 0x20f   :  { %p7226_p13 = scmp.lt.s32.totalorder %s7224_s13, %s7222_s20 }
 0x211   :  { %s522_s11 = sshll.u32 %s9226_s7, 4  ;;  %p7227_p0 = por %p7226_p13, %p7225_p12  ;;  %s523_s11 = int_to_ptr.hbm [resolvable:$true] %s522_s11 }
 0x213   :  { %p7228_p1 = pnand %p7227_p0, %p7223_p11 }
 0x215   :  { %7231 = shalt.err (!%p7228_p1)
}
 0x216   :  { %505 = dma.hbm_to_vmem [thread:$0]  %s501_s23, 16, %s503_s27, [#allocation45]  }
 0x217   :  { %s9227_s0 = sld [smem:[#allocation120_spill]]  ;;  %s7526_s14 = smov [#allocation49]  }
 0x218   :  { %s524_s3 = sshll.u32 %s7526_s14, 4  ;;  %s7244_s2 = sshra.s32 %s523_s11, 4  ;;  %s525_s3 = int_to_ptr.vmem [resolvable:$true] %s524_s3  ;;  %s7245_s2 = int_to_ptr.hbm [resolvable:$true] %s7244_s2 }
 0x219   :  { %s7246_s29 = scalar_lea.hbm %s7245_s2, 1  ;;  %s7248_s21 = scalar_lea.hbm %s9226_s7, 1 }
 0x21a   :  { %p7247_p2 = scmp.ne.s32.totalorder %s7245_s2, %s7246_s29  ;;  %p7249_p3 = scmp.lt.s32.totalorder %s7245_s2, %s9226_s7 }
 0x21b   :  { %p7250_p4 = scmp.lt.s32.totalorder %s7248_s21, %s7246_s29 }
 0x21d   :  { %s546_s18 = sshll.u32 %s9227_s0, 4  ;;  %p7251_p5 = por %p7250_p4, %p7249_p3  ;;  %s547_s18 = int_to_ptr.hbm [resolvable:$true] %s546_s18 }
 0x21f   :  { %p7252_p6 = pnand %p7251_p5, %p7247_p2 }
 0x221   :  { %7255 = shalt.err (!%p7252_p6)
}
 0x222   :  { %527 = dma.hbm_to_vmem [thread:$0]  %s523_s11, 16, %s525_s3, [#allocation48]  }
 0x223   :  { %s9228_s5 = sld [smem:[#allocation123_spill]]  ;;  %s7527_s17 = smov [#allocation52]  }
 0x224   :  { %s548_s12 = sshll.u32 %s7527_s17, 4  ;;  %s7268_s26 = sshra.s32 %s547_s18, 4  ;;  %s549_s12 = int_to_ptr.vmem [resolvable:$true] %s548_s12  ;;  %s7269_s26 = int_to_ptr.hbm [resolvable:$true] %s7268_s26 }
 0x225   :  { %s7270_s28 = scalar_lea.hbm %s7269_s26, 1  ;;  %s7272_s23 = scalar_lea.hbm %s9227_s0, 1 }
 0x226   :  { %p7271_p7 = scmp.ne.s32.totalorder %s7269_s26, %s7270_s28  ;;  %p7273_p8 = scmp.lt.s32.totalorder %s7269_s26, %s9227_s0 }
 0x227   :  { %p7274_p9 = scmp.lt.s32.totalorder %s7272_s23, %s7270_s28 }
 0x229   :  { %s570_s22 = sshll.u32 %s9228_s5, 4  ;;  %p7275_p10 = por %p7274_p9, %p7273_p8  ;;  %s571_s22 = int_to_ptr.hbm [resolvable:$true] %s570_s22 }
 0x22b   :  { %p7276_p11 = pnand %p7275_p10, %p7271_p7 }
 0x22d   :  { %7279 = shalt.err (!%p7276_p11)
}
 0x22e   :  { %551 = dma.hbm_to_vmem [thread:$0]  %s547_s18, 16, %s549_s12, [#allocation51]  }
 0x22f   :  { %s9229_s8 = sld [smem:[#allocation126_spill]]  ;;  %s7528_s24 = smov [#allocation55]  }
 0x230   :  { %s572_s19 = sshll.u32 %s7528_s24, 4  ;;  %s7292_s30 = sshra.s32 %s571_s22, 4  ;;  %s573_s19 = int_to_ptr.vmem [resolvable:$true] %s572_s19  ;;  %s7293_s30 = int_to_ptr.hbm [resolvable:$true] %s7292_s30 }
 0x231   :  { %s7294_s7 = scalar_lea.hbm %s7293_s30, 1  ;;  %s7296_s10 = scalar_lea.hbm %s9228_s5, 1 }
 0x232   :  { %p7295_p12 = scmp.ne.s32.totalorder %s7293_s30, %s7294_s7  ;;  %p7297_p13 = scmp.lt.s32.totalorder %s7293_s30, %s9228_s5 }
 0x233   :  { %p7298_p0 = scmp.lt.s32.totalorder %s7296_s10, %s7294_s7 }
 0x235   :  { %s594_s1 = sshll.u32 %s9229_s8, 4  ;;  %p7299_p1 = por %p7298_p0, %p7297_p13  ;;  %s595_s1 = int_to_ptr.hbm [resolvable:$true] %s594_s1 }
 0x237   :  { %p7300_p2 = pnand %p7299_p1, %p7295_p12 }
 0x239   :  { %7303 = shalt.err (!%p7300_p2)
}
 0x23a   :  { %575 = dma.hbm_to_vmem [thread:$0]  %s571_s22, 16, %s573_s19, [#allocation54]  }
 0x23b   :  { %s7529_s27 = smov [#allocation58]   ;;  %s618_s6 = sshll.u32 %s7841_s9, 4  ;;  %s619_s6 = int_to_ptr.hbm [resolvable:$true] %s618_s6 }
 0x23c   :  { %s596_s11 = sshll.u32 %s7529_s27, 4  ;;  %s7316_s20 = sshra.s32 %s595_s1, 4  ;;  %s597_s11 = int_to_ptr.vmem [resolvable:$true] %s596_s11  ;;  %s7317_s20 = int_to_ptr.hbm [resolvable:$true] %s7316_s20 }
 0x23d   :  { %s7318_s13 = scalar_lea.hbm %s7317_s20, 1  ;;  %s7320_s0 = scalar_lea.hbm %s9229_s8, 1 }
 0x23e   :  { %p7319_p3 = scmp.ne.s32.totalorder %s7317_s20, %s7318_s13  ;;  %p7321_p4 = scmp.lt.s32.totalorder %s7317_s20, %s9229_s8 }
 0x23f   :  { %p7322_p5 = scmp.lt.s32.totalorder %s7320_s0, %s7318_s13 }
 0x241   :  { %p7323_p6 = por %p7322_p5, %p7321_p4 }
 0x243   :  { %p7324_p7 = pnand %p7323_p6, %p7319_p3 }
 0x245   :  { %7327 = shalt.err (!%p7324_p7)
}
 0x246   :  { %599 = dma.hbm_to_vmem [thread:$0]  %s595_s1, 16, %s597_s11, [#allocation57]  }
 0x247   :  { %s7530_s18 = smov [#allocation61]   ;;  %s7340_s3 = sshra.s32 %s619_s6, 4  ;;  %s7341_s3 = int_to_ptr.hbm [resolvable:$true] %s7340_s3 }
 0x248   :  { %s620_s14 = sshll.u32 %s7530_s18, 4  ;;  %s7342_s2 = scalar_lea.hbm %s7341_s3, 1  ;;  %s621_s14 = int_to_ptr.vmem [resolvable:$true] %s620_s14 }
 0x249   :  { %p7343_p8 = scmp.ne.s32.totalorder %s7341_s3, %s7342_s2  ;;  %s7344_s29 = scalar_lea.hbm %s7841_s9, 1 }
 0x24a   :  { %p7345_p9 = scmp.lt.s32.totalorder %s7341_s3, %s7841_s9  ;;  %p7346_p10 = scmp.lt.s32.totalorder %s7344_s29, %s7342_s2 }
 0x24c   :  { %p7347_p11 = por %p7346_p10, %p7345_p9 }
 0x24e   :  { %p7348_p12 = pnand %p7347_p11, %p7343_p8 }
 0x250   :  { %7351 = shalt.err (!%p7348_p12)
}
 0x251   :  { %623 = dma.hbm_to_vmem [thread:$0]  %s619_s6, 16, %s621_s14, [#allocation60]  }
 0x252   :  { %7388 = dma.done.wait [#allocation3], 256  }
 0x253   :  { %7389 = vsyncadd [#allocation3], 4294967040 }
 0x254   :  { %7390 = dma.done.wait [#allocation6], 512  }
 0x255   :  { %7391 = vsyncadd [#allocation6], 4294966784 }
 0x256   :  { %7392 = dma.done.wait [#allocation9], 32  }
 0x257   :  { %7393 = vsyncadd [#allocation9], 4294967264 }
 0x258   :  { %7394 = dma.done.wait [#allocation12], 32  }
 0x259   :  { %7395 = vsyncadd [#allocation12], 4294967264 }
 0x25a   :  { %7396 = dma.done.wait [#allocation15], 32  }
 0x25b   :  { %7397 = vsyncadd [#allocation15], 4294967264 }
 0x25c   :  { %7398 = dma.done.wait [#allocation18], 32  }
 0x25d   :  { %7399 = vsyncadd [#allocation18], 4294967264 }
 0x25e   :  { %7400 = dma.done.wait [#allocation21], 32  }
 0x25f   :  { %7401 = vsyncadd [#allocation21], 4294967264 }
 0x260   :  { %7402 = dma.done.wait [#allocation24], 32  }
 0x261   :  { %7403 = vsyncadd [#allocation24], 4294967264 }
 0x262   :  { %7404 = dma.done.wait [#allocation27], 32  }
 0x263   :  { %7405 = vsyncadd [#allocation27], 4294967264 }
 0x264   :  { %7406 = dma.done.wait [#allocation30], 32  }
 0x265   :  { %7407 = vsyncadd [#allocation30], 4294967264 }
 0x266   :  { %7408 = dma.done.wait [#allocation33], 32  }
 0x267   :  { %7409 = vsyncadd [#allocation33], 4294967264 }
 0x268   :  { %7410 = dma.done.wait [#allocation36], 32  }
 0x269   :  { %7411 = vsyncadd [#allocation36], 4294967264 }
 0x26a   :  { %7412 = dma.done.wait [#allocation39], 32  }
 0x26b   :  { %7413 = vsyncadd [#allocation39], 4294967264 }
 0x26c   :  { %7414 = dma.done.wait [#allocation42], 32  }
 0x26d   :  { %7415 = vsyncadd [#allocation42], 4294967264 }
 0x26e   :  { %7416 = dma.done.wait [#allocation45], 32  }
 0x26f   :  { %7417 = vsyncadd [#allocation45], 4294967264 }
 0x270   :  { %7418 = dma.done.wait [#allocation48], 32  }
 0x271   :  { %7419 = vsyncadd [#allocation48], 4294967264 }
 0x272   :  { %7420 = dma.done.wait [#allocation51], 32  }
 0x273   :  { %7421 = vsyncadd [#allocation51], 4294967264 }
 0x274   :  { %7422 = dma.done.wait [#allocation54], 32  }
 0x275   :  { %7423 = vsyncadd [#allocation54], 4294967264 }
 0x276   :  { %7424 = dma.done.wait [#allocation57], 32  }
 0x277   :  { %7425 = vsyncadd [#allocation57], 4294967264 }
 0x278   :  { %7426 = dma.done.wait [#allocation60], 32  }
 0x279   :  { %7427 = vsyncadd [#allocation60], 4294967264  ;;  %s9230_s9 = sld [smem:[#allocation84_spill]]  ;;  %v781_v0 = vld [vmem:[#allocation5 + $0x8] sm:$0xff]  ;;  %v780_v1 = vld [vmem:[#allocation5] sm:$0xff]  ;;  %vm793_vm0 = vcmask 130048  }
 0x27a   :  { %s9231_s21 = sld [smem:[#allocation88_spill]]  ;;  %814 = vmatpush.msra.mxu0 %v781_v0  ;;  %vm888_vm1 = vcmask 64512   ;;  %s7531_s17 = smov 104   ;;  %v784_v37 = vld [vmem:[#allocation7 + $0x8] sm:$0xff]  ;;  %v783_v38 = vld [vmem:[#allocation7] sm:$0xff] }
 0x27b   :  { %s9232_s5 = sld [smem:[#allocation90_spill]]  ;;  %s7532_s12 = smov 120   ;;  %850 = vmatpush.msra.mxu1 %v784_v37  ;;  %v825_v39 = vld [vmem:[#allocation2] sm:$0xff]  ;;  %v826_v40 = vld [vmem:[#allocation2 + $0x8] sm:$0xff] }
 0x27c   :  { %815 = vmatpush.msra.mxu0 %v780_v1  ;;  %s7533_s22 = smov 112   ;;  %s9233_s26 = sld [smem:[#allocation86_spill]] }
 0x27d   :  { %851 = vmatpush.msra.mxu1 %v783_v38  ;;  %s9234_s28 = sld [smem:[#allocation91_spill]]  ;;  %s7534_s23 = smov 16  }
 0x27e   :  { %5873 = vmatmul.msk.f32.vlgmr.msra.gmra.mxu1 %vm793_vm0, %v825_v39  ;;  %s7535_s8 = smov 24   ;;  %s9235_s1 = sld [smem:[#allocation92_spill]] }
 0x27f   :  { %v788_v2 = vld [vmem:[%s9230_s9] sm:$0xff]  ;;  %v789_v3 = vld [vmem:[%s9230_s9 + $0x8] sm:$0xff]  ;;  %s9236_s24 = sld [smem:[#allocation95_spill]]  ;;  %s5779_s29 = sshll.u32 %s7846_s4, 4  ;;  %s5780_s29 = int_to_ptr.hbm [resolvable:$true] %s5779_s29 }
 0x280   :  { %5871 = vmatmul.msk.f32.vlgmr.msra.gmra.mxu0 %vm793_vm0, %v788_v2  ;;  %v6157_v4 = vld [vmem:[%s9231_s21] ss:$0 sm:$0xff]  ;;  %s9237_s19 = sld [smem:[#allocation96_spill]]  ;;  %s7376_s9 = sshra.s32 %s5780_s29, 4  ;;  %s7377_s9 = int_to_ptr.hbm [resolvable:$true] %s7376_s9 }
 0x281   :  { %v786_v5 = vld [vmem:[%s9232_s5] sm:$0xff]  ;;  %s9238_s30 = sld [smem:[#allocation99_spill]]  ;;  %s7378_s21 = scalar_lea.hbm %s7377_s9, 16 }
 0x282   :  { %v8021_v15 = vld [vmem:[%s9233_s26] sm:$0xff]  ;;  %s9239_s7 = sld [smem:[#allocation101_spill]]  ;;  %p7379_p13 = scmp.ne.s32.totalorder %s7377_s9, %s7378_s21 }
 0x283   :  { %vm862_vm2 = vcmp.eq.f32.partialorder %v8021_v15, 0.0  ;;  %s9240_s10 = sld [smem:[#allocation87_spill]]  ;;  %s7380_s5 = scalar_lea.hbm %s7846_s4, 16 }
 0x284   :  { %s9241_s27 = sld [smem:[#allocation103_spill]]  ;;  %p7381_p0 = scmp.lt.s32.totalorder %s7377_s9, %s7846_s4 }
 0x285   :  { %s9242_s11 = sld [smem:[#allocation105_spill]]  ;;  %p7382_p1 = scmp.lt.s32.totalorder %s7380_s5, %s7378_s21 }
 0x286   :  { %5874 = vmatmul.msk.f32.gmra.mxu1 %vm793_vm0, %v826_v40  ;;  %s9243_s6 = sld [smem:[#allocation108_spill]] }
 0x287   :  { %s9244_s20 = sld [smem:[#allocation110_spill]]  ;;  %p7383_p2 = por %p7382_p1, %p7381_p0 }
 0x288   :  { %5872 = vmatmul.msk.f32.gmra.mxu0 %vm793_vm0, %v789_v3  ;;  %s9245_s13 = sld [smem:[#allocation112_spill]] }
 0x289   :  { %s9246_s0 = sld [smem:[#allocation114_spill]]  ;;  %p7384_p3 = pnand %p7383_p2, %p7379_p13 }
 0x28a   :  { %s9247_s18 = sld [smem:[#allocation118_spill]] }
 0x28b   :  { %s9248_s14 = sld [smem:[#allocation122_spill]] }
 0x28c   :  { %s9249_s3 = sld [smem:[#allocation124_spill]] }
 0x2fd   :  { %v817_v6 = vpop.f32.mrf.mxu0 }
 0x2fe   :  { %v818_v7 = vadd.f32 %v6157_v4, %v817_v6 }
 0x300   :  { %v7988_v8 = vadd.f32 %v818_v7, %v786_v5 }
 0x302   :  { %1331 = vrot.lane.b32.xlu1 %v7988_v8, %s7531_s17  ;;  %1035 = vrot.lane.b32.xlu0 %v7988_v8, %s7532_s12 }
 0x303   :  { %5875 = vmatpush.xpose.msk.msra.mxu2 %vm888_vm1, %v7988_v8 }
 0x305   :  { %v820_v9 = vpop.f32.mrf.mxu0 }
 0x306   :  { %5876 = vmatmul.msk.f32.vlgmr.msra.gmra.mxu2 %vm888_vm1, %v7988_v8  ;;  %v821_v10 = vadd.f32 %v6157_v4, %v820_v9 }
 0x307   :  { %1007 = vmatpush.msrb.mxu2 %v7988_v8 }
 0x308   :  { %v8001_v11 = vadd.f32 %v821_v10, %v786_v5 }
 0x30a   :  { %1183 = vrot.lane.b32.xlu0 %v7988_v8, %s7533_s22  ;;  %5877 = vmatpush.xpose.msk.msra.mxu3 %vm888_vm1, %v8001_v11 }
 0x30d   :  { %5878 = vmatmul.msk.f32.vlgmr.msra.gmra.mxu3 %vm888_vm1, %v8001_v11 }
 0x30e   :  { %1030 = vmatpush.msrb.mxu3 %v8001_v11 }
 0x374   :  { %v1036_v12 = vpop.permute.xlu0 %1035  ;;  %v8012_v14 = vpop.permute.xlu1 %1331 }
 0x375   :  { %5881 = vmatpush.xpose.msk.msrb.mxu0 %vm888_vm1, %v1036_v12  ;;  %1154 = vmatpush.msra.mxu2 %v1036_v12 }
 0x378   :  { %5882 = vmatmul.msk.f32.vlgmr.msrb.gmra.mxu0 %vm888_vm1, %v1036_v12  ;;  %v8075_v12 = vpop.f32.mrf.mxu1 }
 0x37c   :  { %v8010_v13 = vpop.permute.xlu0 %1183 }
 0x37d   :  { %5887 = vmatpush.xpose.msk.msra.mxu0 %vm888_vm1, %v8010_v13 }
 0x380   :  { %5888 = vmatmul.msk.f32.vlgmr.msra.gmra.mxu0 %vm888_vm1, %v8010_v13 }
 0x381   :  { %5893 = vmatpush.xpose.msk.msrb.mxu0 %vm888_vm1, %v8012_v14 }
 0x388   :  { %5894 = vmatmul.msk.f32.vlgmr.msrb.gmra.mxu0 %vm888_vm1, %v8012_v14 }
 0x389   :  { %v909_v16 = vpop.f32.mrf.mxu2 }
 0x38a   :  { %v937_v17 = vsel %vm862_vm2, -1e+20, %v909_v16  ;;  %v8077_v16 = vld [vmem:[#allocation8] ss:$0 sm:$0xff] }
 0x38b   :  { %v939_v18 = vmul.f32 0.35355338, %v937_v17  ;;  %v856_v17 = vpop.f32.mrf.mxu1 }
 0x38d   :  { %v941_v19 = vsel %vm888_vm1, %v939_v18, -inf }
 0x38e   :  { %942 = vmax.xlane.f32.xlu1 %v941_v19  ;;  %v8081_v19 = vld [vmem:[%s9234_s28] sm:$0xff] }
 0x390   :  { %v932_v58 = vpop.f32.mrf.mxu3 }
 0x391   :  { %v938_v60 = vsel %vm862_vm2, -1e+20, %v932_v58 }
 0x392   :  { %v8069_v61 = vmul.f32 0.35355338, %v938_v60 }
 0x394   :  { %v944_v0 = vsel %vm888_vm1, %v8069_v61, -inf }
 0x3a7   :  { %1207 = vrot.lane.b32.xlu1 %v8001_v11, %s7533_s22 }
 0x3f5   :  { %v1056_v20 = vpop.f32.mrf.mxu0 }
 0x3f6   :  { %v1083_v21 = vsel %vm862_vm2, -1e+20, %v1056_v20 }
 0x3f7   :  { %v1085_v22 = vmul.f32 0.35355338, %v1083_v21 }
 0x3f9   :  { %v1087_v23 = vsel %vm888_vm1, %v1085_v22, -inf }
 0x3fa   :  { %1088 = vmax.xlane.f32.xlu2 %v1087_v23 }
 0x3fd   :  { %v1204_v24 = vpop.f32.mrf.mxu0 }
 0x3fe   :  { %v1231_v25 = vsel %vm862_vm2, -1e+20, %v1204_v24 }
 0x3ff   :  { %v1233_v26 = vmul.f32 0.35355338, %v1231_v25 }
 0x401   :  { %v1235_v27 = vsel %vm888_vm1, %v1233_v26, -inf  ;;  %v943_v32 = vpop.xlane.xlu1 %942 }
 0x402   :  { %1236 = vmax.xlane.f32.xlu2 %v1235_v27  ;;  %v947_v33 = vsub.f32 %v939_v18, %v943_v32  ;;  %v857_v18 = vadd.f32 %v8077_v16, %v856_v17 }
 0x404   :  { %v949_v34 = vmul.f32 1.442695, %v947_v33  ;;  %v8084_v20 = vadd.f32 %v857_v18, %v8081_v19 }
 0x405   :  { %v1352_v28 = vpop.f32.mrf.mxu0 }
 0x406   :  { %v1379_v29 = vsel %vm862_vm2, -1e+20, %v1352_v28  ;;  %6194 = vpow2.f32 %v949_v34 }
 0x407   :  { %v1381_v30 = vmul.f32 0.35355338, %v1379_v29 }
 0x409   :  { %v1383_v31 = vsel %vm888_vm1, %v1381_v30, -inf }
 0x40a   :  { %1384 = vmax.xlane.f32.xlu0 %v1383_v31 }
 0x40c   :  { %v6195_v35 = vpop.eup %6194 }
 0x40d   :  { %v953_v36 = vsel %vm888_vm1, %v6195_v35, 0.0 }
 0x419   :  { %v8049_v51 = vpop.permute.xlu1 %1207 }
 0x41a   :  { %1059 = vrot.lane.b32.xlu2 %v8001_v11, %s7532_s12 }
 0x443   :  { %954 = vadd.xlane.f32.xlu2 %v953_v36 }
 0x46d   :  { %v1089_v41 = vpop.xlane.xlu2 %1088 }
 0x46e   :  { %v1093_v42 = vsub.f32 %v1085_v22, %v1089_v41 }
 0x470   :  { %v1095_v43 = vmul.f32 1.442695, %v1093_v42 }
 0x472   :  { %6196 = vpow2.f32 %v1095_v43 }
 0x475   :  { %v1237_v44 = vpop.xlane.xlu2 %1236 }
 0x476   :  { %v1241_v45 = vsub.f32 %v1233_v26, %v1237_v44 }
 0x478   :  { %v8045_v46 = vpop.eup %6196  ;;  %v1243_v47 = vmul.f32 1.442695, %v1241_v45 }
 0x479   :  { %v1099_v48 = vsel %vm888_vm1, %v8045_v46, 0.0 }
 0x47a   :  { %6198 = vpow2.f32 %v1243_v47  ;;  %1100 = vadd.xlane.f32.xlu2 %v1099_v48 }
 0x47d   :  { %v1385_v49 = vpop.xlane.xlu0 %1384  ;;  %v1060_v50 = vpop.permute.xlu2 %1059 }
 0x47e   :  { %v1389_v52 = vsub.f32 %v1381_v30, %v1385_v49  ;;  %5883 = vmatpush.xpose.msk.msrb.mxu1 %vm888_vm1, %v1060_v50  ;;  %1178 = vmatpush.msra.mxu3 %v1060_v50 }
 0x480   :  { %v8054_v53 = vpop.eup %6198  ;;  %v1391_v54 = vmul.f32 1.442695, %v1389_v52 }
 0x481   :  { %5884 = vmatmul.msk.f32.vlgmr.msrb.gmra.mxu1 %vm888_vm1, %v1060_v50  ;;  %v1247_v55 = vsel %vm888_vm1, %v8054_v53, 0.0 }
 0x482   :  { %5889 = vmatpush.xpose.msk.msra.mxu1 %vm888_vm1, %v8049_v51  ;;  %6200 = vpow2.f32 %v1391_v54  ;;  %1248 = vadd.xlane.f32.xlu0 %v1247_v55 }
 0x488   :  { %v8059_v56 = vpop.eup %6200 }
 0x489   :  { %5890 = vmatmul.msk.f32.vlgmr.msra.gmra.mxu1 %vm888_vm1, %v8049_v51  ;;  %v1395_v57 = vsel %vm888_vm1, %v8059_v56, 0.0 }
 0x48a   :  { %1396 = vadd.xlane.f32.xlu1 %v1395_v57 }
 0x496   :  { %1355 = vrot.lane.b32.xlu0 %v8001_v11, %s7531_s17 }
 0x4b6   :  { %v955_v59 = vpop.xlane.xlu2 %954 }
 0x4b7   :  { %6202 = vrcp.f32 %v955_v59  ;;  %v970_v2 = vand.u32 2147483648, %v955_v59  ;;  %v968_v4 = vand.u32 2147483647, %v955_v59  ;;  %vm964_vm4 = vweird.f32 %v955_v59 }
 0x4b9   :  { %v971_v6 = vor.u32 1.1754944e-38, %v970_v2  ;;  %vm969_vm6 = vcmp.eq.f32.partialorder %v968_v4, 8.507059e+37 }
 0x4bd   :  { %v6203_v62 = vpop.eup %6202 }
 0x4be   :  { %v960_v63 = vmul.f32 %v6203_v62, %v955_v59  ;;  %vm965_vm3 = vweird.f32 %v6203_v62 }
 0x4bf   :  { %vm966_vm5 = vmor %vm964_vm4, %vm965_vm3 }
 0x4c0   :  { %v961_v1 = vsub.f32 1.0, %v960_v63  ;;  %945 = vmax.xlane.f32.xlu0 %v944_v0 }
 0x4c2   :  { %v962_v3 = vmul.f32 %v6203_v62, %v961_v1 }
 0x4c4   :  { %v963_v5 = vadd.f32 %v6203_v62, %v962_v3 }
 0x4c6   :  { %v967_v7 = vsel %vm966_vm5, %v6203_v62, %v963_v5 }
 0x4c7   :  { %v972_v9 = vsel %vm969_vm6, %v971_v6, %v967_v7  ;;  %vm1507_vm6 = vcmask 195584  }
 0x4c8   :  { %v987_v10 = vmul.f32 %v6195_v35, %v972_v9 }
 0x4ca   :  { %5879 = vmatmul.msk.f32.vlgmr.msrb.gmra.mxu2 %vm888_vm1, %v987_v10 }
 0x4cb   :  { %1302 = vmatpush.msrb.mxu2 %v8010_v13 }
 0x4ed   :  { %v1101_v21 = vpop.xlane.xlu2 %1100 }
 0x4ee   :  { %6204 = vrcp.f32 %v1101_v21  ;;  %v1116_v26 = vand.u32 2147483648, %v1101_v21  ;;  %v1114_v27 = vand.u32 2147483647, %v1101_v21  ;;  %vm1110_vm8 = vweird.f32 %v1101_v21 }
 0x4f0   :  { %v1117_v31 = vor.u32 1.1754944e-38, %v1116_v26  ;;  %vm1115_vm10 = vcmp.eq.f32.partialorder %v1114_v27, 8.507059e+37 }
 0x4f4   :  { %v6205_v22 = vpop.eup %6204 }
 0x4f5   :  { %v1106_v23 = vmul.f32 %v6205_v22, %v1101_v21  ;;  %v1249_v24 = vpop.xlane.xlu0 %1248  ;;  %vm1111_vm7 = vweird.f32 %v6205_v22 }
 0x4f6   :  { %6206 = vrcp.f32 %v1249_v24  ;;  %vm1112_vm9 = vmor %vm1110_vm8, %vm1111_vm7  ;;  %v1264_v38 = vand.u32 2147483648, %v1249_v24  ;;  %v1262_v42 = vand.u32 2147483647, %v1249_v24  ;;  %vm1258_vm12 = vweird.f32 %v1249_v24 }
 0x4f7   :  { %v1107_v25 = vsub.f32 1.0, %v1106_v23  ;;  %vm1513_vm7 = vcmask 261120  }
 0x4f8   :  { %v1265_v47 = vor.u32 1.1754944e-38, %v1264_v38  ;;  %vm1263_vm14 = vcmp.eq.f32.partialorder %v1262_v42, 8.507059e+37 }
 0x4f9   :  { %v1108_v13 = vmul.f32 %v6205_v22, %v1107_v25 }
 0x4fb   :  { %v1109_v28 = vadd.f32 %v6205_v22, %v1108_v13 }
 0x4fc   :  { %v6207_v29 = vpop.eup %6206 }
 0x4fd   :  { %v1113_v30 = vsel %vm1112_vm9, %v6205_v22, %v1109_v28  ;;  %v1254_v32 = vmul.f32 %v6207_v29, %v1249_v24  ;;  %v1397_v33 = vpop.xlane.xlu1 %1396  ;;  %vm1259_vm11 = vweird.f32 %v6207_v29 }
 0x4fe   :  { %6208 = vrcp.f32 %v1397_v33  ;;  %v1080_v34 = vpop.f32.mrf.mxu1  ;;  %v1118_v37 = vsel %vm1115_vm10, %v1117_v31, %v1113_v30  ;;  %vm1260_vm13 = vmor %vm1258_vm12, %vm1259_vm11  ;;  %v1412_v57 = vand.u32 2147483648, %v1397_v33  ;;  %v1410_v60 = vand.u32 2147483647, %v1397_v33 }
 0x4ff   :  { %v1255_v35 = vsub.f32 1.0, %v1254_v32  ;;  %v1084_v36 = vsel %vm862_vm2, -1e+20, %v1080_v34  ;;  %v1133_v40 = vmul.f32 %v8045_v46, %v1118_v37  ;;  %vm1406_vm3 = vweird.f32 %v1397_v33  ;;  %v867_v34 = vld [vmem:[%s9235_s1 + $0x10] sm:$0xff] }
 0x500   :  { %v1086_v39 = vmul.f32 0.35355338, %v1084_v36  ;;  %v1413_v0 = vor.u32 1.1754944e-38, %v1412_v57  ;;  %vm1411_vm5 = vcmp.eq.f32.partialorder %v1410_v60, 8.507059e+37  ;;  %v865_v36 = vld [vmem:[%s9235_s1] sm:$0xff] }
 0x501   :  { %v1256_v41 = vmul.f32 %v6207_v29, %v1255_v35  ;;  %5885 = vmatmul.msk.f32.vlgmr.msra.gmra.mxu2 %vm888_vm1, %v1133_v40  ;;  %v866_v35 = vld [vmem:[%s9235_s1 + $0x8] sm:$0xff] }
 0x502   :  { %v1090_v43 = vsel %vm888_vm1, %v1086_v39, -inf  ;;  %1450 = vmatpush.msra.mxu2 %v8012_v14 }
 0x503   :  { %v1257_v44 = vadd.f32 %v6207_v29, %v1256_v41  ;;  %1091 = vmax.xlane.f32.xlu2 %v1090_v43 }
 0x504   :  { %v6209_v45 = vpop.eup %6208 }
 0x505   :  { %v1261_v48 = vsel %vm1260_vm13, %v6207_v29, %v1257_v44  ;;  %v1402_v49 = vmul.f32 %v6209_v45, %v1397_v33  ;;  %vm1407_vm15 = vweird.f32 %v6209_v45  ;;  %v868_v33 = vld [vmem:[%s9235_s1 + $0x18] sm:$0xff] }
 0x506   :  { %v1228_v50 = vpop.f32.mrf.mxu1  ;;  %v1266_v46 = vsel %vm1263_vm14, %v1265_v47, %v1261_v48  ;;  %vm1408_vm4 = vmor %vm1406_vm3, %vm1407_vm15  ;;  %1532 = vmatpush.msra.mxu0 %v868_v33 }
 0x507   :  { %v1403_v52 = vsub.f32 1.0, %v1402_v49  ;;  %v1232_v54 = vsel %vm862_vm2, -1e+20, %v1228_v50  ;;  %v1281_v55 = vmul.f32 %v8054_v53, %v1266_v46 }
 0x508   :  { %v1234_v58 = vmul.f32 0.35355338, %v1232_v54  ;;  %v8095_v59 = vpop.permute.xlu0 %1355  ;;  %1533 = vmatpush.msra.mxu0 %v867_v34 }
 0x509   :  { %v1404_v14 = vmul.f32 %v6209_v45, %v1403_v52  ;;  %5895 = vmatpush.xpose.msk.msrb.mxu1 %vm888_vm1, %v8095_v59  ;;  %5891 = vmatmul.msk.f32.vlgmr.msrb.gmra.mxu2 %vm888_vm1, %v1281_v55 }
 0x50a   :  { %v1238_v62 = vsel %vm888_vm1, %v1234_v58, -inf  ;;  %1534 = vmatpush.msra.mxu0 %v866_v35 }
 0x50b   :  { %v1405_v63 = vadd.f32 %v6209_v45, %v1404_v14  ;;  %1239 = vmax.xlane.f32.xlu2 %v1238_v62 }
 0x50c   :  { %5896 = vmatmul.msk.f32.vlgmr.msrb.gmra.mxu1 %vm888_vm1, %v8095_v59  ;;  %1535 = vmatpush.msra.mxu0 %v865_v36 }
 0x50d   :  { %v1409_v53 = vsel %vm1408_vm4, %v6209_v45, %v1405_v63 }
 0x50e   :  { %v1414_v1 = vsel %vm1411_vm5, %v1413_v0, %v1409_v53 }
 0x50f   :  { %v1429_v2 = vmul.f32 %v8059_v56, %v1414_v1 }
 0x511   :  { %5897 = vmatmul.msk.f32.vlgmr.msra.gmra.mxu2 %vm888_vm1, %v1429_v2 }
 0x533   :  { %v946_v26 = vpop.xlane.xlu0 %945 }
 0x534   :  { %v948_v28 = vsub.f32 %v8069_v61, %v946_v26 }
 0x536   :  { %v951_v30 = vmul.f32 1.442695, %v948_v28 }
 0x54d   :  { %v1009_v3 = vpop.f32.mrf.mxu2 }
 0x576   :  { %v1092_v56 = vpop.xlane.xlu2 %1091 }
 0x577   :  { %v1094_v18 = vsub.f32 %v1086_v39, %v1092_v56 }
 0x579   :  { %v1097_v21 = vmul.f32 1.442695, %v1094_v18 }
 0x57b   :  { %6210 = vpow2.f32 %v1097_v21 }
 0x57e   :  { %v1240_v22 = vpop.xlane.xlu2 %1239 }
 0x57f   :  { %v1242_v23 = vsub.f32 %v1234_v58, %v1240_v22 }
 0x581   :  { %v1245_v24 = vmul.f32 1.442695, %v1242_v23  ;;  %v8111_v25 = vpop.eup %6210 }
 0x582   :  { %v1102_v13 = vsel %vm888_vm1, %v8111_v25, 0.0 }
 0x583   :  { %6212 = vpow2.f32 %v1245_v24 }
 0x584   :  { %v1156_v4 = vpop.f32.mrf.mxu2  ;;  %6214 = vpow2.f32 %v951_v30 }
 0x589   :  { %v1376_v5 = vpop.f32.mrf.mxu1  ;;  %v8115_v27 = vpop.eup %6212 }
 0x58a   :  { %v1380_v6 = vsel %vm862_vm2, -1e+20, %v1376_v5  ;;  %v1250_v29 = vsel %vm888_vm1, %v8115_v27, 0.0  ;;  %v6215_v31 = vpop.eup %6214 }
 0x58b   :  { %v1382_v7 = vmul.f32 0.35355338, %v1380_v6  ;;  %v956_v32 = vsel %vm888_vm1, %v6215_v31, 0.0 }
 0x58c   :  { %v1304_v9 = vpop.f32.mrf.mxu2 }
 0x58d   :  { %v1386_v10 = vsel %vm888_vm1, %v1382_v7, -inf  ;;  %1489 = vrot.lane.b32.xlu1 %v1304_v9, %s7534_s23 }
 0x58e   :  { %1387 = vmax.xlane.f32.xlu2 %v1386_v10 }
 0x594   :  { %v1452_v17 = vpop.f32.mrf.mxu2 }
 0x595   :  { %1497 = vrot.lane.b32.xlu0 %v1452_v17, %s7535_s8 }
 0x5a6   :  { %1481 = vrot.lane.b32.xlu2 %v1156_v4, %s7492_s16 }
 0x5b7   :  { %1103 = vadd.xlane.f32.xlu1 %v1102_v13 }
 0x5bf   :  { %1251 = vadd.xlane.f32.xlu0 %v1250_v29 }
 0x5cf   :  { %957 = vadd.xlane.f32.xlu2 %v956_v32 }
 0x5ff   :  { %v1490_v40 = vpop.permute.xlu1 %1489 }
 0x601   :  { %v1388_v37 = vpop.xlane.xlu2 %1387 }
 0x602   :  { %v1390_v61 = vsub.f32 %v1382_v7, %v1388_v37 }
 0x604   :  { %v1393_v38 = vmul.f32 1.442695, %v1390_v61 }
 0x606   :  { %6216 = vpow2.f32 %v1393_v38 }
 0x607   :  { %v1498_v42 = vpop.permute.xlu0 %1497 }
 0x609   :  { %v1482_v39 = vpop.permute.xlu2 %1481 }
 0x60a   :  { %v1503_v41 = vsel %vm888_vm1, %v1009_v3, %v1482_v39 }
 0x60b   :  { %v1505_v43 = vsel %vm793_vm0, %v1503_v41, %v1490_v40 }
 0x60c   :  { %v8127_v44 = vpop.eup %6216  ;;  %v1508_v45 = vsel %vm1507_vm6, %v1505_v43, %v1498_v42 }
 0x60d   :  { %5899 = vmatmul.msk.f32.vlgmr.msra.gmra.mxu0 %vm1513_vm7, %v1508_v45  ;;  %v1398_v47 = vsel %vm888_vm1, %v8127_v44, 0.0 }
 0x60e   :  { %1399 = vadd.xlane.f32.xlu2 %v1398_v47 }
 0x62a   :  { %v1104_v48 = vpop.xlane.xlu1 %1103 }
 0x62b   :  { %6218 = vrcp.f32 %v1104_v48  ;;  %v1130_v6 = vand.u32 2147483648, %v1104_v48  ;;  %vm1124_vm13 = vweird.f32 %v1104_v48  ;;  %v1128_v9 = vand.u32 2147483647, %v1104_v48 }
 0x62d   :  { %v1131_v18 = vor.u32 1.1754944e-38, %v1130_v6  ;;  %vm1129_vm15 = vcmp.eq.f32.partialorder %v1128_v9, 8.507059e+37 }
 0x631   :  { %v6219_v49 = vpop.eup %6218 }
 0x632   :  { %v1252_v50 = vpop.xlane.xlu0 %1251  ;;  %v1120_v52 = vmul.f32 %v6219_v49, %v1104_v48  ;;  %vm1125_vm10 = vweird.f32 %v6219_v49 }
 0x633   :  { %vm1126_vm14 = vmor %vm1124_vm13, %vm1125_vm10  ;;  %v1278_v23 = vand.u32 2147483648, %v1252_v50  ;;  %vm1272_vm4 = vweird.f32 %v1252_v50  ;;  %v1276_v24 = vand.u32 2147483647, %v1252_v50 }
 0x634   :  { %v1121_v55 = vsub.f32 1.0, %v1120_v52 }
 0x635   :  { %v1279_v28 = vor.u32 1.1754944e-38, %v1278_v23 }
 0x636   :  { %v1122_v60 = vmul.f32 %v6219_v49, %v1121_v55 }
 0x638   :  { %v1123_v3 = vadd.f32 %v6219_v49, %v1122_v60 }
 0x63a   :  { %v1127_v17 = vsel %vm1126_vm14, %v6219_v49, %v1123_v3 }
 0x63b   :  { %v1132_v21 = vsel %vm1129_vm15, %v1131_v18, %v1127_v17 }
 0x63c   :  { %v1134_v13 = vmul.f32 %v8111_v25, %v1132_v21 }
 0x642   :  { %v958_v46 = vpop.xlane.xlu2 %957 }
 0x643   :  { %6220 = vrcp.f32 %v958_v46  ;;  %v984_v62 = vand.u32 2147483648, %v958_v46  ;;  %v982_v53 = vand.u32 2147483647, %v958_v46  ;;  %vm978_vm9 = vweird.f32 %v958_v46 }
 0x644   :  { %6222 = vrcp.f32 %v1252_v50 }
 0x645   :  { %v985_v2 = vor.u32 1.1754944e-38, %v984_v62  ;;  %vm983_vm12 = vcmp.eq.f32.partialorder %v982_v53, 8.507059e+37  ;;  %v875_v62 = vld [vmem:[%s9236_s24 + $0x18] sm:$0xff]  ;;  %v873_v53 = vld [vmem:[%s9236_s24 + $0x8] sm:$0xff] }
 0x646   :  { %1627 = vmatpush.msra.mxu1 %v875_v62 }
 0x649   :  { %v6221_v54 = vpop.eup %6220 }
 0x64a   :  { %v974_v57 = vmul.f32 %v6221_v54, %v958_v46  ;;  %v6223_v58 = vpop.eup %6222  ;;  %vm979_vm8 = vweird.f32 %v6221_v54 }
 0x64b   :  { %v1268_v63 = vmul.f32 %v6223_v58, %v1252_v50  ;;  %vm980_vm11 = vmor %vm978_vm9, %vm979_vm8  ;;  %vm1273_vm3 = vweird.f32 %v6223_v58  ;;  %vm1277_vm8 = vcmp.eq.f32.partialorder %v1276_v24, 8.507059e+37  ;;  %v6160_v24 = vld [vmem:[#allocation11] ss:$0 sm:$0xff] }
 0x64c   :  { %v975_v14 = vsub.f32 1.0, %v974_v57  ;;  %vm1274_vm5 = vmor %vm1272_vm4, %vm1273_vm3  ;;  %vm1643_vm4 = vcmask 523264  }
 0x64d   :  { %v1269_v4 = vsub.f32 1.0, %v1268_v63 }
 0x64e   :  { %v976_v0 = vmul.f32 %v6221_v54, %v975_v14 }
 0x64f   :  { %v1270_v56 = vmul.f32 %v6223_v58, %v1269_v4 }
 0x650   :  { %v977_v1 = vadd.f32 %v6221_v54, %v976_v0  ;;  %v874_v0 = vld [vmem:[%s9236_s24 + $0x10] sm:$0xff] }
 0x651   :  { %v1271_v22 = vadd.f32 %v6223_v58, %v1270_v56  ;;  %1628 = vmatpush.msra.mxu1 %v874_v0 }
 0x652   :  { %v981_v5 = vsel %vm980_vm11, %v6221_v54, %v977_v1  ;;  %v872_v1 = vld [vmem:[%s9236_s24] sm:$0xff] }
 0x653   :  { %v986_v7 = vsel %vm983_vm12, %v985_v2, %v981_v5  ;;  %v1275_v26 = vsel %vm1274_vm5, %v6223_v58, %v1271_v22  ;;  %1629 = vmatpush.msra.mxu1 %v873_v53 }
 0x654   :  { %v988_v10 = vmul.f32 %v6215_v31, %v986_v7  ;;  %v1280_v29 = vsel %vm1277_vm8, %v1279_v28, %v1275_v26  ;;  %v8140_v31 = vld [vmem:[#allocation10] ss:$0 sm:$0xff]  ;;  %v6161_v28 = vld [vmem:[#allocation13] ss:$0 sm:$0xff] }
 0x655   :  { %1630 = vmatpush.msra.mxu1 %v872_v1 }
 0x656   :  { %5880 = vmatmul.msk.f32.vlgmr.msrb.gmra.mxu3 %vm888_vm1, %v988_v10 }
 0x657   :  { %1326 = vmatpush.msrb.mxu3 %v8049_v51  ;;  %v1282_v51 = vmul.f32 %v8115_v27, %v1280_v29 }
 0x65e   :  { %5886 = vmatmul.msk.f32.vlgmr.msra.gmra.mxu3 %vm888_vm1, %v1134_v13 }
 0x65f   :  { %1474 = vmatpush.msra.mxu3 %v8095_v59 }
 0x666   :  { %5892 = vmatmul.msk.f32.vlgmr.msrb.gmra.mxu3 %vm888_vm1, %v1282_v51 }
 0x681   :  { %v1400_v30 = vpop.xlane.xlu2 %1399 }
 0x682   :  { %6224 = vrcp.f32 %v1400_v30  ;;  %v1426_v36 = vand.u32 2147483648, %v1400_v30  ;;  %v1424_v59 = vand.u32 2147483647, %v1400_v30  ;;  %vm1420_vm10 = vweird.f32 %v1400_v30 }
 0x684   :  { %v1427_v39 = vor.u32 1.1754944e-38, %v1426_v36  ;;  %vm1425_vm12 = vcmp.eq.f32.partialorder %v1424_v59, 8.507059e+37  ;;  %v878_v36 = vld [vmem:[%s9237_s19 + $0x8] sm:$0xff] }
 0x688   :  { %v6225_v32 = vpop.eup %6224 }
 0x689   :  { %v1416_v33 = vmul.f32 %v6225_v32, %v1400_v30  ;;  %vm1421_vm9 = vweird.f32 %v6225_v32  ;;  %v884_v30 = vld [vmem:[%s9237_s19 + $0x38] sm:$0xff] }
 0x68a   :  { %v1537_v25 = vpop.f32.mrf.mxu0  ;;  %vm1422_vm11 = vmor %vm1420_vm10, %vm1421_vm9  ;;  %1658 = vmatpush.msrb.mxu2 %v884_v30  ;;  %v6165_v30 = vld [vmem:[#allocation19] ss:$0 sm:$0xff] }
 0x68b   :  { %v1417_v34 = vsub.f32 1.0, %v1416_v33  ;;  %v1538_v35 = vadd.f32 %v8140_v31, %v1537_v25  ;;  %v882_v33 = vld [vmem:[%s9237_s19 + $0x28] sm:$0xff]  ;;  %v881_v25 = vld [vmem:[%s9237_s19 + $0x20] sm:$0xff] }
 0x68d   :  { %v1418_v37 = vmul.f32 %v6225_v32, %v1417_v34  ;;  %v1543_v61 = vadd.f32 %v1538_v35, %v7988_v8  ;;  %v7536_v8 = vmov 32.0   ;;  %v880_v34 = vld [vmem:[%s9237_s19 + $0x18] sm:$0xff]  ;;  %v879_v35 = vld [vmem:[%s9237_s19 + $0x10] sm:$0xff] }
 0x68e   :  { %6226 = vrcp.f32 %v7536_v8 }
 0x68f   :  { %v1419_v38 = vadd.f32 %v6225_v32, %v1418_v37  ;;  %v1545_v27 = vsel %vm1513_vm7, %v1543_v61, 0.0  ;;  %v877_v37 = vld [vmem:[%s9237_s19] sm:$0xff] }
 0x690   :  { %1546 = vadd.xlane.f32.xlu1 %v1545_v27 }
 0x691   :  { %v1423_v40 = vsel %vm1422_vm11, %v6225_v32, %v1419_v38  ;;  %v883_v32 = vld [vmem:[%s9237_s19 + $0x30] sm:$0xff] }
 0x692   :  { %v1428_v41 = vsel %vm1425_vm12, %v1427_v39, %v1423_v40  ;;  %1659 = vmatpush.msrb.mxu2 %v883_v32  ;;  %v6162_v39 = vld [vmem:[#allocation14] ss:$0 sm:$0xff] }
 0x693   :  { %v1430_v42 = vmul.f32 %v8127_v44, %v1428_v41 }
 0x694   :  { %v6227_v48 = vpop.eup %6226  ;;  %1660 = vmatpush.msrb.mxu2 %v882_v33 }
 0x695   :  { %5898 = vmatmul.msk.f32.vlgmr.msra.gmra.mxu3 %vm888_vm1, %v1430_v42  ;;  %v1552_v49 = vmul.f32 32.0, %v6227_v48  ;;  %vm1556_vm13 = vweird.f32 %v6227_v48 }
 0x696   :  { %1661 = vmatpush.msrb.mxu2 %v881_v25 }
 0x697   :  { %v1553_v50 = vsub.f32 1.0, %v1552_v49 }
 0x698   :  { %1662 = vmatpush.msrb.mxu2 %v880_v34 }
 0x699   :  { %v1554_v46 = vmul.f32 %v6227_v48, %v1553_v50 }
 0x69a   :  { %1663 = vmatpush.msrb.mxu2 %v879_v35 }
 0x69b   :  { %v1555_v52 = vadd.f32 %v6227_v48, %v1554_v46 }
 0x69c   :  { %1664 = vmatpush.msrb.mxu2 %v878_v36 }
 0x69d   :  { %v8149_v44 = vsel %vm1556_vm13, %v6227_v48, %v1555_v52 }
 0x69e   :  { %1665 = vmatpush.msrb.mxu2 %v877_v37 }
 0x6d9   :  { %v1032_v43 = vpop.f32.mrf.mxu3 }
 0x6e1   :  { %v1180_v45 = vpop.f32.mrf.mxu3 }
 0x6e2   :  { %1483 = vrot.lane.b32.xlu2 %v1180_v45, %s7492_s16 }
 0x6e9   :  { %v1328_v47 = vpop.f32.mrf.mxu3 }
 0x6ea   :  { %1491 = vrot.lane.b32.xlu0 %v1328_v47, %s7534_s23 }
 0x703   :  { %v1547_v54 = vpop.xlane.xlu1 %1546 }
 0x704   :  { %v1558_v55 = vmul.f32 %v8149_v44, %v1547_v54 }
 0x706   :  { %v1560_v57 = vsub.f32 %v1543_v61, %v1558_v55 }
 0x708   :  { %v1562_v58 = vmul.f32 %v1560_v57, %v1560_v57 }
 0x70a   :  { %v1564_v14 = vsel %vm1513_vm7, %v1562_v58, 0.0 }
 0x714   :  { %1565 = vadd.xlane.f32.xlu0 %v1564_v14 }
 0x718   :  { %v1476_v60 = vpop.f32.mrf.mxu3 }
 0x719   :  { %1499 = vrot.lane.b32.xlu1 %v1476_v60, %s7535_s8 }
 0x73c   :  { %v1484_v2 = vpop.permute.xlu2 %1483 }
 0x73d   :  { %v1504_v5 = vsel %vm888_vm1, %v1032_v43, %v1484_v2 }
 0x75c   :  { %v1492_v63 = vpop.permute.xlu0 %1491 }
 0x75d   :  { %v1506_v7 = vsel %vm793_vm0, %v1504_v5, %v1492_v63 }
 0x787   :  { %v1566_v3 = vpop.xlane.xlu0 %1565 }
 0x788   :  { %v1570_v4 = vmul.f32 %v1566_v3, %v8149_v44 }
 0x78a   :  { %v1572_v6 = vadd.f32 1e-05, %v1570_v4 }
 0x78b   :  { %v1500_v9 = vpop.permute.xlu1 %1499 }
 0x78c   :  { %6228 = vrsqrt.f32 %v1572_v6  ;;  %v1509_v10 = vsel %vm1507_vm6, %v1506_v7, %v1500_v9  ;;  %vm1580_vm15 = vweird.f32 %v1572_v6 }
 0x78d   :  { %5900 = vmatmul.msk.f32.gmra.mxu0 %vm1513_vm7, %v1509_v10 }
 0x792   :  { %v6229_v17 = vpop.eup %6228 }
 0x793   :  { %v1575_v56 = vmul.f32 %v6229_v17, %v1572_v6  ;;  %vm1581_vm14 = vweird.f32 %v6229_v17 }
 0x794   :  { %vm1582_vm3 = vmor %vm1580_vm15, %vm1581_vm14 }
 0x795   :  { %v1576_v18 = vmul.f32 %v6229_v17, %v1575_v56 }
 0x797   :  { %v1577_v21 = vmul.f32 0.5, %v1576_v18 }
 0x799   :  { %v1578_v22 = vsub.f32 1.5, %v1577_v21 }
 0x79b   :  { %v1579_v23 = vmul.f32 %v6229_v17, %v1578_v22 }
 0x79d   :  { %v1583_v13 = vsel %vm1582_vm3, %v6229_v17, %v1579_v23 }
 0x79e   :  { %v1594_v26 = vmul.f32 %v1583_v13, %v1560_v57 }
 0x7a0   :  { %v1599_v29 = vmul.f32 %v6160_v24, %v1594_v26 }
 0x7a2   :  { %v1604_v51 = vadd.f32 %v6161_v28, %v1599_v29  ;;  %v6164_v29 = vld [vmem:[#allocation17] ss:$0 sm:$0xff] }
 0x7a4   :  { %5901 = vmatmul.msk.f32.vlgmr.msra.gmra.mxu1 %vm1513_vm7, %v1604_v51 }
 0x80a   :  { %v1540_v59 = vpop.f32.mrf.mxu0 }
 0x80b   :  { %v1541_v61 = vadd.f32 %v8140_v31, %v1540_v59  ;;  %v6163_v31 = vld [vmem:[#allocation16] ss:$0 sm:$0xff] }
 0x80d   :  { %v1544_v38 = vadd.f32 %v1541_v61, %v8001_v11 }
 0x80f   :  { %v1548_v27 = vsel %vm1513_vm7, %v1544_v38, 0.0 }
 0x810   :  { %1549 = vadd.xlane.f32.xlu2 %v1548_v27 }
 0x821   :  { %v1632_v40 = vpop.f32.mrf.mxu1 }
 0x822   :  { %v1633_v41 = vadd.f32 %v6162_v39, %v1632_v40 }
 0x824   :  { %v1638_v42 = vmax.f32 %v1633_v41, 0.0 }
 0x826   :  { %5903 = vmatmul.msk.f32.vlgmr.msrb.gmra.mxu2 %vm1643_vm4, %v1638_v42 }
 0x883   :  { %v1550_v43 = vpop.xlane.xlu2 %1549 }
 0x884   :  { %v1559_v45 = vmul.f32 %v8149_v44, %v1550_v43 }
 0x886   :  { %v1561_v47 = vsub.f32 %v1544_v38, %v1559_v45 }
 0x888   :  { %v1563_v8 = vmul.f32 %v1561_v47, %v1561_v47 }
 0x88a   :  { %v1567_v48 = vsel %vm1513_vm7, %v1563_v8, 0.0 }
 0x88b   :  { %1568 = vadd.xlane.f32.xlu1 %v1567_v48 }
 0x8a9   :  { %v1667_v11 = vpop.f32.mrf.mxu2 }
 0x8aa   :  { %v1668_v49 = vadd.f32 %v6163_v31, %v1667_v11 }
 0x8ac   :  { %v1673_v50 = vadd.f32 %v1668_v49, %v1604_v51 }
 0x8ae   :  { %v1675_v46 = vsel %vm1513_vm7, %v1673_v50, 0.0 }
 0x8af   :  { %1676 = vadd.xlane.f32.xlu2 %v1675_v46 }
 0x8fe   :  { %v1569_v52 = vpop.xlane.xlu1 %1568 }
 0x8ff   :  { %v1571_v54 = vmul.f32 %v1569_v52, %v8149_v44 }
 0x901   :  { %v1573_v55 = vadd.f32 1e-05, %v1571_v54 }
 0x903   :  { %6230 = vrsqrt.f32 %v1573_v55  ;;  %vm1590_vm8 = vweird.f32 %v1573_v55 }
 0x909   :  { %v6231_v57 = vpop.eup %6230 }
 0x90a   :  { %v1585_v58 = vmul.f32 %v6231_v57, %v1573_v55  ;;  %vm1591_vm5 = vweird.f32 %v6231_v57 }
 0x90b   :  { %vm1592_vm9 = vmor %vm1590_vm8, %vm1591_vm5 }
 0x90c   :  { %v1586_v14 = vmul.f32 %v6231_v57, %v1585_v58 }
 0x90e   :  { %v1587_v60 = vmul.f32 0.5, %v1586_v14 }
 0x910   :  { %v1588_v62 = vsub.f32 1.5, %v1587_v60 }
 0x912   :  { %v1589_v63 = vmul.f32 %v6231_v57, %v1588_v62 }
 0x914   :  { %v1593_v0 = vsel %vm1592_vm9, %v6231_v57, %v1589_v63 }
 0x915   :  { %v1595_v53 = vmul.f32 %v1593_v0, %v1561_v47 }
 0x917   :  { %v1600_v1 = vmul.f32 %v6160_v24, %v1595_v53 }
 0x919   :  { %v1605_v2 = vadd.f32 %v6161_v28, %v1600_v1 }
 0x91b   :  { %5902 = vmatmul.msk.f32.gmra.mxu1 %vm1513_vm7, %v1605_v2 }
 0x922   :  { %v1677_v3 = vpop.xlane.xlu2 %1676 }
 0x923   :  { %v1681_v4 = vmul.f32 %v1677_v3, %v8149_v44 }
 0x925   :  { %v1683_v5 = vsub.f32 %v1673_v50, %v1681_v4 }
 0x927   :  { %v1685_v6 = vmul.f32 %v1683_v5, %v1683_v5 }
 0x929   :  { %v1687_v7 = vsel %vm1513_vm7, %v1685_v6, 0.0 }
 0x92a   :  { %1688 = vadd.xlane.f32.xlu0 %v1687_v7 }
 0x998   :  { %v1635_v9 = vpop.f32.mrf.mxu1 }
 0x999   :  { %v1636_v10 = vadd.f32 %v6162_v39, %v1635_v9 }
 0x99b   :  { %v1639_v17 = vmax.f32 %v1636_v10, 0.0 }
 0x99d   :  { %5904 = vmatmul.msk.f32.gmra.mxu2 %vm1643_vm4, %v1639_v17  ;;  %v1689_v56 = vpop.xlane.xlu0 %1688 }
 0x99e   :  { %v1693_v18 = vmul.f32 %v1689_v56, %v8149_v44 }
 0x9a0   :  { %v1695_v21 = vadd.f32 1e-05, %v1693_v18 }
 0x9a2   :  { %6232 = vrsqrt.f32 %v1695_v21  ;;  %vm1703_vm11 = vweird.f32 %v1695_v21 }
 0x9a8   :  { %v6233_v22 = vpop.eup %6232 }
 0x9a9   :  { %v1698_v23 = vmul.f32 %v6233_v22, %v1695_v21  ;;  %vm1704_vm10 = vweird.f32 %v6233_v22 }
 0x9aa   :  { %vm1705_vm12 = vmor %vm1703_vm11, %vm1704_vm10 }
 0x9ab   :  { %v1699_v24 = vmul.f32 %v6233_v22, %v1698_v23  ;;  %v1731_v23 = vld [vmem:[%s9238_s30 + $0x10] sm:$0xff] }
 0x9ad   :  { %v1700_v13 = vmul.f32 0.5, %v1699_v24  ;;  %v1730_v24 = vld [vmem:[%s9238_s30 + $0x8] sm:$0xff] }
 0x9af   :  { %v1701_v26 = vsub.f32 1.5, %v1700_v13  ;;  %v854_v13 = vadd.f32 %v8077_v16, %v8075_v12  ;;  %v1739_v16 = vld [vmem:[%s9239_s7 + $0x18] sm:$0xff] }
 0x9b1   :  { %v1702_v28 = vmul.f32 %v6233_v22, %v1701_v26  ;;  %v1729_v26 = vld [vmem:[%s9238_s30] sm:$0xff] }
 0x9b3   :  { %v1706_v51 = vsel %vm1705_vm12, %v6233_v22, %v1702_v28  ;;  %v1732_v22 = vld [vmem:[%s9238_s30 + $0x18] sm:$0xff]  ;;  %v8239_v28 = vadd.f32 %v854_v13, %v8081_v19 }
 0x9b4   :  { %v1717_v32 = vmul.f32 %v1706_v51, %v1683_v5  ;;  %v1738_v51 = vld [vmem:[%s9239_s7 + $0x10] sm:$0xff] }
 0x9b6   :  { %v1722_v33 = vmul.f32 %v6164_v29, %v1717_v32  ;;  %v1737_v32 = vld [vmem:[%s9239_s7 + $0x8] sm:$0xff] }
 0x9b8   :  { %v8185_v25 = vadd.f32 %v6165_v30, %v1722_v33 }
 0x9ba   :  { %5905 = vmatpush.xpose.msk.msrb.mxu3 %vm888_vm1, %v8185_v25  ;;  %1868 = vmatpush.msrb.mxu0 %v8185_v25 }
 0x9bd   :  { %5906 = vmatmul.msk.f32.vlgmr.msrb.gmra.mxu3 %vm888_vm1, %v8185_v25 }
 0xa20   :  { %v1670_v34 = vpop.f32.mrf.mxu2 }
 0xa21   :  { %v1671_v35 = vadd.f32 %v6163_v31, %v1670_v34 }
 0xa23   :  { %v1674_v36 = vadd.f32 %v1671_v35, %v1605_v2  ;;  %v1736_v35 = vld [vmem:[%s9239_s7] sm:$0xff] }
 0xa25   :  { %v1678_v37 = vsel %vm1513_vm7, %v1674_v36, 0.0 }
 0xa26   :  { %1679 = vadd.xlane.f32.xlu1 %v1678_v37 }
 0xa40   :  { %v1772_v59 = vpop.f32.mrf.mxu3 }
 0xa41   :  { %v1798_v61 = vsel %vm862_vm2, -1e+20, %v1772_v59 }
 0xa42   :  { %v1800_v38 = vmul.f32 0.35355338, %v1798_v61 }
 0xa44   :  { %v1802_v27 = vsel %vm888_vm1, %v1800_v38, -inf }
 0xa45   :  { %1803 = vmax.xlane.f32.xlu2 %v1802_v27 }
 0xa5d   :  { %1896 = vrot.lane.b32.xlu2 %v8185_v25, %s7532_s12 }
 0xa65   :  { %2192 = vrot.lane.b32.xlu2 %v8185_v25, %s7531_s17 }
 0xa99   :  { %v1680_v39 = vpop.xlane.xlu1 %1679 }
 0xa9a   :  { %v1682_v40 = vmul.f32 %v1680_v39, %v8149_v44 }
 0xa9c   :  { %v1684_v41 = vsub.f32 %v1674_v36, %v1682_v40 }
 0xa9e   :  { %v1686_v42 = vmul.f32 %v1684_v41, %v1684_v41 }
 0xaa0   :  { %v1690_v43 = vsel %vm1513_vm7, %v1686_v42, 0.0 }
 0xaa1   :  { %1691 = vadd.xlane.f32.xlu0 %v1690_v43 }
 0xab8   :  { %v1804_v45 = vpop.xlane.xlu2 %1803 }
 0xab9   :  { %v1808_v47 = vsub.f32 %v1800_v38, %v1804_v45 }
 0xabb   :  { %v1810_v8 = vmul.f32 1.442695, %v1808_v47 }
 0xabd   :  { %6234 = vpow2.f32 %v1810_v8 }
 0xac0   :  { %v1897_v0 = vpop.permute.xlu2 %1896 }
 0xac3   :  { %v6235_v48 = vpop.eup %6234 }
 0xac4   :  { %v1814_v31 = vsel %vm888_vm1, %v6235_v48, 0.0 }
 0xac5   :  { %1815 = vadd.xlane.f32.xlu1 %v1814_v31 }
 0xac8   :  { %v8224_v21 = vpop.permute.xlu2 %2192 }
 0xade   :  { %2044 = vrot.lane.b32.xlu1 %v8185_v25, %s7533_s22 }
 0xb14   :  { %v1692_v11 = vpop.xlane.xlu0 %1691 }
 0xb15   :  { %v1694_v49 = vmul.f32 %v1692_v11, %v8149_v44 }
 0xb17   :  { %v1696_v50 = vadd.f32 1e-05, %v1694_v49 }
 0xb19   :  { %6236 = vrsqrt.f32 %v1696_v50  ;;  %vm1713_vm14 = vweird.f32 %v1696_v50 }
 0xb1f   :  { %v6237_v46 = vpop.eup %6236 }
 0xb20   :  { %v1708_v52 = vmul.f32 %v6237_v46, %v1696_v50  ;;  %vm1714_vm13 = vweird.f32 %v6237_v46 }
 0xb21   :  { %vm1715_vm15 = vmor %vm1713_vm14, %vm1714_vm13 }
 0xb22   :  { %v1709_v54 = vmul.f32 %v6237_v46, %v1708_v52 }
 0xb24   :  { %v1710_v55 = vmul.f32 0.5, %v1709_v54 }
 0xb26   :  { %v1711_v57 = vsub.f32 1.5, %v1710_v55 }
 0xb28   :  { %v1712_v58 = vmul.f32 %v6237_v46, %v1711_v57 }
 0xb2a   :  { %v1716_v14 = vsel %vm1715_vm15, %v6237_v46, %v1712_v58 }
 0xb2b   :  { %v1718_v60 = vmul.f32 %v1716_v14, %v1684_v41 }
 0xb2d   :  { %v1723_v62 = vmul.f32 %v6164_v29, %v1718_v60 }
 0xb2f   :  { %v8206_v63 = vadd.f32 %v6165_v30, %v1723_v62 }
 0xb31   :  { %1920 = vrot.lane.b32.xlu0 %v8206_v63, %s7532_s12  ;;  %5907 = vmatpush.xpose.msk.msra.mxu3 %vm888_vm1, %v8206_v63 }
 0xb32   :  { %1891 = vmatpush.msrb.mxu1 %v8206_v63 }
 0xb34   :  { %2015 = vmatpush.msra.mxu1 %v1897_v0  ;;  %5908 = vmatmul.msk.f32.vlgmr.msra.gmra.mxu3 %vm888_vm1, %v8206_v63 }
 0xb35   :  { %5911 = vmatpush.xpose.msk.msrb.mxu3 %vm888_vm1, %v1897_v0 }
 0xb38   :  { %v1816_v53 = vpop.xlane.xlu1 %1815 }
 0xb39   :  { %6238 = vrcp.f32 %v1816_v53  ;;  %2068 = vrot.lane.b32.xlu0 %v8206_v63, %s7533_s22  ;;  %v1831_v4 = vand.u32 2147483648, %v1816_v53  ;;  %v1829_v6 = vand.u32 2147483647, %v1816_v53  ;;  %vm1825_vm5 = vweird.f32 %v1816_v53 }
 0xb3b   :  { %v1832_v9 = vor.u32 1.1754944e-38, %v1831_v4  ;;  %vm1830_vm9 = vcmp.eq.f32.partialorder %v1829_v6, 8.507059e+37 }
 0xb3c   :  { %5912 = vmatmul.msk.f32.vlgmr.msrb.gmra.mxu3 %vm888_vm1, %v1897_v0 }
 0xb3f   :  { %v6239_v1 = vpop.eup %6238 }
 0xb40   :  { %v1821_v2 = vmul.f32 %v6239_v1, %v1816_v53  ;;  %vm1826_vm3 = vweird.f32 %v6239_v1 }
 0xb41   :  { %2216 = vrot.lane.b32.xlu0 %v8206_v63, %s7531_s17  ;;  %vm1827_vm8 = vmor %vm1825_vm5, %vm1826_vm3 }
 0xb42   :  { %v1822_v3 = vsub.f32 1.0, %v1821_v2 }
 0xb44   :  { %v1823_v5 = vmul.f32 %v6239_v1, %v1822_v3 }
 0xb46   :  { %v1824_v7 = vadd.f32 %v6239_v1, %v1823_v5 }
 0xb48   :  { %v1828_v10 = vsel %vm1827_vm8, %v6239_v1, %v1824_v7 }
 0xb49   :  { %v1833_v17 = vsel %vm1830_vm9, %v1832_v9, %v1828_v10 }
 0xb4a   :  { %v1848_v56 = vmul.f32 %v6235_v48, %v1833_v17 }
 0xb4c   :  { %5909 = vmatmul.msk.f32.vlgmr.msrb.gmra.mxu0 %vm888_vm1, %v1848_v56 }
 0xb50   :  { %v8222_v18 = vpop.permute.xlu1 %2044 }
 0xb51   :  { %5917 = vmatpush.xpose.msk.msra.mxu3 %vm888_vm1, %v8222_v18 }
 0xb54   :  { %5918 = vmatmul.msk.f32.vlgmr.msra.gmra.mxu3 %vm888_vm1, %v8222_v18 }
 0xb55   :  { %5923 = vmatpush.xpose.msk.msrb.mxu3 %vm888_vm1, %v8224_v21 }
 0xb59   :  { %2391 = vmatpush.msra.mxu3 %v1732_v22 }
 0xb5b   :  { %2392 = vmatpush.msra.mxu3 %v1731_v23 }
 0xb5c   :  { %5924 = vmatmul.msk.f32.vlgmr.msrb.gmra.mxu3 %vm888_vm1, %v8224_v21 }
 0xb5d   :  { %2393 = vmatpush.msra.mxu3 %v1730_v24 }
 0xb5f   :  { %2394 = vmatpush.msra.mxu3 %v1729_v26 }
 0xb61   :  { %2728 = vmatpush.msrb.mxu3 %v8239_v28 }
 0xba3   :  { %v1921_v29 = vpop.permute.xlu0 %1920 }
 0xba4   :  { %5913 = vmatpush.xpose.msk.msra.mxu0 %vm888_vm1, %v1921_v29  ;;  %2039 = vmatpush.msra.mxu2 %v1921_v29 }
 0xba7   :  { %5914 = vmatmul.msk.f32.vlgmr.msra.gmra.mxu0 %vm888_vm1, %v1921_v29 }
 0xbab   :  { %v2069_v12 = vpop.permute.xlu0 %2068 }
 0xbac   :  { %5919 = vmatpush.xpose.msk.msrb.mxu0 %vm888_vm1, %v2069_v12  ;;  %2187 = vmatpush.msrb.mxu2 %v2069_v12 }
 0xbaf   :  { %5920 = vmatmul.msk.f32.vlgmr.msrb.gmra.mxu0 %vm888_vm1, %v2069_v12 }
 0xbb3   :  { %v8249_v19 = vpop.permute.xlu0 %2216 }
 0xbb4   :  { %5925 = vmatpush.xpose.msk.msra.mxu0 %vm888_vm1, %v8249_v19 }
 0xbb7   :  { %v1795_v30 = vpop.f32.mrf.mxu3  ;;  %5926 = vmatmul.msk.f32.vlgmr.msra.gmra.mxu0 %vm888_vm1, %v8249_v19 }
 0xbb8   :  { %2479 = vmatpush.msrb.mxu0 %v1739_v16  ;;  %v1799_v33 = vsel %vm862_vm2, -1e+20, %v1795_v30 }
 0xbb9   :  { %v1801_v34 = vmul.f32 0.35355338, %v1799_v33 }
 0xbba   :  { %2480 = vmatpush.msrb.mxu0 %v1738_v51 }
 0xbbb   :  { %v1805_v36 = vsel %vm888_vm1, %v1801_v34, -inf }
 0xbbc   :  { %2481 = vmatpush.msrb.mxu0 %v1737_v32  ;;  %1806 = vmax.xlane.f32.xlu2 %v1805_v36 }
 0xbbe   :  { %2482 = vmatpush.msrb.mxu0 %v1736_v35 }
 0xbbf   :  { %v1917_v37 = vpop.f32.mrf.mxu3 }
 0xbc0   :  { %2751 = vmatpush.msra.mxu0 %v8084_v20  ;;  %v1944_v59 = vsel %vm862_vm2, -1e+20, %v1917_v37 }
 0xbc1   :  { %v1946_v61 = vmul.f32 0.35355338, %v1944_v59 }
 0xbc3   :  { %v1948_v38 = vsel %vm888_vm1, %v1946_v61, -inf }
 0xbc4   :  { %1949 = vmax.xlane.f32.xlu1 %v1948_v38 }
 0xbc9   :  { %v8268_v42 = vpop.f32.mrf.mxu0 }
 0xbd7   :  { %v2065_v27 = vpop.f32.mrf.mxu3 }
 0xbd8   :  { %v2092_v39 = vsel %vm862_vm2, -1e+20, %v2065_v27 }
 0xbd9   :  { %v2094_v40 = vmul.f32 0.35355338, %v2092_v39 }
 0xbdb   :  { %v2096_v41 = vsel %vm888_vm1, %v2094_v40, -inf }
 0xbdc   :  { %2097 = vmax.xlane.f32.xlu2 %v2096_v41 }
 0xbdf   :  { %v2213_v47 = vpop.f32.mrf.mxu3 }
 0xbe0   :  { %v2240_v31 = vsel %vm862_vm2, -1e+20, %v2213_v47 }
 0xbe1   :  { %v2242_v11 = vmul.f32 0.35355338, %v2240_v31 }
 0xbe3   :  { %v2244_v55 = vsel %vm888_vm1, %v2242_v11, -inf }
 0xc24   :  { %v1941_v43 = vpop.f32.mrf.mxu0 }
 0xc25   :  { %v1945_v45 = vsel %vm862_vm2, -1e+20, %v1941_v43 }
 0xc26   :  { %v1947_v8 = vmul.f32 0.35355338, %v1945_v45 }
 0xc28   :  { %v1951_v48 = vsel %vm888_vm1, %v1947_v8, -inf }
 0xc29   :  { %1952 = vmax.xlane.f32.xlu0 %v1951_v48 }
 0xc2c   :  { %v2089_v49 = vpop.f32.mrf.mxu0 }
 0xc2d   :  { %v2093_v50 = vsel %vm862_vm2, -1e+20, %v2089_v49 }
 0xc2e   :  { %v2095_v46 = vmul.f32 0.35355338, %v2093_v50 }
 0xc2f   :  { %v1807_v52 = vpop.xlane.xlu2 %1806 }
 0xc30   :  { %v1809_v54 = vsub.f32 %v1801_v34, %v1807_v52  ;;  %v2099_v57 = vsel %vm888_vm1, %v2095_v46, -inf }
 0xc31   :  { %2245 = vmax.xlane.f32.xlu0 %v2244_v55  ;;  %2100 = vmax.xlane.f32.xlu1 %v2099_v57 }
 0xc32   :  { %v1812_v58 = vmul.f32 1.442695, %v1809_v54 }
 0xc34   :  { %6240 = vpow2.f32 %v1812_v58  ;;  %v2237_v14 = vpop.f32.mrf.mxu0 }
 0xc35   :  { %v2241_v60 = vsel %vm862_vm2, -1e+20, %v2237_v14 }
 0xc36   :  { %v2243_v62 = vmul.f32 0.35355338, %v2241_v60 }
 0xc37   :  { %v1950_v0 = vpop.xlane.xlu1 %1949 }
 0xc38   :  { %v1954_v53 = vsub.f32 %v1946_v61, %v1950_v0  ;;  %v2247_v1 = vsel %vm888_vm1, %v2243_v62, -inf }
 0xc39   :  { %2248 = vmax.xlane.f32.xlu2 %v2247_v1 }
 0xc3a   :  { %v8282_v2 = vpop.eup %6240  ;;  %v1956_v3 = vmul.f32 1.442695, %v1954_v53 }
 0xc3b   :  { %v1817_v4 = vsel %vm888_vm1, %v8282_v2, 0.0 }
 0xc3c   :  { %6242 = vpow2.f32 %v1956_v3  ;;  %1818 = vadd.xlane.f32.xlu1 %v1817_v4 }
 0xc42   :  { %v8286_v5 = vpop.eup %6242 }
 0xc43   :  { %v1960_v15 = vsel %vm888_vm1, %v8286_v5, 0.0 }
 0xc44   :  { %1961 = vadd.xlane.f32.xlu0 %v1960_v15 }
 0xc4f   :  { %v2098_v6 = vpop.xlane.xlu2 %2097 }
 0xc50   :  { %v2102_v7 = vsub.f32 %v2094_v40, %v2098_v6 }
 0xc52   :  { %v2104_v9 = vmul.f32 1.442695, %v2102_v7 }
 0xc54   :  { %6244 = vpow2.f32 %v2104_v9 }
 0xc5a   :  { %v8290_v10 = vpop.eup %6244 }
 0xc5b   :  { %v2108_v17 = vsel %vm888_vm1, %v8290_v10, 0.0 }
 0xc5c   :  { %2109 = vadd.xlane.f32.xlu1 %v2108_v17 }
 0xc9c   :  { %v1953_v56 = vpop.xlane.xlu0 %1952 }
 0xc9d   :  { %v1955_v22 = vsub.f32 %v1947_v8, %v1953_v56 }
 0xc9f   :  { %v1958_v23 = vmul.f32 1.442695, %v1955_v22 }
 0xca1   :  { %6246 = vpow2.f32 %v1958_v23 }
 0xca4   :  { %v2246_v24 = vpop.xlane.xlu0 %2245  ;;  %v2101_v13 = vpop.xlane.xlu1 %2100 }
 0xca5   :  { %v2250_v26 = vsub.f32 %v2242_v11, %v2246_v24  ;;  %v2103_v29 = vsub.f32 %v2095_v46, %v2101_v13 }
 0xca7   :  { %v8294_v12 = vpop.eup %6246  ;;  %v2252_v16 = vmul.f32 1.442695, %v2250_v26  ;;  %v2106_v51 = vmul.f32 1.442695, %v2103_v29 }
 0xca8   :  { %v1963_v30 = vsel %vm888_vm1, %v8294_v12, 0.0 }
 0xca9   :  { %6248 = vpow2.f32 %v2252_v16  ;;  %1964 = vadd.xlane.f32.xlu2 %v1963_v30 }
 0xcaa   :  { %6250 = vpow2.f32 %v2106_v51 }
 0xcac   :  { %v2249_v32 = vpop.xlane.xlu2 %2248 }
 0xcad   :  { %v2251_v33 = vsub.f32 %v2243_v62, %v2249_v32 }
 0xcaf   :  { %v8298_v34 = vpop.eup %6248  ;;  %v2254_v35 = vmul.f32 1.442695, %v2251_v33  ;;  %v1819_v36 = vpop.xlane.xlu1 %1818 }
 0xcb0   :  { %v8300_v37 = vpop.eup %6250  ;;  %6252 = vrcp.f32 %v1819_v36  ;;  %v2256_v61 = vsel %vm888_vm1, %v8298_v34, 0.0  ;;  %v1845_v45 = vand.u32 2147483648, %v1819_v36  ;;  %v1843_v8 = vand.u32 2147483647, %v1819_v36 }
 0xcb1   :  { %6254 = vpow2.f32 %v2254_v35  ;;  %v2111_v59 = vsel %vm888_vm1, %v8300_v37, 0.0  ;;  %2257 = vadd.xlane.f32.xlu2 %v2256_v61  ;;  %vm1839_vm10 = vweird.f32 %v1819_v36 }
 0xcb2   :  { %2112 = vadd.xlane.f32.xlu0 %v2111_v59  ;;  %v1846_v11 = vor.u32 1.1754944e-38, %v1845_v45  ;;  %vm1844_vm12 = vcmp.eq.f32.partialorder %v1843_v8, 8.507059e+37 }
 0xcb6   :  { %v6253_v38 = vpop.eup %6252 }
 0xcb7   :  { %v8306_v27 = vpop.eup %6254  ;;  %v1835_v39 = vmul.f32 %v6253_v38, %v1819_v36  ;;  %v1962_v40 = vpop.xlane.xlu0 %1961  ;;  %vm1840_vm2 = vweird.f32 %v6253_v38 }
 0xcb8   :  { %6256 = vrcp.f32 %v1962_v40  ;;  %v2259_v43 = vsel %vm888_vm1, %v8306_v27, 0.0  ;;  %vm1841_vm11 = vmor %vm1839_vm10, %vm1840_vm2  ;;  %v1977_v55 = vand.u32 2147483648, %v1962_v40  ;;  %v1975_v58 = vand.u32 2147483647, %v1962_v40 }
 0xcb9   :  { %v1836_v41 = vsub.f32 1.0, %v1835_v39  ;;  %2260 = vadd.xlane.f32.xlu1 %v2259_v43  ;;  %vm1971_vm14 = vweird.f32 %v1962_v40 }
 0xcba   :  { %v1978_v60 = vor.u32 1.1754944e-38, %v1977_v55  ;;  %vm1976_vm3 = vcmp.eq.f32.partialorder %v1975_v58, 8.507059e+37 }
 0xcbb   :  { %v1837_v47 = vmul.f32 %v6253_v38, %v1836_v41 }
 0xcbd   :  { %v1838_v48 = vadd.f32 %v6253_v38, %v1837_v47 }
 0xcbe   :  { %v6257_v31 = vpop.eup %6256 }
 0xcbf   :  { %v1842_v49 = vsel %vm1841_vm11, %v6253_v38, %v1838_v48  ;;  %v1967_v50 = vmul.f32 %v6257_v31, %v1962_v40  ;;  %vm1972_vm13 = vweird.f32 %v6257_v31 }
 0xcc0   :  { %v1847_v46 = vsel %vm1844_vm12, %v1846_v11, %v1842_v49  ;;  %vm1973_vm15 = vmor %vm1971_vm14, %vm1972_vm13 }
 0xcc1   :  { %v1968_v52 = vsub.f32 1.0, %v1967_v50  ;;  %v1849_v54 = vmul.f32 %v8282_v2, %v1847_v46 }
 0xcc3   :  { %v1969_v57 = vmul.f32 %v6257_v31, %v1968_v52  ;;  %5910 = vmatmul.msk.f32.vlgmr.msrb.gmra.mxu1 %vm888_vm1, %v1849_v54 }
 0xcc4   :  { %2163 = vmatpush.msrb.mxu1 %v8222_v18 }
 0xcc5   :  { %v1970_v14 = vadd.f32 %v6257_v31, %v1969_v57 }
 0xcc7   :  { %v1974_v62 = vsel %vm1973_vm15, %v6257_v31, %v1970_v14 }
 0xcc8   :  { %v1979_v0 = vsel %vm1976_vm3, %v1978_v60, %v1974_v62 }
 0xcc9   :  { %v1994_v53 = vmul.f32 %v8286_v5, %v1979_v0 }
 0xccb   :  { %5915 = vmatmul.msk.f32.vlgmr.msra.gmra.mxu1 %vm888_vm1, %v1994_v53 }
 0xccc   :  { %2311 = vmatpush.msra.mxu1 %v8224_v21 }
 0xccf   :  { %v2110_v1 = vpop.xlane.xlu1 %2109 }
 0xcd0   :  { %6258 = vrcp.f32 %v2110_v1  ;;  %v2125_v15 = vand.u32 2147483648, %v2110_v1  ;;  %v2123_v6 = vand.u32 2147483647, %v2110_v1  ;;  %vm2119_vm8 = vweird.f32 %v2110_v1 }
 0xcd2   :  { %v2126_v9 = vor.u32 1.1754944e-38, %v2125_v15  ;;  %vm2124_vm2 = vcmp.eq.f32.partialorder %v2123_v6, 8.507059e+37 }
 0xcd6   :  { %v6259_v2 = vpop.eup %6258 }
 0xcd7   :  { %v2115_v3 = vmul.f32 %v6259_v2, %v2110_v1  ;;  %vm2120_vm5 = vweird.f32 %v6259_v2 }
 0xcd8   :  { %vm2121_vm9 = vmor %vm2119_vm8, %vm2120_vm5 }
 0xcd9   :  { %v2116_v4 = vsub.f32 1.0, %v2115_v3 }
 0xcdb   :  { %v2117_v18 = vmul.f32 %v6259_v2, %v2116_v4 }
 0xcdd   :  { %v2118_v7 = vadd.f32 %v6259_v2, %v2117_v18 }
 0xcdf   :  { %v2122_v17 = vsel %vm2121_vm9, %v6259_v2, %v2118_v7 }
 0xce0   :  { %v2127_v5 = vsel %vm2124_vm2, %v2126_v9, %v2122_v17  ;;  %v8348_v17 = vld [vmem:[%s9240_s10] sm:$0xff] }
 0xce1   :  { %v2142_v56 = vmul.f32 %v8290_v10, %v2127_v5 }
 0xce3   :  { %5921 = vmatmul.msk.f32.vlgmr.msrb.gmra.mxu1 %vm888_vm1, %v2142_v56 }
 0xd1c   :  { %v1965_v21 = vpop.xlane.xlu2 %1964 }
 0xd1d   :  { %6260 = vrcp.f32 %v1965_v21  ;;  %v1991_v29 = vand.u32 2147483648, %v1965_v21  ;;  %v1989_v51 = vand.u32 2147483647, %v1965_v21  ;;  %vm1985_vm11 = vweird.f32 %v1965_v21 }
 0xd1f   :  { %v1992_v32 = vor.u32 1.1754944e-38, %v1991_v29  ;;  %vm1990_vm13 = vcmp.eq.f32.partialorder %v1989_v51, 8.507059e+37 }
 0xd23   :  { %v6261_v22 = vpop.eup %6260 }
 0xd24   :  { %v1981_v23 = vmul.f32 %v6261_v22, %v1965_v21  ;;  %v2258_v13 = vpop.xlane.xlu2 %2257  ;;  %vm1986_vm10 = vweird.f32 %v6261_v22 }
 0xd25   :  { %v2113_v24 = vpop.xlane.xlu0 %2112  ;;  %vm1987_vm12 = vmor %vm1985_vm11, %vm1986_vm10  ;;  %v2273_v8 = vand.u32 2147483648, %v2258_v13  ;;  %v2271_v31 = vand.u32 2147483647, %v2258_v13  ;;  %vm2267_vm8 = vweird.f32 %v2258_v13 }
 0xd26   :  { %v1982_v26 = vsub.f32 1.0, %v1981_v23  ;;  %6262 = vrcp.f32 %v2113_v24  ;;  %v2139_v41 = vand.u32 2147483648, %v2113_v24  ;;  %v2137_v47 = vand.u32 2147483647, %v2113_v24 }
 0xd27   :  { %6264 = vrcp.f32 %v2258_v13  ;;  %vm2133_vm3 = vweird.f32 %v2113_v24  ;;  %v2274_v52 = vor.u32 1.1754944e-38, %v2273_v8  ;;  %vm2272_vm10 = vcmp.eq.f32.partialorder %v2271_v31, 8.507059e+37 }
 0xd28   :  { %v1983_v16 = vmul.f32 %v6261_v22, %v1982_v26  ;;  %v2140_v50 = vor.u32 1.1754944e-38, %v2139_v41  ;;  %vm2138_vm9 = vcmp.eq.f32.partialorder %v2137_v47, 8.507059e+37  ;;  %v6166_v41 = vld [vmem:[#allocation20] ss:$0 sm:$0xff] }
 0xd2a   :  { %v1984_v30 = vadd.f32 %v6261_v22, %v1983_v16 }
 0xd2c   :  { %v6263_v10 = vpop.eup %6262  ;;  %v1988_v33 = vsel %vm1987_vm12, %v6261_v22, %v1984_v30  ;;  %v2261_v59 = vpop.xlane.xlu1 %2260 }
 0xd2d   :  { %v6265_v35 = vpop.eup %6264  ;;  %v2129_v36 = vmul.f32 %v6263_v10, %v2113_v24  ;;  %v1993_v61 = vsel %vm1990_vm13, %v1992_v32, %v1988_v33  ;;  %6266 = vrcp.f32 %v2261_v59  ;;  %vm2134_vm14 = vweird.f32 %v6263_v10 }
 0xd2e   :  { %v2263_v38 = vmul.f32 %v6265_v35, %v2258_v13  ;;  %v1995_v40 = vmul.f32 %v8294_v12, %v1993_v61  ;;  %vm2268_vm15 = vweird.f32 %v6265_v35  ;;  %vm2135_vm5 = vmor %vm2133_vm3, %vm2134_vm14  ;;  %v2285_v53 = vand.u32 2147483647, %v2261_v59 }
 0xd2f   :  { %v2130_v39 = vsub.f32 1.0, %v2129_v36  ;;  %vm2269_vm2 = vmor %vm2267_vm8, %vm2268_vm15  ;;  %vm2281_vm12 = vweird.f32 %v2261_v59  ;;  %vm864_vm15 = vcmp.eq.f32.partialorder %v8348_v17, 0.0 }
 0xd30   :  { %v2264_v43 = vsub.f32 1.0, %v2263_v38  ;;  %5916 = vmatmul.msk.f32.vlgmr.msra.gmra.mxu2 %vm888_vm1, %v1995_v40  ;;  %vm2286_vm14 = vcmp.eq.f32.partialorder %v2285_v53, 8.507059e+37 }
 0xd31   :  { %v2131_v45 = vmul.f32 %v6263_v10, %v2130_v39  ;;  %2335 = vmatpush.msra.mxu2 %v8249_v19  ;;  %v2287_v19 = vand.u32 2147483648, %v2261_v59 }
 0xd32   :  { %v2265_v48 = vmul.f32 %v6265_v35, %v2264_v43 }
 0xd33   :  { %v2132_v11 = vadd.f32 %v6263_v10, %v2131_v45  ;;  %v6267_v49 = vpop.eup %6266  ;;  %v2288_v2 = vor.u32 1.1754944e-38, %v2287_v19 }
 0xd34   :  { %v2266_v46 = vadd.f32 %v6265_v35, %v2265_v48  ;;  %v2277_v54 = vmul.f32 %v6267_v49, %v2261_v59  ;;  %vm2282_vm11 = vweird.f32 %v6267_v49 }
 0xd35   :  { %v2136_v12 = vsel %vm2135_vm5, %v6263_v10, %v2132_v11  ;;  %vm2283_vm13 = vmor %vm2281_vm12, %vm2282_vm11 }
 0xd36   :  { %v2270_v55 = vsel %vm2269_vm2, %v6265_v35, %v2266_v46  ;;  %v2141_v57 = vsel %vm2138_vm9, %v2140_v50, %v2136_v12  ;;  %v2278_v58 = vsub.f32 1.0, %v2277_v54 }
 0xd37   :  { %v2143_v14 = vmul.f32 %v8300_v37, %v2141_v57  ;;  %v2275_v60 = vsel %vm2272_vm10, %v2274_v52, %v2270_v55 }
 0xd38   :  { %v2290_v62 = vmul.f32 %v8298_v34, %v2275_v60  ;;  %v2279_v0 = vmul.f32 %v6267_v49, %v2278_v58 }
 0xd39   :  { %5922 = vmatmul.msk.f32.vlgmr.msrb.gmra.mxu2 %vm888_vm1, %v2143_v14 }
 0xd3a   :  { %5927 = vmatmul.msk.f32.vlgmr.msra.gmra.mxu1 %vm888_vm1, %v2290_v62  ;;  %5935 = vmatpush.xpose.msk.msrb.mxu2 %vm888_vm1, %v8239_v28  ;;  %v2280_v1 = vadd.f32 %v6267_v49, %v2279_v0 }
 0xd3c   :  { %v2284_v3 = vsel %vm2283_vm13, %v6267_v49, %v2280_v1 }
 0xd3d   :  { %v2289_v37 = vsel %vm2286_vm14, %v2288_v2, %v2284_v3 }
 0xd3e   :  { %v2291_v4 = vmul.f32 %v8306_v27, %v2289_v37 }
 0xd40   :  { %v1893_v34 = vpop.f32.mrf.mxu1 }
 0xd41   :  { %5928 = vmatmul.msk.f32.vlgmr.msra.gmra.mxu2 %vm888_vm1, %v2291_v4 }
 0xd42   :  { %5937 = vmatpush.xpose.msk.msra.mxu2 %vm888_vm1, %v8084_v20 }
 0xd48   :  { %v2017_v15 = vpop.f32.mrf.mxu1 }
 0xd49   :  { %5936 = vmatmul.msk.f32.vlgmr.msrb.gmra.mxu2 %vm888_vm1, %v8239_v28  ;;  %2342 = vrot.lane.b32.xlu0 %v2017_v15, %s7492_s16  ;;  %v1748_v15 = vld [vmem:[%s9241_s27 + $0x38] sm:$0xff] }
 0xd4a   :  { %2509 = vmatpush.msrb.mxu1 %v1748_v15 }
 0xd51   :  { %5938 = vmatmul.msk.f32.vlgmr.msra.gmra.mxu2 %vm888_vm1, %v8084_v20 }
 0xd60   :  { %v2165_v18 = vpop.f32.mrf.mxu1 }
 0xd61   :  { %2350 = vrot.lane.b32.xlu2 %v2165_v18, %s7534_s23  ;;  %v1747_v18 = vld [vmem:[%s9241_s27 + $0x30] sm:$0xff] }
 0xd62   :  { %2510 = vmatpush.msrb.mxu1 %v1747_v18 }
 0xdb3   :  { %v2041_v27 = vpop.f32.mrf.mxu2 }
 0xdb4   :  { %2344 = vrot.lane.b32.xlu0 %v2041_v27, %s7492_s16  ;;  %v1746_v27 = vld [vmem:[%s9241_s27 + $0x28] sm:$0xff] }
 0xdb5   :  { %2511 = vmatpush.msrb.mxu1 %v1746_v27 }
 0xdb7   :  { %v2313_v6 = vpop.f32.mrf.mxu1 }
 0xdb8   :  { %2358 = vrot.lane.b32.xlu1 %v2313_v6, %s7535_s8  ;;  %v1745_v6 = vld [vmem:[%s9241_s27 + $0x20] sm:$0xff] }
 0xdb9   :  { %2512 = vmatpush.msrb.mxu1 %v1745_v6 }
 0xdbb   :  { %v2351_v29 = vpop.permute.xlu2 %2350  ;;  %v2343_v16 = vpop.permute.xlu0 %2342 }
 0xdbc   :  { %v2189_v7 = vpop.f32.mrf.mxu2  ;;  %v2364_v51 = vsel %vm888_vm1, %v8268_v42, %v2343_v16 }
 0xdbd   :  { %2352 = vrot.lane.b32.xlu2 %v2189_v7, %s7534_s23  ;;  %v2366_v32 = vsel %vm793_vm0, %v2364_v51, %v2351_v29  ;;  %v1744_v7 = vld [vmem:[%s9241_s27 + $0x18] sm:$0xff] }
 0xdbe   :  { %2513 = vmatpush.msrb.mxu1 %v1744_v7  ;;  %v6167_v7 = vld [vmem:[#allocation22] ss:$0 sm:$0xff] }
 0xdc0   :  { %2756 = vrot.lane.b32.xlu1 %v8239_v28, %s7532_s12 }
 0xdc4   :  { %v2337_v9 = vpop.f32.mrf.mxu2 }
 0xdc5   :  { %2904 = vrot.lane.b32.xlu2 %v8239_v28, %s7533_s22  ;;  %2360 = vrot.lane.b32.xlu0 %v2337_v9, %s7535_s8  ;;  %v1743_v9 = vld [vmem:[%s9241_s27 + $0x10] sm:$0xff] }
 0xdc6   :  { %2514 = vmatpush.msrb.mxu1 %v1743_v9 }
 0xdcc   :  { %v2630_v5 = vpop.f32.mrf.mxu2 }
 0xdcd   :  { %3052 = vrot.lane.b32.xlu0 %v8239_v28, %s7531_s17  ;;  %v2658_v56 = vsel %vm864_vm15, -1e+20, %v2630_v5  ;;  %v1742_v5 = vld [vmem:[%s9241_s27 + $0x8] sm:$0xff] }
 0xdce   :  { %v2660_v21 = vmul.f32 0.35355338, %v2658_v56  ;;  %2515 = vmatpush.msrb.mxu1 %v1742_v5 }
 0xdd0   :  { %v2662_v23 = vsel %vm888_vm1, %v2660_v21, -inf }
 0xdd4   :  { %v2653_v22 = vpop.f32.mrf.mxu2 }
 0xdd5   :  { %v2659_v24 = vsel %vm864_vm15, -1e+20, %v2653_v22  ;;  %v1741_v22 = vld [vmem:[%s9241_s27] sm:$0xff] }
 0xdd6   :  { %v2661_v13 = vmul.f32 0.35355338, %v2659_v24  ;;  %2516 = vmatpush.msrb.mxu1 %v1741_v22 }
 0xdd8   :  { %v2665_v26 = vsel %vm888_vm1, %v2661_v13, -inf }
 0xdea   :  { %2663 = vmax.xlane.f32.xlu1 %v2662_v23 }
 0xdf2   :  { %2666 = vmax.xlane.f32.xlu1 %v2665_v26 }
 0xe17   :  { %v2353_v30 = vpop.permute.xlu2 %2352 }
 0xe1f   :  { %v8364_v59 = vpop.permute.xlu2 %2904 }
 0xe26   :  { %v2345_v35 = vpop.permute.xlu0 %2344 }
 0xe27   :  { %v2365_v61 = vsel %vm888_vm1, %v1893_v34, %v2345_v35 }
 0xe28   :  { %v2367_v38 = vsel %vm793_vm0, %v2365_v61, %v2353_v30 }
 0xe2a   :  { %v2359_v10 = vpop.permute.xlu1 %2358 }
 0xe2b   :  { %v2368_v33 = vsel %vm1507_vm6, %v2366_v32, %v2359_v10 }
 0xe2c   :  { %5929 = vmatmul.msk.f32.vlgmr.msra.gmra.mxu3 %vm1513_vm7, %v2368_v33 }
 0xe32   :  { %v8362_v36 = vpop.permute.xlu1 %2756 }
 0xe33   :  { %5941 = vmatpush.xpose.msk.msrb.mxu2 %vm888_vm1, %v8362_v36 }
 0xe36   :  { %5942 = vmatmul.msk.f32.vlgmr.msrb.gmra.mxu2 %vm888_vm1, %v8362_v36 }
 0xe37   :  { %5947 = vmatpush.xpose.msk.msra.mxu2 %vm888_vm1, %v8364_v59  ;;  %v2361_v42 = vpop.permute.xlu0 %2360 }
 0xe38   :  { %v2369_v39 = vsel %vm1507_vm6, %v2367_v38, %v2361_v42 }
 0xe39   :  { %5930 = vmatmul.msk.f32.gmra.mxu3 %vm1513_vm7, %v2369_v39 }
 0xe3e   :  { %5948 = vmatmul.msk.f32.vlgmr.msra.gmra.mxu2 %vm888_vm1, %v8364_v59 }
 0xe3f   :  { %v8378_v40 = vpop.permute.xlu0 %3052 }
 0xe40   :  { %5953 = vmatpush.xpose.msk.msrb.mxu2 %vm888_vm1, %v8378_v40 }
 0xe46   :  { %5954 = vmatmul.msk.f32.vlgmr.msrb.gmra.mxu2 %vm888_vm1, %v8378_v40 }
 0xe5d   :  { %v2664_v43 = vpop.xlane.xlu1 %2663 }
 0xe5e   :  { %v2668_v31 = vsub.f32 %v2660_v21, %v2664_v43 }
 0xe60   :  { %v2670_v12 = vmul.f32 1.442695, %v2668_v31 }
 0xe62   :  { %6268 = vpow2.f32 %v2670_v12 }
 0xe65   :  { %v2667_v11 = vpop.xlane.xlu1 %2666 }
 0xe66   :  { %v2669_v52 = vsub.f32 %v2661_v13, %v2667_v11 }
 0xe68   :  { %v2672_v58 = vmul.f32 1.442695, %v2669_v52  ;;  %v8397_v53 = vpop.eup %6268 }
 0xe69   :  { %v2674_v1 = vsel %vm888_vm1, %v8397_v53, 0.0 }
 0xe6a   :  { %6270 = vpow2.f32 %v2672_v58 }
 0xe70   :  { %v8401_v2 = vpop.eup %6270 }
 0xe71   :  { %v2677_v34 = vsel %vm888_vm1, %v8401_v2, 0.0 }
 0xeaf   :  { %v2396_v45 = vpop.f32.mrf.mxu3 }
 0xeb0   :  { %v2397_v47 = vadd.f32 %v6166_v41, %v2396_v45 }
 0xeb2   :  { %v2402_v8 = vadd.f32 %v2397_v47, %v8185_v25 }
 0xeb4   :  { %v2404_v48 = vsel %vm1513_vm7, %v2402_v8, 0.0 }
 0xeb5   :  { %2405 = vadd.xlane.f32.xlu2 %v2404_v48 }
 0xeb9   :  { %v2777_v49 = vpop.f32.mrf.mxu2 }
 0xeba   :  { %v2804_v50 = vsel %vm864_vm15, -1e+20, %v2777_v49 }
 0xebb   :  { %v8388_v46 = vmul.f32 0.35355338, %v2804_v50 }
 0xebc   :  { %v2399_v54 = vpop.f32.mrf.mxu3 }
 0xebd   :  { %v2400_v55 = vadd.f32 %v6166_v41, %v2399_v54  ;;  %v2808_v57 = vsel %vm888_vm1, %v8388_v46, -inf }
 0xebe   :  { %2809 = vmax.xlane.f32.xlu2 %v2808_v57 }
 0xebf   :  { %v2403_v25 = vadd.f32 %v2400_v55, %v8206_v63 }
 0xec1   :  { %v2925_v14 = vpop.f32.mrf.mxu2  ;;  %v2407_v60 = vsel %vm1513_vm7, %v2403_v25, 0.0 }
 0xec2   :  { %v2952_v19 = vsel %vm864_vm15, -1e+20, %v2925_v14  ;;  %2408 = vadd.xlane.f32.xlu0 %v2407_v60 }
 0xec3   :  { %v2954_v62 = vmul.f32 0.35355338, %v2952_v19 }
 0xec5   :  { %v2956_v0 = vsel %vm888_vm1, %v2954_v62, -inf }
 0xec6   :  { %2957 = vmax.xlane.f32.xlu1 %v2956_v0 }
 0xec9   :  { %v3073_v63 = vpop.f32.mrf.mxu2 }
 0xeca   :  { %v3100_v3 = vsel %vm864_vm15, -1e+20, %v3073_v63  ;;  %2675 = vadd.xlane.f32.xlu0 %v2674_v1 }
 0xecb   :  { %v8405_v37 = vmul.f32 0.35355338, %v3100_v3 }
 0xecd   :  { %v3104_v4 = vsel %vm888_vm1, %v8405_v37, -inf }
 0xece   :  { %3105 = vmax.xlane.f32.xlu2 %v3104_v4  ;;  %2678 = vadd.xlane.f32.xlu1 %v2677_v34 }
 0xee6   :  { %2780 = vrot.lane.b32.xlu2 %v8084_v20, %s7532_s12 }
 0xf28   :  { %v2406_v56 = vpop.xlane.xlu2 %2405 }
 0xf29   :  { %v2410_v21 = vmul.f32 %v2406_v56, %v8149_v44 }
 0xf2b   :  { %v8422_v23 = vsub.f32 %v2402_v8, %v2410_v21  ;;  %v6168_v21 = vld [vmem:[#allocation23] ss:$0 sm:$0xff] }
 0xf2d   :  { %v2414_v24 = vmul.f32 %v8422_v23, %v8422_v23 }
 0xf2f   :  { %v2416_v13 = vsel %vm1513_vm7, %v2414_v24, 0.0 }
 0xf30   :  { %2417 = vadd.xlane.f32.xlu0 %v2416_v13 }
 0xf31   :  { %v2810_v51 = vpop.xlane.xlu2 %2809 }
 0xf32   :  { %v2814_v54 = vsub.f32 %v8388_v46, %v2810_v51 }
 0xf34   :  { %v2816_v55 = vmul.f32 1.442695, %v2814_v54 }
 0xf35   :  { %v2409_v26 = vpop.xlane.xlu0 %2408 }
 0xf36   :  { %v2411_v29 = vmul.f32 %v2409_v26, %v8149_v44 }
 0xf38   :  { %v8428_v16 = vsub.f32 %v2403_v25, %v2411_v29 }
 0xf39   :  { %v2958_v30 = vpop.xlane.xlu1 %2957 }
 0xf3a   :  { %v2962_v32 = vsub.f32 %v2954_v62, %v2958_v30  ;;  %v2415_v10 = vmul.f32 %v8428_v16, %v8428_v16 }
 0xf3c   :  { %v2964_v33 = vmul.f32 1.442695, %v2962_v32  ;;  %v2419_v35 = vsel %vm1513_vm7, %v2415_v10, 0.0 }
 0xf3d   :  { %v2676_v61 = vpop.xlane.xlu0 %2675  ;;  %2420 = vadd.xlane.f32.xlu1 %v2419_v35 }
 0xf3e   :  { %6272 = vpow2.f32 %v2964_v33  ;;  %v2691_v47 = vand.u32 2147483648, %v2676_v61  ;;  %v2689_v31 = vand.u32 2147483647, %v2676_v61  ;;  %vm2685_vm5 = vweird.f32 %v2676_v61 }
 0xf3f   :  { %6274 = vrcp.f32 %v2676_v61 }
 0xf40   :  { %v2692_v49 = vor.u32 1.1754944e-38, %v2691_v47  ;;  %vm2690_vm9 = vcmp.eq.f32.partialorder %v2689_v31, 8.507059e+37  ;;  %6276 = vpow2.f32 %v2816_v55 }
 0xf41   :  { %v3106_v42 = vpop.xlane.xlu2 %3105 }
 0xf42   :  { %v3110_v58 = vsub.f32 %v8405_v37, %v3106_v42 }
 0xf44   :  { %v8433_v38 = vpop.eup %6272  ;;  %2928 = vrot.lane.b32.xlu0 %v8084_v20, %s7533_s22  ;;  %v3112_v14 = vmul.f32 1.442695, %v3110_v58 }
 0xf45   :  { %v6275_v39 = vpop.eup %6274  ;;  %v2968_v41 = vsel %vm888_vm1, %v8433_v38, 0.0 }
 0xf46   :  { %v2681_v43 = vmul.f32 %v6275_v39, %v2676_v61  ;;  %2969 = vadd.xlane.f32.xlu2 %v2968_v41  ;;  %vm2686_vm3 = vweird.f32 %v6275_v39  ;;  %v8446_v57 = vpop.eup %6276  ;;  %6278 = vpow2.f32 %v3112_v14 }
 0xf47   :  { %vm2687_vm8 = vmor %vm2685_vm5, %vm2686_vm3  ;;  %v2820_v25 = vsel %vm888_vm1, %v8446_v57, 0.0 }
 0xf48   :  { %v2682_v45 = vsub.f32 1.0, %v2681_v43 }
 0xf49   :  { %v2781_v8 = vpop.permute.xlu2 %2780 }
 0xf4a   :  { %v2683_v48 = vmul.f32 %v6275_v39, %v2682_v45  ;;  %5943 = vmatpush.xpose.msk.msra.mxu3 %vm888_vm1, %v2781_v8  ;;  %2899 = vmatpush.msra.mxu1 %v2781_v8 }
 0xf4c   :  { %v2684_v11 = vadd.f32 %v6275_v39, %v2683_v48  ;;  %v8451_v60 = vpop.eup %6278 }
 0xf4d   :  { %v3116_v19 = vsel %vm888_vm1, %v8451_v60, 0.0 }
 0xf4e   :  { %v2688_v50 = vsel %vm2687_vm8, %v6275_v39, %v2684_v11 }
 0xf4f   :  { %v2693_v12 = vsel %vm2690_vm9, %v2692_v49, %v2688_v50 }
 0xf50   :  { %v2708_v52 = vmul.f32 %v8397_v53, %v2693_v12  ;;  %v2679_v53 = vpop.xlane.xlu1 %2678 }
 0xf51   :  { %v2705_v43 = vand.u32 2147483648, %v2679_v53  ;;  %vm2699_vm5 = vweird.f32 %v2679_v53 }
 0xf52   :  { %5939 = vmatmul.msk.f32.vlgmr.msrb.gmra.mxu3 %vm888_vm1, %v2708_v52 }
 0xf56   :  { %3076 = vrot.lane.b32.xlu1 %v8084_v20, %s7531_s17 }
 0xf5a   :  { %5944 = vmatmul.msk.f32.vlgmr.msra.gmra.mxu3 %vm888_vm1, %v2781_v8 }
 0xf6e   :  { %2821 = vadd.xlane.f32.xlu0 %v2820_v25 }
 0xf80   :  { %3117 = vadd.xlane.f32.xlu1 %v3116_v19 }
 0xfa3   :  { %v2418_v62 = vpop.xlane.xlu0 %2417 }
 0xfa4   :  { %v2422_v46 = vmul.f32 %v2418_v62, %v8149_v44 }
 0xfa6   :  { %v2424_v0 = vadd.f32 1e-05, %v2422_v46 }
 0xfa8   :  { %6280 = vrsqrt.f32 %v2424_v0  ;;  %vm2432_vm10 = vweird.f32 %v2424_v0 }
 0xfa9   :  { %6282 = vrcp.f32 %v2679_v53 }
 0xfae   :  { %v6281_v63 = vpop.eup %6280 }
 0xfaf   :  { %v2427_v1 = vmul.f32 %v6281_v63, %v2424_v0  ;;  %vm2433_vm2 = vweird.f32 %v6281_v63  ;;  %v6283_v5 = vpop.eup %6282 }
 0xfb0   :  { %v2421_v3 = vpop.xlane.xlu1 %2420  ;;  %vm2434_vm11 = vmor %vm2432_vm10, %vm2433_vm2  ;;  %v2695_v26 = vmul.f32 %v6283_v5, %v2679_v53  ;;  %vm2700_vm3 = vweird.f32 %v6283_v5 }
 0xfb1   :  { %v2428_v4 = vmul.f32 %v6281_v63, %v2427_v1  ;;  %v2423_v37 = vmul.f32 %v2421_v3, %v8149_v44  ;;  %vm2701_vm8 = vmor %vm2699_vm5, %vm2700_vm3 }
 0xfb2   :  { %v2696_v32 = vsub.f32 1.0, %v2695_v26 }
 0xfb3   :  { %v2429_v34 = vmul.f32 0.5, %v2428_v4  ;;  %v2425_v15 = vadd.f32 1e-05, %v2423_v37 }
 0xfb4   :  { %v2697_v33 = vmul.f32 %v6283_v5, %v2696_v32 }
 0xfb5   :  { %v2430_v18 = vsub.f32 1.5, %v2429_v34  ;;  %6284 = vrsqrt.f32 %v2425_v15  ;;  %vm2442_vm13 = vweird.f32 %v2425_v15 }
 0xfb6   :  { %v8457_v27 = vpop.permute.xlu0 %2928  ;;  %v2698_v39 = vadd.f32 %v6283_v5, %v2697_v33 }
 0xfb7   :  { %v2431_v6 = vmul.f32 %v6281_v63, %v2430_v18  ;;  %5949 = vmatpush.xpose.msk.msrb.mxu3 %vm888_vm1, %v8457_v27 }
 0xfb8   :  { %v2702_v47 = vsel %vm2701_vm8, %v6283_v5, %v2698_v39 }
 0xfb9   :  { %v2435_v9 = vsel %vm2434_vm11, %v6281_v63, %v2431_v6  ;;  %v2970_v11 = vpop.xlane.xlu2 %2969 }
 0xfba   :  { %v2446_v56 = vmul.f32 %v2435_v9, %v8422_v23  ;;  %5950 = vmatmul.msk.f32.vlgmr.msrb.gmra.mxu3 %vm888_vm1, %v8457_v27  ;;  %6286 = vrcp.f32 %v2970_v11  ;;  %v2985_v4 = vand.u32 2147483648, %v2970_v11  ;;  %v2983_v34 = vand.u32 2147483647, %v2970_v11 }
 0xfbb   :  { %v6285_v22 = vpop.eup %6284 }
 0xfbc   :  { %v2451_v24 = vmul.f32 %v6167_v7, %v2446_v56  ;;  %v2437_v13 = vmul.f32 %v6285_v22, %v2425_v15  ;;  %vm2443_vm12 = vweird.f32 %v6285_v22  ;;  %vm2984_vm5 = vcmp.eq.f32.partialorder %v2983_v34, 8.507059e+37  ;;  %v2582_v34 = vld [vmem:[%s9242_s11 + $0x10] sm:$0xff] }
 0xfbd   :  { %vm2444_vm14 = vmor %vm2442_vm13, %vm2443_vm12 }
 0xfbe   :  { %v2438_v29 = vmul.f32 %v6285_v22, %v2437_v13  ;;  %v8464_v51 = vadd.f32 %v6168_v21, %v2451_v24 }
 0xfc0   :  { %v2439_v30 = vmul.f32 0.5, %v2438_v29  ;;  %5931 = vmatmul.msk.f32.vlgmr.msrb.gmra.mxu0 %vm1513_vm7, %v8464_v51  ;;  %v6287_v55 = vpop.eup %6286 }
 0xfc1   :  { %2875 = vmatpush.msrb.mxu0 %v8362_v36  ;;  %v2703_v36 = vand.u32 2147483647, %v2679_v53  ;;  %vm2980_vm12 = vweird.f32 %v6287_v55 }
 0xfc2   :  { %v2440_v10 = vsub.f32 1.5, %v2439_v30 }
 0xfc3   :  { %vm2704_vm9 = vcmp.eq.f32.partialorder %v2703_v36, 8.507059e+37 }
 0xfc4   :  { %v2441_v23 = vmul.f32 %v6285_v22, %v2440_v10  ;;  %v6169_v10 = vld [vmem:[#allocation25] ss:$0 sm:$0xff] }
 0xfc6   :  { %v2445_v35 = vsel %vm2444_vm14, %v6285_v22, %v2441_v23  ;;  %vm2979_vm14 = vweird.f32 %v2970_v11 }
 0xfc7   :  { %v2447_v61 = vmul.f32 %v2445_v35, %v8428_v16  ;;  %v2706_v16 = vor.u32 1.1754944e-38, %v2705_v43  ;;  %vm2981_vm3 = vmor %vm2979_vm14, %vm2980_vm12 }
 0xfc8   :  { %v8470_v42 = vpop.permute.xlu1 %3076 }
 0xfc9   :  { %5955 = vmatpush.xpose.msk.msra.mxu3 %vm888_vm1, %v8470_v42  ;;  %v2452_v41 = vmul.f32 %v6167_v7, %v2447_v61  ;;  %v2707_v8 = vsel %vm2704_vm9, %v2706_v16, %v2702_v47  ;;  %v2986_v7 = vor.u32 1.1754944e-38, %v2985_v4 }
 0xfca   :  { %v2709_v48 = vmul.f32 %v8401_v2, %v2707_v8  ;;  %v2975_v2 = vmul.f32 %v6287_v55, %v2970_v11 }
 0xfcb   :  { %v8474_v45 = vadd.f32 %v6168_v21, %v2452_v41 }
 0xfcc   :  { %5956 = vmatmul.msk.f32.vlgmr.msra.gmra.mxu3 %vm888_vm1, %v8470_v42  ;;  %v2976_v58 = vsub.f32 1.0, %v2975_v2 }
 0xfcd   :  { %5932 = vmatmul.msk.f32.gmra.mxu0 %vm1513_vm7, %v8474_v45 }
 0xfce   :  { %v2977_v62 = vmul.f32 %v6287_v55, %v2976_v58 }
 0xfd0   :  { %v2978_v1 = vadd.f32 %v6287_v55, %v2977_v62 }
 0xfd2   :  { %v2982_v6 = vsel %vm2981_vm3, %v6287_v55, %v2978_v1 }
 0xfd3   :  { %v2987_v9 = vsel %vm2984_vm5, %v2986_v7, %v2982_v6  ;;  %v2580_v6 = vld [vmem:[%s9242_s11] sm:$0xff] }
 0xfd4   :  { %v3002_v21 = vmul.f32 %v8433_v38, %v2987_v9 }
 0xfd5   :  { %v8481_v31 = vpop.f32.mrf.mxu3  ;;  %5940 = vmatmul.msk.f32.vlgmr.msra.gmra.mxu0 %vm888_vm1, %v2709_v48 }
 0xfd6   :  { %3023 = vmatpush.msra.mxu0 %v8364_v59 }
 0xfdd   :  { %v2801_v49 = vpop.f32.mrf.mxu3 }
 0xfde   :  { %v2805_v50 = vsel %vm864_vm15, -1e+20, %v2801_v49 }
 0xfdf   :  { %v8487_v12 = vmul.f32 0.35355338, %v2805_v50 }
 0xfe1   :  { %v2822_v52 = vpop.xlane.xlu0 %2821  ;;  %v2811_v54 = vsel %vm888_vm1, %v8487_v12, -inf }
 0xfe2   :  { %6288 = vrcp.f32 %v2822_v52  ;;  %2812 = vmax.xlane.f32.xlu0 %v2811_v54  ;;  %v2837_v19 = vand.u32 2147483648, %v2822_v52  ;;  %v2835_v0 = vand.u32 2147483647, %v2822_v52  ;;  %vm2831_vm10 = vweird.f32 %v2822_v52 }
 0xfe4   :  { %v2838_v63 = vor.u32 1.1754944e-38, %v2837_v19  ;;  %vm2836_vm13 = vcmp.eq.f32.partialorder %v2835_v0, 8.507059e+37  ;;  %v8514_v19 = vld [vmem:[#allocation26] ss:$0 sm:$0xff] }
 0xfe8   :  { %v6289_v25 = vpop.eup %6288 }
 0xfe9   :  { %v2827_v14 = vmul.f32 %v6289_v25, %v2822_v52  ;;  %vm2832_vm2 = vweird.f32 %v6289_v25 }
 0xfea   :  { %vm2833_vm11 = vmor %vm2831_vm10, %vm2832_vm2 }
 0xfeb   :  { %v2828_v59 = vsub.f32 1.0, %v2827_v14 }
 0xfed   :  { %v2829_v46 = vmul.f32 %v6289_v25, %v2828_v59 }
 0xfef   :  { %v2830_v53 = vadd.f32 %v6289_v25, %v2829_v46 }
 0xff1   :  { %v2834_v3 = vsel %vm2833_vm11, %v6289_v25, %v2830_v53 }
 0xff2   :  { %v2839_v37 = vsel %vm2836_vm13, %v2838_v63, %v2834_v3 }
 0xff3   :  { %v3118_v15 = vpop.xlane.xlu1 %3117  ;;  %v2854_v18 = vmul.f32 %v8446_v57, %v2839_v37  ;;  %v2583_v37 = vld [vmem:[%s9242_s11 + $0x18] sm:$0xff] }
 0xff4   :  { %6290 = vrcp.f32 %v3118_v15  ;;  %v3133_v24 = vand.u32 2147483648, %v3118_v15  ;;  %v3131_v57 = vand.u32 2147483647, %v3118_v15  ;;  %vm3127_vm9 = vweird.f32 %v3118_v15  ;;  %3251 = vmatpush.msra.mxu2 %v2583_v37 }
 0xff5   :  { %5945 = vmatmul.msk.f32.vlgmr.msrb.gmra.mxu0 %vm888_vm1, %v2854_v18 }
 0xff6   :  { %3171 = vmatpush.msrb.mxu0 %v8378_v40  ;;  %v3134_v29 = vor.u32 1.1754944e-38, %v3133_v24  ;;  %vm3132_vm10 = vcmp.eq.f32.partialorder %v3131_v57, 8.507059e+37  ;;  %3252 = vmatpush.msra.mxu2 %v2582_v34 }
 0xffa   :  { %v6291_v5 = vpop.eup %6290 }
 0xffb   :  { %v3123_v56 = vmul.f32 %v6291_v5, %v3118_v15  ;;  %vm3128_vm8 = vweird.f32 %v6291_v5  ;;  %v2581_v15 = vld [vmem:[%s9242_s11 + $0x8] sm:$0xff] }
 0xffc   :  { %vm3129_vm2 = vmor %vm3127_vm9, %vm3128_vm8  ;;  %3253 = vmatpush.msra.mxu2 %v2581_v15 }
 0xffd   :  { %v3124_v22 = vsub.f32 1.0, %v3123_v56  ;;  %5951 = vmatmul.msk.f32.vlgmr.msra.gmra.mxu0 %vm888_vm1, %v3002_v21 }
 0xffe   :  { %3254 = vmatpush.msra.mxu2 %v2580_v6 }
 0xfff   :  { %v3125_v13 = vmul.f32 %v6291_v5, %v3124_v22 }
0x1001   :  { %v3126_v26 = vadd.f32 %v6291_v5, %v3125_v13 }
0x1003   :  { %v3130_v30 = vsel %vm3129_vm2, %v6291_v5, %v3126_v26 }
0x1004   :  { %v3135_v40 = vsel %vm3132_vm10, %v3134_v29, %v3130_v30 }
0x1005   :  { %v3150_v32 = vmul.f32 %v8451_v60, %v3135_v40 }
0x1007   :  { %5957 = vmatmul.msk.f32.vlgmr.msrb.gmra.mxu0 %vm888_vm1, %v3150_v32 }
0x103d   :  { %v2484_v38 = vpop.f32.mrf.mxu0  ;;  %v2949_v23 = vpop.f32.mrf.mxu3 }
0x103e   :  { %v2485_v33 = vadd.f32 %v6169_v10, %v2484_v38  ;;  %v2953_v35 = vsel %vm864_vm15, -1e+20, %v2949_v23 }
0x103f   :  { %v2955_v61 = vmul.f32 0.35355338, %v2953_v35 }
0x1040   :  { %v2490_v39 = vmax.f32 %v2485_v33, 0.0 }
0x1041   :  { %v2959_v41 = vsel %vm888_vm1, %v2955_v61, -inf }
0x1042   :  { %5933 = vmatmul.msk.f32.vlgmr.msrb.gmra.mxu1 %vm1643_vm4, %v2490_v39  ;;  %2960 = vmax.xlane.f32.xlu2 %v2959_v41 }
0x1043   :  { %3047 = vmatpush.msrb.mxu1 %v8457_v27 }
0x104a   :  { %v2487_v43 = vpop.f32.mrf.mxu0 }
0x104b   :  { %v2488_v60 = vadd.f32 %v6169_v10, %v2487_v43 }
0x104d   :  { %v2491_v36 = vmax.f32 %v2488_v60, 0.0 }
0x104f   :  { %5934 = vmatmul.msk.f32.gmra.mxu1 %vm1643_vm4, %v2491_v36  ;;  %v3097_v47 = vpop.f32.mrf.mxu3 }
0x1050   :  { %v3101_v16 = vsel %vm864_vm15, -1e+20, %v3097_v47 }
0x1051   :  { %v3103_v8 = vmul.f32 0.35355338, %v3101_v16 }
0x1052   :  { %v8507_v11 = vpop.f32.mrf.mxu0 }
0x1053   :  { %v3107_v48 = vsel %vm888_vm1, %v3103_v8, -inf }
0x1054   :  { %3108 = vmax.xlane.f32.xlu0 %v3107_v48 }
0x1055   :  { %v2813_v52 = vpop.xlane.xlu0 %2812 }
0x1056   :  { %v2815_v54 = vsub.f32 %v8487_v12, %v2813_v52 }
0x1058   :  { %v2818_v55 = vmul.f32 1.442695, %v2815_v54 }
0x105a   :  { %6292 = vpow2.f32 %v2818_v55 }
0x1060   :  { %v6293_v2 = vpop.eup %6292 }
0x1061   :  { %v2823_v25 = vsel %vm888_vm1, %v6293_v2, 0.0 }
0x1072   :  { %v2877_v49 = vpop.f32.mrf.mxu0 }
0x1073   :  { %3202 = vrot.lane.b32.xlu2 %v2877_v49, %s7492_s16 }
0x107a   :  { %v3025_v50 = vpop.f32.mrf.mxu0 }
0x107b   :  { %3210 = vrot.lane.b32.xlu1 %v3025_v50, %s7534_s23 }
0x1084   :  { %v3173_v27 = vpop.f32.mrf.mxu0 }
0x1085   :  { %3218 = vrot.lane.b32.xlu0 %v3173_v27, %s7535_s8 }
0x109c   :  { %2824 = vadd.xlane.f32.xlu2 %v2823_v25 }
0x10b5   :  { %v2961_v58 = vpop.xlane.xlu2 %2960 }
0x10b6   :  { %v2963_v14 = vsub.f32 %v2955_v61, %v2961_v58 }
0x10b8   :  { %v2966_v59 = vmul.f32 1.442695, %v2963_v14 }
0x10ba   :  { %6294 = vpow2.f32 %v2966_v59 }
0x10bf   :  { %v2518_v62 = vpop.f32.mrf.mxu1 }
0x10c0   :  { %v8516_v46 = vpop.eup %6294  ;;  %v2519_v12 = vadd.f32 %v8514_v19, %v2518_v62  ;;  %v8545_v62 = vld [vmem:[#allocation31] ss:$0 sm:$0xff] }
0x10c1   :  { %v2971_v0 = vsel %vm888_vm1, %v8516_v46, 0.0 }
0x10c2   :  { %2972 = vadd.xlane.f32.xlu0 %v2971_v0  ;;  %v8522_v53 = vadd.f32 %v2519_v12, %v8464_v51 }
0x10c4   :  { %v2526_v63 = vsel %vm1513_vm7, %v8522_v53, 0.0 }
0x10c5   :  { %2527 = vadd.xlane.f32.xlu2 %v2526_v63 }
0x10c7   :  { %v3109_v1 = vpop.xlane.xlu0 %3108 }
0x10c8   :  { %v3111_v3 = vsub.f32 %v3103_v8, %v3109_v1 }
0x10ca   :  { %v3114_v4 = vmul.f32 1.442695, %v3111_v3 }
0x10cc   :  { %6296 = vpow2.f32 %v3114_v4  ;;  %v2521_v1 = vpop.f32.mrf.mxu1 }
0x10cd   :  { %v3203_v7 = vpop.permute.xlu2 %3202  ;;  %v2522_v4 = vadd.f32 %v8514_v19, %v2521_v1 }
0x10ce   :  { %v3224_v5 = vsel %vm888_vm1, %v8481_v31, %v3203_v7 }
0x10cf   :  { %v2525_v34 = vadd.f32 %v2522_v4, %v8474_v45 }
0x10d1   :  { %v2529_v15 = vsel %vm1513_vm7, %v2525_v34, 0.0 }
0x10d2   :  { %v8529_v18 = vpop.eup %6296 }
0x10d3   :  { %v3119_v51 = vsel %vm888_vm1, %v8529_v18, 0.0 }
0x10d4   :  { %3120 = vadd.xlane.f32.xlu1 %v3119_v51 }
0x10ed   :  { %v3211_v9 = vpop.permute.xlu1 %3210 }
0x10ee   :  { %v3226_v56 = vsel %vm793_vm0, %v3224_v5, %v3211_v9 }
0x10f7   :  { %v3219_v21 = vpop.permute.xlu0 %3218 }
0x10f8   :  { %v3228_v22 = vsel %vm1507_vm6, %v3226_v56, %v3219_v21 }
0x10f9   :  { %5959 = vmatmul.msk.f32.vlgmr.msra.gmra.mxu2 %vm1513_vm7, %v3228_v22 }
0x110f   :  { %v2825_v24 = vpop.xlane.xlu2 %2824 }
0x1110   :  { %6298 = vrcp.f32 %v2825_v24  ;;  %v2851_v29 = vand.u32 2147483648, %v2825_v24  ;;  %v2849_v40 = vand.u32 2147483647, %v2825_v24  ;;  %vm2845_vm12 = vweird.f32 %v2825_v24 }
0x1112   :  { %v2852_v31 = vor.u32 1.1754944e-38, %v2851_v29  ;;  %vm2850_vm14 = vcmp.eq.f32.partialorder %v2849_v40, 8.507059e+37 }
0x1116   :  { %v6299_v13 = vpop.eup %6298 }
0x1117   :  { %v2841_v57 = vmul.f32 %v6299_v13, %v2825_v24  ;;  %vm2846_vm11 = vweird.f32 %v6299_v13 }
0x1118   :  { %vm2847_vm13 = vmor %vm2845_vm12, %vm2846_vm11 }
0x1119   :  { %v2842_v26 = vsub.f32 1.0, %v2841_v57 }
0x111b   :  { %v2843_v30 = vmul.f32 %v6299_v13, %v2842_v26 }
0x111d   :  { %v2844_v32 = vadd.f32 %v6299_v13, %v2843_v30 }
0x111f   :  { %v2848_v10 = vsel %vm2847_vm13, %v6299_v13, %v2844_v32 }
0x1120   :  { %v2853_v38 = vsel %vm2850_vm14, %v2852_v31, %v2848_v10 }
0x1121   :  { %v2855_v23 = vmul.f32 %v6293_v2, %v2853_v38 }
0x1123   :  { %5946 = vmatmul.msk.f32.vlgmr.msra.gmra.mxu1 %vm888_vm1, %v2855_v23 }
0x1124   :  { %3195 = vmatpush.msra.mxu1 %v8470_v42 }
0x1135   :  { %v2973_v33 = vpop.xlane.xlu0 %2972 }
0x1136   :  { %6300 = vrcp.f32 %v2973_v33  ;;  %v2999_v41 = vand.u32 2147483648, %v2973_v33  ;;  %v2997_v60 = vand.u32 2147483647, %v2973_v33  ;;  %vm2993_vm5 = vweird.f32 %v2973_v33 }
0x1138   :  { %v3000_v47 = vor.u32 1.1754944e-38, %v2999_v41  ;;  %vm2998_vm9 = vcmp.eq.f32.partialorder %v2997_v60, 8.507059e+37 }
0x113c   :  { %v6301_v35 = vpop.eup %6300 }
0x113d   :  { %v2989_v61 = vmul.f32 %v6301_v35, %v2973_v33  ;;  %vm2994_vm3 = vweird.f32 %v6301_v35 }
0x113e   :  { %vm2995_vm8 = vmor %vm2993_vm5, %vm2994_vm3 }
0x113f   :  { %v2990_v39 = vsub.f32 1.0, %v2989_v61 }
0x1141   :  { %v2991_v43 = vmul.f32 %v6301_v35, %v2990_v39 }
0x1143   :  { %v2992_v36 = vadd.f32 %v6301_v35, %v2991_v43 }
0x1145   :  { %v2996_v16 = vsel %vm2995_vm8, %v6301_v35, %v2992_v36  ;;  %v6172_v36 = vld [vmem:[#allocation28] ss:$0 sm:$0xff] }
0x1146   :  { %v3001_v8 = vsel %vm2998_vm9, %v3000_v47, %v2996_v16 }
0x1147   :  { %v3121_v48 = vpop.xlane.xlu1 %3120  ;;  %v3003_v49 = vmul.f32 %v8516_v46, %v3001_v8  ;;  %v6173_v8 = vld [vmem:[#allocation29] ss:$0 sm:$0xff] }
0x1148   :  { %6302 = vrcp.f32 %v3121_v48  ;;  %v3147_v52 = vand.u32 2147483648, %v3121_v48  ;;  %v3145_v55 = vand.u32 2147483647, %v3121_v48  ;;  %vm3141_vm10 = vweird.f32 %v3121_v48 }
0x1149   :  { %5952 = vmatmul.msk.f32.vlgmr.msrb.gmra.mxu1 %vm888_vm1, %v3003_v49 }
0x114a   :  { %v3148_v25 = vor.u32 1.1754944e-38, %v3147_v52  ;;  %vm3146_vm12 = vcmp.eq.f32.partialorder %v3145_v55, 8.507059e+37 }
0x114e   :  { %v6303_v42 = vpop.eup %6302 }
0x114f   :  { %v3137_v50 = vmul.f32 %v6303_v42, %v3121_v48  ;;  %vm3142_vm2 = vweird.f32 %v6303_v42 }
0x1150   :  { %vm3143_vm11 = vmor %vm3141_vm10, %vm3142_vm2 }
0x1151   :  { %v3138_v27 = vsub.f32 1.0, %v3137_v50 }
0x1153   :  { %v3139_v54 = vmul.f32 %v6303_v42, %v3138_v27 }
0x1155   :  { %v3140_v2 = vadd.f32 %v6303_v42, %v3139_v54 }
0x1157   :  { %v3144_v58 = vsel %vm3143_vm11, %v6303_v42, %v3140_v2 }
0x1158   :  { %v3149_v14 = vsel %vm3146_vm12, %v3148_v25, %v3144_v58  ;;  %v8579_v25 = vld [vmem:[#allocation32] ss:$0 sm:$0xff] }
0x1159   :  { %v3151_v59 = vmul.f32 %v8529_v18, %v3149_v14 }
0x115b   :  { %5958 = vmatmul.msk.f32.vlgmr.msra.gmra.mxu1 %vm888_vm1, %v3151_v59  ;;  %v8581_v59 = vld [vmem:[#allocation34] ss:$0 sm:$0xff] }
0x117c   :  { %v3256_v46 = vpop.f32.mrf.mxu2 }
0x117d   :  { %v3257_v12 = vadd.f32 %v8545_v62, %v3256_v46 }
0x117f   :  { %v3262_v0 = vadd.f32 %v3257_v12, %v8239_v28  ;;  %v2528_v28 = vpop.xlane.xlu2 %2527 }
0x1180   :  { %v2532_v51 = vmul.f32 %v2528_v28, %v8149_v44 }
0x1181   :  { %v3264_v63 = vsel %vm1513_vm7, %v3262_v0, 0.0 }
0x1182   :  { %3265 = vadd.xlane.f32.xlu0 %v3264_v63  ;;  %v2534_v6 = vsub.f32 %v8522_v53, %v2532_v51 }
0x1184   :  { %v2536_v7 = vmul.f32 %v2534_v6, %v2534_v6 }
0x1186   :  { %v2538_v9 = vsel %vm1513_vm7, %v2536_v7, 0.0 }
0x11a0   :  { %v2901_v3 = vpop.f32.mrf.mxu1 }
0x11a1   :  { %3204 = vrot.lane.b32.xlu1 %v2901_v3, %s7492_s16 }
0x11c6   :  { %v3049_v37 = vpop.f32.mrf.mxu1 }
0x11c7   :  { %3212 = vrot.lane.b32.xlu2 %v3049_v37, %s7534_s23 }
0x11cb   :  { %2530 = vadd.xlane.f32.xlu1 %v2529_v15 }
0x11d8   :  { %v3197_v18 = vpop.f32.mrf.mxu1 }
0x11d9   :  { %3220 = vrot.lane.b32.xlu0 %v3197_v18, %s7535_s8 }
0x11f0   :  { %2539 = vadd.xlane.f32.xlu2 %v2538_v9 }
0x11f5   :  { %v3266_v19 = vpop.xlane.xlu0 %3265 }
0x11f6   :  { %v3270_v45 = vmul.f32 %v3266_v19, %v8149_v44 }
0x11f8   :  { %v3272_v5 = vsub.f32 %v3262_v0, %v3270_v45 }
0x11fa   :  { %v3274_v56 = vmul.f32 %v3272_v5, %v3272_v5 }
0x11fc   :  { %v3276_v21 = vsel %vm1513_vm7, %v3274_v56, 0.0 }
0x1203   :  { %3277 = vadd.xlane.f32.xlu0 %v3276_v21 }
0x1213   :  { %v3205_v22 = vpop.permute.xlu1 %3204 }
0x1214   :  { %v3225_v30 = vsel %vm888_vm1, %v8507_v11, %v3205_v22 }
0x1221   :  { %v3213_v29 = vpop.permute.xlu2 %3212 }
0x1222   :  { %v3227_v40 = vsel %vm793_vm0, %v3225_v30, %v3213_v29 }
0x123e   :  { %v2531_v24 = vpop.xlane.xlu1 %2530 }
0x123f   :  { %v2533_v13 = vmul.f32 %v2531_v24, %v8149_v44 }
0x1241   :  { %v8562_v57 = vsub.f32 %v2525_v34, %v2533_v13 }
0x1243   :  { %v2537_v53 = vmul.f32 %v8562_v57, %v8562_v57 }
0x1245   :  { %v2541_v26 = vsel %vm1513_vm7, %v2537_v53, 0.0 }
0x1246   :  { %2542 = vadd.xlane.f32.xlu1 %v2541_v26 }
0x124b   :  { %v3221_v32 = vpop.permute.xlu0 %3220 }
0x124c   :  { %v3229_v31 = vsel %vm1507_vm6, %v3227_v40, %v3221_v32 }
0x124d   :  { %5960 = vmatmul.msk.f32.gmra.mxu2 %vm1513_vm7, %v3229_v31 }
0x1263   :  { %v2540_v10 = vpop.xlane.xlu2 %2539 }
0x1264   :  { %v2544_v38 = vmul.f32 %v2540_v10, %v8149_v44 }
0x1266   :  { %v2546_v23 = vadd.f32 1e-05, %v2544_v38 }
0x1268   :  { %6304 = vrsqrt.f32 %v2546_v23  ;;  %vm2554_vm14 = vweird.f32 %v2546_v23 }
0x126e   :  { %v6305_v33 = vpop.eup %6304 }
0x126f   :  { %v2549_v35 = vmul.f32 %v6305_v33, %v2546_v23  ;;  %vm2555_vm13 = vweird.f32 %v6305_v33 }
0x1270   :  { %vm2556_vm3 = vmor %vm2554_vm14, %vm2555_vm13 }
0x1271   :  { %v2550_v61 = vmul.f32 %v6305_v33, %v2549_v35 }
0x1273   :  { %v2551_v39 = vmul.f32 0.5, %v2550_v61 }
0x1275   :  { %v2552_v41 = vsub.f32 1.5, %v2551_v39 }
0x1276   :  { %v3278_v43 = vpop.xlane.xlu0 %3277 }
0x1277   :  { %v2553_v11 = vmul.f32 %v6305_v33, %v2552_v41  ;;  %v3282_v60 = vmul.f32 %v3278_v43, %v8149_v44 }
0x1279   :  { %v2557_v47 = vsel %vm2556_vm3, %v6305_v33, %v2553_v11  ;;  %v3284_v16 = vadd.f32 1e-05, %v3282_v60 }
0x127a   :  { %v2568_v48 = vmul.f32 %v2557_v47, %v2534_v6 }
0x127b   :  { %6306 = vrsqrt.f32 %v3284_v16  ;;  %vm3292_vm8 = vweird.f32 %v3284_v16 }
0x127c   :  { %v2573_v49 = vmul.f32 %v6172_v36, %v2568_v48 }
0x127e   :  { %v8574_v42 = vadd.f32 %v6173_v8, %v2573_v49 }
0x1280   :  { %5961 = vmatpush.xpose.msk.msrb.mxu3 %vm888_vm1, %v8574_v42  ;;  %3440 = vmatpush.msrb.mxu1 %v8574_v42 }
0x1281   :  { %v6307_v50 = vpop.eup %6306 }
0x1282   :  { %v3287_v27 = vmul.f32 %v6307_v50, %v3284_v16  ;;  %vm3293_vm5 = vweird.f32 %v6307_v50 }
0x1283   :  { %vm3294_vm9 = vmor %vm3292_vm8, %vm3293_vm5 }
0x1284   :  { %v3288_v52 = vmul.f32 %v6307_v50, %v3287_v27 }
0x1286   :  { %v3289_v54 = vmul.f32 0.5, %v3288_v52 }
0x1288   :  { %v3290_v55 = vsub.f32 1.5, %v3289_v54 }
0x128a   :  { %v3291_v2 = vmul.f32 %v6307_v50, %v3290_v55 }
0x128c   :  { %v3295_v58 = vsel %vm3294_vm9, %v6307_v50, %v3291_v2 }
0x128d   :  { %v3306_v14 = vmul.f32 %v3295_v58, %v3272_v5 }
0x128f   :  { %v3311_v46 = vmul.f32 %v8579_v25, %v3306_v14 }
0x1291   :  { %v8585_v12 = vadd.f32 %v8581_v59, %v3311_v46 }
0x1293   :  { %3468 = vrot.lane.b32.xlu1 %v8585_v12, %s7532_s12  ;;  %5962 = vmatmul.msk.f32.vlgmr.msrb.gmra.mxu3 %vm888_vm1, %v8585_v12 }
0x12b9   :  { %v2543_v0 = vpop.xlane.xlu1 %2542 }
0x12ba   :  { %v2545_v63 = vmul.f32 %v2543_v0, %v8149_v44 }
0x12bc   :  { %v2547_v1 = vadd.f32 1e-05, %v2545_v63 }
0x12be   :  { %6308 = vrsqrt.f32 %v2547_v1  ;;  %vm2564_vm10 = vweird.f32 %v2547_v1 }
0x12c4   :  { %v6309_v3 = vpop.eup %6308 }
0x12c5   :  { %v2559_v4 = vmul.f32 %v6309_v3, %v2547_v1  ;;  %vm2565_vm2 = vweird.f32 %v6309_v3 }
0x12c6   :  { %vm2566_vm11 = vmor %vm2564_vm10, %vm2565_vm2 }
0x12c7   :  { %v2560_v37 = vmul.f32 %v6309_v3, %v2559_v4 }
0x12c9   :  { %v2561_v34 = vmul.f32 0.5, %v2560_v37 }
0x12cb   :  { %v2562_v15 = vsub.f32 1.5, %v2561_v34 }
0x12cd   :  { %v2563_v18 = vmul.f32 %v6309_v3, %v2562_v15 }
0x12cf   :  { %v2567_v28 = vsel %vm2566_vm11, %v6309_v3, %v2563_v18 }
0x12d0   :  { %v2569_v51 = vmul.f32 %v2567_v28, %v8562_v57  ;;  %v3259_v6 = vpop.f32.mrf.mxu2 }
0x12d1   :  { %v3260_v7 = vadd.f32 %v8545_v62, %v3259_v6 }
0x12d2   :  { %v2574_v9 = vmul.f32 %v6172_v36, %v2569_v51 }
0x12d3   :  { %v3263_v19 = vadd.f32 %v3260_v7, %v8084_v20 }
0x12d4   :  { %v8595_v45 = vadd.f32 %v6173_v8, %v2574_v9 }
0x12d5   :  { %v3267_v5 = vsel %vm1513_vm7, %v3263_v19, 0.0 }
0x12d6   :  { %5963 = vmatpush.xpose.msk.msra.mxu0 %vm888_vm1, %v8595_v45  ;;  %3463 = vmatpush.msra.mxu3 %v8595_v45 }
0x12d7   :  { %3268 = vadd.xlane.f32.xlu2 %v3267_v5 }
0x1305   :  { %v3469_v50 = vpop.permute.xlu1 %3468 }
0x1316   :  { %v3341_v56 = vpop.f32.mrf.mxu3 }
0x1317   :  { %v3370_v21 = vsel %vm864_vm15, -1e+20, %v3341_v56 }
0x1318   :  { %v3372_v22 = vmul.f32 0.35355338, %v3370_v21 }
0x131a   :  { %v3374_v62 = vsel %vm888_vm1, %v3372_v22, -inf }
0x131b   :  { %3375 = vmax.xlane.f32.xlu0 %v3374_v62 }
0x132f   :  { %3470 = vrot.lane.b32.xlu0 %v8574_v42, %s7532_s12 }
0x1337   :  { %3624 = vrot.lane.b32.xlu0 %v8585_v12, %s7533_s22 }
0x133f   :  { %3782 = vrot.lane.b32.xlu0 %v8574_v42, %s7531_s17 }
0x1347   :  { %3498 = vrot.lane.b32.xlu0 %v8595_v45, %s7532_s12 }
0x134a   :  { %v3269_v20 = vpop.xlane.xlu2 %3268 }
0x134b   :  { %v3271_v24 = vmul.f32 %v3269_v20, %v8149_v44 }
0x134d   :  { %v3273_v13 = vsub.f32 %v3263_v19, %v3271_v24 }
0x134f   :  { %3654 = vrot.lane.b32.xlu0 %v8595_v45, %s7533_s22  ;;  %v3275_v57 = vmul.f32 %v3273_v13, %v3273_v13 }
0x1351   :  { %v3279_v53 = vsel %vm1513_vm7, %v3275_v57, 0.0 }
0x1352   :  { %3280 = vadd.xlane.f32.xlu2 %v3279_v53 }
0x1357   :  { %3810 = vrot.lane.b32.xlu0 %v8595_v45, %s7531_s17 }
0x136a   :  { %3626 = vrot.lane.b32.xlu2 %v8574_v42, %s7533_s22 }
0x1372   :  { %3780 = vrot.lane.b32.xlu2 %v8585_v12, %s7531_s17 }
0x138e   :  { %v3376_v26 = vpop.xlane.xlu0 %3375 }
0x138f   :  { %v3380_v29 = vsub.f32 %v3372_v22, %v3376_v26 }
0x1391   :  { %v3382_v30 = vmul.f32 1.442695, %v3380_v29 }
0x1393   :  { %6310 = vpow2.f32 %v3382_v30 }
0x1399   :  { %v6311_v40 = vpop.eup %6310 }
0x139a   :  { %v3386_v32 = vsel %vm888_vm1, %v6311_v40, 0.0 }
0x139b   :  { %3387 = vadd.xlane.f32.xlu1 %v3386_v32 }
0x13a1   :  { %v8623_v31 = vpop.permute.xlu0 %3470 }
0x13a2   :  { %5967 = vmatpush.xpose.msk.msrb.mxu0 %vm888_vm1, %v8623_v31  ;;  %3595 = vmatpush.msrb.mxu2 %v8623_v31 }
0x13a9   :  { %v3625_v10 = vpop.permute.xlu0 %3624 }
0x13b1   :  { %v8628_v38 = vpop.permute.xlu0 %3782 }
0x13b9   :  { %v8630_v23 = vpop.permute.xlu0 %3498 }
0x13ba   :  { %5969 = vmatpush.xpose.msk.msra.mxu1 %vm888_vm1, %v8630_v23  ;;  %3619 = vmatpush.msrb.mxu3 %v8630_v23 }
0x13c1   :  { %v8658_v3 = vpop.permute.xlu0 %3654 }
0x13c5   :  { %v3281_v33 = vpop.xlane.xlu2 %3280 }
0x13c6   :  { %v3283_v35 = vmul.f32 %v3281_v33, %v8149_v44 }
0x13c8   :  { %v3285_v61 = vadd.f32 1e-05, %v3283_v35 }
0x13c9   :  { %v8663_v37 = vpop.permute.xlu0 %3810 }
0x13ca   :  { %6312 = vrsqrt.f32 %v3285_v61  ;;  %vm3302_vm13 = vweird.f32 %v3285_v61 }
0x13cd   :  { %v8636_v39 = vpop.permute.xlu2 %3626 }
0x13ce   :  { %3751 = vmatpush.msra.mxu2 %v8636_v39 }
0x13d0   :  { %v6313_v41 = vpop.eup %6312 }
0x13d1   :  { %v3297_v43 = vmul.f32 %v6313_v41, %v3285_v61  ;;  %vm3303_vm12 = vweird.f32 %v6313_v41 }
0x13d2   :  { %vm3304_vm14 = vmor %vm3302_vm13, %vm3303_vm12 }
0x13d3   :  { %v3298_v11 = vmul.f32 %v6313_v41, %v3297_v43 }
0x13d5   :  { %v3299_v60 = vmul.f32 0.5, %v3298_v11  ;;  %v3781_v27 = vpop.permute.xlu2 %3780 }
0x13d7   :  { %v3300_v36 = vsub.f32 1.5, %v3299_v60 }
0x13d9   :  { %v3301_v47 = vmul.f32 %v6313_v41, %v3300_v36 }
0x13db   :  { %v3305_v16 = vsel %vm3304_vm14, %v6313_v41, %v3301_v47 }
0x13dc   :  { %v3307_v8 = vmul.f32 %v3305_v16, %v3273_v13 }
0x13de   :  { %v3312_v48 = vmul.f32 %v8579_v25, %v3307_v8 }
0x13e0   :  { %v8641_v49 = vadd.f32 %v8581_v59, %v3312_v48 }
0x13e2   :  { %3496 = vrot.lane.b32.xlu2 %v8641_v49, %s7532_s12  ;;  %5964 = vmatmul.msk.f32.vlgmr.msra.gmra.mxu0 %vm888_vm1, %v8641_v49 }
0x13e3   :  { %5973 = vmatpush.xpose.msk.msra.mxu0 %vm888_vm1, %v8636_v39 }
0x13ea   :  { %3652 = vrot.lane.b32.xlu2 %v8641_v49, %s7533_s22  ;;  %5968 = vmatmul.msk.f32.vlgmr.msrb.gmra.mxu0 %vm888_vm1, %v3469_v50 }
0x13eb   :  { %5979 = vmatpush.xpose.msk.msrb.mxu0 %vm888_vm1, %v8628_v38 }
0x13f2   :  { %3808 = vrot.lane.b32.xlu2 %v8641_v49, %s7531_s17  ;;  %5974 = vmatmul.msk.f32.vlgmr.msra.gmra.mxu0 %vm888_vm1, %v3625_v10 }
0x13fa   :  { %5980 = vmatmul.msk.f32.vlgmr.msrb.gmra.mxu0 %vm888_vm1, %v3781_v27 }
0x140e   :  { %v3388_v52 = vpop.xlane.xlu1 %3387 }
0x140f   :  { %6314 = vrcp.f32 %v3388_v52  ;;  %v3403_v25 = vand.u32 2147483648, %v3388_v52  ;;  %v3401_v14 = vand.u32 2147483647, %v3388_v52  ;;  %vm3397_vm5 = vweird.f32 %v3388_v52 }
0x1411   :  { %v3404_v46 = vor.u32 1.1754944e-38, %v3403_v25  ;;  %vm3402_vm9 = vcmp.eq.f32.partialorder %v3401_v14, 8.507059e+37 }
0x1415   :  { %v6315_v54 = vpop.eup %6314 }
0x1416   :  { %v3393_v55 = vmul.f32 %v6315_v54, %v3388_v52  ;;  %vm3398_vm3 = vweird.f32 %v6315_v54 }
0x1417   :  { %vm3399_vm8 = vmor %vm3397_vm5, %vm3398_vm3 }
0x1418   :  { %v3394_v2 = vsub.f32 1.0, %v3393_v55 }
0x141a   :  { %v3395_v58 = vmul.f32 %v6315_v54, %v3394_v2 }
0x141c   :  { %v3396_v59 = vadd.f32 %v6315_v54, %v3395_v58 }
0x141e   :  { %v3400_v0 = vsel %vm3399_vm8, %v6315_v54, %v3396_v59 }
0x141f   :  { %v3405_v63 = vsel %vm3402_vm9, %v3404_v46, %v3400_v0 }
0x1420   :  { %v3420_v1 = vmul.f32 %v6311_v40, %v3405_v63 }
0x1422   :  { %5965 = vmatmul.msk.f32.vlgmr.msrb.gmra.mxu1 %vm888_vm1, %v3420_v1 }
0x1423   :  { %5975 = vmatpush.xpose.msk.msrb.mxu1 %vm888_vm1, %v8658_v3 }
0x143c   :  { %v3497_v4 = vpop.permute.xlu2 %3496 }
0x143d   :  { %5970 = vmatmul.msk.f32.vlgmr.msra.gmra.mxu1 %vm888_vm1, %v3497_v4 }
0x143e   :  { %5981 = vmatpush.xpose.msk.msra.mxu1 %vm888_vm1, %v8663_v37 }
0x1444   :  { %v3653_v34 = vpop.permute.xlu2 %3652 }
0x1445   :  { %5976 = vmatmul.msk.f32.vlgmr.msrb.gmra.mxu1 %vm888_vm1, %v3653_v34 }
0x144c   :  { %v3809_v15 = vpop.permute.xlu2 %3808 }
0x144d   :  { %5982 = vmatmul.msk.f32.vlgmr.msra.gmra.mxu1 %vm888_vm1, %v3809_v15 }
0x145f   :  { %v3367_v18 = vpop.f32.mrf.mxu0 }
0x1460   :  { %v3371_v24 = vsel %vm864_vm15, -1e+20, %v3367_v18 }
0x1461   :  { %v3373_v13 = vmul.f32 0.35355338, %v3371_v24 }
0x1463   :  { %v3377_v57 = vsel %vm888_vm1, %v3373_v13, -inf }
0x1467   :  { %v3493_v28 = vpop.f32.mrf.mxu0 }
0x1468   :  { %v3524_v51 = vsel %vm864_vm15, -1e+20, %v3493_v28 }
0x1469   :  { %v3526_v6 = vmul.f32 0.35355338, %v3524_v51 }
0x146b   :  { %v3528_v7 = vsel %vm888_vm1, %v3526_v6, -inf }
0x146c   :  { %3529 = vmax.xlane.f32.xlu0 %v3528_v7 }
0x146f   :  { %v3649_v9 = vpop.f32.mrf.mxu0 }
0x1470   :  { %v3680_v19 = vsel %vm864_vm15, -1e+20, %v3649_v9 }
0x1471   :  { %v3682_v5 = vmul.f32 0.35355338, %v3680_v19 }
0x1473   :  { %v3684_v56 = vsel %vm888_vm1, %v3682_v5, -inf }
0x1474   :  { %3685 = vmax.xlane.f32.xlu2 %v3684_v56 }
0x1477   :  { %v3805_v21 = vpop.f32.mrf.mxu0 }
0x1478   :  { %v3836_v22 = vsel %vm864_vm15, -1e+20, %v3805_v21 }
0x1479   :  { %v3838_v62 = vmul.f32 0.35355338, %v3836_v22 }
0x147b   :  { %v3840_v20 = vsel %vm888_vm1, %v3838_v62, -inf }
0x147c   :  { %3841 = vmax.xlane.f32.xlu1 %v3840_v20 }
0x1484   :  { %3378 = vmax.xlane.f32.xlu1 %v3377_v57 }
0x149f   :  { %v8682_v53 = vpop.f32.mrf.mxu1 }
0x14ba   :  { %v3521_v26 = vpop.f32.mrf.mxu1 }
0x14bb   :  { %v3525_v29 = vsel %vm864_vm15, -1e+20, %v3521_v26 }
0x14bc   :  { %v3527_v30 = vmul.f32 0.35355338, %v3525_v29 }
0x14be   :  { %v3531_v40 = vsel %vm888_vm1, %v3527_v30, -inf }
0x14bf   :  { %3532 = vmax.xlane.f32.xlu1 %v3531_v40 }
0x14c2   :  { %v3677_v32 = vpop.f32.mrf.mxu1 }
0x14c3   :  { %v3681_v10 = vsel %vm864_vm15, -1e+20, %v3677_v32 }
0x14c4   :  { %v3683_v33 = vmul.f32 0.35355338, %v3681_v10 }
0x14c6   :  { %v3687_v35 = vsel %vm888_vm1, %v3683_v33, -inf }
0x14c7   :  { %3688 = vmax.xlane.f32.xlu1 %v3687_v35 }
0x14ca   :  { %v3833_v61 = vpop.f32.mrf.mxu1 }
0x14cb   :  { %v3837_v41 = vsel %vm864_vm15, -1e+20, %v3833_v61 }
0x14cc   :  { %v3839_v43 = vmul.f32 0.35355338, %v3837_v41 }
0x14ce   :  { %v3843_v11 = vsel %vm888_vm1, %v3839_v43, -inf }
0x14cf   :  { %3844 = vmax.xlane.f32.xlu0 %v3843_v11 }
0x14df   :  { %v3530_v60 = vpop.xlane.xlu0 %3529 }
0x14e0   :  { %v3534_v36 = vsub.f32 %v3526_v6, %v3530_v60 }
0x14e2   :  { %v3536_v47 = vmul.f32 1.442695, %v3534_v36 }
0x14e4   :  { %6316 = vpow2.f32 %v3536_v47 }
0x14e7   :  { %v3686_v16 = vpop.xlane.xlu2 %3685 }
0x14e8   :  { %v3690_v8 = vsub.f32 %v3682_v5, %v3686_v16 }
0x14ea   :  { %v8693_v48 = vpop.eup %6316  ;;  %v3692_v50 = vmul.f32 1.442695, %v3690_v8 }
0x14eb   :  { %v3540_v27 = vsel %vm888_vm1, %v8693_v48, 0.0 }
0x14ec   :  { %6318 = vpow2.f32 %v3692_v50  ;;  %3541 = vadd.xlane.f32.xlu1 %v3540_v27 }
0x14ef   :  { %v3842_v52 = vpop.xlane.xlu1 %3841 }
0x14f0   :  { %v3846_v54 = vsub.f32 %v3838_v62, %v3842_v52 }
0x14f2   :  { %v8697_v55 = vpop.eup %6318  ;;  %v3848_v2 = vmul.f32 1.442695, %v3846_v54 }
0x14f3   :  { %v3696_v25 = vsel %vm888_vm1, %v8697_v55, 0.0 }
0x14f4   :  { %6320 = vpow2.f32 %v3848_v2  ;;  %3697 = vadd.xlane.f32.xlu2 %v3696_v25 }
0x14f7   :  { %v3379_v58 = vpop.xlane.xlu1 %3378 }
0x14f8   :  { %v3381_v14 = vsub.f32 %v3373_v13, %v3379_v58 }
0x14fa   :  { %v8701_v59 = vpop.eup %6320  ;;  %v3384_v46 = vmul.f32 1.442695, %v3381_v14 }
0x14fb   :  { %v3852_v0 = vsel %vm888_vm1, %v8701_v59, 0.0 }
0x14fc   :  { %6322 = vpow2.f32 %v3384_v46  ;;  %3853 = vadd.xlane.f32.xlu1 %v3852_v0 }
0x1502   :  { %v8705_v63 = vpop.eup %6322 }
0x1503   :  { %v3389_v1 = vsel %vm888_vm1, %v8705_v63, 0.0 }
0x1504   :  { %3390 = vadd.xlane.f32.xlu0 %v3389_v1 }
0x1532   :  { %v3533_v4 = vpop.xlane.xlu1 %3532 }
0x1533   :  { %v3535_v34 = vsub.f32 %v3527_v30, %v3533_v4 }
0x1535   :  { %v3538_v15 = vmul.f32 1.442695, %v3535_v34 }
0x1537   :  { %6324 = vpow2.f32 %v3538_v15 }
0x153a   :  { %v3689_v18 = vpop.xlane.xlu1 %3688 }
0x153b   :  { %v3691_v28 = vsub.f32 %v3683_v33, %v3689_v18 }
0x153d   :  { %v8709_v51 = vpop.eup %6324  ;;  %v3694_v6 = vmul.f32 1.442695, %v3691_v28 }
0x153e   :  { %v3543_v7 = vsel %vm888_vm1, %v8709_v51, 0.0 }
0x153f   :  { %6326 = vpow2.f32 %v3694_v6  ;;  %3544 = vadd.xlane.f32.xlu2 %v3543_v7 }
0x1542   :  { %v3845_v9 = vpop.xlane.xlu0 %3844 }
0x1543   :  { %v3847_v19 = vsub.f32 %v3839_v43, %v3845_v9 }
0x1545   :  { %v8713_v5 = vpop.eup %6326  ;;  %v3850_v56 = vmul.f32 1.442695, %v3847_v19 }
0x1546   :  { %v3699_v21 = vsel %vm888_vm1, %v8713_v5, 0.0 }
0x1547   :  { %6328 = vpow2.f32 %v3850_v56  ;;  %3700 = vadd.xlane.f32.xlu1 %v3699_v21 }
0x154d   :  { %v8717_v22 = vpop.eup %6328 }
0x154e   :  { %v3855_v62 = vsel %vm888_vm1, %v8717_v22, 0.0 }
0x154f   :  { %3856 = vadd.xlane.f32.xlu0 %v3855_v62 }
0x155f   :  { %v3542_v20 = vpop.xlane.xlu1 %3541 }
0x1560   :  { %6330 = vrcp.f32 %v3542_v20  ;;  %v3557_v29 = vand.u32 2147483648, %v3542_v20  ;;  %v3555_v40 = vand.u32 2147483647, %v3542_v20  ;;  %vm3551_vm10 = vweird.f32 %v3542_v20 }
0x1562   :  { %v3558_v33 = vor.u32 1.1754944e-38, %v3557_v29  ;;  %vm3556_vm12 = vcmp.eq.f32.partialorder %v3555_v40, 8.507059e+37 }
0x1566   :  { %v6331_v24 = vpop.eup %6330 }
0x1567   :  { %v3547_v13 = vmul.f32 %v6331_v24, %v3542_v20  ;;  %v3698_v57 = vpop.xlane.xlu2 %3697  ;;  %vm3552_vm2 = vweird.f32 %v6331_v24 }
0x1568   :  { %6332 = vrcp.f32 %v3698_v57  ;;  %vm3553_vm11 = vmor %vm3551_vm10, %vm3552_vm2  ;;  %v3713_v36 = vand.u32 2147483648, %v3698_v57  ;;  %v3711_v16 = vand.u32 2147483647, %v3698_v57  ;;  %vm3707_vm14 = vweird.f32 %v3698_v57 }
0x1569   :  { %v3548_v26 = vsub.f32 1.0, %v3547_v13 }
0x156a   :  { %v3714_v27 = vor.u32 1.1754944e-38, %v3713_v36  ;;  %vm3712_vm5 = vcmp.eq.f32.partialorder %v3711_v16, 8.507059e+37 }
0x156b   :  { %v3549_v30 = vmul.f32 %v6331_v24, %v3548_v26 }
0x156d   :  { %v3550_v32 = vadd.f32 %v6331_v24, %v3549_v30 }
0x156e   :  { %v6333_v10 = vpop.eup %6332 }
0x156f   :  { %v3554_v35 = vsel %vm3553_vm11, %v6331_v24, %v3550_v32  ;;  %v3703_v61 = vmul.f32 %v6333_v10, %v3698_v57  ;;  %v3854_v41 = vpop.xlane.xlu1 %3853  ;;  %vm3708_vm13 = vweird.f32 %v6333_v10 }
0x1570   :  { %v3559_v43 = vsel %vm3556_vm12, %v3558_v33, %v3554_v35  ;;  %6334 = vrcp.f32 %v3854_v41  ;;  %vm3709_vm3 = vmor %vm3707_vm14, %vm3708_vm13  ;;  %v3869_v14 = vand.u32 2147483648, %v3854_v41  ;;  %v3867_v0 = vand.u32 2147483647, %v3854_v41 }
0x1571   :  { %v3704_v11 = vsub.f32 1.0, %v3703_v61  ;;  %v3574_v60 = vmul.f32 %v8693_v48, %v3559_v43  ;;  %vm3863_vm9 = vweird.f32 %v3854_v41 }
0x1572   :  { %v3870_v34 = vor.u32 1.1754944e-38, %v3869_v14  ;;  %vm3868_vm10 = vcmp.eq.f32.partialorder %v3867_v0, 8.507059e+37 }
0x1573   :  { %v3705_v47 = vmul.f32 %v6333_v10, %v3704_v11  ;;  %5971 = vmatmul.msk.f32.vlgmr.msrb.gmra.mxu2 %vm888_vm1, %v3574_v60 }
0x1574   :  { %3907 = vmatpush.msrb.mxu2 %v8628_v38 }
0x1575   :  { %v3706_v8 = vadd.f32 %v6333_v10, %v3705_v47 }
0x1576   :  { %v6335_v50 = vpop.eup %6334 }
0x1577   :  { %v3710_v52 = vsel %vm3709_vm3, %v6333_v10, %v3706_v8  ;;  %v3859_v54 = vmul.f32 %v6335_v50, %v3854_v41  ;;  %v3391_v2 = vpop.xlane.xlu0 %3390  ;;  %vm3864_vm8 = vweird.f32 %v6335_v50 }
0x1578   :  { %v3715_v25 = vsel %vm3712_vm5, %v3714_v27, %v3710_v52  ;;  %6336 = vrcp.f32 %v3391_v2  ;;  %vm3865_vm2 = vmor %vm3863_vm9, %vm3864_vm8  ;;  %v3417_v9 = vand.u32 2147483648, %v3391_v2  ;;  %v3415_v19 = vand.u32 2147483647, %v3391_v2 }
0x1579   :  { %v3860_v48 = vsub.f32 1.0, %v3859_v54  ;;  %v3730_v58 = vmul.f32 %v8697_v55, %v3715_v25  ;;  %vm3411_vm12 = vweird.f32 %v3391_v2 }
0x157a   :  { %v3418_v21 = vor.u32 1.1754944e-38, %v3417_v9  ;;  %vm3416_vm14 = vcmp.eq.f32.partialorder %v3415_v19, 8.507059e+37  ;;  %v2589_v9 = vld [vmem:[%s9243_s6 + $0x10] sm:$0xff] }
0x157b   :  { %v3861_v46 = vmul.f32 %v6335_v50, %v3860_v48  ;;  %5977 = vmatmul.msk.f32.vlgmr.msra.gmra.mxu2 %vm888_vm1, %v3730_v58 }
0x157d   :  { %v3862_v1 = vadd.f32 %v6335_v50, %v3861_v46 }
0x157e   :  { %v6337_v4 = vpop.eup %6336 }
0x157f   :  { %v3866_v15 = vsel %vm3865_vm2, %v6335_v50, %v3862_v1  ;;  %v3407_v18 = vmul.f32 %v6337_v4, %v3391_v2  ;;  %vm3412_vm11 = vweird.f32 %v6337_v4 }
0x1580   :  { %v3871_v28 = vsel %vm3868_vm10, %v3870_v34, %v3866_v15  ;;  %vm3413_vm13 = vmor %vm3411_vm12, %vm3412_vm11 }
0x1581   :  { %v3408_v6 = vsub.f32 1.0, %v3407_v18  ;;  %v3886_v7 = vmul.f32 %v8701_v59, %v3871_v28 }
0x1583   :  { %v3409_v55 = vmul.f32 %v6337_v4, %v3408_v6  ;;  %5983 = vmatmul.msk.f32.vlgmr.msrb.gmra.mxu2 %vm888_vm1, %v3886_v7 }
0x1585   :  { %v3410_v56 = vadd.f32 %v6337_v4, %v3409_v55  ;;  %v2588_v55 = vld [vmem:[%s9243_s6 + $0x8] sm:$0xff] }
0x1587   :  { %v3414_v62 = vsel %vm3413_vm13, %v6337_v4, %v3410_v56  ;;  %v2587_v56 = vld [vmem:[%s9243_s6] sm:$0xff] }
0x1588   :  { %v3419_v20 = vsel %vm3416_vm14, %v3418_v21, %v3414_v62 }
0x1589   :  { %v3421_v24 = vmul.f32 %v8705_v63, %v3419_v20 }
0x158b   :  { %5966 = vmatmul.msk.f32.vlgmr.msra.gmra.mxu3 %vm888_vm1, %v3421_v24 }
0x158c   :  { %3775 = vmatpush.msra.mxu3 %v8658_v3 }
0x15b2   :  { %v3545_v59 = vpop.xlane.xlu2 %3544 }
0x15b3   :  { %6338 = vrcp.f32 %v3545_v59  ;;  %v3571_v30 = vand.u32 2147483648, %v3545_v59  ;;  %v3569_v32 = vand.u32 2147483647, %v3545_v59  ;;  %vm3565_vm5 = vweird.f32 %v3545_v59 }
0x15b5   :  { %v3572_v63 = vor.u32 1.1754944e-38, %v3571_v30  ;;  %vm3570_vm9 = vcmp.eq.f32.partialorder %v3569_v32, 8.507059e+37 }
0x15b9   :  { %v6339_v13 = vpop.eup %6338 }
0x15ba   :  { %v3561_v57 = vmul.f32 %v6339_v13, %v3545_v59  ;;  %v3701_v26 = vpop.xlane.xlu1 %3700  ;;  %vm3566_vm3 = vweird.f32 %v6339_v13 }
0x15bb   :  { %6340 = vrcp.f32 %v3701_v26  ;;  %vm3567_vm8 = vmor %vm3565_vm5, %vm3566_vm3  ;;  %v3727_v36 = vand.u32 2147483648, %v3701_v26  ;;  %v3725_v16 = vand.u32 2147483647, %v3701_v26  ;;  %vm3721_vm10 = vweird.f32 %v3701_v26 }
0x15bc   :  { %v3562_v29 = vsub.f32 1.0, %v3561_v57 }
0x15bd   :  { %v3728_v27 = vor.u32 1.1754944e-38, %v3727_v36  ;;  %vm3726_vm12 = vcmp.eq.f32.partialorder %v3725_v16, 8.507059e+37 }
0x15be   :  { %v3563_v40 = vmul.f32 %v6339_v13, %v3562_v29 }
0x15c0   :  { %v3564_v10 = vadd.f32 %v6339_v13, %v3563_v40 }
0x15c1   :  { %v6341_v33 = vpop.eup %6340 }
0x15c2   :  { %v3568_v35 = vsel %vm3567_vm8, %v6339_v13, %v3564_v10  ;;  %v3717_v61 = vmul.f32 %v6341_v33, %v3701_v26  ;;  %v3857_v41 = vpop.xlane.xlu0 %3856  ;;  %vm3722_vm2 = vweird.f32 %v6341_v33  ;;  %v6176_v10 = vld [vmem:[#allocation35] ss:$0 sm:$0xff] }
0x15c3   :  { %v3573_v43 = vsel %vm3570_vm9, %v3572_v63, %v3568_v35  ;;  %6342 = vrcp.f32 %v3857_v41  ;;  %vm3723_vm11 = vmor %vm3721_vm10, %vm3722_vm2  ;;  %v3883_v48 = vand.u32 2147483648, %v3857_v41  ;;  %v3881_v14 = vand.u32 2147483647, %v3857_v41 }
0x15c4   :  { %v3718_v11 = vsub.f32 1.0, %v3717_v61  ;;  %v3575_v60 = vmul.f32 %v8709_v51, %v3573_v43  ;;  %vm3877_vm14 = vweird.f32 %v3857_v41 }
0x15c5   :  { %v3884_v0 = vor.u32 1.1754944e-38, %v3883_v48  ;;  %vm3882_vm5 = vcmp.eq.f32.partialorder %v3881_v14, 8.507059e+37 }
0x15c6   :  { %v3719_v47 = vmul.f32 %v6341_v33, %v3718_v11  ;;  %5972 = vmatmul.msk.f32.vlgmr.msrb.gmra.mxu3 %vm888_vm1, %v3575_v60 }
0x15c7   :  { %3931 = vmatpush.msrb.mxu3 %v8663_v37 }
0x15c8   :  { %v3720_v8 = vadd.f32 %v6341_v33, %v3719_v47 }
0x15c9   :  { %v6343_v50 = vpop.eup %6342 }
0x15ca   :  { %v3724_v52 = vsel %vm3723_vm11, %v6341_v33, %v3720_v8  ;;  %v3873_v54 = vmul.f32 %v6343_v50, %v3857_v41  ;;  %vm3878_vm13 = vweird.f32 %v6343_v50 }
0x15cb   :  { %v3729_v2 = vsel %vm3726_vm12, %v3728_v27, %v3724_v52  ;;  %vm3879_vm3 = vmor %vm3877_vm14, %vm3878_vm13 }
0x15cc   :  { %v3874_v25 = vsub.f32 1.0, %v3873_v54  ;;  %v3731_v51 = vmul.f32 %v8713_v5, %v3729_v2  ;;  %v2597_v54 = vld [vmem:[%s9244_s20 + $0x18] sm:$0xff]  ;;  %v2596_v2 = vld [vmem:[%s9244_s20 + $0x10] sm:$0xff] }
0x15cd   :  { %4075 = vmatpush.msrb.mxu1 %v2597_v54 }
0x15ce   :  { %v3875_v58 = vmul.f32 %v6343_v50, %v3874_v25  ;;  %5978 = vmatmul.msk.f32.vlgmr.msra.gmra.mxu3 %vm888_vm1, %v3731_v51  ;;  %v2595_v25 = vld [vmem:[%s9244_s20 + $0x8] sm:$0xff]  ;;  %v2594_v51 = vld [vmem:[%s9244_s20] sm:$0xff] }
0x15cf   :  { %4076 = vmatpush.msrb.mxu1 %v2596_v2 }
0x15d0   :  { %v3876_v46 = vadd.f32 %v6343_v50, %v3875_v58 }
0x15d1   :  { %4077 = vmatpush.msrb.mxu1 %v2595_v25 }
0x15d2   :  { %v3880_v1 = vsel %vm3879_vm3, %v6343_v50, %v3876_v46 }
0x15d3   :  { %v3885_v4 = vsel %vm3882_vm5, %v3884_v0, %v3880_v1  ;;  %4078 = vmatpush.msrb.mxu1 %v2594_v51 }
0x15d4   :  { %v3887_v34 = vmul.f32 %v8717_v22, %v3885_v4  ;;  %v2590_v22 = vld [vmem:[%s9243_s6 + $0x18] sm:$0xff] }
0x15d5   :  { %3987 = vmatpush.msra.mxu0 %v2590_v22 }
0x15d6   :  { %5984 = vmatmul.msk.f32.vlgmr.msrb.gmra.mxu3 %vm888_vm1, %v3887_v34 }
0x15d7   :  { %3988 = vmatpush.msra.mxu0 %v2589_v9  ;;  %v2606_v9 = vld [vmem:[%s9245_s13 + $0x38] sm:$0xff] }
0x15d8   :  { %4105 = vmatpush.msra.mxu2 %v2606_v9 }
0x15d9   :  { %3989 = vmatpush.msra.mxu0 %v2588_v55  ;;  %v2605_v55 = vld [vmem:[%s9245_s13 + $0x30] sm:$0xff] }
0x15da   :  { %4106 = vmatpush.msra.mxu2 %v2605_v55 }
0x15db   :  { %3990 = vmatpush.msra.mxu0 %v2587_v56 }
0x15f6   :  { %v3597_v5 = vpop.f32.mrf.mxu2 }
0x15f7   :  { %3938 = vrot.lane.b32.xlu2 %v3597_v5, %s7492_s16 }
0x15fe   :  { %v3753_v15 = vpop.f32.mrf.mxu2 }
0x15ff   :  { %3946 = vrot.lane.b32.xlu1 %v3753_v15, %s7534_s23  ;;  %v6177_v15 = vld [vmem:[#allocation37] ss:$0 sm:$0xff] }
0x1606   :  { %v3909_v18 = vpop.f32.mrf.mxu2 }
0x1607   :  { %3954 = vrot.lane.b32.xlu0 %v3909_v18, %s7535_s8 }
0x160e   :  { %v3465_v28 = vpop.f32.mrf.mxu3 }
0x1649   :  { %v3621_v6 = vpop.f32.mrf.mxu3 }
0x164a   :  { %3940 = vrot.lane.b32.xlu2 %v3621_v6, %s7492_s16  ;;  %v6178_v6 = vld [vmem:[#allocation38] ss:$0 sm:$0xff] }
0x1651   :  { %v3777_v7 = vpop.f32.mrf.mxu3  ;;  %v3939_v21 = vpop.permute.xlu2 %3938 }
0x1652   :  { %3948 = vrot.lane.b32.xlu0 %v3777_v7, %s7534_s23  ;;  %v3960_v20 = vsel %vm888_vm1, %v8682_v53, %v3939_v21 }
0x1659   :  { %v3933_v19 = vpop.f32.mrf.mxu3 }
0x165a   :  { %3956 = vrot.lane.b32.xlu1 %v3933_v19, %s7535_s8  ;;  %v2604_v19 = vld [vmem:[%s9245_s13 + $0x28] sm:$0xff] }
0x165b   :  { %4107 = vmatpush.msra.mxu2 %v2604_v19  ;;  %v6181_v19 = vld [vmem:[#allocation43] ss:$0 sm:$0xff] }
0x1671   :  { %v3947_v62 = vpop.permute.xlu1 %3946 }
0x1672   :  { %v3962_v24 = vsel %vm793_vm0, %v3960_v20, %v3947_v62  ;;  %v2603_v62 = vld [vmem:[%s9245_s13 + $0x20] sm:$0xff] }
0x1673   :  { %4108 = vmatpush.msra.mxu2 %v2603_v62 }
0x1679   :  { %v3955_v59 = vpop.permute.xlu0 %3954 }
0x167a   :  { %v3964_v13 = vsel %vm1507_vm6, %v3962_v24, %v3955_v59  ;;  %v2602_v24 = vld [vmem:[%s9245_s13 + $0x18] sm:$0xff] }
0x167b   :  { %5985 = vmatmul.msk.f32.vlgmr.msra.gmra.mxu0 %vm1513_vm7, %v3964_v13  ;;  %4109 = vmatpush.msra.mxu2 %v2602_v24 }
0x16a4   :  { %v3941_v57 = vpop.permute.xlu2 %3940 }
0x16a5   :  { %v3961_v29 = vsel %vm888_vm1, %v3465_v28, %v3941_v57 }
0x16c4   :  { %v3949_v26 = vpop.permute.xlu0 %3948 }
0x16c5   :  { %v3963_v30 = vsel %vm793_vm0, %v3961_v29, %v3949_v26 }
0x16cc   :  { %v3957_v40 = vpop.permute.xlu1 %3956 }
0x16cd   :  { %v3965_v32 = vsel %vm1507_vm6, %v3963_v30, %v3957_v40 }
0x16ce   :  { %5986 = vmatmul.msk.f32.gmra.mxu0 %vm1513_vm7, %v3965_v32 }
0x16f8   :  { %v3992_v53 = vpop.f32.mrf.mxu0 }
0x16f9   :  { %v3993_v33 = vadd.f32 %v6176_v10, %v3992_v53 }
0x16fb   :  { %v3998_v63 = vadd.f32 %v3993_v33, %v8585_v12  ;;  %v2601_v33 = vld [vmem:[%s9245_s13 + $0x10] sm:$0xff] }
0x16fc   :  { %4110 = vmatpush.msra.mxu2 %v2601_v33 }
0x16fd   :  { %v4000_v35 = vsel %vm1513_vm7, %v3998_v63, 0.0 }
0x16fe   :  { %4001 = vadd.xlane.f32.xlu2 %v4000_v35  ;;  %v2599_v35 = vld [vmem:[%s9245_s13] sm:$0xff] }
0x174b   :  { %v3995_v61 = vpop.f32.mrf.mxu0 }
0x174c   :  { %v3996_v41 = vadd.f32 %v6176_v10, %v3995_v61  ;;  %v6179_v61 = vld [vmem:[#allocation40] ss:$0 sm:$0xff] }
0x174e   :  { %v3999_v43 = vadd.f32 %v3996_v41, %v8641_v49 }
0x1750   :  { %v4003_v11 = vsel %vm1513_vm7, %v3999_v43, 0.0 }
0x1751   :  { %4004 = vadd.xlane.f32.xlu0 %v4003_v11 }
0x1771   :  { %v4002_v60 = vpop.xlane.xlu2 %4001 }
0x1772   :  { %v4006_v36 = vmul.f32 %v4002_v60, %v8149_v44 }
0x1774   :  { %v4008_v47 = vsub.f32 %v3998_v63, %v4006_v36  ;;  %v2600_v63 = vld [vmem:[%s9245_s13 + $0x8] sm:$0xff] }
0x1775   :  { %4111 = vmatpush.msra.mxu2 %v2600_v63 }
0x1776   :  { %v4010_v16 = vmul.f32 %v4008_v47, %v4008_v47 }
0x1777   :  { %4112 = vmatpush.msra.mxu2 %v2599_v35 }
0x1778   :  { %v4012_v12 = vsel %vm1513_vm7, %v4010_v16, 0.0  ;;  %v6180_v16 = vld [vmem:[#allocation41] ss:$0 sm:$0xff] }
0x1779   :  { %4013 = vadd.xlane.f32.xlu1 %v4012_v12 }
0x17c4   :  { %v4005_v8 = vpop.xlane.xlu0 %4004 }
0x17c5   :  { %v4007_v50 = vmul.f32 %v4005_v8, %v8149_v44 }
0x17c7   :  { %v4009_v27 = vsub.f32 %v3999_v43, %v4007_v50 }
0x17c9   :  { %v4011_v52 = vmul.f32 %v4009_v27, %v4009_v27 }
0x17cb   :  { %v4015_v49 = vsel %vm1513_vm7, %v4011_v52, 0.0 }
0x17cc   :  { %4016 = vadd.xlane.f32.xlu2 %v4015_v49 }
0x17ec   :  { %v4014_v48 = vpop.xlane.xlu1 %4013 }
0x17ed   :  { %v4018_v58 = vmul.f32 %v4014_v48, %v8149_v44 }
0x17ef   :  { %v4020_v14 = vadd.f32 1e-05, %v4018_v58 }
0x17f1   :  { %6344 = vrsqrt.f32 %v4020_v14  ;;  %vm4028_vm9 = vweird.f32 %v4020_v14 }
0x17f7   :  { %v6345_v46 = vpop.eup %6344 }
0x17f8   :  { %v4023_v0 = vmul.f32 %v6345_v46, %v4020_v14  ;;  %vm4029_vm8 = vweird.f32 %v6345_v46 }
0x17f9   :  { %vm4030_vm2 = vmor %vm4028_vm9, %vm4029_vm8 }
0x17fa   :  { %v4024_v1 = vmul.f32 %v6345_v46, %v4023_v0 }
0x17fc   :  { %v4025_v4 = vmul.f32 0.5, %v4024_v1 }
0x17fe   :  { %v4026_v34 = vsub.f32 1.5, %v4025_v4 }
0x1800   :  { %v4027_v5 = vmul.f32 %v6345_v46, %v4026_v34 }
0x1802   :  { %v4031_v18 = vsel %vm4030_vm2, %v6345_v46, %v4027_v5 }
0x1803   :  { %v4042_v28 = vmul.f32 %v4031_v18, %v4008_v47 }
0x1805   :  { %v4047_v7 = vmul.f32 %v6177_v15, %v4042_v28 }
0x1807   :  { %v4052_v22 = vadd.f32 %v6178_v6, %v4047_v7 }
0x1809   :  { %5987 = vmatmul.msk.f32.vlgmr.msrb.gmra.mxu1 %vm1513_vm7, %v4052_v22 }
0x183f   :  { %v4017_v56 = vpop.xlane.xlu2 %4016 }
0x1840   :  { %v4019_v21 = vmul.f32 %v4017_v56, %v8149_v44 }
0x1842   :  { %v4021_v20 = vadd.f32 1e-05, %v4019_v21  ;;  %v6182_v21 = vld [vmem:[#allocation44] ss:$0 sm:$0xff] }
0x1844   :  { %6346 = vrsqrt.f32 %v4021_v20  ;;  %vm4038_vm11 = vweird.f32 %v4021_v20 }
0x184a   :  { %v6347_v59 = vpop.eup %6346 }
0x184b   :  { %v4033_v13 = vmul.f32 %v6347_v59, %v4021_v20  ;;  %vm4039_vm10 = vweird.f32 %v6347_v59 }
0x184c   :  { %vm4040_vm12 = vmor %vm4038_vm11, %vm4039_vm10 }
0x184d   :  { %v4034_v57 = vmul.f32 %v6347_v59, %v4033_v13 }
0x184f   :  { %v4035_v26 = vmul.f32 0.5, %v4034_v57 }
0x1851   :  { %v4036_v29 = vsub.f32 1.5, %v4035_v26 }
0x1853   :  { %v4037_v30 = vmul.f32 %v6347_v59, %v4036_v29 }
0x1855   :  { %v4041_v40 = vsel %vm4040_vm12, %v6347_v59, %v4037_v30 }
0x1856   :  { %v4043_v32 = vmul.f32 %v4041_v40, %v4009_v27 }
0x1858   :  { %v4048_v10 = vmul.f32 %v6177_v15, %v4043_v32 }
0x185a   :  { %v4053_v53 = vadd.f32 %v6178_v6, %v4048_v10 }
0x185c   :  { %5988 = vmatmul.msk.f32.gmra.mxu1 %vm1513_vm7, %v4053_v53 }
0x1886   :  { %v4080_v41 = vpop.f32.mrf.mxu1 }
0x1887   :  { %v4081_v43 = vadd.f32 %v6179_v61, %v4080_v41 }
0x1889   :  { %v4086_v11 = vmax.f32 %v4081_v43, 0.0 }
0x188b   :  { %5989 = vmatmul.msk.f32.vlgmr.msra.gmra.mxu2 %vm1643_vm4, %v4086_v11  ;;  %v4179_v11 = vld [vmem:[%s9246_s0 + $0x18] sm:$0xff] }
0x18d9   :  { %v4083_v60 = vpop.f32.mrf.mxu1 }
0x18da   :  { %v4084_v36 = vadd.f32 %v6179_v61, %v4083_v60  ;;  %v4178_v60 = vld [vmem:[%s9246_s0 + $0x10] sm:$0xff] }
0x18dc   :  { %v4087_v47 = vmax.f32 %v4084_v36, 0.0  ;;  %v4177_v36 = vld [vmem:[%s9246_s0 + $0x8] sm:$0xff] }
0x18de   :  { %5990 = vmatmul.msk.f32.gmra.mxu2 %vm1643_vm4, %v4087_v47  ;;  %v4176_v47 = vld [vmem:[%s9246_s0] sm:$0xff] }
0x190e   :  { %v4114_v12 = vpop.f32.mrf.mxu2 }
0x190f   :  { %v4115_v8 = vadd.f32 %v6180_v16, %v4114_v12 }
0x1911   :  { %v4120_v50 = vadd.f32 %v4115_v8, %v4052_v22 }
0x1913   :  { %v4122_v27 = vsel %vm1513_vm7, %v4120_v50, 0.0 }
0x1914   :  { %4123 = vadd.xlane.f32.xlu0 %v4122_v27 }
0x1961   :  { %v4117_v52 = vpop.f32.mrf.mxu2 }
0x1962   :  { %v4118_v49 = vadd.f32 %v6180_v16, %v4117_v52 }
0x1964   :  { %v4121_v54 = vadd.f32 %v4118_v49, %v4053_v53 }
0x1966   :  { %v4125_v2 = vsel %vm1513_vm7, %v4121_v54, 0.0 }
0x1967   :  { %4126 = vadd.xlane.f32.xlu1 %v4125_v2 }
0x1987   :  { %v4124_v25 = vpop.xlane.xlu0 %4123 }
0x1988   :  { %v4128_v51 = vmul.f32 %v4124_v25, %v8149_v44 }
0x198a   :  { %v4130_v48 = vsub.f32 %v4120_v50, %v4128_v51 }
0x198c   :  { %v4132_v58 = vmul.f32 %v4130_v48, %v4130_v48 }
0x198e   :  { %v4134_v14 = vsel %vm1513_vm7, %v4132_v58, 0.0 }
0x198f   :  { %4135 = vadd.xlane.f32.xlu2 %v4134_v14 }
0x19da   :  { %v4127_v46 = vpop.xlane.xlu1 %4126 }
0x19db   :  { %v4129_v0 = vmul.f32 %v4127_v46, %v8149_v44 }
0x19dd   :  { %v4131_v1 = vsub.f32 %v4121_v54, %v4129_v0 }
0x19df   :  { %v4133_v4 = vmul.f32 %v4131_v1, %v4131_v1 }
0x19e1   :  { %v4137_v34 = vsel %vm1513_vm7, %v4133_v4, 0.0 }
0x19e2   :  { %4138 = vadd.xlane.f32.xlu0 %v4137_v34 }
0x1a02   :  { %v4136_v5 = vpop.xlane.xlu2 %4135 }
0x1a03   :  { %v4140_v15 = vmul.f32 %v4136_v5, %v8149_v44 }
0x1a05   :  { %v4142_v18 = vadd.f32 1e-05, %v4140_v15 }
0x1a07   :  { %6348 = vrsqrt.f32 %v4142_v18  ;;  %vm4150_vm14 = vweird.f32 %v4142_v18 }
0x1a0d   :  { %v6349_v28 = vpop.eup %6348 }
0x1a0e   :  { %v4145_v6 = vmul.f32 %v6349_v28, %v4142_v18  ;;  %vm4151_vm13 = vweird.f32 %v6349_v28 }
0x1a0f   :  { %vm4152_vm3 = vmor %vm4150_vm14, %vm4151_vm13 }
0x1a10   :  { %v4146_v7 = vmul.f32 %v6349_v28, %v4145_v6 }
0x1a12   :  { %v4147_v22 = vmul.f32 0.5, %v4146_v7 }
0x1a14   :  { %v4148_v9 = vsub.f32 1.5, %v4147_v22 }
0x1a16   :  { %v4149_v55 = vmul.f32 %v6349_v28, %v4148_v9 }
0x1a18   :  { %v4153_v56 = vsel %vm4152_vm3, %v6349_v28, %v4149_v55 }
0x1a19   :  { %v4164_v62 = vmul.f32 %v4153_v56, %v4130_v48 }
0x1a1b   :  { %v4169_v20 = vmul.f32 %v6181_v19, %v4164_v62 }
0x1a1d   :  { %v8790_v24 = vadd.f32 %v6182_v21, %v4169_v20 }
0x1a1f   :  { %4646 = vrot.lane.b32.xlu0 %v8790_v24, %s7531_s17  ;;  %4498 = vrot.lane.b32.xlu2 %v8790_v24, %s7533_s22 }
0x1a20   :  { %4350 = vrot.lane.b32.xlu1 %v8790_v24, %s7532_s12  ;;  %5991 = vmatpush.xpose.msk.msra.mxu3 %vm888_vm1, %v8790_v24 }
0x1a21   :  { %4322 = vmatpush.msrb.mxu0 %v8790_v24 }
0x1a23   :  { %5992 = vmatmul.msk.f32.vlgmr.msra.gmra.mxu3 %vm888_vm1, %v8790_v24 }
0x1a55   :  { %v4139_v59 = vpop.xlane.xlu0 %4138 }
0x1a56   :  { %v4141_v13 = vmul.f32 %v4139_v59, %v8149_v44 }
0x1a58   :  { %v4143_v57 = vadd.f32 1e-05, %v4141_v13 }
0x1a5a   :  { %6350 = vrsqrt.f32 %v4143_v57  ;;  %vm4160_vm8 = vweird.f32 %v4143_v57 }
0x1a60   :  { %v6351_v26 = vpop.eup %6350 }
0x1a61   :  { %v4155_v29 = vmul.f32 %v6351_v26, %v4143_v57  ;;  %vm4161_vm5 = vweird.f32 %v6351_v26 }
0x1a62   :  { %vm4162_vm9 = vmor %vm4160_vm8, %vm4161_vm5 }
0x1a63   :  { %v4156_v30 = vmul.f32 %v6351_v26, %v4155_v29 }
0x1a65   :  { %v4157_v40 = vmul.f32 0.5, %v4156_v30 }
0x1a67   :  { %v4158_v32 = vsub.f32 1.5, %v4157_v40 }
0x1a69   :  { %v4159_v10 = vmul.f32 %v6351_v26, %v4158_v32 }
0x1a6b   :  { %v4163_v53 = vsel %vm4162_vm9, %v6351_v26, %v4159_v10 }
0x1a6c   :  { %v4165_v33 = vmul.f32 %v4163_v53, %v4131_v1 }
0x1a6e   :  { %v4170_v63 = vmul.f32 %v6181_v19, %v4165_v33 }
0x1a70   :  { %v8804_v35 = vadd.f32 %v6182_v21, %v4170_v63 }
0x1a72   :  { %5993 = vmatpush.xpose.msk.msrb.mxu3 %vm888_vm1, %v8804_v35  ;;  %4345 = vmatpush.msra.mxu1 %v8804_v35 }
0x1a75   :  { %5994 = vmatmul.msk.f32.vlgmr.msrb.gmra.mxu3 %vm888_vm1, %v8804_v35 }
0x1a79   :  { %v8811_v41 = vpop.permute.xlu2 %4498 }
0x1a91   :  { %v8816_v43 = vpop.permute.xlu0 %4646 }
0x1a92   :  { %v4351_v61 = vpop.permute.xlu1 %4350 }
0x1a93   :  { %5997 = vmatpush.xpose.msk.msra.mxu3 %vm888_vm1, %v4351_v61  ;;  %4469 = vmatpush.msrb.mxu1 %v4351_v61 }
0x1a96   :  { %5998 = vmatmul.msk.f32.vlgmr.msra.gmra.mxu3 %vm888_vm1, %v4351_v61 }
0x1a97   :  { %6003 = vmatpush.xpose.msk.msrb.mxu3 %vm888_vm1, %v8811_v41 }
0x1a9b   :  { %6009 = vmatpush.xpose.msk.msra.mxu3 %vm888_vm1, %v8816_v43 }
0x1a9e   :  { %6004 = vmatmul.msk.f32.vlgmr.msrb.gmra.mxu3 %vm888_vm1, %v8811_v41 }
0x1a9f   :  { %4845 = vmatpush.msrb.mxu3 %v4179_v11 }
0x1aa1   :  { %4846 = vmatpush.msrb.mxu3 %v4178_v60 }
0x1aa3   :  { %4847 = vmatpush.msrb.mxu3 %v4177_v36 }
0x1aa5   :  { %4848 = vmatpush.msrb.mxu3 %v4176_v47 }
0x1aa6   :  { %v4226_v16 = vpop.f32.mrf.mxu3  ;;  %6010 = vmatmul.msk.f32.vlgmr.msra.gmra.mxu3 %vm888_vm1, %v8816_v43 }
0x1aa7   :  { %v4252_v12 = vsel %vm864_vm15, -1e+20, %v4226_v16  ;;  %5174 = vmatpush.msra.mxu3 %v8623_v31 }
0x1aa8   :  { %v4254_v8 = vmul.f32 0.35355338, %v4252_v12 }
0x1aaa   :  { %v4256_v50 = vsel %vm888_vm1, %v4254_v8, -inf }
0x1aab   :  { %4257 = vmax.xlane.f32.xlu1 %v4256_v50 }
0x1af8   :  { %v4249_v27 = vpop.f32.mrf.mxu3 }
0x1af9   :  { %v4253_v52 = vsel %vm864_vm15, -1e+20, %v4249_v27 }
0x1afa   :  { %v4255_v49 = vmul.f32 0.35355338, %v4253_v52 }
0x1afc   :  { %v4259_v54 = vsel %vm888_vm1, %v4255_v49, -inf }
0x1afd   :  { %4260 = vmax.xlane.f32.xlu0 %v4259_v54 }
0x1b19   :  { %v4371_v2 = vpop.f32.mrf.mxu3 }
0x1b1a   :  { %v4398_v25 = vsel %vm864_vm15, -1e+20, %v4371_v2 }
0x1b1b   :  { %v4400_v51 = vmul.f32 0.35355338, %v4398_v25 }
0x1b1d   :  { %v4402_v48 = vsel %vm888_vm1, %v4400_v51, -inf }
0x1b1e   :  { %v4258_v58 = vpop.xlane.xlu1 %4257  ;;  %4403 = vmax.xlane.f32.xlu2 %v4402_v48 }
0x1b1f   :  { %v4262_v14 = vsub.f32 %v4254_v8, %v4258_v58 }
0x1b21   :  { %v4264_v46 = vmul.f32 1.442695, %v4262_v14  ;;  %v4519_v0 = vpop.f32.mrf.mxu3 }
0x1b22   :  { %v4546_v1 = vsel %vm864_vm15, -1e+20, %v4519_v0 }
0x1b23   :  { %6352 = vpow2.f32 %v4264_v46  ;;  %v4548_v4 = vmul.f32 0.35355338, %v4546_v1 }
0x1b25   :  { %v4550_v34 = vsel %vm888_vm1, %v4548_v4, -inf }
0x1b26   :  { %4551 = vmax.xlane.f32.xlu2 %v4550_v34 }
0x1b29   :  { %v6353_v5 = vpop.eup %6352  ;;  %v4667_v15 = vpop.f32.mrf.mxu3 }
0x1b2a   :  { %v4694_v18 = vsel %vm864_vm15, -1e+20, %v4667_v15  ;;  %v4268_v28 = vsel %vm888_vm1, %v6353_v5, 0.0 }
0x1b2b   :  { %v4696_v6 = vmul.f32 0.35355338, %v4694_v18  ;;  %4269 = vadd.xlane.f32.xlu1 %v4268_v28 }
0x1b2d   :  { %v4698_v7 = vsel %vm888_vm1, %v4696_v6, -inf }
0x1b2e   :  { %4699 = vmax.xlane.f32.xlu0 %v4698_v7 }
0x1b3e   :  { %4522 = vrot.lane.b32.xlu2 %v8804_v35, %s7533_s22 }
0x1b44   :  { %4374 = vrot.lane.b32.xlu1 %v8804_v35, %s7532_s12 }
0x1b70   :  { %v4261_v22 = vpop.xlane.xlu0 %4260 }
0x1b71   :  { %v4263_v9 = vsub.f32 %v4255_v49, %v4261_v22 }
0x1b73   :  { %v4266_v55 = vmul.f32 1.442695, %v4263_v9 }
0x1b75   :  { %6354 = vpow2.f32 %v4266_v55 }
0x1b7b   :  { %v8850_v19 = vpop.eup %6354 }
0x1b7c   :  { %v4271_v56 = vsel %vm888_vm1, %v8850_v19, 0.0 }
0x1b7d   :  { %4272 = vadd.xlane.f32.xlu0 %v4271_v56 }
0x1b91   :  { %v4404_v21 = vpop.xlane.xlu2 %4403  ;;  %4670 = vrot.lane.b32.xlu0 %v8804_v35, %s7531_s17 }
0x1b92   :  { %v4408_v62 = vsub.f32 %v4400_v51, %v4404_v21 }
0x1b94   :  { %v4410_v20 = vmul.f32 1.442695, %v4408_v62 }
0x1b96   :  { %6356 = vpow2.f32 %v4410_v20 }
0x1b99   :  { %v4552_v59 = vpop.xlane.xlu2 %4551 }
0x1b9a   :  { %v4556_v13 = vsub.f32 %v4548_v4, %v4552_v59 }
0x1b9c   :  { %v8856_v57 = vpop.eup %6356  ;;  %v4558_v26 = vmul.f32 1.442695, %v4556_v13 }
0x1b9d   :  { %v4414_v29 = vsel %vm888_vm1, %v8856_v57, 0.0 }
0x1b9e   :  { %6358 = vpow2.f32 %v4558_v26  ;;  %v4270_v30 = vpop.xlane.xlu1 %4269  ;;  %4415 = vadd.xlane.f32.xlu2 %v4414_v29 }
0x1b9f   :  { %6360 = vrcp.f32 %v4270_v30  ;;  %v4285_v61 = vand.u32 2147483648, %v4270_v30  ;;  %v4283_v36 = vand.u32 2147483647, %v4270_v30  ;;  %vm4279_vm10 = vweird.f32 %v4270_v30 }
0x1ba1   :  { %v4700_v33 = vpop.xlane.xlu0 %4699  ;;  %v4286_v16 = vor.u32 1.1754944e-38, %v4285_v61  ;;  %vm4284_vm12 = vcmp.eq.f32.partialorder %v4283_v36, 8.507059e+37  ;;  %v4523_v54 = vpop.permute.xlu2 %4522 }
0x1ba2   :  { %v4704_v11 = vsub.f32 %v4696_v6, %v4700_v33 }
0x1ba4   :  { %v8860_v40 = vpop.eup %6358  ;;  %v4706_v12 = vmul.f32 1.442695, %v4704_v11 }
0x1ba5   :  { %v6361_v32 = vpop.eup %6360  ;;  %v4562_v10 = vsel %vm888_vm1, %v8860_v40, 0.0 }
0x1ba6   :  { %v4275_v53 = vmul.f32 %v6361_v32, %v4270_v30  ;;  %4563 = vadd.xlane.f32.xlu1 %v4562_v10  ;;  %vm4280_vm2 = vweird.f32 %v6361_v32  ;;  %6362 = vpow2.f32 %v4706_v12 }
0x1ba7   :  { %vm4281_vm11 = vmor %vm4279_vm10, %vm4280_vm2 }
0x1ba8   :  { %v4276_v63 = vsub.f32 1.0, %v4275_v53 }
0x1baa   :  { %v4277_v60 = vmul.f32 %v6361_v32, %v4276_v63 }
0x1bac   :  { %v4278_v47 = vadd.f32 %v6361_v32, %v4277_v60  ;;  %v8865_v49 = vpop.eup %6362 }
0x1bad   :  { %v4710_v2 = vsel %vm888_vm1, %v8865_v49, 0.0 }
0x1bae   :  { %v4282_v8 = vsel %vm4281_vm11, %v6361_v32, %v4278_v47 }
0x1baf   :  { %v4287_v50 = vsel %vm4284_vm12, %v4286_v16, %v4282_v8 }
0x1bb0   :  { %v4302_v27 = vmul.f32 %v6353_v5, %v4287_v50 }
0x1bb2   :  { %5995 = vmatmul.msk.f32.vlgmr.msrb.gmra.mxu0 %vm888_vm1, %v4302_v27 }
0x1bb6   :  { %v4375_v52 = vpop.permute.xlu1 %4374 }
0x1bb7   :  { %5999 = vmatpush.xpose.msk.msra.mxu0 %vm888_vm1, %v4375_v52  ;;  %4493 = vmatpush.msrb.mxu2 %v4375_v52 }
0x1bb9   :  { %4641 = vmatpush.msra.mxu2 %v4523_v54 }
0x1bba   :  { %6000 = vmatmul.msk.f32.vlgmr.msra.gmra.mxu0 %vm888_vm1, %v4375_v52 }
0x1bbb   :  { %6005 = vmatpush.xpose.msk.msrb.mxu0 %vm888_vm1, %v4523_v54  ;;  %4711 = vadd.xlane.f32.xlu0 %v4710_v2 }
0x1bc2   :  { %6006 = vmatmul.msk.f32.vlgmr.msrb.gmra.mxu0 %vm888_vm1, %v4523_v54 }
0x1bf0   :  { %v4273_v25 = vpop.xlane.xlu0 %4272 }
0x1bf1   :  { %6364 = vrcp.f32 %v4273_v25  ;;  %v4299_v14 = vand.u32 2147483648, %v4273_v25  ;;  %v4297_v0 = vand.u32 2147483647, %v4273_v25  ;;  %vm4293_vm14 = vweird.f32 %v4273_v25 }
0x1bf3   :  { %v4300_v4 = vor.u32 1.1754944e-38, %v4299_v14  ;;  %vm4298_vm5 = vcmp.eq.f32.partialorder %v4297_v0, 8.507059e+37 }
0x1bf7   :  { %v6365_v51 = vpop.eup %6364 }
0x1bf8   :  { %v4289_v48 = vmul.f32 %v6365_v51, %v4273_v25  ;;  %vm4294_vm13 = vweird.f32 %v6365_v51 }
0x1bf9   :  { %vm4295_vm3 = vmor %vm4293_vm14, %vm4294_vm13 }
0x1bfa   :  { %v4290_v58 = vsub.f32 1.0, %v4289_v48 }
0x1bfc   :  { %v4291_v46 = vmul.f32 %v6365_v51, %v4290_v58 }
0x1bfe   :  { %v4292_v1 = vadd.f32 %v6365_v51, %v4291_v46 }
0x1c00   :  { %v4296_v34 = vsel %vm4295_vm3, %v6365_v51, %v4292_v1 }
0x1c01   :  { %v4301_v5 = vsel %vm4298_vm5, %v4300_v4, %v4296_v34 }
0x1c02   :  { %v4303_v15 = vmul.f32 %v8850_v19, %v4301_v5 }
0x1c03   :  { %v8874_v18 = vpop.permute.xlu0 %4670 }
0x1c04   :  { %5996 = vmatmul.msk.f32.vlgmr.msra.gmra.mxu1 %vm888_vm1, %v4303_v15  ;;  %6011 = vmatpush.xpose.msk.msra.mxu0 %vm888_vm1, %v8874_v18 }
0x1c05   :  { %4617 = vmatpush.msra.mxu1 %v8811_v41 }
0x1c07   :  { %6012 = vmatmul.msk.f32.vlgmr.msra.gmra.mxu0 %vm888_vm1, %v8874_v18 }
0x1c08   :  { %6017 = vmatpush.xpose.msk.msrb.mxu0 %vm888_vm1, %v8574_v42 }
0x1c0c   :  { %5051 = vmatpush.msra.mxu0 %v8595_v45 }
0x1c11   :  { %v4416_v28 = vpop.xlane.xlu2 %4415 }
0x1c12   :  { %6366 = vrcp.f32 %v4416_v28  ;;  %v4431_v55 = vand.u32 2147483648, %v4416_v28  ;;  %v4429_v56 = vand.u32 2147483647, %v4416_v28  ;;  %vm4425_vm9 = vweird.f32 %v4416_v28 }
0x1c14   :  { %v4432_v62 = vor.u32 1.1754944e-38, %v4431_v55  ;;  %vm4430_vm10 = vcmp.eq.f32.partialorder %v4429_v56, 8.507059e+37 }
0x1c18   :  { %v6367_v6 = vpop.eup %6366 }
0x1c19   :  { %v4421_v7 = vmul.f32 %v6367_v6, %v4416_v28  ;;  %v4564_v22 = vpop.xlane.xlu1 %4563  ;;  %vm4426_vm8 = vweird.f32 %v6367_v6 }
0x1c1a   :  { %6368 = vrcp.f32 %v4564_v22  ;;  %vm4427_vm2 = vmor %vm4425_vm9, %vm4426_vm8  ;;  %v4579_v30 = vand.u32 2147483648, %v4564_v22  ;;  %v4577_v10 = vand.u32 2147483647, %v4564_v22  ;;  %vm4573_vm12 = vweird.f32 %v4564_v22 }
0x1c1b   :  { %v4422_v9 = vsub.f32 1.0, %v4421_v7 }
0x1c1c   :  { %v4580_v33 = vor.u32 1.1754944e-38, %v4579_v30  ;;  %vm4578_vm14 = vcmp.eq.f32.partialorder %v4577_v10, 8.507059e+37 }
0x1c1d   :  { %v4423_v19 = vmul.f32 %v6367_v6, %v4422_v9 }
0x1c1f   :  { %v4424_v41 = vadd.f32 %v6367_v6, %v4423_v19 }
0x1c20   :  { %v6369_v21 = vpop.eup %6368 }
0x1c21   :  { %v4428_v20 = vsel %vm4427_vm2, %v6367_v6, %v4424_v41  ;;  %v4569_v59 = vmul.f32 %v6369_v21, %v4564_v22  ;;  %vm4574_vm11 = vweird.f32 %v6369_v21 }
0x1c22   :  { %v4433_v13 = vsel %vm4430_vm10, %v4432_v62, %v4428_v20  ;;  %vm4575_vm13 = vmor %vm4573_vm12, %vm4574_vm11 }
0x1c23   :  { %v4570_v26 = vsub.f32 1.0, %v4569_v59  ;;  %v4448_v29 = vmul.f32 %v8856_v57, %v4433_v13 }
0x1c25   :  { %v4571_v32 = vmul.f32 %v6369_v21, %v4570_v26  ;;  %6001 = vmatmul.msk.f32.vlgmr.msrb.gmra.mxu1 %vm888_vm1, %v4448_v29 }
0x1c26   :  { %4765 = vmatpush.msrb.mxu1 %v8816_v43 }
0x1c27   :  { %v4572_v53 = vadd.f32 %v6369_v21, %v4571_v32 }
0x1c29   :  { %v4576_v63 = vsel %vm4575_vm13, %v6369_v21, %v4572_v53 }
0x1c2a   :  { %v4581_v61 = vsel %vm4578_vm14, %v4580_v33, %v4576_v63 }
0x1c2b   :  { %v4596_v11 = vmul.f32 %v8860_v40, %v4581_v61 }
0x1c2d   :  { %6007 = vmatmul.msk.f32.vlgmr.msra.gmra.mxu1 %vm888_vm1, %v4596_v11 }
0x1c2e   :  { %6019 = vmatpush.xpose.msk.msra.mxu1 %vm888_vm1, %v8595_v45  ;;  %v4712_v57 = vpop.xlane.xlu0 %4711 }
0x1c2f   :  { %v8892_v60 = vpop.f32.mrf.mxu0  ;;  %6370 = vrcp.f32 %v4712_v57  ;;  %v4727_v8 = vand.u32 2147483648, %v4712_v57  ;;  %v4725_v40 = vand.u32 2147483647, %v4712_v57  ;;  %vm4721_vm5 = vweird.f32 %v4712_v57 }
0x1c31   :  { %v4728_v45 = vor.u32 1.1754944e-38, %v4727_v8  ;;  %vm4726_vm9 = vcmp.eq.f32.partialorder %v4725_v40, 8.507059e+37 }
0x1c35   :  { %v6371_v36 = vpop.eup %6370 }
0x1c36   :  { %v4717_v43 = vmul.f32 %v6371_v36, %v4712_v57  ;;  %vm4722_vm3 = vweird.f32 %v6371_v36 }
0x1c37   :  { %v4395_v47 = vpop.f32.mrf.mxu0  ;;  %vm4723_vm8 = vmor %vm4721_vm5, %vm4722_vm3 }
0x1c38   :  { %v4718_v16 = vsub.f32 1.0, %v4717_v43  ;;  %v4399_v12 = vsel %vm864_vm15, -1e+20, %v4395_v47 }
0x1c39   :  { %v4401_v50 = vmul.f32 0.35355338, %v4399_v12 }
0x1c3a   :  { %v4719_v27 = vmul.f32 %v6371_v36, %v4718_v16 }
0x1c3b   :  { %v4405_v52 = vsel %vm888_vm1, %v4401_v50, -inf }
0x1c3c   :  { %v4720_v54 = vadd.f32 %v6371_v36, %v4719_v27  ;;  %4406 = vmax.xlane.f32.xlu2 %v4405_v52 }
0x1c3e   :  { %v4724_v2 = vsel %vm4723_vm8, %v6371_v36, %v4720_v54 }
0x1c3f   :  { %v4729_v25 = vsel %vm4726_vm9, %v4728_v45, %v4724_v2  ;;  %v4543_v51 = vpop.f32.mrf.mxu0 }
0x1c40   :  { %v4744_v48 = vmul.f32 %v8865_v49, %v4729_v25  ;;  %v4547_v58 = vsel %vm864_vm15, -1e+20, %v4543_v51 }
0x1c41   :  { %v4549_v14 = vmul.f32 0.35355338, %v4547_v58 }
0x1c42   :  { %6013 = vmatmul.msk.f32.vlgmr.msrb.gmra.mxu1 %vm888_vm1, %v4744_v48 }
0x1c43   :  { %6023 = vmatpush.xpose.msk.msrb.mxu1 %vm888_vm1, %v8623_v31  ;;  %v4553_v46 = vsel %vm888_vm1, %v4549_v14, -inf }
0x1c44   :  { %4554 = vmax.xlane.f32.xlu1 %v4553_v46 }
0x1c81   :  { %v8907_v49 = vpop.f32.mrf.mxu1 }
0x1c84   :  { %v4691_v0 = vpop.f32.mrf.mxu0 }
0x1c85   :  { %v4695_v1 = vsel %vm864_vm15, -1e+20, %v4691_v0 }
0x1c86   :  { %v4697_v4 = vmul.f32 0.35355338, %v4695_v1 }
0x1c88   :  { %v4701_v34 = vsel %vm888_vm1, %v4697_v4, -inf }
0x1c89   :  { %4702 = vmax.xlane.f32.xlu0 %v4701_v34 }
0x1ca2   :  { %v4471_v5 = vpop.f32.mrf.mxu1 }
0x1ca3   :  { %4796 = vrot.lane.b32.xlu2 %v4471_v5, %s7492_s16 }
0x1caa   :  { %v4619_v15 = vpop.f32.mrf.mxu1 }
0x1cab   :  { %4804 = vrot.lane.b32.xlu1 %v4619_v15, %s7534_s23 }
0x1caf   :  { %v4407_v31 = vpop.xlane.xlu2 %4406 }
0x1cb0   :  { %v4409_v28 = vsub.f32 %v4401_v50, %v4407_v31 }
0x1cb2   :  { %v4412_v6 = vmul.f32 1.442695, %v4409_v28 }
0x1cb4   :  { %6372 = vpow2.f32 %v4412_v6 }
0x1cb7   :  { %v4555_v55 = vpop.xlane.xlu1 %4554 }
0x1cb8   :  { %v4557_v19 = vsub.f32 %v4549_v14, %v4555_v55 }
0x1cba   :  { %v6373_v22 = vpop.eup %6372  ;;  %v4560_v56 = vmul.f32 1.442695, %v4557_v19 }
0x1cbb   :  { %v4417_v9 = vsel %vm888_vm1, %v6373_v22, 0.0 }
0x1cbc   :  { %6374 = vpow2.f32 %v4560_v56 }
0x1cbf   :  { %v4767_v7 = vpop.f32.mrf.mxu1 }
0x1cc0   :  { %4812 = vrot.lane.b32.xlu0 %v4767_v7, %s7535_s8 }
0x1cc2   :  { %v6375_v41 = vpop.eup %6374 }
0x1cc3   :  { %v4565_v21 = vsel %vm888_vm1, %v6375_v41, 0.0 }
0x1ccc   :  { %4418 = vadd.xlane.f32.xlu2 %v4417_v9 }
0x1cea   :  { %4566 = vadd.xlane.f32.xlu0 %v4565_v21 }
0x1cfc   :  { %v4703_v62 = vpop.xlane.xlu0 %4702 }
0x1cfd   :  { %v4705_v20 = vsub.f32 %v4697_v4, %v4703_v62  ;;  %v4797_v29 = vpop.permute.xlu2 %4796 }
0x1cfe   :  { %v4818_v32 = vsel %vm888_vm1, %v8892_v60, %v4797_v29 }
0x1cff   :  { %v4708_v59 = vmul.f32 1.442695, %v4705_v20 }
0x1d01   :  { %6376 = vpow2.f32 %v4708_v59 }
0x1d07   :  { %v8914_v13 = vpop.eup %6376 }
0x1d08   :  { %v4713_v26 = vsel %vm888_vm1, %v8914_v13, 0.0 }
0x1d09   :  { %4714 = vadd.xlane.f32.xlu1 %v4713_v26 }
0x1d1d   :  { %v4805_v30 = vpop.permute.xlu1 %4804 }
0x1d1e   :  { %v4820_v10 = vsel %vm793_vm0, %v4818_v32, %v4805_v30 }
0x1d32   :  { %v4813_v53 = vpop.permute.xlu0 %4812 }
0x1d33   :  { %v4822_v33 = vsel %vm1507_vm6, %v4820_v10, %v4813_v53 }
0x1d34   :  { %6015 = vmatmul.msk.f32.vlgmr.msrb.gmra.mxu3 %vm1513_vm7, %v4822_v33 }
0x1d35   :  { %5320 = vmatpush.msrb.mxu3 %v8636_v39 }
0x1d3f   :  { %v4419_v63 = vpop.xlane.xlu2 %4418 }
0x1d40   :  { %6378 = vrcp.f32 %v4419_v63  ;;  %v4445_v36 = vand.u32 2147483648, %v4419_v63  ;;  %v4443_v47 = vand.u32 2147483647, %v4419_v63  ;;  %vm4439_vm10 = vweird.f32 %v4419_v63 }
0x1d42   :  { %v4446_v60 = vor.u32 1.1754944e-38, %v4445_v36  ;;  %vm4444_vm12 = vcmp.eq.f32.partialorder %v4443_v47, 8.507059e+37 }
0x1d46   :  { %v6379_v61 = vpop.eup %6378 }
0x1d47   :  { %v4435_v11 = vmul.f32 %v6379_v61, %v4419_v63  ;;  %vm4440_vm2 = vweird.f32 %v6379_v61 }
0x1d48   :  { %vm4441_vm11 = vmor %vm4439_vm10, %vm4440_vm2 }
0x1d49   :  { %v4436_v57 = vsub.f32 1.0, %v4435_v11 }
0x1d4b   :  { %v4437_v43 = vmul.f32 %v6379_v61, %v4436_v57 }
0x1d4d   :  { %v4438_v16 = vadd.f32 %v6379_v61, %v4437_v43 }
0x1d4f   :  { %v4442_v12 = vsel %vm4441_vm11, %v6379_v61, %v4438_v16 }
0x1d50   :  { %v4447_v8 = vsel %vm4444_vm12, %v4446_v60, %v4442_v12 }
0x1d51   :  { %v4449_v50 = vmul.f32 %v6373_v22, %v4447_v8  ;;  %v6185_v8 = vld [vmem:[#allocation49] ss:$0 sm:$0xff] }
0x1d53   :  { %6002 = vmatmul.msk.f32.vlgmr.msrb.gmra.mxu2 %vm888_vm1, %v4449_v50 }
0x1d54   :  { %4789 = vmatpush.msrb.mxu2 %v8874_v18 }
0x1d5d   :  { %v4567_v27 = vpop.xlane.xlu0 %4566 }
0x1d5e   :  { %6380 = vrcp.f32 %v4567_v27  ;;  %v4593_v45 = vand.u32 2147483648, %v4567_v27  ;;  %v4591_v25 = vand.u32 2147483647, %v4567_v27  ;;  %vm4587_vm14 = vweird.f32 %v4567_v27 }
0x1d60   :  { %v4594_v48 = vor.u32 1.1754944e-38, %v4593_v45  ;;  %vm4592_vm5 = vcmp.eq.f32.partialorder %v4591_v25, 8.507059e+37 }
0x1d64   :  { %v6381_v40 = vpop.eup %6380 }
0x1d65   :  { %v4583_v52 = vmul.f32 %v6381_v40, %v4567_v27  ;;  %vm4588_vm13 = vweird.f32 %v6381_v40 }
0x1d66   :  { %vm4589_vm3 = vmor %vm4587_vm14, %vm4588_vm13 }
0x1d67   :  { %v4584_v54 = vsub.f32 1.0, %v4583_v52 }
0x1d69   :  { %v4585_v2 = vmul.f32 %v6381_v40, %v4584_v54 }
0x1d6b   :  { %v4586_v51 = vadd.f32 %v6381_v40, %v4585_v2 }
0x1d6d   :  { %v4590_v58 = vsel %vm4589_vm3, %v6381_v40, %v4586_v51 }
0x1d6e   :  { %v4595_v14 = vsel %vm4592_vm5, %v4594_v48, %v4590_v58 }
0x1d6f   :  { %v4597_v46 = vmul.f32 %v6375_v41, %v4595_v14 }
0x1d71   :  { %6008 = vmatmul.msk.f32.vlgmr.msra.gmra.mxu2 %vm888_vm1, %v4597_v46 }
0x1d72   :  { %5028 = vmatpush.msra.mxu2 %v8574_v42  ;;  %v6183_v42 = vld [vmem:[#allocation46] ss:$0 sm:$0xff] }
0x1d7c   :  { %v4715_v18 = vpop.xlane.xlu1 %4714 }
0x1d7d   :  { %6382 = vrcp.f32 %v4715_v18  ;;  %v4741_v34 = vand.u32 2147483648, %v4715_v18  ;;  %v4739_v15 = vand.u32 2147483647, %v4715_v18  ;;  %vm4735_vm9 = vweird.f32 %v4715_v18 }
0x1d7f   :  { %v4742_v28 = vor.u32 1.1754944e-38, %v4741_v34  ;;  %vm4740_vm10 = vcmp.eq.f32.partialorder %v4739_v15, 8.507059e+37 }
0x1d83   :  { %v6383_v0 = vpop.eup %6382 }
0x1d84   :  { %v4731_v1 = vmul.f32 %v6383_v0, %v4715_v18  ;;  %vm4736_vm8 = vweird.f32 %v6383_v0 }
0x1d85   :  { %vm4737_vm2 = vmor %vm4735_vm9, %vm4736_vm8 }
0x1d86   :  { %v4732_v4 = vsub.f32 1.0, %v4731_v1 }
0x1d88   :  { %v4733_v5 = vmul.f32 %v6383_v0, %v4732_v4 }
0x1d8a   :  { %v4734_v31 = vadd.f32 %v6383_v0, %v4733_v5 }
0x1d8c   :  { %v4738_v6 = vsel %vm4737_vm2, %v6383_v0, %v4734_v31 }
0x1d8d   :  { %v4743_v7 = vsel %vm4740_vm10, %v4742_v28, %v4738_v6 }
0x1d8e   :  { %v4745_v22 = vmul.f32 %v8914_v13, %v4743_v7 }
0x1d90   :  { %6014 = vmatmul.msk.f32.vlgmr.msrb.gmra.mxu2 %vm888_vm1, %v4745_v22 }
0x1d91   :  { %6025 = vmatpush.xpose.msk.msrb.mxu2 %vm888_vm1, %v8630_v23 }
0x1db7   :  { %v4850_v9 = vpop.f32.mrf.mxu3 }
0x1db8   :  { %v4851_v55 = vadd.f32 %v6183_v42, %v4850_v9 }
0x1dba   :  { %v4856_v19 = vadd.f32 %v4851_v55, %v8790_v24 }
0x1dbc   :  { %v4858_v56 = vsel %vm1513_vm7, %v4856_v19, 0.0 }
0x1dbd   :  { %4859 = vadd.xlane.f32.xlu2 %v4858_v56 }
0x1dd6   :  { %v4495_v41 = vpop.f32.mrf.mxu2 }
0x1dd7   :  { %4798 = vrot.lane.b32.xlu0 %v4495_v41, %s7492_s16 }
0x1df4   :  { %v4643_v21 = vpop.f32.mrf.mxu2 }
0x1df5   :  { %4806 = vrot.lane.b32.xlu1 %v4643_v21, %s7534_s23 }
0x1e13   :  { %v4791_v62 = vpop.f32.mrf.mxu2 }
0x1e14   :  { %4814 = vrot.lane.b32.xlu2 %v4791_v62, %s7535_s8 }
0x1e30   :  { %v4860_v20 = vpop.xlane.xlu2 %4859 }
0x1e31   :  { %v4864_v59 = vmul.f32 %v4860_v20, %v8149_v44 }
0x1e33   :  { %v4866_v13 = vsub.f32 %v4856_v19, %v4864_v59 }
0x1e35   :  { %v4868_v26 = vmul.f32 %v4866_v13, %v4866_v13 }
0x1e37   :  { %v4870_v29 = vsel %vm1513_vm7, %v4868_v26, 0.0 }
0x1e38   :  { %4871 = vadd.xlane.f32.xlu0 %v4870_v29 }
0x1e49   :  { %v4799_v24 = vpop.permute.xlu0 %4798 }
0x1e4a   :  { %v4819_v32 = vsel %vm888_vm1, %v8907_v49, %v4799_v24  ;;  %v6184_v49 = vld [vmem:[#allocation47] ss:$0 sm:$0xff] }
0x1e67   :  { %v4807_v30 = vpop.permute.xlu1 %4806 }
0x1e68   :  { %v4821_v10 = vsel %vm793_vm0, %v4819_v32, %v4807_v30 }
0x1e6e   :  { %v4815_v53 = vpop.permute.xlu2 %4814 }
0x1e6f   :  { %v4823_v33 = vsel %vm1507_vm6, %v4821_v10, %v4815_v53 }
0x1e70   :  { %6016 = vmatmul.msk.f32.gmra.mxu3 %vm1513_vm7, %v4823_v33 }
0x1eab   :  { %v4872_v63 = vpop.xlane.xlu0 %4871 }
0x1eac   :  { %v4876_v61 = vmul.f32 %v4872_v63, %v8149_v44 }
0x1eae   :  { %v4878_v11 = vadd.f32 1e-05, %v4876_v61 }
0x1eb0   :  { %6384 = vrsqrt.f32 %v4878_v11  ;;  %vm4886_vm12 = vweird.f32 %v4878_v11 }
0x1eb6   :  { %v6385_v57 = vpop.eup %6384 }
0x1eb7   :  { %v4881_v36 = vmul.f32 %v6385_v57, %v4878_v11  ;;  %vm4887_vm11 = vweird.f32 %v6385_v57 }
0x1eb8   :  { %vm4888_vm13 = vmor %vm4886_vm12, %vm4887_vm11 }
0x1eb9   :  { %v4882_v43 = vmul.f32 %v6385_v57, %v4881_v36 }
0x1ebb   :  { %v4883_v47 = vmul.f32 0.5, %v4882_v43 }
0x1ebd   :  { %v4884_v16 = vsub.f32 1.5, %v4883_v47 }
0x1ebf   :  { %v4885_v60 = vmul.f32 %v6385_v57, %v4884_v16 }
0x1ec1   :  { %v4889_v12 = vsel %vm4888_vm13, %v6385_v57, %v4885_v60 }
0x1ec2   :  { %v4900_v50 = vmul.f32 %v4889_v12, %v4866_v13 }
0x1ec4   :  { %v4905_v27 = vmul.f32 %v6184_v49, %v4900_v50 }
0x1ec6   :  { %v8945_v40 = vadd.f32 %v6185_v8, %v4905_v27 }
0x1ec8   :  { %6018 = vmatmul.msk.f32.vlgmr.msrb.gmra.mxu0 %vm888_vm1, %v8945_v40 }
0x1ec9   :  { %5197 = vmatpush.msrb.mxu0 %v8630_v23 }
0x1ef3   :  { %v4853_v52 = vpop.f32.mrf.mxu3 }
0x1ef4   :  { %v4854_v54 = vadd.f32 %v6183_v42, %v4853_v52 }
0x1ef6   :  { %v4857_v45 = vadd.f32 %v4854_v54, %v8804_v35 }
0x1ef8   :  { %v4861_v2 = vsel %vm1513_vm7, %v4857_v45, 0.0 }
0x1ef9   :  { %4862 = vadd.xlane.f32.xlu1 %v4861_v2 }
0x1f45   :  { %v4932_v25 = vpop.f32.mrf.mxu0 }
0x1f46   :  { %v4958_v51 = vsel %vm864_vm15, -1e+20, %v4932_v25 }
0x1f47   :  { %v4960_v48 = vmul.f32 0.35355338, %v4958_v51 }
0x1f49   :  { %v4962_v58 = vsel %vm888_vm1, %v4960_v48, -inf }
0x1f4a   :  { %4963 = vmax.xlane.f32.xlu2 %v4962_v58 }
0x1f6c   :  { %v4863_v14 = vpop.xlane.xlu1 %4862 }
0x1f6d   :  { %v4865_v46 = vmul.f32 %v4863_v14, %v8149_v44 }
0x1f6f   :  { %v4867_v18 = vsub.f32 %v4857_v45, %v4865_v46 }
0x1f71   :  { %v4869_v23 = vmul.f32 %v4867_v18, %v4867_v18 }
0x1f73   :  { %v4873_v0 = vsel %vm1513_vm7, %v4869_v23, 0.0 }
0x1f74   :  { %4874 = vadd.xlane.f32.xlu0 %v4873_v0 }
0x1f88   :  { %5056 = vrot.lane.b32.xlu0 %v8945_v40, %s7532_s12 }
0x1fbd   :  { %v4964_v35 = vpop.xlane.xlu2 %4963 }
0x1fbe   :  { %v4968_v1 = vsub.f32 %v4960_v48, %v4964_v35 }
0x1fc0   :  { %v4970_v4 = vmul.f32 1.442695, %v4968_v1 }
0x1fc2   :  { %6386 = vpow2.f32 %v4970_v4 }
0x1fc8   :  { %v6387_v34 = vpop.eup %6386 }
0x1fc9   :  { %v4974_v5 = vsel %vm888_vm1, %v6387_v34, 0.0 }
0x1fca   :  { %4975 = vadd.xlane.f32.xlu1 %v4974_v5 }
0x1fe3   :  { %5202 = vrot.lane.b32.xlu1 %v8945_v40, %s7533_s22 }
0x1fe7   :  { %v4875_v15 = vpop.xlane.xlu0 %4874 }
0x1fe8   :  { %v4877_v31 = vmul.f32 %v4875_v15, %v8149_v44 }
0x1fea   :  { %v4879_v28 = vadd.f32 1e-05, %v4877_v31 }
0x1fec   :  { %6388 = vrsqrt.f32 %v4879_v28  ;;  %vm4896_vm3 = vweird.f32 %v4879_v28 }
0x1ff2   :  { %v6389_v6 = vpop.eup %6388 }
0x1ff3   :  { %v4891_v7 = vmul.f32 %v6389_v6, %v4879_v28  ;;  %vm4897_vm14 = vweird.f32 %v6389_v6 }
0x1ff4   :  { %vm4898_vm5 = vmor %vm4896_vm3, %vm4897_vm14 }
0x1ff5   :  { %v4892_v22 = vmul.f32 %v6389_v6, %v4891_v7 }
0x1ff7   :  { %v4893_v42 = vmul.f32 0.5, %v4892_v22 }
0x1ff9   :  { %v4894_v9 = vsub.f32 1.5, %v4893_v42 }
0x1ffa   :  { %v5057_v62 = vpop.permute.xlu0 %5056 }
0x1ffb   :  { %v4895_v55 = vmul.f32 %v6389_v6, %v4894_v9 }
0x1ffd   :  { %v4899_v19 = vsel %vm4898_vm5, %v6389_v6, %v4895_v55 }
0x1ffe   :  { %v4901_v56 = vmul.f32 %v4899_v19, %v4867_v18 }
0x2000   :  { %v4906_v41 = vmul.f32 %v6184_v49, %v4901_v56 }
0x2002   :  { %v8963_v21 = vadd.f32 %v6185_v8, %v4906_v41 }
0x2004   :  { %5226 = vrot.lane.b32.xlu0 %v8963_v21, %s7533_s22  ;;  %5080 = vrot.lane.b32.xlu2 %v8963_v21, %s7532_s12 }
0x2005   :  { %6020 = vmatmul.msk.f32.vlgmr.msra.gmra.mxu1 %vm888_vm1, %v8963_v21 }
0x2006   :  { %6029 = vmatpush.xpose.msk.msra.mxu1 %vm888_vm1, %v8636_v39 }
0x200c   :  { %5372 = vrot.lane.b32.xlu0 %v8963_v21, %s7531_s17  ;;  %5348 = vrot.lane.b32.xlu2 %v8945_v40, %s7531_s17 }
0x200d   :  { %6024 = vmatmul.msk.f32.vlgmr.msrb.gmra.mxu1 %vm888_vm1, %v5057_v62 }
0x200e   :  { %6035 = vmatpush.xpose.msk.msrb.mxu1 %vm888_vm1, %v8628_v38 }
0x203d   :  { %v4976_v20 = vpop.xlane.xlu1 %4975 }
0x203e   :  { %6390 = vrcp.f32 %v4976_v20  ;;  %v4991_v29 = vand.u32 2147483648, %v4976_v20  ;;  %v4989_v39 = vand.u32 2147483647, %v4976_v20  ;;  %vm4985_vm9 = vweird.f32 %v4976_v20 }
0x2040   :  { %v4992_v32 = vor.u32 1.1754944e-38, %v4991_v29  ;;  %vm4990_vm10 = vcmp.eq.f32.partialorder %v4989_v39, 8.507059e+37 }
0x2044   :  { %v6391_v59 = vpop.eup %6390 }
0x2045   :  { %v4981_v13 = vmul.f32 %v6391_v59, %v4976_v20  ;;  %vm4986_vm8 = vweird.f32 %v6391_v59 }
0x2046   :  { %vm4987_vm2 = vmor %vm4985_vm9, %vm4986_vm8 }
0x2047   :  { %v4982_v26 = vsub.f32 1.0, %v4981_v13 }
0x2049   :  { %v4983_v24 = vmul.f32 %v6391_v59, %v4982_v26 }
0x204b   :  { %v4984_v30 = vadd.f32 %v6391_v59, %v4983_v24 }
0x204d   :  { %v4988_v10 = vsel %vm4987_vm2, %v6391_v59, %v4984_v30 }
0x204e   :  { %v4993_v53 = vsel %vm4990_vm10, %v4992_v32, %v4988_v10 }
0x204f   :  { %v5008_v33 = vmul.f32 %v6387_v34, %v4993_v53 }
0x2051   :  { %6021 = vmatmul.msk.f32.vlgmr.msra.gmra.mxu2 %vm888_vm1, %v5008_v33 }
0x2052   :  { %6031 = vmatpush.xpose.msk.msra.mxu2 %vm888_vm1, %v8658_v3 }
0x2055   :  { %v5203_v63 = vpop.permute.xlu1 %5202 }
0x2056   :  { %6030 = vmatmul.msk.f32.vlgmr.msra.gmra.mxu1 %vm888_vm1, %v5203_v63 }
0x205e   :  { %v5081_v61 = vpop.permute.xlu2 %5080 }
0x205f   :  { %6026 = vmatmul.msk.f32.vlgmr.msrb.gmra.mxu2 %vm888_vm1, %v5081_v61 }
0x2060   :  { %6037 = vmatpush.xpose.msk.msrb.mxu2 %vm888_vm1, %v8663_v37 }
0x2066   :  { %v5349_v11 = vpop.permute.xlu2 %5348 }
0x2067   :  { %6036 = vmatmul.msk.f32.vlgmr.msrb.gmra.mxu1 %vm888_vm1, %v5349_v11 }
0x2076   :  { %v5227_v57 = vpop.permute.xlu0 %5226 }
0x2077   :  { %6032 = vmatmul.msk.f32.vlgmr.msra.gmra.mxu2 %vm888_vm1, %v5227_v57 }
0x207e   :  { %v5373_v36 = vpop.permute.xlu0 %5372 }
0x207f   :  { %6038 = vmatmul.msk.f32.vlgmr.msrb.gmra.mxu2 %vm888_vm1, %v5373_v36 }
0x2082   :  { %v4955_v43 = vpop.f32.mrf.mxu1 }
0x2083   :  { %v4959_v47 = vsel %vm864_vm15, -1e+20, %v4955_v43 }
0x2084   :  { %v4961_v16 = vmul.f32 0.35355338, %v4959_v47 }
0x2086   :  { %v4965_v60 = vsel %vm888_vm1, %v4961_v16, -inf }
0x2087   :  { %4966 = vmax.xlane.f32.xlu2 %v4965_v60 }
0x208a   :  { %v5077_v49 = vpop.f32.mrf.mxu1 }
0x208b   :  { %v5104_v12 = vsel %vm864_vm15, -1e+20, %v5077_v49 }
0x208c   :  { %v5106_v8 = vmul.f32 0.35355338, %v5104_v12 }
0x208e   :  { %v5108_v50 = vsel %vm888_vm1, %v5106_v8, -inf }
0x208f   :  { %5109 = vmax.xlane.f32.xlu1 %v5108_v50 }
0x20d3   :  { %v5223_v27 = vpop.f32.mrf.mxu1 }
0x20d4   :  { %v5250_v52 = vsel %vm864_vm15, -1e+20, %v5223_v27  ;;  %v8999_v2 = vpop.f32.mrf.mxu2 }
0x20d5   :  { %v5252_v54 = vmul.f32 0.35355338, %v5250_v52 }
0x20d7   :  { %v5254_v45 = vsel %vm888_vm1, %v5252_v54, -inf }
0x20d8   :  { %5255 = vmax.xlane.f32.xlu0 %v5254_v45 }
0x20e2   :  { %v5101_v25 = vpop.f32.mrf.mxu2 }
0x20e3   :  { %v5105_v51 = vsel %vm864_vm15, -1e+20, %v5101_v25 }
0x20e4   :  { %v5107_v48 = vmul.f32 0.35355338, %v5105_v51  ;;  %v5369_v58 = vpop.f32.mrf.mxu1 }
0x20e5   :  { %v5396_v14 = vsel %vm864_vm15, -1e+20, %v5369_v58 }
0x20e6   :  { %v5398_v46 = vmul.f32 0.35355338, %v5396_v14  ;;  %v5111_v18 = vsel %vm888_vm1, %v5107_v48, -inf }
0x20e7   :  { %5112 = vmax.xlane.f32.xlu1 %v5111_v18 }
0x20e8   :  { %v5400_v23 = vsel %vm888_vm1, %v5398_v46, -inf }
0x20e9   :  { %5401 = vmax.xlane.f32.xlu2 %v5400_v23 }
0x20fa   :  { %v4967_v0 = vpop.xlane.xlu2 %4966  ;;  %v5247_v35 = vpop.f32.mrf.mxu2 }
0x20fb   :  { %v4969_v1 = vsub.f32 %v4961_v16, %v4967_v0  ;;  %v5251_v4 = vsel %vm864_vm15, -1e+20, %v5247_v35 }
0x20fc   :  { %v5253_v34 = vmul.f32 0.35355338, %v5251_v4 }
0x20fd   :  { %v4972_v5 = vmul.f32 1.442695, %v4969_v1 }
0x20fe   :  { %v5257_v15 = vsel %vm888_vm1, %v5253_v34, -inf }
0x20ff   :  { %6392 = vpow2.f32 %v4972_v5  ;;  %5258 = vmax.xlane.f32.xlu0 %v5257_v15 }
0x2102   :  { %v5110_v31 = vpop.xlane.xlu1 %5109  ;;  %v5393_v28 = vpop.f32.mrf.mxu2 }
0x2103   :  { %v5114_v6 = vsub.f32 %v5106_v8, %v5110_v31  ;;  %v5397_v7 = vsel %vm864_vm15, -1e+20, %v5393_v28 }
0x2104   :  { %v5399_v22 = vmul.f32 0.35355338, %v5397_v7 }
0x2105   :  { %v9012_v42 = vpop.eup %6392  ;;  %v5116_v9 = vmul.f32 1.442695, %v5114_v6 }
0x2106   :  { %v4977_v55 = vsel %vm888_vm1, %v9012_v42, 0.0  ;;  %v5403_v19 = vsel %vm888_vm1, %v5399_v22, -inf }
0x2107   :  { %6394 = vpow2.f32 %v5116_v9  ;;  %4978 = vadd.xlane.f32.xlu0 %v4977_v55  ;;  %5404 = vmax.xlane.f32.xlu1 %v5403_v19 }
0x210d   :  { %v9017_v56 = vpop.eup %6394 }
0x210e   :  { %v5120_v41 = vsel %vm888_vm1, %v9017_v56, 0.0 }
0x210f   :  { %5121 = vadd.xlane.f32.xlu2 %v5120_v41 }
0x214b   :  { %v5256_v17 = vpop.xlane.xlu0 %5255 }
0x214c   :  { %v5260_v62 = vsub.f32 %v5252_v54, %v5256_v17 }
0x214e   :  { %v5262_v20 = vmul.f32 1.442695, %v5260_v62 }
0x2150   :  { %6396 = vpow2.f32 %v5262_v20 }
0x2156   :  { %v9021_v59 = vpop.eup %6396 }
0x2157   :  { %v5266_v13 = vsel %vm888_vm1, %v9021_v59, 0.0 }
0x2158   :  { %5267 = vadd.xlane.f32.xlu1 %v5266_v13 }
0x215a   :  { %v5113_v26 = vpop.xlane.xlu1 %5112 }
0x215b   :  { %v5115_v29 = vsub.f32 %v5107_v48, %v5113_v26 }
0x215c   :  { %v5402_v24 = vpop.xlane.xlu2 %5401 }
0x215d   :  { %v5118_v39 = vmul.f32 1.442695, %v5115_v29  ;;  %v5406_v30 = vsub.f32 %v5398_v46, %v5402_v24 }
0x215f   :  { %6398 = vpow2.f32 %v5118_v39  ;;  %v5408_v32 = vmul.f32 1.442695, %v5406_v30 }
0x2161   :  { %6400 = vpow2.f32 %v5408_v32 }
0x2165   :  { %v9025_v10 = vpop.eup %6398 }
0x2166   :  { %v5123_v53 = vsel %vm888_vm1, %v9025_v10, 0.0 }
0x2167   :  { %v9029_v33 = vpop.eup %6400  ;;  %5124 = vadd.xlane.f32.xlu2 %v5123_v53 }
0x2168   :  { %v5412_v63 = vsel %vm888_vm1, %v9029_v33, 0.0 }
0x2169   :  { %5413 = vadd.xlane.f32.xlu0 %v5412_v63 }
0x2172   :  { %v5259_v61 = vpop.xlane.xlu0 %5258 }
0x2173   :  { %v5261_v11 = vsub.f32 %v5253_v34, %v5259_v61 }
0x2175   :  { %v5264_v57 = vmul.f32 1.442695, %v5261_v11 }
0x2177   :  { %6402 = vpow2.f32 %v5264_v57 }
0x217a   :  { %v5405_v36 = vpop.xlane.xlu1 %5404  ;;  %v4979_v43 = vpop.xlane.xlu0 %4978 }
0x217b   :  { %v5407_v47 = vsub.f32 %v5399_v22, %v5405_v36  ;;  %6404 = vrcp.f32 %v4979_v43  ;;  %v5005_v54 = vand.u32 2147483648, %v4979_v43  ;;  %v5003_v25 = vand.u32 2147483647, %v4979_v43 }
0x217c   :  { %vm4999_vm11 = vweird.f32 %v4979_v43 }
0x217d   :  { %v9033_v16 = vpop.eup %6402  ;;  %v5410_v60 = vmul.f32 1.442695, %v5407_v47  ;;  %v5006_v14 = vor.u32 1.1754944e-38, %v5005_v54  ;;  %vm5004_vm13 = vcmp.eq.f32.partialorder %v5003_v25, 8.507059e+37 }
0x217e   :  { %v5269_v49 = vsel %vm888_vm1, %v9033_v16, 0.0 }
0x217f   :  { %6406 = vpow2.f32 %v5410_v60  ;;  %5270 = vadd.xlane.f32.xlu1 %v5269_v49 }
0x2181   :  { %v6405_v12 = vpop.eup %6404 }
0x2182   :  { %v4995_v8 = vmul.f32 %v6405_v12, %v4979_v43  ;;  %v5122_v50 = vpop.xlane.xlu2 %5121  ;;  %vm5000_vm15 = vweird.f32 %v6405_v12 }
0x2183   :  { %6408 = vrcp.f32 %v5122_v50  ;;  %vm5001_vm12 = vmor %vm4999_vm11, %vm5000_vm15  ;;  %v5137_v1 = vand.u32 2147483648, %v5122_v50  ;;  %v5135_v34 = vand.u32 2147483647, %v5122_v50  ;;  %vm5131_vm3 = vweird.f32 %v5122_v50 }
0x2184   :  { %v4996_v27 = vsub.f32 1.0, %v4995_v8 }
0x2185   :  { %v9037_v52 = vpop.eup %6406  ;;  %v5138_v15 = vor.u32 1.1754944e-38, %v5137_v1  ;;  %vm5136_vm8 = vcmp.eq.f32.partialorder %v5135_v34, 8.507059e+37 }
0x2186   :  { %v4997_v45 = vmul.f32 %v6405_v12, %v4996_v27  ;;  %v5415_v51 = vsel %vm888_vm1, %v9037_v52, 0.0 }
0x2187   :  { %5416 = vadd.xlane.f32.xlu2 %v5415_v51 }
0x2188   :  { %v4998_v48 = vadd.f32 %v6405_v12, %v4997_v45 }
0x2189   :  { %v6409_v58 = vpop.eup %6408 }
0x218a   :  { %v5002_v46 = vsel %vm5001_vm12, %v6405_v12, %v4998_v48  ;;  %v5127_v18 = vmul.f32 %v6409_v58, %v5122_v50  ;;  %vm5132_vm14 = vweird.f32 %v6409_v58 }
0x218b   :  { %v5007_v23 = vsel %vm5004_vm13, %v5006_v14, %v5002_v46  ;;  %vm5133_vm5 = vmor %vm5131_vm3, %vm5132_vm14 }
0x218c   :  { %v5009_v0 = vmul.f32 %v9012_v42, %v5007_v23  ;;  %v5128_v35 = vsub.f32 1.0, %v5127_v18 }
0x218e   :  { %v5129_v4 = vmul.f32 %v6409_v58, %v5128_v35  ;;  %6022 = vmatmul.msk.f32.vlgmr.msra.gmra.mxu0 %vm888_vm1, %v5009_v0 }
0x218f   :  { %5343 = vmatpush.msra.mxu0 %v8658_v3 }
0x2190   :  { %v5130_v5 = vadd.f32 %v6409_v58, %v5129_v4 }
0x2192   :  { %v5134_v31 = vsel %vm5133_vm5, %v6409_v58, %v5130_v5 }
0x2193   :  { %v5139_v28 = vsel %vm5136_vm8, %v5138_v15, %v5134_v31 }
0x2194   :  { %v5154_v6 = vmul.f32 %v9017_v56, %v5139_v28 }
0x2196   :  { %6027 = vmatmul.msk.f32.vlgmr.msra.gmra.mxu3 %vm888_vm1, %v5154_v6 }
0x2197   :  { %5466 = vmatpush.msra.mxu3 %v8628_v38 }
0x21cb   :  { %v5268_v7 = vpop.xlane.xlu1 %5267 }
0x21cc   :  { %6410 = vrcp.f32 %v5268_v7  ;;  %v5283_v55 = vand.u32 2147483648, %v5268_v7  ;;  %v5281_v19 = vand.u32 2147483647, %v5268_v7  ;;  %vm5277_vm2 = vweird.f32 %v5268_v7 }
0x21ce   :  { %v5284_v17 = vor.u32 1.1754944e-38, %v5283_v55  ;;  %vm5282_vm15 = vcmp.eq.f32.partialorder %v5281_v19, 8.507059e+37 }
0x21d2   :  { %v6411_v22 = vpop.eup %6410 }
0x21d3   :  { %v5273_v42 = vmul.f32 %v6411_v22, %v5268_v7  ;;  %vm5278_vm9 = vweird.f32 %v6411_v22 }
0x21d4   :  { %vm5279_vm10 = vmor %vm5277_vm2, %vm5278_vm9 }
0x21d5   :  { %v5274_v9 = vsub.f32 1.0, %v5273_v42 }
0x21d7   :  { %v5275_v3 = vmul.f32 %v6411_v22, %v5274_v9 }
0x21d9   :  { %v5276_v41 = vadd.f32 %v6411_v22, %v5275_v3 }
0x21da   :  { %v5125_v62 = vpop.xlane.xlu2 %5124 }
0x21db   :  { %v5280_v20 = vsel %vm5279_vm10, %v6411_v22, %v5276_v41  ;;  %6412 = vrcp.f32 %v5125_v62  ;;  %v5151_v32 = vand.u32 2147483648, %v5125_v62  ;;  %v5149_v63 = vand.u32 2147483647, %v5125_v62  ;;  %v4186_v41 = vld [vmem:[%s9247_s18 + $0x18] sm:$0xff] }
0x21dc   :  { %v5285_v56 = vsel %vm5282_vm15, %v5284_v17, %v5280_v20  ;;  %v5414_v13 = vpop.xlane.xlu0 %5413  ;;  %vm5145_vm12 = vweird.f32 %v5125_v62  ;;  %v4185_v17 = vld [vmem:[%s9247_s18 + $0x10] sm:$0xff]  ;;  %5545 = vmatpush.msra.mxu1 %v4186_v41  ;;  %v4183_v20 = vld [vmem:[%s9247_s18] sm:$0xff] }
0x21dd   :  { %v5300_v38 = vmul.f32 %v9021_v59, %v5285_v56  ;;  %6414 = vrcp.f32 %v5414_v13  ;;  %v5429_v11 = vand.u32 2147483648, %v5414_v13  ;;  %v5427_v43 = vand.u32 2147483647, %v5414_v13 }
0x21de   :  { %v5152_v59 = vor.u32 1.1754944e-38, %v5151_v32  ;;  %vm5150_vm3 = vcmp.eq.f32.partialorder %v5149_v63, 8.507059e+37  ;;  %vm5423_vm5 = vweird.f32 %v5414_v13  ;;  %5546 = vmatpush.msra.mxu1 %v4185_v17 }
0x21df   :  { %6033 = vmatmul.msk.f32.vlgmr.msrb.gmra.mxu3 %vm888_vm1, %v5300_v38  ;;  %v5430_v12 = vor.u32 1.1754944e-38, %v5429_v11  ;;  %vm5428_vm9 = vcmp.eq.f32.partialorder %v5427_v43, 8.507059e+37 }
0x21e1   :  { %v6413_v26 = vpop.eup %6412 }
0x21e2   :  { %v5141_v29 = vmul.f32 %v6413_v26, %v5125_v62  ;;  %vm5146_vm11 = vweird.f32 %v6413_v26  ;;  %v4184_v62 = vld [vmem:[%s9247_s18 + $0x8] sm:$0xff] }
0x21e3   :  { %v6415_v24 = vpop.eup %6414  ;;  %vm5147_vm14 = vmor %vm5145_vm12, %vm5146_vm11  ;;  %5547 = vmatpush.msra.mxu1 %v4184_v62 }
0x21e4   :  { %v5142_v39 = vsub.f32 1.0, %v5141_v29  ;;  %v5419_v30 = vmul.f32 %v6415_v24, %v5414_v13  ;;  %vm5424_vm13 = vweird.f32 %v6415_v24 }
0x21e5   :  { %vm5425_vm8 = vmor %vm5423_vm5, %vm5424_vm13  ;;  %5548 = vmatpush.msra.mxu1 %v4183_v20 }
0x21e6   :  { %v5143_v53 = vmul.f32 %v6413_v26, %v5142_v39  ;;  %v5420_v61 = vsub.f32 1.0, %v5419_v30 }
0x21e8   :  { %v5144_v57 = vadd.f32 %v6413_v26, %v5143_v53  ;;  %v5421_v36 = vmul.f32 %v6415_v24, %v5420_v61 }
0x21ea   :  { %v5148_v47 = vsel %vm5147_vm14, %v6413_v26, %v5144_v57  ;;  %v5422_v60 = vadd.f32 %v6415_v24, %v5421_v36 }
0x21eb   :  { %v5153_v49 = vsel %vm5150_vm3, %v5152_v59, %v5148_v47 }
0x21ec   :  { %v5155_v8 = vmul.f32 %v9025_v10, %v5153_v49  ;;  %v5426_v50 = vsel %vm5425_vm8, %v6415_v24, %v5422_v60 }
0x21ed   :  { %v5431_v27 = vsel %vm5428_vm9, %v5430_v12, %v5426_v50 }
0x21ee   :  { %v5446_v54 = vmul.f32 %v9029_v33, %v5431_v27  ;;  %6028 = vmatmul.msk.f32.vlgmr.msrb.gmra.mxu0 %vm888_vm1, %v5155_v8 }
0x21ef   :  { %5489 = vmatpush.msrb.mxu0 %v8663_v37 }
0x21f0   :  { %6039 = vmatmul.msk.f32.vlgmr.msra.gmra.mxu3 %vm888_vm1, %v5446_v54 }
0x21f2   :  { %v5271_v45 = vpop.xlane.xlu1 %5270 }
0x21f3   :  { %6416 = vrcp.f32 %v5271_v45  ;;  %v5297_v14 = vand.u32 2147483648, %v5271_v45  ;;  %v5295_v46 = vand.u32 2147483647, %v5271_v45  ;;  %vm5291_vm10 = vweird.f32 %v5271_v45 }
0x21f5   :  { %v5298_v23 = vor.u32 1.1754944e-38, %v5297_v14  ;;  %vm5296_vm11 = vcmp.eq.f32.partialorder %v5295_v46, 8.507059e+37  ;;  %v4191_v14 = vld [vmem:[%s9248_s14 + $0x8] sm:$0xff] }
0x21f9   :  { %v6417_v25 = vpop.eup %6416 }
0x21fa   :  { %v5287_v51 = vmul.f32 %v6417_v25, %v5271_v45  ;;  %v5417_v48 = vpop.xlane.xlu2 %5416  ;;  %vm5292_vm2 = vweird.f32 %v6417_v25 }
0x21fb   :  { %6418 = vrcp.f32 %v5417_v48  ;;  %vm5293_vm15 = vmor %vm5291_vm10, %vm5292_vm2  ;;  %v5443_v34 = vand.u32 2147483648, %v5417_v48  ;;  %v5441_v15 = vand.u32 2147483647, %v5417_v48  ;;  %vm5437_vm13 = vweird.f32 %v5417_v48 }
0x21fc   :  { %v5288_v58 = vsub.f32 1.0, %v5287_v51 }
0x21fd   :  { %v5444_v28 = vor.u32 1.1754944e-38, %v5443_v34  ;;  %vm5442_vm3 = vcmp.eq.f32.partialorder %v5441_v15, 8.507059e+37  ;;  %v6187_v34 = vld [vmem:[#allocation52] ss:$0 sm:$0xff]  ;;  %v6188_v15 = vld [vmem:[#allocation53] ss:$0 sm:$0xff] }
0x21fe   :  { %v5289_v10 = vmul.f32 %v6417_v25, %v5288_v58  ;;  %v4192_v58 = vld [vmem:[%s9248_s14 + $0x10] sm:$0xff] }
0x2200   :  { %v5290_v18 = vadd.f32 %v6417_v25, %v5289_v10  ;;  %v4190_v10 = vld [vmem:[%s9248_s14] sm:$0xff] }
0x2201   :  { %v6419_v33 = vpop.eup %6418 }
0x2202   :  { %v5294_v0 = vsel %vm5293_vm15, %v6417_v25, %v5290_v18  ;;  %v5433_v37 = vmul.f32 %v6419_v33, %v5417_v48  ;;  %vm5438_vm12 = vweird.f32 %v6419_v33  ;;  %v4193_v48 = vld [vmem:[%s9248_s14 + $0x18] sm:$0xff] }
0x2203   :  { %v5299_v35 = vsel %vm5296_vm11, %v5298_v23, %v5294_v0  ;;  %vm5439_vm14 = vmor %vm5437_vm13, %vm5438_vm12  ;;  %5633 = vmatpush.msra.mxu2 %v4193_v48 }
0x2204   :  { %v5301_v1 = vmul.f32 %v9033_v16, %v5299_v35  ;;  %v5434_v4 = vsub.f32 1.0, %v5433_v37 }
0x2205   :  { %5634 = vmatpush.msra.mxu2 %v4192_v58 }
0x2206   :  { %v5435_v5 = vmul.f32 %v6419_v33, %v5434_v4  ;;  %6034 = vmatmul.msk.f32.vlgmr.msra.gmra.mxu0 %vm888_vm1, %v5301_v1 }
0x2207   :  { %5635 = vmatpush.msra.mxu2 %v4191_v14 }
0x2208   :  { %v5436_v31 = vadd.f32 %v6419_v33, %v5435_v5 }
0x2209   :  { %5636 = vmatpush.msra.mxu2 %v4190_v10  ;;  %v5737_v10 = vld [vmem:[%s7836_s25 + $0x18] sm:$0xff] }
0x220a   :  { %v5440_v6 = vsel %vm5439_vm14, %v6419_v33, %v5436_v31  ;;  %5760 = vmatpush.msra.mxu0 %v5737_v10 }
0x220b   :  { %v5445_v7 = vsel %vm5442_vm3, %v5444_v28, %v5440_v6  ;;  %v5053_v9 = vpop.f32.mrf.mxu0 }
0x220c   :  { %v5447_v22 = vmul.f32 %v9037_v52, %v5445_v7  ;;  %v4202_v7 = vld [vmem:[%s9249_s3 + $0x38] sm:$0xff] }
0x220d   :  { %5663 = vmatpush.msrb.mxu3 %v4202_v7 }
0x220e   :  { %6040 = vmatmul.msk.f32.vlgmr.msrb.gmra.mxu0 %vm888_vm1, %v5447_v22  ;;  %v4201_v22 = vld [vmem:[%s9249_s3 + $0x30] sm:$0xff] }
0x220f   :  { %5664 = vmatpush.msrb.mxu3 %v4201_v22 }
0x2219   :  { %v5176_v16 = vpop.f32.mrf.mxu3 }
0x221a   :  { %5496 = vrot.lane.b32.xlu0 %v5176_v16, %s7492_s16  ;;  %v4200_v16 = vld [vmem:[%s9249_s3 + $0x28] sm:$0xff] }
0x221b   :  { %5665 = vmatpush.msrb.mxu3 %v4200_v16 }
0x2262   :  { %v5322_v42 = vpop.f32.mrf.mxu3 }
0x2263   :  { %5504 = vrot.lane.b32.xlu1 %v5322_v42, %s7534_s23 }
0x226b   :  { %v5199_v55 = vpop.f32.mrf.mxu0 }
0x226c   :  { %5498 = vrot.lane.b32.xlu0 %v5199_v55, %s7492_s16  ;;  %v4199_v55 = vld [vmem:[%s9249_s3 + $0x20] sm:$0xff] }
0x226d   :  { %5666 = vmatpush.msrb.mxu3 %v4199_v55 }
0x2273   :  { %v5468_v3 = vpop.f32.mrf.mxu3 }
0x2274   :  { %5512 = vrot.lane.b32.xlu2 %v5468_v3, %s7535_s8 }
0x2283   :  { %v5345_v19 = vpop.f32.mrf.mxu0 }
0x2284   :  { %5506 = vrot.lane.b32.xlu2 %v5345_v19, %s7534_s23  ;;  %v4198_v19 = vld [vmem:[%s9249_s3 + $0x18] sm:$0xff] }
0x2285   :  { %5667 = vmatpush.msrb.mxu3 %v4198_v19 }
0x228b   :  { %v5491_v52 = vpop.f32.mrf.mxu0 }
0x228c   :  { %5514 = vrot.lane.b32.xlu0 %v5491_v52, %s7535_s8  ;;  %v5497_v56 = vpop.permute.xlu0 %5496 }
0x228d   :  { %v5518_v13 = vsel %vm888_vm1, %v8999_v2, %v5497_v56  ;;  %v6186_v2 = vld [vmem:[#allocation50] ss:$0 sm:$0xff] }
0x22ce   :  { %v5513_v26 = vpop.permute.xlu2 %5512 }
0x22d5   :  { %v5505_v38 = vpop.permute.xlu1 %5504 }
0x22d6   :  { %v5520_v29 = vsel %vm793_vm0, %v5518_v13, %v5505_v38 }
0x22d7   :  { %v5522_v24 = vsel %vm1507_vm6, %v5520_v29, %v5513_v26 }
0x22d8   :  { %6041 = vmatmul.msk.f32.vlgmr.msra.gmra.mxu1 %vm1513_vm7, %v5522_v24  ;;  %v4197_v24 = vld [vmem:[%s9249_s3 + $0x10] sm:$0xff] }
0x22d9   :  { %5668 = vmatpush.msrb.mxu3 %v4197_v24 }
0x22de   :  { %v5499_v39 = vpop.permute.xlu0 %5498  ;;  %v5507_v30 = vpop.permute.xlu2 %5506 }
0x22df   :  { %v5519_v32 = vsel %vm888_vm1, %v5053_v9, %v5499_v39  ;;  %v4196_v39 = vld [vmem:[%s9249_s3 + $0x8] sm:$0xff] }
0x22e0   :  { %v5521_v53 = vsel %vm793_vm0, %v5519_v32, %v5507_v30  ;;  %v4195_v30 = vld [vmem:[%s9249_s3] sm:$0xff]  ;;  %5669 = vmatpush.msrb.mxu3 %v4196_v39  ;;  %v6189_v32 = vld [vmem:[#allocation55] ss:$0 sm:$0xff] }
0x22e2   :  { %5670 = vmatpush.msrb.mxu3 %v4195_v30 }
0x22fe   :  { %v5515_v63 = vpop.permute.xlu0 %5514 }
0x22ff   :  { %v5523_v61 = vsel %vm1507_vm6, %v5521_v53, %v5515_v63 }
0x2300   :  { %6042 = vmatmul.msk.f32.gmra.mxu1 %vm1513_vm7, %v5523_v61 }
0x2355   :  { %v5550_v11 = vpop.f32.mrf.mxu1 }
0x2356   :  { %v5551_v57 = vadd.f32 %v6186_v2, %v5550_v11 }
0x2358   :  { %v5556_v36 = vadd.f32 %v5551_v57, %v8945_v40 }
0x235a   :  { %v5558_v43 = vsel %vm1513_vm7, %v5556_v36, 0.0 }
0x235b   :  { %5559 = vadd.xlane.f32.xlu1 %v5558_v43 }
0x237d   :  { %v5553_v59 = vpop.f32.mrf.mxu1 }
0x237e   :  { %v5554_v47 = vadd.f32 %v6186_v2, %v5553_v59 }
0x2380   :  { %v5557_v60 = vadd.f32 %v5554_v47, %v8963_v21 }
0x2382   :  { %v5561_v49 = vsel %vm1513_vm7, %v5557_v60, 0.0 }
0x2383   :  { %5562 = vadd.xlane.f32.xlu2 %v5561_v49 }
0x23ce   :  { %v5560_v12 = vpop.xlane.xlu1 %5559 }
0x23cf   :  { %v5564_v8 = vmul.f32 %v5560_v12, %v8149_v44 }
0x23d1   :  { %v5566_v50 = vsub.f32 %v5556_v36, %v5564_v8  ;;  %v6190_v36 = vld [vmem:[#allocation56] ss:$0 sm:$0xff] }
0x23d3   :  { %v5568_v27 = vmul.f32 %v5566_v50, %v5566_v50 }
0x23d5   :  { %v5570_v40 = vsel %vm1513_vm7, %v5568_v27, 0.0 }
0x23d6   :  { %5571 = vadd.xlane.f32.xlu0 %v5570_v40 }
0x23f6   :  { %v5563_v54 = vpop.xlane.xlu2 %5562 }
0x23f7   :  { %v5565_v45 = vmul.f32 %v5563_v54, %v8149_v44 }
0x23f9   :  { %v5567_v25 = vsub.f32 %v5557_v60, %v5565_v45 }
0x23fb   :  { %v5569_v51 = vmul.f32 %v5567_v25, %v5567_v25 }
0x23fd   :  { %v5573_v21 = vsel %vm1513_vm7, %v5569_v51, 0.0 }
0x23fe   :  { %5574 = vadd.xlane.f32.xlu1 %v5573_v21 }
0x2449   :  { %v5572_v46 = vpop.xlane.xlu0 %5571 }
0x244a   :  { %v5576_v18 = vmul.f32 %v5572_v46, %v8149_v44  ;;  %v5736_v46 = vld [vmem:[%s7836_s25 + $0x10] sm:$0xff] }
0x244b   :  { %5761 = vmatpush.msra.mxu0 %v5736_v46 }
0x244c   :  { %v5578_v33 = vadd.f32 1e-05, %v5576_v18  ;;  %v5735_v18 = vld [vmem:[%s7836_s25 + $0x8] sm:$0xff] }
0x244d   :  { %5762 = vmatpush.msra.mxu0 %v5735_v18 }
0x244e   :  { %6420 = vrsqrt.f32 %v5578_v33  ;;  %vm5586_vm6 = vweird.f32 %v5578_v33 }
0x2454   :  { %v6421_v23 = vpop.eup %6420 }
0x2455   :  { %v5581_v0 = vmul.f32 %v6421_v23, %v5578_v33  ;;  %vm5587_vm1 = vweird.f32 %v6421_v23  ;;  %v5734_v33 = vld [vmem:[%s7836_s25] sm:$0xff]  ;;  %s7537_s25 = smov [#allocation62]  }
0x2456   :  { %vm5588_vm5 = vmor %vm5586_vm6, %vm5587_vm1  ;;  %5763 = vmatpush.msra.mxu0 %v5734_v33  ;;  %s5777_s2 = sshll.u32 %s7537_s25, 4  ;;  %s5778_s2 = int_to_ptr.vmem [resolvable:$true] %s5777_s2 }
0x2457   :  { %v5582_v37 = vmul.f32 %v6421_v23, %v5581_v0 }
0x2459   :  { %v5583_v35 = vmul.f32 0.5, %v5582_v37 }
0x245b   :  { %v5584_v1 = vsub.f32 1.5, %v5583_v35 }
0x245d   :  { %v5585_v4 = vmul.f32 %v6421_v23, %v5584_v1 }
0x245f   :  { %v5589_v5 = vsel %vm5588_vm5, %v6421_v23, %v5585_v4 }
0x2460   :  { %v5600_v31 = vmul.f32 %v5589_v5, %v5566_v50 }
0x2462   :  { %v5605_v28 = vmul.f32 %v6187_v34, %v5600_v31  ;;  %v6191_v31 = vld [vmem:[#allocation58] ss:$0 sm:$0xff] }
0x2464   :  { %v5610_v6 = vadd.f32 %v6188_v15, %v5605_v28 }
0x2466   :  { %6043 = vmatmul.msk.f32.vlgmr.msra.gmra.mxu2 %vm1513_vm7, %v5610_v6 }
0x2471   :  { %v5575_v42 = vpop.xlane.xlu1 %5574 }
0x2472   :  { %v5577_v9 = vmul.f32 %v5575_v42, %v8149_v44 }
0x2474   :  { %v5579_v3 = vadd.f32 1e-05, %v5577_v9 }
0x2476   :  { %6422 = vrsqrt.f32 %v5579_v3  ;;  %vm5596_vm9 = vweird.f32 %v5579_v3 }
0x247c   :  { %v6423_v52 = vpop.eup %6422 }
0x247d   :  { %v5591_v41 = vmul.f32 %v6423_v52, %v5579_v3  ;;  %vm5597_vm8 = vweird.f32 %v6423_v52 }
0x247e   :  { %vm5598_vm2 = vmor %vm5596_vm9, %vm5597_vm8 }
0x247f   :  { %v5592_v17 = vmul.f32 %v6423_v52, %v5591_v41 }
0x2481   :  { %v5593_v62 = vmul.f32 0.5, %v5592_v17 }
0x2483   :  { %v5594_v20 = vsub.f32 1.5, %v5593_v62 }
0x2485   :  { %v5595_v56 = vmul.f32 %v6423_v52, %v5594_v20 }
0x2487   :  { %v5599_v13 = vsel %vm5598_vm2, %v6423_v52, %v5595_v56 }
0x2488   :  { %v5601_v38 = vmul.f32 %v5599_v13, %v5567_v25 }
0x248a   :  { %v5606_v26 = vmul.f32 %v6187_v34, %v5601_v38 }
0x248c   :  { %v5611_v29 = vadd.f32 %v6188_v15, %v5606_v26  ;;  %v6193_v26 = vld [vmem:[#allocation61] ss:$0 sm:$0xff] }
0x248e   :  { %6044 = vmatmul.msk.f32.gmra.mxu2 %vm1513_vm7, %v5611_v29 }
0x24e9   :  { %v5638_v53 = vpop.f32.mrf.mxu2 }
0x24ea   :  { %v5639_v63 = vadd.f32 %v6189_v32, %v5638_v53 }
0x24ec   :  { %v5644_v61 = vmax.f32 %v5639_v63, 0.0 }
0x24ee   :  { %6045 = vmatmul.msk.f32.vlgmr.msrb.gmra.mxu3 %vm1643_vm4, %v5644_v61 }
0x2511   :  { %v5641_v2 = vpop.f32.mrf.mxu2 }
0x2512   :  { %v5642_v11 = vadd.f32 %v6189_v32, %v5641_v2 }
0x2514   :  { %v5645_v57 = vmax.f32 %v5642_v11, 0.0 }
0x2516   :  { %6046 = vmatmul.msk.f32.gmra.mxu3 %vm1643_vm4, %v5645_v57 }
0x2571   :  { %v5672_v43 = vpop.f32.mrf.mxu3 }
0x2572   :  { %v5673_v59 = vadd.f32 %v6190_v36, %v5672_v43 }
0x2574   :  { %v5678_v47 = vadd.f32 %v5673_v59, %v5610_v6  ;;  %v6192_v6 = vld [vmem:[#allocation59] ss:$0 sm:$0xff] }
0x2576   :  { %v5680_v60 = vsel %vm1513_vm7, %v5678_v47, 0.0 }
0x2577   :  { %5681 = vadd.xlane.f32.xlu2 %v5680_v60 }
0x2599   :  { %v5675_v49 = vpop.f32.mrf.mxu3 }
0x259a   :  { %v5676_v12 = vadd.f32 %v6190_v36, %v5675_v49 }
0x259c   :  { %v5679_v8 = vadd.f32 %v5676_v12, %v5611_v29 }
0x259e   :  { %v5683_v50 = vsel %vm1513_vm7, %v5679_v8, 0.0 }
0x259f   :  { %5684 = vadd.xlane.f32.xlu0 %v5683_v50 }
0x25ea   :  { %v5682_v27 = vpop.xlane.xlu2 %5681 }
0x25eb   :  { %v5686_v40 = vmul.f32 %v5682_v27, %v8149_v44 }
0x25ed   :  { %v5688_v54 = vsub.f32 %v5678_v47, %v5686_v40 }
0x25ef   :  { %v5690_v45 = vmul.f32 %v5688_v54, %v5688_v54 }
0x25f1   :  { %v5692_v25 = vsel %vm1513_vm7, %v5690_v45, 0.0 }
0x25f2   :  { %5693 = vadd.xlane.f32.xlu1 %v5692_v25 }
0x2612   :  { %v5685_v51 = vpop.xlane.xlu0 %5684 }
0x2613   :  { %v5687_v21 = vmul.f32 %v5685_v51, %v8149_v44 }
0x2615   :  { %v5689_v48 = vsub.f32 %v5679_v8, %v5687_v21 }
0x2617   :  { %v5691_v58 = vmul.f32 %v5689_v48, %v5689_v48 }
0x2619   :  { %v5695_v14 = vsel %vm1513_vm7, %v5691_v58, 0.0 }
0x261a   :  { %5696 = vadd.xlane.f32.xlu2 %v5695_v14 }
0x2665   :  { %v5694_v23 = vpop.xlane.xlu1 %5693 }
0x2666   :  { %v5698_v0 = vmul.f32 %v5694_v23, %v8149_v44 }
0x2668   :  { %v5700_v37 = vadd.f32 1e-05, %v5698_v0 }
0x266a   :  { %6424 = vrsqrt.f32 %v5700_v37  ;;  %vm5708_vm10 = vweird.f32 %v5700_v37 }
0x2670   :  { %v6425_v35 = vpop.eup %6424 }
0x2671   :  { %v5703_v1 = vmul.f32 %v6425_v35, %v5700_v37  ;;  %vm5709_vm4 = vweird.f32 %v6425_v35 }
0x2672   :  { %vm5710_vm15 = vmor %vm5708_vm10, %vm5709_vm4 }
0x2673   :  { %v5704_v4 = vmul.f32 %v6425_v35, %v5703_v1 }
0x2675   :  { %v5705_v34 = vmul.f32 0.5, %v5704_v4 }
0x2677   :  { %v5706_v5 = vsub.f32 1.5, %v5705_v34 }
0x2679   :  { %v5707_v15 = vmul.f32 %v6425_v35, %v5706_v5 }
0x267b   :  { %v5711_v28 = vsel %vm5710_vm15, %v6425_v35, %v5707_v15 }
0x267c   :  { %v5722_v7 = vmul.f32 %v5711_v28, %v5688_v54 }
0x267e   :  { %v5727_v22 = vmul.f32 %v6191_v31, %v5722_v7 }
0x2680   :  { %v5732_v16 = vadd.f32 %v6192_v6, %v5727_v22 }
0x2682   :  { %6047 = vmatmul.msk.f32.vlgmr.msra.gmra.mxu0 %vm1513_vm7, %v5732_v16 }
0x268d   :  { %v5697_v42 = vpop.xlane.xlu2 %5696 }
0x268e   :  { %v5699_v9 = vmul.f32 %v5697_v42, %v8149_v44 }
0x2690   :  { %v5701_v55 = vadd.f32 1e-05, %v5699_v9 }
0x2692   :  { %6426 = vrsqrt.f32 %v5701_v55  ;;  %vm5718_vm12 = vweird.f32 %v5701_v55 }
0x2698   :  { %v6427_v3 = vpop.eup %6426 }
0x2699   :  { %v5713_v19 = vmul.f32 %v6427_v3, %v5701_v55  ;;  %vm5719_vm11 = vweird.f32 %v6427_v3 }
0x269a   :  { %vm5720_vm13 = vmor %vm5718_vm12, %vm5719_vm11 }
0x269b   :  { %v5714_v52 = vmul.f32 %v6427_v3, %v5713_v19 }
0x269d   :  { %v5715_v41 = vmul.f32 0.5, %v5714_v52 }
0x269f   :  { %v5716_v17 = vsub.f32 1.5, %v5715_v41 }
0x26a1   :  { %v5717_v62 = vmul.f32 %v6427_v3, %v5716_v17 }
0x26a3   :  { %v5721_v20 = vsel %vm5720_vm13, %v6427_v3, %v5717_v62 }
0x26a4   :  { %v5723_v56 = vmul.f32 %v5721_v20, %v5689_v48 }
0x26a6   :  { %v5728_v13 = vmul.f32 %v6191_v31, %v5723_v56 }
0x26a8   :  { %v5733_v38 = vadd.f32 %v6192_v6, %v5728_v13 }
0x26aa   :  { %6048 = vmatmul.msk.f32.gmra.mxu0 %vm1513_vm7, %v5733_v38 }
0x26ff   :  { %v5765_v44 = vpop.f32.mrf.mxu0 }
0x2700   :  { %v5766_v29 = vadd.f32 %v6193_v26, %v5765_v44 }
0x2702   :  { %5771 = vst.msk [vmem:[#allocation62] sm:$0xff] %vm793_vm0, %v5766_v29 }
0x2727   :  { %v5768_v24 = vpop.f32.mrf.mxu0 }
0x2728   :  { %v5769_v39 = vadd.f32 %v6193_v26, %v5768_v24 }
0x272a   :  { %5772 = vst.msk [vmem:[#allocation62 + $0x8] sm:$0xff] %vm793_vm0, %v5769_v39 }
0x272b   :  { %7387 = shalt.err (!%p7384_p3)
}
0x272c   :  { %5785 = dma.vmem_to_hbm [thread:$0]  %s5778_s2, 256, %s5780_s29, [#allocation4], %s7491_s15, %s7491_s15, %s7492_s16  }
0x272d   :  { %7428 = dma.done.wait [#allocation4], 256  }
0x272e   :  { %7429 = vsyncadd [#allocation4], 4294967040 }
0x272f   :  { %5790 = vsyncpa [#allocation3], 1 }
0x2730   :  { %5791 = vsyncpa [#allocation6], 1 }
0x2731   :  { %5792 = vsyncpa [#allocation9], 1 }
0x2732   :  { %5793 = vsyncpa [#allocation12], 1 }
0x2733   :  { %5794 = vsyncpa [#allocation15], 1 }
0x2734   :  { %5795 = vsyncpa [#allocation18], 1 }
0x2735   :  { %5796 = vsyncpa [#allocation21], 1 }
0x2736   :  { %5797 = vsyncpa [#allocation24], 1 }
0x2737   :  { %5798 = vsyncpa [#allocation27], 1 }
0x2738   :  { %5799 = vsyncpa [#allocation30], 1 }
0x2739   :  { %5800 = vsyncpa [#allocation33], 1 }
0x273a   :  { %5801 = vsyncpa [#allocation36], 1 }
0x273b   :  { %5802 = vsyncpa [#allocation39], 1 }
0x273c   :  { %5803 = vsyncpa [#allocation42], 1 }
0x273d   :  { %5804 = vsyncpa [#allocation45], 1 }
0x273e   :  { %5805 = vsyncpa [#allocation48], 1 }
0x273f   :  { %5806 = vsyncpa [#allocation51], 1 }
0x2740   :  { %5807 = vsyncpa [#allocation54], 1 }
0x2741   :  { %5808 = vsyncpa [#allocation57], 1 }
0x2742   :  { %5809 = vsyncpa [#allocation60], 1 }
0x2743   :  { %5810 = vsyncpa [#allocation4], 1 }

</bundles_post_ra>
